<compile_context>
chip_gen: v5e
topology: v5e:2x2
jax: 0.10.0
libtpu: 0.0.40
codegen_flags: <defaults>
</compile_context>

<pallas_src>
import functools
import math

import jax
import jax.numpy as jnp
from jax.experimental import pallas as pl
from jax.experimental.pallas import tpu as pltpu

_SQRT_2_OVER_PI = math.sqrt(2.0 / math.pi)
_EPS = 1e-6


def _pick_n_tile(n):
    for t in (512, 256, 128):
        if n % t == 0:
            return t
    return n


def _pick_seq_tile(s):
    for t in (512, 256, 128, 64, 32, 16, 8):
        if t <= s and s % t == 0:
            return t
    return s  # full extent is always a legal block


def _layer_norm_f32(x):
    mu = jnp.mean(x, axis=-1, keepdims=True)
    xc = x - mu
    var = jnp.mean(xc * xc, axis=-1, keepdims=True)
    return xc * jax.lax.rsqrt(var + _EPS)


# ------------------------------------------------- 1. merged modulation linear ----
def _silu_linear_kernel(x_ref, w_ref, b_ref, o_ref):
    x = x_ref[...].astype(jnp.float32)
    x = x * jax.nn.sigmoid(x)                       # SiLU over (B, D) rows (tiny)
    y = jnp.dot(x.astype(w_ref.dtype), w_ref[...],
                preferred_element_type=jnp.float32)
    o_ref[...] = (y + b_ref[...].astype(jnp.float32)).astype(o_ref.dtype)


def modulation_linear(temb, w, b):
    """silu(temb) @ w + b with temb:(B,D), w:(D,N), b:(1,N). Weight-DMA bound."""
    B, D = temb.shape
    _, N = w.shape
    tn = _pick_n_tile(N)
    cost = pl.CostEstimate(
        flops=2 * B * D * N,
        transcendentals=B * D * (N // tn),
        bytes_accessed=temb.nbytes + w.nbytes + b.nbytes
        + B * N * jnp.dtype(temb.dtype).itemsize)
    return pl.pallas_call(
        _silu_linear_kernel,
        out_shape=jax.ShapeDtypeStruct((B, N), temb.dtype),
        grid=(N // tn,),
        in_specs=[pl.BlockSpec((B, D), lambda j: (0, 0)),
                  pl.BlockSpec((D, tn), lambda j: (0, j)),
                  pl.BlockSpec((1, tn), lambda j: (0, j))],
        out_specs=pl.BlockSpec((B, tn), lambda j: (0, j)),
        compiler_params=pltpu.CompilerParams(dimension_semantics=("parallel",)),
        cost_estimate=cost,
    )(temb, w, b)


# --------------------------------------------- 2. LayerNorm+modulate -> qkv proj ----
def _norm_mod_matmul_kernel(x_ref, scale_ref, shift_ref, w_ref, b_ref, o_ref, n_sc):
    j = pl.program_id(2)

    @pl.when(j == 0)
    def _():
        x = x_ref[0].astype(jnp.float32)
        scale = scale_ref[0].astype(jnp.float32)
        shift = shift_ref[0].astype(jnp.float32)
        n = _layer_norm_f32(x) * (1.0 + scale) + shift
        n_sc[...] = n.astype(n_sc.dtype)            # cast once, reused across N tiles

    y = jnp.dot(n_sc[...], w_ref[...], preferred_element_type=jnp.float32)
    o_ref[0] = (y + b_ref[...].astype(jnp.float32)).astype(o_ref.dtype)


def norm_mod_qkv(x, scale, shift, w, b):
    """(LN(x)*(1+scale)+shift) @ w + b with x:(B,S,D), scale/shift:(B,1,D)."""
    B, S, D = x.shape
    Kw, N = w.shape
    assert Kw == D and b.shape == (1, N)
    ts = _pick_seq_tile(S)
    tn = _pick_n_tile(N)
    M = B * S
    cost = pl.CostEstimate(
        flops=2 * M * D * N + 10 * M * D,
        transcendentals=M,
        bytes_accessed=x.nbytes + w.nbytes + b.nbytes
        + M * N * jnp.dtype(x.dtype).itemsize)
    return pl.pallas_call(
        _norm_mod_matmul_kernel,
        out_shape=jax.ShapeDtypeStruct((B, S, N), x.dtype),
        grid=(B, S // ts, N // tn),
        in_specs=[
            pl.BlockSpec((1, ts, D), lambda bb, i, j: (bb, i, 0)),
            pl.BlockSpec((1, 1, D), lambda bb, i, j: (bb, 0, 0)),
            pl.BlockSpec((1, 1, D), lambda bb, i, j: (bb, 0, 0)),
            pl.BlockSpec((D, tn), lambda bb, i, j: (0, j)),
            pl.BlockSpec((1, tn), lambda bb, i, j: (0, j)),
        ],
        out_specs=pl.BlockSpec((1, ts, tn), lambda bb, i, j: (bb, i, j)),
        scratch_shapes=[pltpu.VMEM((ts, D), w.dtype)],
        compiler_params=pltpu.CompilerParams(
            dimension_semantics=("parallel", "parallel", "arbitrary")),
        cost_estimate=cost,
    )(x, scale, shift, w, b)


# --------------------------------------------------------- 3. flash attention ----
def _flash_attn_kernel(q_ref, k_ref, v_ref, o_ref, m_sc, l_sc, acc_sc, *, scale):
    kv = pl.program_id(3)

    @pl.when(kv == 0)
    def _():
        m_sc[...] = jnp.full(m_sc.shape, -jnp.inf, dtype=m_sc.dtype)
        l_sc[...] = jnp.zeros_like(l_sc)
        acc_sc[...] = jnp.zeros_like(acc_sc)

    q = q_ref[0].astype(jnp.float32) * scale        # 1/sqrt(Dh) folded into Q
    k = k_ref[0].astype(jnp.float32)
    v = v_ref[0]
    s = jax.lax.dot_general(q, k, (((1,), (1,)), ((), ())),
                            preferred_element_type=jnp.float32)      # (tq, tkv)
    m_prev = m_sc[...]
    m_new = jnp.maximum(m_prev, jnp.max(s, axis=-1, keepdims=True))
    alpha = jnp.exp(m_prev - m_new)
    p = jnp.exp(s - m_new)
    l_sc[...] = alpha * l_sc[...] + jnp.sum(p, axis=-1, keepdims=True)
    acc_sc[...] = alpha * acc_sc[...] + jnp.dot(p.astype(v.dtype), v,
                                                preferred_element_type=jnp.float32)
    m_sc[...] = m_new

    @pl.when(kv == pl.num_programs(3) - 1)
    def _():
        # Normalize once per row via EUP reciprocal (no SxS divide).
        o_ref[0] = (acc_sc[...] * pl.reciprocal(l_sc[...], approx=True)
                    ).astype(o_ref.dtype)


def joint_attention(qkv, num_heads, head_dim):
    """qkv: (B, S, 3*D) packed as [Q heads | K heads | V heads], D = H*Dh."""
    B, S, three_d = qkv.shape
    H, Dh = num_heads, head_dim
    D = H * Dh
    assert three_d == 3 * D
    tq = _pick_seq_tile(S)
    tkv = _pick_seq_tile(S)
    scale = 1.0 / math.sqrt(Dh)
    cost = pl.CostEstimate(
        flops=4 * B * H * S * S * Dh,
        transcendentals=B * H * S * S,
        bytes_accessed=qkv.nbytes + B * S * D * jnp.dtype(qkv.dtype).itemsize)
    # TODO(synk): for real SD3 (Dh=64) batch >=2 heads per block so the output lane
    # dim is a 128-multiple (unmasked stores) and the QK contraction fills the MXU.
    return pl.pallas_call(
        functools.partial(_flash_attn_kernel, scale=scale),
        out_shape=jax.ShapeDtypeStruct((B, S, D), qkv.dtype),
        grid=(B, H, S // tq, S // tkv),
        in_specs=[
            pl.BlockSpec((1, tq, Dh), lambda b, h, i, k: (b, i, h)),          # Q
            pl.BlockSpec((1, tkv, Dh), lambda b, h, i, k: (b, k, H + h)),     # K
            pl.BlockSpec((1, tkv, Dh), lambda b, h, i, k: (b, k, 2 * H + h)), # V
        ],
        out_specs=pl.BlockSpec((1, tq, Dh), lambda b, h, i, k: (b, i, h)),
        scratch_shapes=[pltpu.VMEM((tq, 1), jnp.float32),
                        pltpu.VMEM((tq, 1), jnp.float32),
                        pltpu.VMEM((tq, Dh), jnp.float32)],
        compiler_params=pltpu.CompilerParams(
            dimension_semantics=("parallel", "parallel", "parallel", "arbitrary")),
        cost_estimate=cost,
    )(qkv, qkv, qkv)


# ------------------------------------------ 4. out projection + gated residual ----
def _out_proj_residual_kernel(attn_ref, w_ref, b_ref, x_ref, gate_ref, o_ref):
    a = attn_ref[0].astype(w_ref.dtype)
    y = jnp.dot(a, w_ref[...], preferred_element_type=jnp.float32)
    y = y + b_ref[...].astype(jnp.float32)
    x = x_ref[0].astype(jnp.float32)
    g = gate_ref[0].astype(jnp.float32)
    o_ref[0] = (x + g * y).astype(o_ref.dtype)


def out_proj_residual(attn, w, b, x, gate):
    """x + gate * (attn @ w + b) with attn/x:(B,S,D), gate:(B,1,D)."""
    B, S, D = x.shape
    _, N = w.shape
    ts = _pick_seq_tile(S)
    tn = _pick_n_tile(N)
    M = B * S
    cost = pl.CostEstimate(
        flops=2 * M * D * N,
        transcendentals=0,
        bytes_accessed=attn.nbytes + w.nbytes + x.nbytes
        + M * N * jnp.dtype(x.dtype).itemsize)
    return pl.pallas_call(
        _out_proj_residual_kernel,
        out_shape=jax.ShapeDtypeStruct((B, S, N), x.dtype),
        grid=(B, S // ts, N // tn),
        in_specs=[
            pl.BlockSpec((1, ts, D), lambda bb, i, j: (bb, i, 0)),
            pl.BlockSpec((D, tn), lambda bb, i, j: (0, j)),
            pl.BlockSpec((1, tn), lambda bb, i, j: (0, j)),
            pl.BlockSpec((1, ts, tn), lambda bb, i, j: (bb, i, j)),
            pl.BlockSpec((1, 1, tn), lambda bb, i, j: (bb, 0, j)),
        ],
        out_specs=pl.BlockSpec((1, ts, tn), lambda bb, i, j: (bb, i, j)),
        compiler_params=pltpu.CompilerParams(
            dimension_semantics=("parallel", "parallel", "parallel")),
        cost_estimate=cost,
    )(attn, w, b, x, gate)


# ------------------------------ 5. FFN with LN+mod prologue and gated-res epilogue ----
def _ffn_kernel(x_ref, scale_ref, shift_ref, gate_ref, w1_ref, b1_ref, w2_ref, b2_ref,
                o_ref, n_sc, acc_sc):
    k = pl.program_id(2)

    @pl.when(k == 0)
    def _():
        x = x_ref[0].astype(jnp.float32)
        n = (_layer_norm_f32(x) * (1.0 + scale_ref[0].astype(jnp.float32))
             + shift_ref[0].astype(jnp.float32))
        n_sc[...] = n.astype(n_sc.dtype)
        acc_sc[...] = jnp.zeros_like(acc_sc)

    h = jnp.dot(n_sc[...], w1_ref[...], preferred_element_type=jnp.float32)
    h = h + b1_ref[...].astype(jnp.float32)
    # GELU (tanh approximation), f32 on EUP/VPU.
    h = 0.5 * h * (1.0 + jnp.tanh(_SQRT_2_OVER_PI * (h + 0.044715 * h * h * h)))
    acc_sc[...] += jnp.dot(h.astype(w2_ref.dtype), w2_ref[...],
                           preferred_element_type=jnp.float32)

    @pl.when(k == pl.num_programs(2) - 1)
    def _():
        y = acc_sc[...] + b2_ref[...].astype(jnp.float32)
        o_ref[0] = (x_ref[0].astype(jnp.float32)
                    + gate_ref[0].astype(jnp.float32) * y).astype(o_ref.dtype)


def ffn_residual(x, scale, shift, gate, w1, b1, w2, b2):
    """x + gate * (GELU((LN(x)*(1+scale)+shift) @ w1 + b1) @ w2 + b2)."""
    B, S, D = x.shape
    _, Hd = w1.shape
    assert w2.shape == (Hd, D) and b1.shape == (1, Hd) and b2.shape == (1, D)
    ts = _pick_seq_tile(S)
    th = _pick_n_tile(Hd)
    M = B * S
    cost = pl.CostEstimate(
        flops=4 * M * D * Hd,
        transcendentals=2 * M * Hd,
        bytes_accessed=x.nbytes + w1.nbytes + b1.nbytes + w2.nbytes + b2.nbytes
        + M * D * jnp.dtype(x.dtype).itemsize)
    return pl.pallas_call(
        _ffn_kernel,
        out_shape=jax.ShapeDtypeStruct((B, S, D), x.dtype),
        grid=(B, S // ts, Hd // th),
        in_specs=[
            pl.BlockSpec((1, ts, D), lambda bb, i, k: (bb, i, 0)),
            pl.BlockSpec((1, 1, D), lambda bb, i, k: (bb, 0, 0)),
            pl.BlockSpec((1, 1, D), lambda bb, i, k: (bb, 0, 0)),
            pl.BlockSpec((1, 1, D), lambda bb, i, k: (bb, 0, 0)),
            pl.BlockSpec((D, th), lambda bb, i, k: (0, k)),
            pl.BlockSpec((1, th), lambda bb, i, k: (0, k)),
            pl.BlockSpec((th, D), lambda bb, i, k: (k, 0)),
            pl.BlockSpec((1, D), lambda bb, i, k: (0, 0)),
        ],
        out_specs=pl.BlockSpec((1, ts, D), lambda bb, i, k: (bb, i, 0)),
        scratch_shapes=[pltpu.VMEM((ts, D), w1.dtype),
                        pltpu.VMEM((ts, D), jnp.float32)],
        compiler_params=pltpu.CompilerParams(
            dimension_semantics=("parallel", "parallel", "arbitrary")),
        cost_estimate=cost,
    )(x, scale, shift, gate, w1, b1, w2, b2)


# ------------------------------------------------------- full block forward ----
def joint_transformer_block(x_a, x_b, temb, params, *, num_heads):
    B, Sa, D = x_a.shape
    _, Sb, _ = x_b.shape
    head_dim = D // num_heads
    p = params

    # Merged AdaLayerNorm modulation matmul (norm1_a & norm1_b weights concatenated).
    mod = modulation_linear(temb, p["norm1_w"], p["norm1_b"])      # (B, 12*D)

    def chunk6(m):  # shift_msa, scale_msa, gate_msa, shift_mlp, scale_mlp, gate_mlp
        return tuple(m[:, i * D:(i + 1) * D].reshape(B, 1, D) for i in range(6))

    (shift_msa_a, scale_msa_a, gate_msa_a,
     shift_mlp_a, scale_mlp_a, gate_mlp_a) = chunk6(mod[:, :6 * D])
    (shift_msa_b, scale_msa_b, gate_msa_b,
     shift_mlp_b, scale_mlp_b, gate_mlp_b) = chunk6(mod[:, 6 * D:])

    # LayerNorm+modulate fused into the qkv projection prologue (no HBM round trip).
    qkv_a = norm_mod_qkv(x_a, scale_msa_a, shift_msa_a, p["a_to_qkv_w"], p["a_to_qkv_b"])
    qkv_b = norm_mod_qkv(x_b, scale_msa_b, shift_msa_b, p["b_to_qkv_w"], p["b_to_qkv_b"])
    # TODO(synk): write both projections into one aliased (B, Sa+Sb, 3D) buffer via
    # input_output_aliases to eliminate this concat's HBM round trip.
    qkv = jnp.concatenate([qkv_a, qkv_b], axis=1)

    attn = joint_attention(qkv, num_heads, head_dim)               # (B, Sa+Sb, D)

    # Output projection fused with the gate_msa residual.
    x_a = out_proj_residual(attn[:, :Sa], p["a_to_out_w"], p["a_to_out_b"], x_a, gate_msa_a)
    x_b = out_proj_residual(attn[:, Sa:], p["b_to_out_w"], p["b_to_out_b"], x_b, gate_msa_b)

    # FFN with LN+modulate prologue and gate_mlp residual epilogue fused.
    x_a = ffn_residual(x_a, scale_mlp_a, shift_mlp_a, gate_mlp_a,
                       p["ff_a_w1"], p["ff_a_b1"], p["ff_a_w2"], p["ff_a_b2"])
    x_b = ffn_residual(x_b, scale_mlp_b, shift_mlp_b, gate_mlp_b,
                       p["ff_b_w1"], p["ff_b_b1"], p["ff_b_w2"], p["ff_b_b2"])
    return x_a, x_b


# ------------------------------------------------------------- params / ref ----
def init_params(key, dim, dtype=jnp.float32):
    """Linear weights stored pre-transposed as (in, out); biases as (1, out).
    The two AdaLayerNorm modulation linears are merged along the output dim once."""
    def lin(k, n_in, n_out):
        kw, kb = jax.random.split(k)
        w = (jax.random.normal(kw, (n_in, n_out), jnp.float32) * 0.02).astype(dtype)
        b = (jax.random.normal(kb, (1, n_out), jnp.float32) * 0.02).astype(dtype)
        return w, b

    keys = jax.random.split(key, 9)
    p = {}
    p["norm1_w"], p["norm1_b"] = lin(keys[0], dim, 12 * dim)   # [norm1_a | norm1_b]
    p["a_to_qkv_w"], p["a_to_qkv_b"] = lin(keys[1], dim, 3 * dim)
    p["b_to_qkv_w"], p["b_to_qkv_b"] = lin(keys[2], dim, 3 * dim)
    p["a_to_out_w"], p["a_to_out_b"] = lin(keys[3], dim, dim)
    p["b_to_out_w"], p["b_to_out_b"] = lin(keys[4], dim, dim)
    p["ff_a_w1"], p["ff_a_b1"] = lin(keys[5], dim, 4 * dim)
    p["ff_a_w2"], p["ff_a_b2"] = lin(keys[6], 4 * dim, dim)
    p["ff_b_w1"], p["ff_b_b1"] = lin(keys[7], dim, 4 * dim)
    p["ff_b_w2"], p["ff_b_b2"] = lin(keys[8], 4 * dim, dim)
    return p


def reference(x_a, x_b, temb, params, *, num_heads):
    B, Sa, D = x_a.shape
    Sb = x_b.shape[1]
    Dh = D // num_heads
    p = params

    def layer_norm(x):
        mu = jnp.mean(x, -1, keepdims=True)
        var = jnp.mean((x - mu) ** 2, -1, keepdims=True)
        return (x - mu) / jnp.sqrt(var + _EPS)

    mod = jax.nn.silu(temb) @ p["norm1_w"] + p["norm1_b"]          # (B, 12*D)

    def chunk6(m):
        return jnp.split(m[:, None, :], 6, axis=2)

    sh_msa_a, sc_msa_a, g_msa_a, sh_mlp_a, sc_mlp_a, g_mlp_a = chunk6(mod[:, :6 * D])
    sh_msa_b, sc_msa_b, g_msa_b, sh_mlp_b, sc_mlp_b, g_mlp_b = chunk6(mod[:, 6 * D:])

    na = layer_norm(x_a) * (1 + sc_msa_a) + sh_msa_a
    nb = layer_norm(x_b) * (1 + sc_msa_b) + sh_msa_b

    qkv = jnp.concatenate([na @ p["a_to_qkv_w"] + p["a_to_qkv_b"],
                           nb @ p["b_to_qkv_w"] + p["b_to_qkv_b"]], axis=1)
    S = Sa + Sb
    qkv = qkv.reshape(B, S, 3 * num_heads, Dh).transpose(0, 2, 1, 3)
    q, k, v = jnp.split(qkv, 3, axis=1)
    s = jnp.einsum("bhqd,bhkd->bhqk", q, k) / math.sqrt(Dh)
    pr = jax.nn.softmax(s, axis=-1)
    o = jnp.einsum("bhqk,bhkd->bhqd", pr, v)
    o = o.transpose(0, 2, 1, 3).reshape(B, S, D)
    attn_a = o[:, :Sa] @ p["a_to_out_w"] + p["a_to_out_b"]
    attn_b = o[:, Sa:] @ p["b_to_out_w"] + p["b_to_out_b"]

    x_a = x_a + g_msa_a * attn_a
    n2a = layer_norm(x_a) * (1 + sc_mlp_a) + sh_mlp_a
    ha = jax.nn.gelu(n2a @ p["ff_a_w1"] + p["ff_a_b1"], approximate=True)
    x_a = x_a + g_mlp_a * (ha @ p["ff_a_w2"] + p["ff_a_b2"])

    x_b = x_b + g_msa_b * attn_b
    n2b = layer_norm(x_b) * (1 + sc_mlp_b) + sh_mlp_b
    hb = jax.nn.gelu(n2b @ p["ff_b_w1"] + p["ff_b_b1"], approximate=True)
    x_b = x_b + g_mlp_b * (hb @ p["ff_b_w2"] + p["ff_b_b2"])
    return x_a, x_b


if __name__ == "__main__":
    # Small shapes consistent with the module: dim=256, 2 heads (head_dim=128),
    # Sa=16 image tokens, Sb=8 text tokens, batch=2.  S=24 gives 3 KV tiles, so the
    # flash-attention online-softmax accumulation path is exercised.
    B, dim, num_heads = 2, 256, 2
    Sa, Sb = 16, 8

    key = jax.random.PRNGKey(0)
    k_params, k_xa, k_xb, k_t = jax.random.split(key, 4)
    params = init_params(k_params, dim)          # prepared once (merged norm1 weights)
    x_a = jax.random.normal(k_xa, (B, Sa, dim), jnp.float32)
    x_b = jax.random.normal(k_xb, (B, Sb, dim), jnp.float32)
    temb = jax.random.normal(k_t, (B, dim), jnp.float32)

    fwd = jax.jit(functools.partial(joint_transformer_block, num_heads=num_heads))
    out_a, out_b = fwd(x_a, x_b, temb, params)
    out_a, out_b = jax.block_until_ready((out_a, out_b))

    ref_a, ref_b = reference(x_a, x_b, temb, params, num_heads=num_heads)
    assert out_a.shape == (B, Sa, dim) and out_b.shape == (B, Sb, dim)
    assert jnp.allclose(out_a, ref_a, atol=2e-2, rtol=2e-2), "hidden_states_a mismatch"
    assert jnp.allclose(out_b, ref_b, atol=2e-2, rtol=2e-2), "hidden_states_b mismatch"

    print("KERNEL_OK")
</pallas_src>

<mosaic_0001>
module attributes {stable_mosaic.version = 11 : i64} {
  func.func @_silu_linear_kernel(%arg0: i32, %arg1: memref<2x256xf32, #tpu.memory_space<vmem>>, %arg2: memref<256x512xf32, #tpu.memory_space<vmem>>, %arg3: memref<1x512xf32, #tpu.memory_space<vmem>>, %arg4: memref<2x512xf32, #tpu.memory_space<vmem>>) attributes {dimension_semantics = [#tpu.dimension_semantics<parallel>], iteration_bounds = array<i64: 6>, scalar_prefetch = 0 : i64, scratch_operands = 0 : i64, tpu.core_type = #tpu.core_type<tc>, window_params = [{pipeline_mode = #tpu.pipeline_mode<synchronous>, transform_indices = @transform_0, window_bounds = array<i64: 2, 256>}, {transform_indices = @transform_1, window_bounds = array<i64: 256, 512>}, {transform_indices = @transform_2, window_bounds = array<i64: 1, 512>}, {transform_indices = @transform_3, window_bounds = array<i64: 2, 512>}]} {
    %c0 = arith.constant 0 : index
    %c0_0 = arith.constant 0 : index
    %0 = vector.load %arg1[%c0, %c0_0] : memref<2x256xf32, #tpu.memory_space<vmem>>, vector<2x256xf32>
    %1 = arith.negf %0 : vector<2x256xf32>
    %2 = math.exp %1 : vector<2x256xf32>
    %cst = arith.constant 1.000000e+00 : f32
    %3 = vector.broadcast %cst : f32 to vector<2x256xf32>
    %4 = arith.addf %3, %2 : vector<2x256xf32>
    %5 = arith.divf %3, %4 : vector<2x256xf32>
    %6 = arith.mulf %0, %5 : vector<2x256xf32>
    %c0_1 = arith.constant 0 : index
    %c0_2 = arith.constant 0 : index
    %7 = vector.load %arg2[%c0_1, %c0_2] : memref<256x512xf32, #tpu.memory_space<vmem>>, vector<256x512xf32>
    %cst_3 = arith.constant dense<0.000000e+00> : vector<2x512xf32>
    %8 = tpu.matmul %6, %7, %cst_3 {dimension_numbers = #tpu.dot_dimension_numbers<[1], [0], [0], [1], [0, 0, 1, 1], [], []>} : vector<2x256xf32>, vector<256x512xf32>, vector<2x512xf32> -> vector<2x512xf32>
    %c0_4 = arith.constant 0 : index
    %c0_5 = arith.constant 0 : index
    %9 = vector.load %arg3[%c0_4, %c0_5] : memref<1x512xf32, #tpu.memory_space<vmem>>, vector<1x512xf32>
    %10 = vector.broadcast %9 : vector<1x512xf32> to vector<2x512xf32>
    %11 = arith.addf %8, %10 : vector<2x512xf32>
    %c0_6 = arith.constant 0 : index
    %c0_7 = arith.constant 0 : index
    %12 = vector.load %arg4[%c0_6, %c0_7] : memref<2x512xf32, #tpu.memory_space<vmem>>, vector<2x512xf32>
    tpu.vector_store %arg4[%c0_6, %c0_7], %11 {strides = array<i32>} : memref<2x512xf32, #tpu.memory_space<vmem>>, vector<2x512xf32>,
    return
  }
  func.func @transform_0(%arg0: i32) -> (i32, i32) {
    %c0_i32 = arith.constant 0 : i32
    %c0_i32_0 = arith.constant 0 : i32
    %c0_i32_1 = arith.constant 0 : i32
    return %c0_i32, %c0_i32_0 : i32, i32
  }
  func.func @transform_1(%arg0: i32) -> (i32, i32) {
    %c0_i32 = arith.constant 0 : i32
    %c0_i32_0 = arith.constant 0 : i32
    return %c0_i32, %arg0 : i32, i32
  }
  func.func @transform_2(%arg0: i32) -> (i32, i32) {
    %c0_i32 = arith.constant 0 : i32
    %c0_i32_0 = arith.constant 0 : i32
    return %c0_i32, %arg0 : i32, i32
  }
  func.func @transform_3(%arg0: i32) -> (i32, i32) {
    %c0_i32 = arith.constant 0 : i32
    %c0_i32_0 = arith.constant 0 : i32
    return %c0_i32, %arg0 : i32, i32
  }
}

module attributes {stable_mosaic.version = 11 : i64} {
  func.func @_norm_mod_matmul_kernel(%arg0: i32, %arg1: i32, %arg2: i32, %arg3: memref<1x8x256xf32, #tpu.memory_space<vmem>>, %arg4: memref<1x1x256xf32, #tpu.memory_space<vmem>>, %arg5: memref<1x1x256xf32, #tpu.memory_space<vmem>>, %arg6: memref<256x256xf32, #tpu.memory_space<vmem>>, %arg7: memref<1x256xf32, #tpu.memory_space<vmem>>, %arg8: memref<1x8x256xf32, #tpu.memory_space<vmem>>, %arg9: memref<8x256xf32, #tpu.memory_space<vmem>>) attributes {dimension_semantics = [#tpu.dimension_semantics<parallel>, #tpu.dimension_semantics<parallel>, #tpu.dimension_semantics<arbitrary>], iteration_bounds = array<i64: 2, 1, 3>, scalar_prefetch = 0 : i64, scratch_operands = 1 : i64, tpu.core_type = #tpu.core_type<tc>, window_params = [{transform_indices = @transform_0, window_bounds = array<i64: 1, 8, 256>}, {transform_indices = @transform_1, window_bounds = array<i64: 1, 1, 256>}, {transform_indices = @transform_2, window_bounds = array<i64: 1, 1, 256>}, {transform_indices = @transform_3, window_bounds = array<i64: 256, 256>}, {transform_indices = @transform_4, window_bounds = array<i64: 1, 256>}, {transform_indices = @transform_5, window_bounds = array<i64: 1, 8, 256>}]} {
    %c0_i32 = arith.constant 0 : i32
    %0 = arith.cmpi eq, %arg2, %c0_i32 : i32
    %1 = arith.extui %0 : i1 to i32
    %c0_i32_0 = arith.constant 0 : i32
    %2 = arith.cmpi ne, %1, %c0_i32_0 : i32
    scf.if %2 {
      %c0_9 = arith.constant 0 : index
      %c0_10 = arith.constant 0 : index
      %c0_11 = arith.constant 0 : index
      %12 = vector.load %arg3[%c0_9, %c0_10, %c0_11] : memref<1x8x256xf32, #tpu.memory_space<vmem>>, vector<1x8x256xf32>
      %13 = vector.shape_cast %12 : vector<1x8x256xf32> to vector<8x256xf32>
      %c0_12 = arith.constant 0 : index
      %c0_13 = arith.constant 0 : index
      %c0_14 = arith.constant 0 : index
      %14 = vector.load %arg4[%c0_12, %c0_13, %c0_14] : memref<1x1x256xf32, #tpu.memory_space<vmem>>, vector<1x1x256xf32>
      %15 = vector.shape_cast %14 : vector<1x1x256xf32> to vector<1x256xf32>
      %c0_15 = arith.constant 0 : index
      %c0_16 = arith.constant 0 : index
      %c0_17 = arith.constant 0 : index
      %16 = vector.load %arg5[%c0_15, %c0_16, %c0_17] : memref<1x1x256xf32, #tpu.memory_space<vmem>>, vector<1x1x256xf32>
      %17 = vector.shape_cast %16 : vector<1x1x256xf32> to vector<1x256xf32>
      %cst_18 = arith.constant dense<0.000000e+00> : vector<8xf32>
      %18 = vector.multi_reduction <add>, %13, %cst_18 [1] : vector<8x256xf32> to vector<8xf32>
      %19 = vector.shape_cast %18 : vector<8xf32> to vector<8x1xf32>
      %cst_19 = arith.constant 2.560000e+02 : f32
      %20 = vector.broadcast %cst_19 : f32 to vector<8x1xf32>
      %21 = arith.divf %19, %20 : vector<8x1xf32>
      %22 = vector.broadcast %21 : vector<8x1xf32> to vector<8x256xf32>
      %23 = arith.subf %13, %22 : vector<8x256xf32>
      %24 = arith.mulf %23, %23 : vector<8x256xf32>
      %cst_20 = arith.constant dense<0.000000e+00> : vector<8xf32>
      %25 = vector.multi_reduction <add>, %24, %cst_20 [1] : vector<8x256xf32> to vector<8xf32>
      %26 = vector.shape_cast %25 : vector<8xf32> to vector<8x1xf32>
      %cst_21 = arith.constant 2.560000e+02 : f32
      %27 = vector.broadcast %cst_21 : f32 to vector<8x1xf32>
      %28 = arith.divf %26, %27 : vector<8x1xf32>
      %cst_22 = arith.constant 9.99999997E-7 : f32
      %29 = vector.broadcast %cst_22 : f32 to vector<8x1xf32>
      %30 = arith.addf %28, %29 : vector<8x1xf32>
      %31 = math.rsqrt %30 : vector<8x1xf32>
      %32 = vector.broadcast %31 : vector<8x1xf32> to vector<8x256xf32>
      %33 = arith.mulf %23, %32 : vector<8x256xf32>
      %cst_23 = arith.constant 1.000000e+00 : f32
      %34 = vector.broadcast %cst_23 : f32 to vector<1x256xf32>
      %35 = arith.addf %34, %15 : vector<1x256xf32>
      %36 = vector.broadcast %35 : vector<1x256xf32> to vector<8x256xf32>
      %37 = arith.mulf %33, %36 : vector<8x256xf32>
      %38 = vector.broadcast %17 : vector<1x256xf32> to vector<8x256xf32>
      %39 = arith.addf %37, %38 : vector<8x256xf32>
      %c0_24 = arith.constant 0 : index
      %c0_25 = arith.constant 0 : index
      %40 = vector.load %arg9[%c0_24, %c0_25] : memref<8x256xf32, #tpu.memory_space<vmem>>, vector<8x256xf32>
      tpu.vector_store %arg9[%c0_24, %c0_25], %39 {strides = array<i32>} : memref<8x256xf32, #tpu.memory_space<vmem>>, vector<8x256xf32>,
    } else {
    }
    %c0 = arith.constant 0 : index
    %c0_1 = arith.constant 0 : index
    %3 = vector.load %arg9[%c0, %c0_1] : memref<8x256xf32, #tpu.memory_space<vmem>>, vector<8x256xf32>
    %c0_2 = arith.constant 0 : index
    %c0_3 = arith.constant 0 : index
    %4 = vector.load %arg6[%c0_2, %c0_3] : memref<256x256xf32, #tpu.memory_space<vmem>>, vector<256x256xf32>
    %cst = arith.constant dense<0.000000e+00> : vector<8x256xf32>
    %5 = tpu.matmul %3, %4, %cst {dimension_numbers = #tpu.dot_dimension_numbers<[1], [0], [0], [1], [0, 0, 1, 1], [], []>} : vector<8x256xf32>, vector<256x256xf32>, vector<8x256xf32> -> vector<8x256xf32>
    %c0_4 = arith.constant 0 : index
    %c0_5 = arith.constant 0 : index
    %6 = vector.load %arg7[%c0_4, %c0_5] : memref<1x256xf32, #tpu.memory_space<vmem>>, vector<1x256xf32>
    %7 = vector.broadcast %6 : vector<1x256xf32> to vector<8x256xf32>
    %8 = arith.addf %5, %7 : vector<8x256xf32>
    %c0_6 = arith.constant 0 : index
    %c0_7 = arith.constant 0 : index
    %c0_8 = arith.constant 0 : index
    %9 = vector.load %arg8[%c0_6, %c0_7, %c0_8] : memref<1x8x256xf32, #tpu.memory_space<vmem>>, vector<1x8x256xf32>
    %10 = vector.shape_cast %9 : vector<1x8x256xf32> to vector<8x256xf32>
    %11 = vector.shape_cast %8 : vector<8x256xf32> to vector<1x8x256xf32>
    tpu.vector_store %arg8[%c0_6, %c0_7, %c0_8], %11 {strides = array<i32>} : memref<1x8x256xf32, #tpu.memory_space<vmem>>, vector<1x8x256xf32>,
    return
  }
  func.func @transform_0(%arg0: i32, %arg1: i32, %arg2: i32) -> (i32, i32, i32) {
    %c0_i32 = arith.constant 0 : i32
    %c0_i32_0 = arith.constant 0 : i32
    return %arg0, %arg1, %c0_i32 : i32, i32, i32
  }
  func.func @transform_1(%arg0: i32, %arg1: i32, %arg2: i32) -> (i32, i32, i32) {
    %c0_i32 = arith.constant 0 : i32
    %c0_i32_0 = arith.constant 0 : i32
    %c0_i32_1 = arith.constant 0 : i32
    return %arg0, %c0_i32, %c0_i32_0 : i32, i32, i32
  }
  func.func @transform_2(%arg0: i32, %arg1: i32, %arg2: i32) -> (i32, i32, i32) {
    %c0_i32 = arith.constant 0 : i32
    %c0_i32_0 = arith.constant 0 : i32
    %c0_i32_1 = arith.constant 0 : i32
    return %arg0, %c0_i32, %c0_i32_0 : i32, i32, i32
  }
  func.func @transform_3(%arg0: i32, %arg1: i32, %arg2: i32) -> (i32, i32) {
    %c0_i32 = arith.constant 0 : i32
    %c0_i32_0 = arith.constant 0 : i32
    return %c0_i32, %arg2 : i32, i32
  }
  func.func @transform_4(%arg0: i32, %arg1: i32, %arg2: i32) -> (i32, i32) {
    %c0_i32 = arith.constant 0 : i32
    %c0_i32_0 = arith.constant 0 : i32
    return %c0_i32, %arg2 : i32, i32
  }
  func.func @transform_5(%arg0: i32, %arg1: i32, %arg2: i32) -> (i32, i32, i32) {
    %c0_i32 = arith.constant 0 : i32
    return %arg0, %arg1, %arg2 : i32, i32, i32
  }
}

module attributes {stable_mosaic.version = 11 : i64} {
  func.func @_norm_mod_matmul_kernel(%arg0: i32, %arg1: i32, %arg2: i32, %arg3: memref<1x16x256xf32, #tpu.memory_space<vmem>>, %arg4: memref<1x1x256xf32, #tpu.memory_space<vmem>>, %arg5: memref<1x1x256xf32, #tpu.memory_space<vmem>>, %arg6: memref<256x256xf32, #tpu.memory_space<vmem>>, %arg7: memref<1x256xf32, #tpu.memory_space<vmem>>, %arg8: memref<1x16x256xf32, #tpu.memory_space<vmem>>, %arg9: memref<16x256xf32, #tpu.memory_space<vmem>>) attributes {dimension_semantics = [#tpu.dimension_semantics<parallel>, #tpu.dimension_semantics<parallel>, #tpu.dimension_semantics<arbitrary>], iteration_bounds = array<i64: 2, 1, 3>, scalar_prefetch = 0 : i64, scratch_operands = 1 : i64, tpu.core_type = #tpu.core_type<tc>, window_params = [{transform_indices = @transform_0, window_bounds = array<i64: 1, 16, 256>}, {transform_indices = @transform_1, window_bounds = array<i64: 1, 1, 256>}, {transform_indices = @transform_2, window_bounds = array<i64: 1, 1, 256>}, {transform_indices = @transform_3, window_bounds = array<i64: 256, 256>}, {transform_indices = @transform_4, window_bounds = array<i64: 1, 256>}, {transform_indices = @transform_5, window_bounds = array<i64: 1, 16, 256>}]} {
    %c0_i32 = arith.constant 0 : i32
    %0 = arith.cmpi eq, %arg2, %c0_i32 : i32
    %1 = arith.extui %0 : i1 to i32
    %c0_i32_0 = arith.constant 0 : i32
    %2 = arith.cmpi ne, %1, %c0_i32_0 : i32
    scf.if %2 {
      %c0_9 = arith.constant 0 : index
      %c0_10 = arith.constant 0 : index
      %c0_11 = arith.constant 0 : index
      %12 = vector.load %arg3[%c0_9, %c0_10, %c0_11] : memref<1x16x256xf32, #tpu.memory_space<vmem>>, vector<1x16x256xf32>
      %13 = vector.shape_cast %12 : vector<1x16x256xf32> to vector<16x256xf32>
      %c0_12 = arith.constant 0 : index
      %c0_13 = arith.constant 0 : index
      %c0_14 = arith.constant 0 : index
      %14 = vector.load %arg4[%c0_12, %c0_13, %c0_14] : memref<1x1x256xf32, #tpu.memory_space<vmem>>, vector<1x1x256xf32>
      %15 = vector.shape_cast %14 : vector<1x1x256xf32> to vector<1x256xf32>
      %c0_15 = arith.constant 0 : index
      %c0_16 = arith.constant 0 : index
      %c0_17 = arith.constant 0 : index
      %16 = vector.load %arg5[%c0_15, %c0_16, %c0_17] : memref<1x1x256xf32, #tpu.memory_space<vmem>>, vector<1x1x256xf32>
      %17 = vector.shape_cast %16 : vector<1x1x256xf32> to vector<1x256xf32>
      %cst_18 = arith.constant dense<0.000000e+00> : vector<16xf32>
      %18 = vector.multi_reduction <add>, %13, %cst_18 [1] : vector<16x256xf32> to vector<16xf32>
      %19 = vector.shape_cast %18 : vector<16xf32> to vector<16x1xf32>
      %cst_19 = arith.constant 2.560000e+02 : f32
      %20 = vector.broadcast %cst_19 : f32 to vector<16x1xf32>
      %21 = arith.divf %19, %20 : vector<16x1xf32>
      %22 = vector.broadcast %21 : vector<16x1xf32> to vector<16x256xf32>
      %23 = arith.subf %13, %22 : vector<16x256xf32>
      %24 = arith.mulf %23, %23 : vector<16x256xf32>
      %cst_20 = arith.constant dense<0.000000e+00> : vector<16xf32>
      %25 = vector.multi_reduction <add>, %24, %cst_20 [1] : vector<16x256xf32> to vector<16xf32>
      %26 = vector.shape_cast %25 : vector<16xf32> to vector<16x1xf32>
      %cst_21 = arith.constant 2.560000e+02 : f32
      %27 = vector.broadcast %cst_21 : f32 to vector<16x1xf32>
      %28 = arith.divf %26, %27 : vector<16x1xf32>
      %cst_22 = arith.constant 9.99999997E-7 : f32
      %29 = vector.broadcast %cst_22 : f32 to vector<16x1xf32>
      %30 = arith.addf %28, %29 : vector<16x1xf32>
      %31 = math.rsqrt %30 : vector<16x1xf32>
      %32 = vector.broadcast %31 : vector<16x1xf32> to vector<16x256xf32>
      %33 = arith.mulf %23, %32 : vector<16x256xf32>
      %cst_23 = arith.constant 1.000000e+00 : f32
      %34 = vector.broadcast %cst_23 : f32 to vector<1x256xf32>
      %35 = arith.addf %34, %15 : vector<1x256xf32>
      %36 = vector.broadcast %35 : vector<1x256xf32> to vector<16x256xf32>
      %37 = arith.mulf %33, %36 : vector<16x256xf32>
      %38 = vector.broadcast %17 : vector<1x256xf32> to vector<16x256xf32>
      %39 = arith.addf %37, %38 : vector<16x256xf32>
      %c0_24 = arith.constant 0 : index
      %c0_25 = arith.constant 0 : index
      %40 = vector.load %arg9[%c0_24, %c0_25] : memref<16x256xf32, #tpu.memory_space<vmem>>, vector<16x256xf32>
      tpu.vector_store %arg9[%c0_24, %c0_25], %39 {strides = array<i32>} : memref<16x256xf32, #tpu.memory_space<vmem>>, vector<16x256xf32>,
    } else {
    }
    %c0 = arith.constant 0 : index
    %c0_1 = arith.constant 0 : index
    %3 = vector.load %arg9[%c0, %c0_1] : memref<16x256xf32, #tpu.memory_space<vmem>>, vector<16x256xf32>
    %c0_2 = arith.constant 0 : index
    %c0_3 = arith.constant 0 : index
    %4 = vector.load %arg6[%c0_2, %c0_3] : memref<256x256xf32, #tpu.memory_space<vmem>>, vector<256x256xf32>
    %cst = arith.constant dense<0.000000e+00> : vector<16x256xf32>
    %5 = tpu.matmul %3, %4, %cst {dimension_numbers = #tpu.dot_dimension_numbers<[1], [0], [0], [1], [0, 0, 1, 1], [], []>} : vector<16x256xf32>, vector<256x256xf32>, vector<16x256xf32> -> vector<16x256xf32>
    %c0_4 = arith.constant 0 : index
    %c0_5 = arith.constant 0 : index
    %6 = vector.load %arg7[%c0_4, %c0_5] : memref<1x256xf32, #tpu.memory_space<vmem>>, vector<1x256xf32>
    %7 = vector.broadcast %6 : vector<1x256xf32> to vector<16x256xf32>
    %8 = arith.addf %5, %7 : vector<16x256xf32>
    %c0_6 = arith.constant 0 : index
    %c0_7 = arith.constant 0 : index
    %c0_8 = arith.constant 0 : index
    %9 = vector.load %arg8[%c0_6, %c0_7, %c0_8] : memref<1x16x256xf32, #tpu.memory_space<vmem>>, vector<1x16x256xf32>
    %10 = vector.shape_cast %9 : vector<1x16x256xf32> to vector<16x256xf32>
    %11 = vector.shape_cast %8 : vector<16x256xf32> to vector<1x16x256xf32>
    tpu.vector_store %arg8[%c0_6, %c0_7, %c0_8], %11 {strides = array<i32>} : memref<1x16x256xf32, #tpu.memory_space<vmem>>, vector<1x16x256xf32>,
    return
  }
  func.func @transform_0(%arg0: i32, %arg1: i32, %arg2: i32) -> (i32, i32, i32) {
    %c0_i32 = arith.constant 0 : i32
    %c0_i32_0 = arith.constant 0 : i32
    return %arg0, %arg1, %c0_i32 : i32, i32, i32
  }
  func.func @transform_1(%arg0: i32, %arg1: i32, %arg2: i32) -> (i32, i32, i32) {
    %c0_i32 = arith.constant 0 : i32
    %c0_i32_0 = arith.constant 0 : i32
    %c0_i32_1 = arith.constant 0 : i32
    return %arg0, %c0_i32, %c0_i32_0 : i32, i32, i32
  }
  func.func @transform_2(%arg0: i32, %arg1: i32, %arg2: i32) -> (i32, i32, i32) {
    %c0_i32 = arith.constant 0 : i32
    %c0_i32_0 = arith.constant 0 : i32
    %c0_i32_1 = arith.constant 0 : i32
    return %arg0, %c0_i32, %c0_i32_0 : i32, i32, i32
  }
  func.func @transform_3(%arg0: i32, %arg1: i32, %arg2: i32) -> (i32, i32) {
    %c0_i32 = arith.constant 0 : i32
    %c0_i32_0 = arith.constant 0 : i32
    return %c0_i32, %arg2 : i32, i32
  }
  func.func @transform_4(%arg0: i32, %arg1: i32, %arg2: i32) -> (i32, i32) {
    %c0_i32 = arith.constant 0 : i32
    %c0_i32_0 = arith.constant 0 : i32
    return %c0_i32, %arg2 : i32, i32
  }
  func.func @transform_5(%arg0: i32, %arg1: i32, %arg2: i32) -> (i32, i32, i32) {
    %c0_i32 = arith.constant 0 : i32
    return %arg0, %arg1, %arg2 : i32, i32, i32
  }
}

module attributes {stable_mosaic.version = 11 : i64} {
  func.func @_flash_attn_kernel(%arg0: i32, %arg1: i32, %arg2: i32, %arg3: i32, %arg4: memref<1x8x128xf32, #tpu.memory_space<vmem>>, %arg5: memref<1x8x128xf32, #tpu.memory_space<vmem>>, %arg6: memref<1x8x128xf32, #tpu.memory_space<vmem>>, %arg7: memref<1x8x128xf32, #tpu.memory_space<vmem>>, %arg8: memref<8x1xf32, #tpu.memory_space<vmem>>, %arg9: memref<8x1xf32, #tpu.memory_space<vmem>>, %arg10: memref<8x128xf32, #tpu.memory_space<vmem>>) attributes {dimension_semantics = [#tpu.dimension_semantics<parallel>, #tpu.dimension_semantics<parallel>, #tpu.dimension_semantics<parallel>, #tpu.dimension_semantics<arbitrary>], iteration_bounds = array<i64: 2, 2, 3, 3>, scalar_prefetch = 0 : i64, scratch_operands = 3 : i64, tpu.core_type = #tpu.core_type<tc>, window_params = [{transform_indices = @transform_0, window_bounds = array<i64: 1, 8, 128>}, {transform_indices = @transform_1, window_bounds = array<i64: 1, 8, 128>}, {transform_indices = @transform_2, window_bounds = array<i64: 1, 8, 128>}, {transform_indices = @transform_3, window_bounds = array<i64: 1, 8, 128>}]} {
    %c0_i32 = arith.constant 0 : i32
    %0 = arith.cmpi eq, %arg3, %c0_i32 : i32
    %1 = arith.extui %0 : i1 to i32
    %c0_i32_0 = arith.constant 0 : i32
    %2 = arith.cmpi ne, %1, %c0_i32_0 : i32
    scf.if %2 {
      %cst_26 = arith.constant 0xFF800000 : f32
      %37 = vector.broadcast %cst_26 : f32 to vector<8x1xf32>
      %c0_27 = arith.constant 0 : index
      %c0_28 = arith.constant 0 : index
      %38 = vector.load %arg8[%c0_27, %c0_28] : memref<8x1xf32, #tpu.memory_space<vmem>>, vector<8x1xf32>
      tpu.vector_store %arg8[%c0_27, %c0_28], %37 {strides = array<i32>} : memref<8x1xf32, #tpu.memory_space<vmem>>, vector<8x1xf32>,
      %cst_29 = arith.constant 0.000000e+00 : f32
      %39 = vector.broadcast %cst_29 : f32 to vector<8x1xf32>
      %c0_30 = arith.constant 0 : index
      %c0_31 = arith.constant 0 : index
      %40 = vector.load %arg9[%c0_30, %c0_31] : memref<8x1xf32, #tpu.memory_space<vmem>>, vector<8x1xf32>
      tpu.vector_store %arg9[%c0_30, %c0_31], %39 {strides = array<i32>} : memref<8x1xf32, #tpu.memory_space<vmem>>, vector<8x1xf32>,
      %cst_32 = arith.constant 0.000000e+00 : f32
      %41 = vector.broadcast %cst_32 : f32 to vector<8x128xf32>
      %c0_33 = arith.constant 0 : index
      %c0_34 = arith.constant 0 : index
      %42 = vector.load %arg10[%c0_33, %c0_34] : memref<8x128xf32, #tpu.memory_space<vmem>>, vector<8x128xf32>
      tpu.vector_store %arg10[%c0_33, %c0_34], %41 {strides = array<i32>} : memref<8x128xf32, #tpu.memory_space<vmem>>, vector<8x128xf32>,
    } else {
    }
    %c0 = arith.constant 0 : index
    %c0_1 = arith.constant 0 : index
    %c0_2 = arith.constant 0 : index
    %3 = vector.load %arg4[%c0, %c0_1, %c0_2] : memref<1x8x128xf32, #tpu.memory_space<vmem>>, vector<1x8x128xf32>
    %4 = vector.shape_cast %3 : vector<1x8x128xf32> to vector<8x128xf32>
    %cst = arith.constant 0.0883883461 : f32
    %5 = vector.broadcast %cst : f32 to vector<8x128xf32>
    %6 = arith.mulf %4, %5 : vector<8x128xf32>
    %c0_3 = arith.constant 0 : index
    %c0_4 = arith.constant 0 : index
    %c0_5 = arith.constant 0 : index
    %7 = vector.load %arg5[%c0_3, %c0_4, %c0_5] : memref<1x8x128xf32, #tpu.memory_space<vmem>>, vector<1x8x128xf32>
    %8 = vector.shape_cast %7 : vector<1x8x128xf32> to vector<8x128xf32>
    %c0_6 = arith.constant 0 : index
    %c0_7 = arith.constant 0 : index
    %c0_8 = arith.constant 0 : index
    %9 = vector.load %arg6[%c0_6, %c0_7, %c0_8] : memref<1x8x128xf32, #tpu.memory_space<vmem>>, vector<1x8x128xf32>
    %10 = vector.shape_cast %9 : vector<1x8x128xf32> to vector<8x128xf32>
    %cst_9 = arith.constant dense<0.000000e+00> : vector<8x8xf32>
    %11 = tpu.matmul %6, %8, %cst_9 {dimension_numbers = #tpu.dot_dimension_numbers<[1], [1], [0], [0], [0, 0, 1, 0], [], []>} : vector<8x128xf32>, vector<8x128xf32>, vector<8x8xf32> -> vector<8x8xf32>
    %c0_10 = arith.constant 0 : index
    %c0_11 = arith.constant 0 : index
    %12 = vector.load %arg8[%c0_10, %c0_11] : memref<8x1xf32, #tpu.memory_space<vmem>>, vector<8x1xf32>
    %cst_12 = arith.constant dense<0xFF800000> : vector<8xf32>
    %13 = vector.multi_reduction <maximumf>, %11, %cst_12 [1] : vector<8x8xf32> to vector<8xf32>
    %14 = vector.shape_cast %13 : vector<8xf32> to vector<8x1xf32>
    %15 = arith.maximumf %12, %14 : vector<8x1xf32>
    %16 = arith.subf %12, %15 : vector<8x1xf32>
    %17 = math.exp %16 : vector<8x1xf32>
    %18 = vector.broadcast %15 : vector<8x1xf32> to vector<8x8xf32>
    %19 = arith.subf %11, %18 : vector<8x8xf32>
    %20 = math.exp %19 : vector<8x8xf32>
    %c0_13 = arith.constant 0 : index
    %c0_14 = arith.constant 0 : index
    %21 = vector.load %arg9[%c0_13, %c0_14] : memref<8x1xf32, #tpu.memory_space<vmem>>, vector<8x1xf32>
    %22 = arith.mulf %17, %21 : vector<8x1xf32>
    %cst_15 = arith.constant dense<0.000000e+00> : vector<8xf32>
    %23 = vector.multi_reduction <add>, %20, %cst_15 [1] : vector<8x8xf32> to vector<8xf32>
    %24 = vector.shape_cast %23 : vector<8xf32> to vector<8x1xf32>
    %25 = arith.addf %22, %24 : vector<8x1xf32>
    %c0_16 = arith.constant 0 : index
    %c0_17 = arith.constant 0 : index
    %26 = vector.load %arg9[%c0_16, %c0_17] : memref<8x1xf32, #tpu.memory_space<vmem>>, vector<8x1xf32>
    tpu.vector_store %arg9[%c0_16, %c0_17], %25 {strides = array<i32>} : memref<8x1xf32, #tpu.memory_space<vmem>>, vector<8x1xf32>,
    %c0_18 = arith.constant 0 : index
    %c0_19 = arith.constant 0 : index
    %27 = vector.load %arg10[%c0_18, %c0_19] : memref<8x128xf32, #tpu.memory_space<vmem>>, vector<8x128xf32>
    %28 = vector.broadcast %17 : vector<8x1xf32> to vector<8x128xf32>
    %29 = arith.mulf %28, %27 : vector<8x128xf32>
    %cst_20 = arith.constant dense<0.000000e+00> : vector<8x128xf32>
    %30 = tpu.matmul %20, %10, %cst_20 {dimension_numbers = #tpu.dot_dimension_numbers<[1], [0], [0], [1], [0, 0, 1, 1], [], []>} : vector<8x8xf32>, vector<8x128xf32>, vector<8x128xf32> -> vector<8x128xf32>
    %31 = arith.addf %29, %30 : vector<8x128xf32>
    %c0_21 = arith.constant 0 : index
    %c0_22 = arith.constant 0 : index
    %32 = vector.load %arg10[%c0_21, %c0_22] : memref<8x128xf32, #tpu.memory_space<vmem>>, vector<8x128xf32>
    tpu.vector_store %arg10[%c0_21, %c0_22], %31 {strides = array<i32>} : memref<8x128xf32, #tpu.memory_space<vmem>>, vector<8x128xf32>,
    %c0_23 = arith.constant 0 : index
    %c0_24 = arith.constant 0 : index
    %33 = vector.load %arg8[%c0_23, %c0_24] : memref<8x1xf32, #tpu.memory_space<vmem>>, vector<8x1xf32>
    tpu.vector_store %arg8[%c0_23, %c0_24], %15 {strides = array<i32>} : memref<8x1xf32, #tpu.memory_space<vmem>>, vector<8x1xf32>,
    %c2_i32 = arith.constant 2 : i32
    %34 = arith.cmpi eq, %arg3, %c2_i32 : i32
    %35 = arith.extui %34 : i1 to i32
    %c0_i32_25 = arith.constant 0 : i32
    %36 = arith.cmpi ne, %35, %c0_i32_25 : i32
    scf.if %36 {
      %c0_26 = arith.constant 0 : index
      %c0_27 = arith.constant 0 : index
      %37 = vector.load %arg10[%c0_26, %c0_27] : memref<8x128xf32, #tpu.memory_space<vmem>>, vector<8x128xf32>
      %c0_28 = arith.constant 0 : index
      %c0_29 = arith.constant 0 : index
      %38 = vector.load %arg9[%c0_28, %c0_29] : memref<8x1xf32, #tpu.memory_space<vmem>>, vector<8x1xf32>
      %39 = tpu.reciprocal %38 {approx = true} : vector<8x1xf32> -> vector<8x1xf32>
      %40 = vector.broadcast %39 : vector<8x1xf32> to vector<8x128xf32>
      %41 = arith.mulf %37, %40 : vector<8x128xf32>
      %c0_30 = arith.constant 0 : index
      %c0_31 = arith.constant 0 : index
      %c0_32 = arith.constant 0 : index
      %42 = vector.load %arg7[%c0_30, %c0_31, %c0_32] : memref<1x8x128xf32, #tpu.memory_space<vmem>>, vector<1x8x128xf32>
      %43 = vector.shape_cast %42 : vector<1x8x128xf32> to vector<8x128xf32>
      %44 = vector.shape_cast %41 : vector<8x128xf32> to vector<1x8x128xf32>
      tpu.vector_store %arg7[%c0_30, %c0_31, %c0_32], %44 {strides = array<i32>} : memref<1x8x128xf32, #tpu.memory_space<vmem>>, vector<1x8x128xf32>,
    } else {
    }
    return
  }
  func.func @transform_0(%arg0: i32, %arg1: i32, %arg2: i32, %arg3: i32) -> (i32, i32, i32) {
    %c0_i32 = arith.constant 0 : i32
    return %arg0, %arg2, %arg1 : i32, i32, i32
  }
  func.func @transform_1(%arg0: i32, %arg1: i32, %arg2: i32, %arg3: i32) -> (i32, i32, i32) {
    %c2_i32 = arith.constant 2 : i32
    %0 = arith.addi %c2_i32, %arg1 : i32
    %c0_i32 = arith.constant 0 : i32
    return %arg0, %arg3, %0 : i32, i32, i32
  }
  func.func @transform_2(%arg0: i32, %arg1: i32, %arg2: i32, %arg3: i32) -> (i32, i32, i32) {
    %c4_i32 = arith.constant 4 : i32
    %0 = arith.addi %c4_i32, %arg1 : i32
    %c0_i32 = arith.constant 0 : i32
    return %arg0, %arg3, %0 : i32, i32, i32
  }
  func.func @transform_3(%arg0: i32, %arg1: i32, %arg2: i32, %arg3: i32) -> (i32, i32, i32) {
    %c0_i32 = arith.constant 0 : i32
    return %arg0, %arg2, %arg1 : i32, i32, i32
  }
}

module attributes {stable_mosaic.version = 11 : i64} {
  func.func @_out_proj_residual_kernel(%arg0: i32, %arg1: i32, %arg2: i32, %arg3: memref<1x16x256xf32, #tpu.memory_space<vmem>>, %arg4: memref<256x256xf32, #tpu.memory_space<vmem>>, %arg5: memref<1x256xf32, #tpu.memory_space<vmem>>, %arg6: memref<1x16x256xf32, #tpu.memory_space<vmem>>, %arg7: memref<1x1x256xf32, #tpu.memory_space<vmem>>, %arg8: memref<1x16x256xf32, #tpu.memory_space<vmem>>) attributes {dimension_semantics = [#tpu.dimension_semantics<parallel>, #tpu.dimension_semantics<parallel>, #tpu.dimension_semantics<parallel>], iteration_bounds = array<i64: 2, 1, 1>, scalar_prefetch = 0 : i64, scratch_operands = 0 : i64, tpu.core_type = #tpu.core_type<tc>, window_params = [{transform_indices = @transform_0, window_bounds = array<i64: 1, 16, 256>}, {transform_indices = @transform_1, window_bounds = array<i64: 256, 256>}, {transform_indices = @transform_2, window_bounds = array<i64: 1, 256>}, {transform_indices = @transform_3, window_bounds = array<i64: 1, 16, 256>}, {transform_indices = @transform_4, window_bounds = array<i64: 1, 1, 256>}, {transform_indices = @transform_5, window_bounds = array<i64: 1, 16, 256>}]} {
    %c0 = arith.constant 0 : index
    %c0_0 = arith.constant 0 : index
    %c0_1 = arith.constant 0 : index
    %0 = vector.load %arg3[%c0, %c0_0, %c0_1] : memref<1x16x256xf32, #tpu.memory_space<vmem>>, vector<1x16x256xf32>
    %1 = vector.shape_cast %0 : vector<1x16x256xf32> to vector<16x256xf32>
    %c0_2 = arith.constant 0 : index
    %c0_3 = arith.constant 0 : index
    %2 = vector.load %arg4[%c0_2, %c0_3] : memref<256x256xf32, #tpu.memory_space<vmem>>, vector<256x256xf32>
    %cst = arith.constant dense<0.000000e+00> : vector<16x256xf32>
    %3 = tpu.matmul %1, %2, %cst {dimension_numbers = #tpu.dot_dimension_numbers<[1], [0], [0], [1], [0, 0, 1, 1], [], []>} : vector<16x256xf32>, vector<256x256xf32>, vector<16x256xf32> -> vector<16x256xf32>
    %c0_4 = arith.constant 0 : index
    %c0_5 = arith.constant 0 : index
    %4 = vector.load %arg5[%c0_4, %c0_5] : memref<1x256xf32, #tpu.memory_space<vmem>>, vector<1x256xf32>
    %5 = vector.broadcast %4 : vector<1x256xf32> to vector<16x256xf32>
    %6 = arith.addf %3, %5 : vector<16x256xf32>
    %c0_6 = arith.constant 0 : index
    %c0_7 = arith.constant 0 : index
    %c0_8 = arith.constant 0 : index
    %7 = vector.load %arg6[%c0_6, %c0_7, %c0_8] : memref<1x16x256xf32, #tpu.memory_space<vmem>>, vector<1x16x256xf32>
    %8 = vector.shape_cast %7 : vector<1x16x256xf32> to vector<16x256xf32>
    %c0_9 = arith.constant 0 : index
    %c0_10 = arith.constant 0 : index
    %c0_11 = arith.constant 0 : index
    %9 = vector.load %arg7[%c0_9, %c0_10, %c0_11] : memref<1x1x256xf32, #tpu.memory_space<vmem>>, vector<1x1x256xf32>
    %10 = vector.shape_cast %9 : vector<1x1x256xf32> to vector<1x256xf32>
    %11 = vector.broadcast %10 : vector<1x256xf32> to vector<16x256xf32>
    %12 = arith.mulf %11, %6 : vector<16x256xf32>
    %13 = arith.addf %8, %12 : vector<16x256xf32>
    %c0_12 = arith.constant 0 : index
    %c0_13 = arith.constant 0 : index
    %c0_14 = arith.constant 0 : index
    %14 = vector.load %arg8[%c0_12, %c0_13, %c0_14] : memref<1x16x256xf32, #tpu.memory_space<vmem>>, vector<1x16x256xf32>
    %15 = vector.shape_cast %14 : vector<1x16x256xf32> to vector<16x256xf32>
    %16 = vector.shape_cast %13 : vector<16x256xf32> to vector<1x16x256xf32>
    tpu.vector_store %arg8[%c0_12, %c0_13, %c0_14], %16 {strides = array<i32>} : memref<1x16x256xf32, #tpu.memory_space<vmem>>, vector<1x16x256xf32>,
    return
  }
  func.func @transform_0(%arg0: i32, %arg1: i32, %arg2: i32) -> (i32, i32, i32) {
    %c0_i32 = arith.constant 0 : i32
    %c0_i32_0 = arith.constant 0 : i32
    return %arg0, %arg1, %c0_i32 : i32, i32, i32
  }
  func.func @transform_1(%arg0: i32, %arg1: i32, %arg2: i32) -> (i32, i32) {
    %c0_i32 = arith.constant 0 : i32
    %c0_i32_0 = arith.constant 0 : i32
    return %c0_i32, %arg2 : i32, i32
  }
  func.func @transform_2(%arg0: i32, %arg1: i32, %arg2: i32) -> (i32, i32) {
    %c0_i32 = arith.constant 0 : i32
    %c0_i32_0 = arith.constant 0 : i32
    return %c0_i32, %arg2 : i32, i32
  }
  func.func @transform_3(%arg0: i32, %arg1: i32, %arg2: i32) -> (i32, i32, i32) {
    %c0_i32 = arith.constant 0 : i32
    return %arg0, %arg1, %arg2 : i32, i32, i32
  }
  func.func @transform_4(%arg0: i32, %arg1: i32, %arg2: i32) -> (i32, i32, i32) {
    %c0_i32 = arith.constant 0 : i32
    %c0_i32_0 = arith.constant 0 : i32
    return %arg0, %c0_i32, %arg2 : i32, i32, i32
  }
  func.func @transform_5(%arg0: i32, %arg1: i32, %arg2: i32) -> (i32, i32, i32) {
    %c0_i32 = arith.constant 0 : i32
    return %arg0, %arg1, %arg2 : i32, i32, i32
  }
}

module attributes {stable_mosaic.version = 11 : i64} {
  func.func @_ffn_kernel(%arg0: i32, %arg1: i32, %arg2: i32, %arg3: memref<1x16x256xf32, #tpu.memory_space<vmem>>, %arg4: memref<1x1x256xf32, #tpu.memory_space<vmem>>, %arg5: memref<1x1x256xf32, #tpu.memory_space<vmem>>, %arg6: memref<1x1x256xf32, #tpu.memory_space<vmem>>, %arg7: memref<256x512xf32, #tpu.memory_space<vmem>>, %arg8: memref<1x512xf32, #tpu.memory_space<vmem>>, %arg9: memref<512x256xf32, #tpu.memory_space<vmem>>, %arg10: memref<1x256xf32, #tpu.memory_space<vmem>>, %arg11: memref<1x16x256xf32, #tpu.memory_space<vmem>>, %arg12: memref<16x256xf32, #tpu.memory_space<vmem>>, %arg13: memref<16x256xf32, #tpu.memory_space<vmem>>) attributes {dimension_semantics = [#tpu.dimension_semantics<parallel>, #tpu.dimension_semantics<parallel>, #tpu.dimension_semantics<arbitrary>], iteration_bounds = array<i64: 2, 1, 2>, scalar_prefetch = 0 : i64, scratch_operands = 2 : i64, tpu.core_type = #tpu.core_type<tc>, window_params = [{transform_indices = @transform_0, window_bounds = array<i64: 1, 16, 256>}, {transform_indices = @transform_1, window_bounds = array<i64: 1, 1, 256>}, {transform_indices = @transform_2, window_bounds = array<i64: 1, 1, 256>}, {transform_indices = @transform_3, window_bounds = array<i64: 1, 1, 256>}, {transform_indices = @transform_4, window_bounds = array<i64: 256, 512>}, {transform_indices = @transform_5, window_bounds = array<i64: 1, 512>}, {transform_indices = @transform_6, window_bounds = array<i64: 512, 256>}, {pipeline_mode = #tpu.pipeline_mode<synchronous>, transform_indices = @transform_7, window_bounds = array<i64: 1, 256>}, {transform_indices = @transform_8, window_bounds = array<i64: 1, 16, 256>}]} {
    %c0_i32 = arith.constant 0 : i32
    %0 = arith.cmpi eq, %arg2, %c0_i32 : i32
    %1 = arith.extui %0 : i1 to i32
    %c0_i32_0 = arith.constant 0 : i32
    %2 = arith.cmpi ne, %1, %c0_i32_0 : i32
    scf.if %2 {
      %c0_18 = arith.constant 0 : index
      %c0_19 = arith.constant 0 : index
      %c0_20 = arith.constant 0 : index
      %30 = vector.load %arg3[%c0_18, %c0_19, %c0_20] : memref<1x16x256xf32, #tpu.memory_space<vmem>>, vector<1x16x256xf32>
      %31 = vector.shape_cast %30 : vector<1x16x256xf32> to vector<16x256xf32>
      %cst_21 = arith.constant dense<0.000000e+00> : vector<16xf32>
      %32 = vector.multi_reduction <add>, %31, %cst_21 [1] : vector<16x256xf32> to vector<16xf32>
      %33 = vector.shape_cast %32 : vector<16xf32> to vector<16x1xf32>
      %cst_22 = arith.constant 2.560000e+02 : f32
      %34 = vector.broadcast %cst_22 : f32 to vector<16x1xf32>
      %35 = arith.divf %33, %34 : vector<16x1xf32>
      %36 = vector.broadcast %35 : vector<16x1xf32> to vector<16x256xf32>
      %37 = arith.subf %31, %36 : vector<16x256xf32>
      %38 = arith.mulf %37, %37 : vector<16x256xf32>
      %cst_23 = arith.constant dense<0.000000e+00> : vector<16xf32>
      %39 = vector.multi_reduction <add>, %38, %cst_23 [1] : vector<16x256xf32> to vector<16xf32>
      %40 = vector.shape_cast %39 : vector<16xf32> to vector<16x1xf32>
      %cst_24 = arith.constant 2.560000e+02 : f32
      %41 = vector.broadcast %cst_24 : f32 to vector<16x1xf32>
      %42 = arith.divf %40, %41 : vector<16x1xf32>
      %cst_25 = arith.constant 9.99999997E-7 : f32
      %43 = vector.broadcast %cst_25 : f32 to vector<16x1xf32>
      %44 = arith.addf %42, %43 : vector<16x1xf32>
      %45 = math.rsqrt %44 : vector<16x1xf32>
      %46 = vector.broadcast %45 : vector<16x1xf32> to vector<16x256xf32>
      %47 = arith.mulf %37, %46 : vector<16x256xf32>
      %c0_26 = arith.constant 0 : index
      %c0_27 = arith.constant 0 : index
      %c0_28 = arith.constant 0 : index
      %48 = vector.load %arg4[%c0_26, %c0_27, %c0_28] : memref<1x1x256xf32, #tpu.memory_space<vmem>>, vector<1x1x256xf32>
      %49 = vector.shape_cast %48 : vector<1x1x256xf32> to vector<1x256xf32>
      %cst_29 = arith.constant 1.000000e+00 : f32
      %50 = vector.broadcast %cst_29 : f32 to vector<1x256xf32>
      %51 = arith.addf %50, %49 : vector<1x256xf32>
      %52 = vector.broadcast %51 : vector<1x256xf32> to vector<16x256xf32>
      %53 = arith.mulf %47, %52 : vector<16x256xf32>
      %c0_30 = arith.constant 0 : index
      %c0_31 = arith.constant 0 : index
      %c0_32 = arith.constant 0 : index
      %54 = vector.load %arg5[%c0_30, %c0_31, %c0_32] : memref<1x1x256xf32, #tpu.memory_space<vmem>>, vector<1x1x256xf32>
      %55 = vector.shape_cast %54 : vector<1x1x256xf32> to vector<1x256xf32>
      %56 = vector.broadcast %55 : vector<1x256xf32> to vector<16x256xf32>
      %57 = arith.addf %53, %56 : vector<16x256xf32>
      %c0_33 = arith.constant 0 : index
      %c0_34 = arith.constant 0 : index
      %58 = vector.load %arg12[%c0_33, %c0_34] : memref<16x256xf32, #tpu.memory_space<vmem>>, vector<16x256xf32>
      tpu.vector_store %arg12[%c0_33, %c0_34], %57 {strides = array<i32>} : memref<16x256xf32, #tpu.memory_space<vmem>>, vector<16x256xf32>,
      %cst_35 = arith.constant 0.000000e+00 : f32
      %59 = vector.broadcast %cst_35 : f32 to vector<16x256xf32>
      %c0_36 = arith.constant 0 : index
      %c0_37 = arith.constant 0 : index
      %60 = vector.load %arg13[%c0_36, %c0_37] : memref<16x256xf32, #tpu.memory_space<vmem>>, vector<16x256xf32>
      tpu.vector_store %arg13[%c0_36, %c0_37], %59 {strides = array<i32>} : memref<16x256xf32, #tpu.memory_space<vmem>>, vector<16x256xf32>,
    } else {
    }
    %c0 = arith.constant 0 : index
    %c0_1 = arith.constant 0 : index
    %3 = vector.load %arg12[%c0, %c0_1] : memref<16x256xf32, #tpu.memory_space<vmem>>, vector<16x256xf32>
    %c0_2 = arith.constant 0 : index
    %c0_3 = arith.constant 0 : index
    %4 = vector.load %arg7[%c0_2, %c0_3] : memref<256x512xf32, #tpu.memory_space<vmem>>, vector<256x512xf32>
    %cst = arith.constant dense<0.000000e+00> : vector<16x512xf32>
    %5 = tpu.matmul %3, %4, %cst {dimension_numbers = #tpu.dot_dimension_numbers<[1], [0], [0], [1], [0, 0, 1, 1], [], []>} : vector<16x256xf32>, vector<256x512xf32>, vector<16x512xf32> -> vector<16x512xf32>
    %c0_4 = arith.constant 0 : index
    %c0_5 = arith.constant 0 : index
    %6 = vector.load %arg8[%c0_4, %c0_5] : memref<1x512xf32, #tpu.memory_space<vmem>>, vector<1x512xf32>
    %7 = vector.broadcast %6 : vector<1x512xf32> to vector<16x512xf32>
    %8 = arith.addf %5, %7 : vector<16x512xf32>
    %cst_6 = arith.constant 5.000000e-01 : f32
    %9 = vector.broadcast %cst_6 : f32 to vector<16x512xf32>
    %10 = arith.mulf %9, %8 : vector<16x512xf32>
    %cst_7 = arith.constant 4.471500e-02 : f32
    %11 = vector.broadcast %cst_7 : f32 to vector<16x512xf32>
    %12 = arith.mulf %11, %8 : vector<16x512xf32>
    %13 = arith.mulf %12, %8 : vector<16x512xf32>
    %14 = arith.mulf %13, %8 : vector<16x512xf32>
    %15 = arith.addf %8, %14 : vector<16x512xf32>
    %cst_8 = arith.constant 0.797884583 : f32
    %16 = vector.broadcast %cst_8 : f32 to vector<16x512xf32>
    %17 = arith.mulf %16, %15 : vector<16x512xf32>
    %18 = math.tanh %17 : vector<16x512xf32>
    %cst_9 = arith.constant 1.000000e+00 : f32
    %19 = vector.broadcast %cst_9 : f32 to vector<16x512xf32>
    %20 = arith.addf %19, %18 : vector<16x512xf32>
    %21 = arith.mulf %10, %20 : vector<16x512xf32>
    %c0_10 = arith.constant 0 : index
    %c0_11 = arith.constant 0 : index
    %22 = vector.load %arg13[%c0_10, %c0_11] : memref<16x256xf32, #tpu.memory_space<vmem>>, vector<16x256xf32>
    %c0_12 = arith.constant 0 : index
    %c0_13 = arith.constant 0 : index
    %23 = vector.load %arg9[%c0_12, %c0_13] : memref<512x256xf32, #tpu.memory_space<vmem>>, vector<512x256xf32>
    %cst_14 = arith.constant dense<0.000000e+00> : vector<16x256xf32>
    %24 = tpu.matmul %21, %23, %cst_14 {dimension_numbers = #tpu.dot_dimension_numbers<[1], [0], [0], [1], [0, 0, 1, 1], [], []>} : vector<16x512xf32>, vector<512x256xf32>, vector<16x256xf32> -> vector<16x256xf32>
    %25 = arith.addf %22, %24 : vector<16x256xf32>
    %c0_15 = arith.constant 0 : index
    %c0_16 = arith.constant 0 : index
    %26 = vector.load %arg13[%c0_15, %c0_16] : memref<16x256xf32, #tpu.memory_space<vmem>>, vector<16x256xf32>
    tpu.vector_store %arg13[%c0_15, %c0_16], %25 {strides = array<i32>} : memref<16x256xf32, #tpu.memory_space<vmem>>, vector<16x256xf32>,
    %c1_i32 = arith.constant 1 : i32
    %27 = arith.cmpi eq, %arg2, %c1_i32 : i32
    %28 = arith.extui %27 : i1 to i32
    %c0_i32_17 = arith.constant 0 : i32
    %29 = arith.cmpi ne, %28, %c0_i32_17 : i32
    scf.if %29 {
      %c0_18 = arith.constant 0 : index
      %c0_19 = arith.constant 0 : index
      %30 = vector.load %arg13[%c0_18, %c0_19] : memref<16x256xf32, #tpu.memory_space<vmem>>, vector<16x256xf32>
      %c0_20 = arith.constant 0 : index
      %c0_21 = arith.constant 0 : index
      %31 = vector.load %arg10[%c0_20, %c0_21] : memref<1x256xf32, #tpu.memory_space<vmem>>, vector<1x256xf32>
      %32 = vector.broadcast %31 : vector<1x256xf32> to vector<16x256xf32>
      %33 = arith.addf %30, %32 : vector<16x256xf32>
      %c0_22 = arith.constant 0 : index
      %c0_23 = arith.constant 0 : index
      %c0_24 = arith.constant 0 : index
      %34 = vector.load %arg3[%c0_22, %c0_23, %c0_24] : memref<1x16x256xf32, #tpu.memory_space<vmem>>, vector<1x16x256xf32>
      %35 = vector.shape_cast %34 : vector<1x16x256xf32> to vector<16x256xf32>
      %c0_25 = arith.constant 0 : index
      %c0_26 = arith.constant 0 : index
      %c0_27 = arith.constant 0 : index
      %36 = vector.load %arg6[%c0_25, %c0_26, %c0_27] : memref<1x1x256xf32, #tpu.memory_space<vmem>>, vector<1x1x256xf32>
      %37 = vector.shape_cast %36 : vector<1x1x256xf32> to vector<1x256xf32>
      %38 = vector.broadcast %37 : vector<1x256xf32> to vector<16x256xf32>
      %39 = arith.mulf %38, %33 : vector<16x256xf32>
      %40 = arith.addf %35, %39 : vector<16x256xf32>
      %c0_28 = arith.constant 0 : index
      %c0_29 = arith.constant 0 : index
      %c0_30 = arith.constant 0 : index
      %41 = vector.load %arg11[%c0_28, %c0_29, %c0_30] : memref<1x16x256xf32, #tpu.memory_space<vmem>>, vector<1x16x256xf32>
      %42 = vector.shape_cast %41 : vector<1x16x256xf32> to vector<16x256xf32>
      %43 = vector.shape_cast %40 : vector<16x256xf32> to vector<1x16x256xf32>
      tpu.vector_store %arg11[%c0_28, %c0_29, %c0_30], %43 {strides = array<i32>} : memref<1x16x256xf32, #tpu.memory_space<vmem>>, vector<1x16x256xf32>,
    } else {
    }
    return
  }
  func.func @transform_0(%arg0: i32, %arg1: i32, %arg2: i32) -> (i32, i32, i32) {
    %c0_i32 = arith.constant 0 : i32
    %c0_i32_0 = arith.constant 0 : i32
    return %arg0, %arg1, %c0_i32 : i32, i32, i32
  }
  func.func @transform_1(%arg0: i32, %arg1: i32, %arg2: i32) -> (i32, i32, i32) {
    %c0_i32 = arith.constant 0 : i32
    %c0_i32_0 = arith.constant 0 : i32
    %c0_i32_1 = arith.constant 0 : i32
    return %arg0, %c0_i32, %c0_i32_0 : i32, i32, i32
  }
  func.func @transform_2(%arg0: i32, %arg1: i32, %arg2: i32) -> (i32, i32, i32) {
    %c0_i32 = arith.constant 0 : i32
    %c0_i32_0 = arith.constant 0 : i32
    %c0_i32_1 = arith.constant 0 : i32
    return %arg0, %c0_i32, %c0_i32_0 : i32, i32, i32
  }
  func.func @transform_3(%arg0: i32, %arg1: i32, %arg2: i32) -> (i32, i32, i32) {
    %c0_i32 = arith.constant 0 : i32
    %c0_i32_0 = arith.constant 0 : i32
    %c0_i32_1 = arith.constant 0 : i32
    return %arg0, %c0_i32, %c0_i32_0 : i32, i32, i32
  }
  func.func @transform_4(%arg0: i32, %arg1: i32, %arg2: i32) -> (i32, i32) {
    %c0_i32 = arith.constant 0 : i32
    %c0_i32_0 = arith.constant 0 : i32
    return %c0_i32, %arg2 : i32, i32
  }
  func.func @transform_5(%arg0: i32, %arg1: i32, %arg2: i32) -> (i32, i32) {
    %c0_i32 = arith.constant 0 : i32
    %c0_i32_0 = arith.constant 0 : i32
    return %c0_i32, %arg2 : i32, i32
  }
  func.func @transform_6(%arg0: i32, %arg1: i32, %arg2: i32) -> (i32, i32) {
    %c0_i32 = arith.constant 0 : i32
    %c0_i32_0 = arith.constant 0 : i32
    return %arg2, %c0_i32 : i32, i32
  }
  func.func @transform_7(%arg0: i32, %arg1: i32, %arg2: i32) -> (i32, i32) {
    %c0_i32 = arith.constant 0 : i32
    %c0_i32_0 = arith.constant 0 : i32
    %c0_i32_1 = arith.constant 0 : i32
    return %c0_i32, %c0_i32_0 : i32, i32
  }
  func.func @transform_8(%arg0: i32, %arg1: i32, %arg2: i32) -> (i32, i32, i32) {
    %c0_i32 = arith.constant 0 : i32
    %c0_i32_0 = arith.constant 0 : i32
    return %arg0, %arg1, %c0_i32 : i32, i32, i32
  }
}

module attributes {stable_mosaic.version = 11 : i64} {
  func.func @_out_proj_residual_kernel(%arg0: i32, %arg1: i32, %arg2: i32, %arg3: memref<1x8x256xf32, #tpu.memory_space<vmem>>, %arg4: memref<256x256xf32, #tpu.memory_space<vmem>>, %arg5: memref<1x256xf32, #tpu.memory_space<vmem>>, %arg6: memref<1x8x256xf32, #tpu.memory_space<vmem>>, %arg7: memref<1x1x256xf32, #tpu.memory_space<vmem>>, %arg8: memref<1x8x256xf32, #tpu.memory_space<vmem>>) attributes {dimension_semantics = [#tpu.dimension_semantics<parallel>, #tpu.dimension_semantics<parallel>, #tpu.dimension_semantics<parallel>], iteration_bounds = array<i64: 2, 1, 1>, scalar_prefetch = 0 : i64, scratch_operands = 0 : i64, tpu.core_type = #tpu.core_type<tc>, window_params = [{transform_indices = @transform_0, window_bounds = array<i64: 1, 8, 256>}, {transform_indices = @transform_1, window_bounds = array<i64: 256, 256>}, {transform_indices = @transform_2, window_bounds = array<i64: 1, 256>}, {transform_indices = @transform_3, window_bounds = array<i64: 1, 8, 256>}, {transform_indices = @transform_4, window_bounds = array<i64: 1, 1, 256>}, {transform_indices = @transform_5, window_bounds = array<i64: 1, 8, 256>}]} {
    %c0 = arith.constant 0 : index
    %c0_0 = arith.constant 0 : index
    %c0_1 = arith.constant 0 : index
    %0 = vector.load %arg3[%c0, %c0_0, %c0_1] : memref<1x8x256xf32, #tpu.memory_space<vmem>>, vector<1x8x256xf32>
    %1 = vector.shape_cast %0 : vector<1x8x256xf32> to vector<8x256xf32>
    %c0_2 = arith.constant 0 : index
    %c0_3 = arith.constant 0 : index
    %2 = vector.load %arg4[%c0_2, %c0_3] : memref<256x256xf32, #tpu.memory_space<vmem>>, vector<256x256xf32>
    %cst = arith.constant dense<0.000000e+00> : vector<8x256xf32>
    %3 = tpu.matmul %1, %2, %cst {dimension_numbers = #tpu.dot_dimension_numbers<[1], [0], [0], [1], [0, 0, 1, 1], [], []>} : vector<8x256xf32>, vector<256x256xf32>, vector<8x256xf32> -> vector<8x256xf32>
    %c0_4 = arith.constant 0 : index
    %c0_5 = arith.constant 0 : index
    %4 = vector.load %arg5[%c0_4, %c0_5] : memref<1x256xf32, #tpu.memory_space<vmem>>, vector<1x256xf32>
    %5 = vector.broadcast %4 : vector<1x256xf32> to vector<8x256xf32>
    %6 = arith.addf %3, %5 : vector<8x256xf32>
    %c0_6 = arith.constant 0 : index
    %c0_7 = arith.constant 0 : index
    %c0_8 = arith.constant 0 : index
    %7 = vector.load %arg6[%c0_6, %c0_7, %c0_8] : memref<1x8x256xf32, #tpu.memory_space<vmem>>, vector<1x8x256xf32>
    %8 = vector.shape_cast %7 : vector<1x8x256xf32> to vector<8x256xf32>
    %c0_9 = arith.constant 0 : index
    %c0_10 = arith.constant 0 : index
    %c0_11 = arith.constant 0 : index
    %9 = vector.load %arg7[%c0_9, %c0_10, %c0_11] : memref<1x1x256xf32, #tpu.memory_space<vmem>>, vector<1x1x256xf32>
    %10 = vector.shape_cast %9 : vector<1x1x256xf32> to vector<1x256xf32>
    %11 = vector.broadcast %10 : vector<1x256xf32> to vector<8x256xf32>
    %12 = arith.mulf %11, %6 : vector<8x256xf32>
    %13 = arith.addf %8, %12 : vector<8x256xf32>
    %c0_12 = arith.constant 0 : index
    %c0_13 = arith.constant 0 : index
    %c0_14 = arith.constant 0 : index
    %14 = vector.load %arg8[%c0_12, %c0_13, %c0_14] : memref<1x8x256xf32, #tpu.memory_space<vmem>>, vector<1x8x256xf32>
    %15 = vector.shape_cast %14 : vector<1x8x256xf32> to vector<8x256xf32>
    %16 = vector.shape_cast %13 : vector<8x256xf32> to vector<1x8x256xf32>
    tpu.vector_store %arg8[%c0_12, %c0_13, %c0_14], %16 {strides = array<i32>} : memref<1x8x256xf32, #tpu.memory_space<vmem>>, vector<1x8x256xf32>,
    return
  }
  func.func @transform_0(%arg0: i32, %arg1: i32, %arg2: i32) -> (i32, i32, i32) {
    %c0_i32 = arith.constant 0 : i32
    %c0_i32_0 = arith.constant 0 : i32
    return %arg0, %arg1, %c0_i32 : i32, i32, i32
  }
  func.func @transform_1(%arg0: i32, %arg1: i32, %arg2: i32) -> (i32, i32) {
    %c0_i32 = arith.constant 0 : i32
    %c0_i32_0 = arith.constant 0 : i32
    return %c0_i32, %arg2 : i32, i32
  }
  func.func @transform_2(%arg0: i32, %arg1: i32, %arg2: i32) -> (i32, i32) {
    %c0_i32 = arith.constant 0 : i32
    %c0_i32_0 = arith.constant 0 : i32
    return %c0_i32, %arg2 : i32, i32
  }
  func.func @transform_3(%arg0: i32, %arg1: i32, %arg2: i32) -> (i32, i32, i32) {
    %c0_i32 = arith.constant 0 : i32
    return %arg0, %arg1, %arg2 : i32, i32, i32
  }
  func.func @transform_4(%arg0: i32, %arg1: i32, %arg2: i32) -> (i32, i32, i32) {
    %c0_i32 = arith.constant 0 : i32
    %c0_i32_0 = arith.constant 0 : i32
    return %arg0, %c0_i32, %arg2 : i32, i32, i32
  }
  func.func @transform_5(%arg0: i32, %arg1: i32, %arg2: i32) -> (i32, i32, i32) {
    %c0_i32 = arith.constant 0 : i32
    return %arg0, %arg1, %arg2 : i32, i32, i32
  }
}

module attributes {stable_mosaic.version = 11 : i64} {
  func.func @_ffn_kernel(%arg0: i32, %arg1: i32, %arg2: i32, %arg3: memref<1x8x256xf32, #tpu.memory_space<vmem>>, %arg4: memref<1x1x256xf32, #tpu.memory_space<vmem>>, %arg5: memref<1x1x256xf32, #tpu.memory_space<vmem>>, %arg6: memref<1x1x256xf32, #tpu.memory_space<vmem>>, %arg7: memref<256x512xf32, #tpu.memory_space<vmem>>, %arg8: memref<1x512xf32, #tpu.memory_space<vmem>>, %arg9: memref<512x256xf32, #tpu.memory_space<vmem>>, %arg10: memref<1x256xf32, #tpu.memory_space<vmem>>, %arg11: memref<1x8x256xf32, #tpu.memory_space<vmem>>, %arg12: memref<8x256xf32, #tpu.memory_space<vmem>>, %arg13: memref<8x256xf32, #tpu.memory_space<vmem>>) attributes {dimension_semantics = [#tpu.dimension_semantics<parallel>, #tpu.dimension_semantics<parallel>, #tpu.dimension_semantics<arbitrary>], iteration_bounds = array<i64: 2, 1, 2>, scalar_prefetch = 0 : i64, scratch_operands = 2 : i64, tpu.core_type = #tpu.core_type<tc>, window_params = [{transform_indices = @transform_0, window_bounds = array<i64: 1, 8, 256>}, {transform_indices = @transform_1, window_bounds = array<i64: 1, 1, 256>}, {transform_indices = @transform_2, window_bounds = array<i64: 1, 1, 256>}, {transform_indices = @transform_3, window_bounds = array<i64: 1, 1, 256>}, {transform_indices = @transform_4, window_bounds = array<i64: 256, 512>}, {transform_indices = @transform_5, window_bounds = array<i64: 1, 512>}, {transform_indices = @transform_6, window_bounds = array<i64: 512, 256>}, {pipeline_mode = #tpu.pipeline_mode<synchronous>, transform_indices = @transform_7, window_bounds = array<i64: 1, 256>}, {transform_indices = @transform_8, window_bounds = array<i64: 1, 8, 256>}]} {
    %c0_i32 = arith.constant 0 : i32
    %0 = arith.cmpi eq, %arg2, %c0_i32 : i32
    %1 = arith.extui %0 : i1 to i32
    %c0_i32_0 = arith.constant 0 : i32
    %2 = arith.cmpi ne, %1, %c0_i32_0 : i32
    scf.if %2 {
      %c0_18 = arith.constant 0 : index
      %c0_19 = arith.constant 0 : index
      %c0_20 = arith.constant 0 : index
      %30 = vector.load %arg3[%c0_18, %c0_19, %c0_20] : memref<1x8x256xf32, #tpu.memory_space<vmem>>, vector<1x8x256xf32>
      %31 = vector.shape_cast %30 : vector<1x8x256xf32> to vector<8x256xf32>
      %cst_21 = arith.constant dense<0.000000e+00> : vector<8xf32>
      %32 = vector.multi_reduction <add>, %31, %cst_21 [1] : vector<8x256xf32> to vector<8xf32>
      %33 = vector.shape_cast %32 : vector<8xf32> to vector<8x1xf32>
      %cst_22 = arith.constant 2.560000e+02 : f32
      %34 = vector.broadcast %cst_22 : f32 to vector<8x1xf32>
      %35 = arith.divf %33, %34 : vector<8x1xf32>
      %36 = vector.broadcast %35 : vector<8x1xf32> to vector<8x256xf32>
      %37 = arith.subf %31, %36 : vector<8x256xf32>
      %38 = arith.mulf %37, %37 : vector<8x256xf32>
      %cst_23 = arith.constant dense<0.000000e+00> : vector<8xf32>
      %39 = vector.multi_reduction <add>, %38, %cst_23 [1] : vector<8x256xf32> to vector<8xf32>
      %40 = vector.shape_cast %39 : vector<8xf32> to vector<8x1xf32>
      %cst_24 = arith.constant 2.560000e+02 : f32
      %41 = vector.broadcast %cst_24 : f32 to vector<8x1xf32>
      %42 = arith.divf %40, %41 : vector<8x1xf32>
      %cst_25 = arith.constant 9.99999997E-7 : f32
      %43 = vector.broadcast %cst_25 : f32 to vector<8x1xf32>
      %44 = arith.addf %42, %43 : vector<8x1xf32>
      %45 = math.rsqrt %44 : vector<8x1xf32>
      %46 = vector.broadcast %45 : vector<8x1xf32> to vector<8x256xf32>
      %47 = arith.mulf %37, %46 : vector<8x256xf32>
      %c0_26 = arith.constant 0 : index
      %c0_27 = arith.constant 0 : index
      %c0_28 = arith.constant 0 : index
      %48 = vector.load %arg4[%c0_26, %c0_27, %c0_28] : memref<1x1x256xf32, #tpu.memory_space<vmem>>, vector<1x1x256xf32>
      %49 = vector.shape_cast %48 : vector<1x1x256xf32> to vector<1x256xf32>
      %cst_29 = arith.constant 1.000000e+00 : f32
      %50 = vector.broadcast %cst_29 : f32 to vector<1x256xf32>
      %51 = arith.addf %50, %49 : vector<1x256xf32>
      %52 = vector.broadcast %51 : vector<1x256xf32> to vector<8x256xf32>
      %53 = arith.mulf %47, %52 : vector<8x256xf32>
      %c0_30 = arith.constant 0 : index
      %c0_31 = arith.constant 0 : index
      %c0_32 = arith.constant 0 : index
      %54 = vector.load %arg5[%c0_30, %c0_31, %c0_32] : memref<1x1x256xf32, #tpu.memory_space<vmem>>, vector<1x1x256xf32>
      %55 = vector.shape_cast %54 : vector<1x1x256xf32> to vector<1x256xf32>
      %56 = vector.broadcast %55 : vector<1x256xf32> to vector<8x256xf32>
      %57 = arith.addf %53, %56 : vector<8x256xf32>
      %c0_33 = arith.constant 0 : index
      %c0_34 = arith.constant 0 : index
      %58 = vector.load %arg12[%c0_33, %c0_34] : memref<8x256xf32, #tpu.memory_space<vmem>>, vector<8x256xf32>
      tpu.vector_store %arg12[%c0_33, %c0_34], %57 {strides = array<i32>} : memref<8x256xf32, #tpu.memory_space<vmem>>, vector<8x256xf32>,
      %cst_35 = arith.constant 0.000000e+00 : f32
      %59 = vector.broadcast %cst_35 : f32 to vector<8x256xf32>
      %c0_36 = arith.constant 0 : index
      %c0_37 = arith.constant 0 : index
      %60 = vector.load %arg13[%c0_36, %c0_37] : memref<8x256xf32, #tpu.memory_space<vmem>>, vector<8x256xf32>
      tpu.vector_store %arg13[%c0_36, %c0_37], %59 {strides = array<i32>} : memref<8x256xf32, #tpu.memory_space<vmem>>, vector<8x256xf32>,
    } else {
    }
    %c0 = arith.constant 0 : index
    %c0_1 = arith.constant 0 : index
    %3 = vector.load %arg12[%c0, %c0_1] : memref<8x256xf32, #tpu.memory_space<vmem>>, vector<8x256xf32>
    %c0_2 = arith.constant 0 : index
    %c0_3 = arith.constant 0 : index
    %4 = vector.load %arg7[%c0_2, %c0_3] : memref<256x512xf32, #tpu.memory_space<vmem>>, vector<256x512xf32>
    %cst = arith.constant dense<0.000000e+00> : vector<8x512xf32>
    %5 = tpu.matmul %3, %4, %cst {dimension_numbers = #tpu.dot_dimension_numbers<[1], [0], [0], [1], [0, 0, 1, 1], [], []>} : vector<8x256xf32>, vector<256x512xf32>, vector<8x512xf32> -> vector<8x512xf32>
    %c0_4 = arith.constant 0 : index
    %c0_5 = arith.constant 0 : index
    %6 = vector.load %arg8[%c0_4, %c0_5] : memref<1x512xf32, #tpu.memory_space<vmem>>, vector<1x512xf32>
    %7 = vector.broadcast %6 : vector<1x512xf32> to vector<8x512xf32>
    %8 = arith.addf %5, %7 : vector<8x512xf32>
    %cst_6 = arith.constant 5.000000e-01 : f32
    %9 = vector.broadcast %cst_6 : f32 to vector<8x512xf32>
    %10 = arith.mulf %9, %8 : vector<8x512xf32>
    %cst_7 = arith.constant 4.471500e-02 : f32
    %11 = vector.broadcast %cst_7 : f32 to vector<8x512xf32>
    %12 = arith.mulf %11, %8 : vector<8x512xf32>
    %13 = arith.mulf %12, %8 : vector<8x512xf32>
    %14 = arith.mulf %13, %8 : vector<8x512xf32>
    %15 = arith.addf %8, %14 : vector<8x512xf32>
    %cst_8 = arith.constant 0.797884583 : f32
    %16 = vector.broadcast %cst_8 : f32 to vector<8x512xf32>
    %17 = arith.mulf %16, %15 : vector<8x512xf32>
    %18 = math.tanh %17 : vector<8x512xf32>
    %cst_9 = arith.constant 1.000000e+00 : f32
    %19 = vector.broadcast %cst_9 : f32 to vector<8x512xf32>
    %20 = arith.addf %19, %18 : vector<8x512xf32>
    %21 = arith.mulf %10, %20 : vector<8x512xf32>
    %c0_10 = arith.constant 0 : index
    %c0_11 = arith.constant 0 : index
    %22 = vector.load %arg13[%c0_10, %c0_11] : memref<8x256xf32, #tpu.memory_space<vmem>>, vector<8x256xf32>
    %c0_12 = arith.constant 0 : index
    %c0_13 = arith.constant 0 : index
    %23 = vector.load %arg9[%c0_12, %c0_13] : memref<512x256xf32, #tpu.memory_space<vmem>>, vector<512x256xf32>
    %cst_14 = arith.constant dense<0.000000e+00> : vector<8x256xf32>
    %24 = tpu.matmul %21, %23, %cst_14 {dimension_numbers = #tpu.dot_dimension_numbers<[1], [0], [0], [1], [0, 0, 1, 1], [], []>} : vector<8x512xf32>, vector<512x256xf32>, vector<8x256xf32> -> vector<8x256xf32>
    %25 = arith.addf %22, %24 : vector<8x256xf32>
    %c0_15 = arith.constant 0 : index
    %c0_16 = arith.constant 0 : index
    %26 = vector.load %arg13[%c0_15, %c0_16] : memref<8x256xf32, #tpu.memory_space<vmem>>, vector<8x256xf32>
    tpu.vector_store %arg13[%c0_15, %c0_16], %25 {strides = array<i32>} : memref<8x256xf32, #tpu.memory_space<vmem>>, vector<8x256xf32>,
    %c1_i32 = arith.constant 1 : i32
    %27 = arith.cmpi eq, %arg2, %c1_i32 : i32
    %28 = arith.extui %27 : i1 to i32
    %c0_i32_17 = arith.constant 0 : i32
    %29 = arith.cmpi ne, %28, %c0_i32_17 : i32
    scf.if %29 {
      %c0_18 = arith.constant 0 : index
      %c0_19 = arith.constant 0 : index
      %30 = vector.load %arg13[%c0_18, %c0_19] : memref<8x256xf32, #tpu.memory_space<vmem>>, vector<8x256xf32>
      %c0_20 = arith.constant 0 : index
      %c0_21 = arith.constant 0 : index
      %31 = vector.load %arg10[%c0_20, %c0_21] : memref<1x256xf32, #tpu.memory_space<vmem>>, vector<1x256xf32>
      %32 = vector.broadcast %31 : vector<1x256xf32> to vector<8x256xf32>
      %33 = arith.addf %30, %32 : vector<8x256xf32>
      %c0_22 = arith.constant 0 : index
      %c0_23 = arith.constant 0 : index
      %c0_24 = arith.constant 0 : index
      %34 = vector.load %arg3[%c0_22, %c0_23, %c0_24] : memref<1x8x256xf32, #tpu.memory_space<vmem>>, vector<1x8x256xf32>
      %35 = vector.shape_cast %34 : vector<1x8x256xf32> to vector<8x256xf32>
      %c0_25 = arith.constant 0 : index
      %c0_26 = arith.constant 0 : index
      %c0_27 = arith.constant 0 : index
      %36 = vector.load %arg6[%c0_25, %c0_26, %c0_27] : memref<1x1x256xf32, #tpu.memory_space<vmem>>, vector<1x1x256xf32>
      %37 = vector.shape_cast %36 : vector<1x1x256xf32> to vector<1x256xf32>
      %38 = vector.broadcast %37 : vector<1x256xf32> to vector<8x256xf32>
      %39 = arith.mulf %38, %33 : vector<8x256xf32>
      %40 = arith.addf %35, %39 : vector<8x256xf32>
      %c0_28 = arith.constant 0 : index
      %c0_29 = arith.constant 0 : index
      %c0_30 = arith.constant 0 : index
      %41 = vector.load %arg11[%c0_28, %c0_29, %c0_30] : memref<1x8x256xf32, #tpu.memory_space<vmem>>, vector<1x8x256xf32>
      %42 = vector.shape_cast %41 : vector<1x8x256xf32> to vector<8x256xf32>
      %43 = vector.shape_cast %40 : vector<8x256xf32> to vector<1x8x256xf32>
      tpu.vector_store %arg11[%c0_28, %c0_29, %c0_30], %43 {strides = array<i32>} : memref<1x8x256xf32, #tpu.memory_space<vmem>>, vector<1x8x256xf32>,
    } else {
    }
    return
  }
  func.func @transform_0(%arg0: i32, %arg1: i32, %arg2: i32) -> (i32, i32, i32) {
    %c0_i32 = arith.constant 0 : i32
    %c0_i32_0 = arith.constant 0 : i32
    return %arg0, %arg1, %c0_i32 : i32, i32, i32
  }
  func.func @transform_1(%arg0: i32, %arg1: i32, %arg2: i32) -> (i32, i32, i32) {
    %c0_i32 = arith.constant 0 : i32
    %c0_i32_0 = arith.constant 0 : i32
    %c0_i32_1 = arith.constant 0 : i32
    return %arg0, %c0_i32, %c0_i32_0 : i32, i32, i32
  }
  func.func @transform_2(%arg0: i32, %arg1: i32, %arg2: i32) -> (i32, i32, i32) {
    %c0_i32 = arith.constant 0 : i32
    %c0_i32_0 = arith.constant 0 : i32
    %c0_i32_1 = arith.constant 0 : i32
    return %arg0, %c0_i32, %c0_i32_0 : i32, i32, i32
  }
  func.func @transform_3(%arg0: i32, %arg1: i32, %arg2: i32) -> (i32, i32, i32) {
    %c0_i32 = arith.constant 0 : i32
    %c0_i32_0 = arith.constant 0 : i32
    %c0_i32_1 = arith.constant 0 : i32
    return %arg0, %c0_i32, %c0_i32_0 : i32, i32, i32
  }
  func.func @transform_4(%arg0: i32, %arg1: i32, %arg2: i32) -> (i32, i32) {
    %c0_i32 = arith.constant 0 : i32
    %c0_i32_0 = arith.constant 0 : i32
    return %c0_i32, %arg2 : i32, i32
  }
  func.func @transform_5(%arg0: i32, %arg1: i32, %arg2: i32) -> (i32, i32) {
    %c0_i32 = arith.constant 0 : i32
    %c0_i32_0 = arith.constant 0 : i32
    return %c0_i32, %arg2 : i32, i32
  }
  func.func @transform_6(%arg0: i32, %arg1: i32, %arg2: i32) -> (i32, i32) {
    %c0_i32 = arith.constant 0 : i32
    %c0_i32_0 = arith.constant 0 : i32
    return %arg2, %c0_i32 : i32, i32
  }
  func.func @transform_7(%arg0: i32, %arg1: i32, %arg2: i32) -> (i32, i32) {
    %c0_i32 = arith.constant 0 : i32
    %c0_i32_0 = arith.constant 0 : i32
    %c0_i32_1 = arith.constant 0 : i32
    return %c0_i32, %c0_i32_0 : i32, i32
  }
  func.func @transform_8(%arg0: i32, %arg1: i32, %arg2: i32) -> (i32, i32, i32) {
    %c0_i32 = arith.constant 0 : i32
    %c0_i32_0 = arith.constant 0 : i32
    return %arg0, %arg1, %c0_i32 : i32, i32, i32
  }
}

</mosaic_0001>

<bundles_post_ra>
// kernel: joint_transformer_block.8
= control target key start
LH: loop header
LB: loop body
LE: loop exit
PB: predicated region body
PF: predicated region fallthrough
CT: control target
= control target key end

     0   :  { %8 = vsyncpa [#allocation3], 0  ;;  %s1211_s0 = inlined_call_operand.hbm [shape: f32[2,256], index: 0, kind: input, shape index: {}]   ;;  %s1212_s1 = inlined_call_operand.hbm [shape: f32[256,3072], index: 1, kind: input, shape index: {}]   ;;  %s1213_s2 = inlined_call_operand.hbm [shape: f32[1,3072], index: 2, kind: input, shape index: {}]   ;;  %s1214_s3 = inlined_call_operand.vmem [shape: f32[2,3072], index: 3, kind: output, shape index: {}]  }
   0x1   :  { %9 = vsyncpa [#allocation5], 0 }
   0x2   :  { %11 = vsyncpa [#allocation5 + $0x1], 0  ;;  %s922_s12 = smov 0   ;;  %s924_s13 = smov 0  }
   0x3   :  { %s926_s14 = smov 0   ;;  %s928_s15 = smov 0  }
   0x4 LB: > { %s943_s16 = sadd.s32 1, %s896_s15   ;;  %s45_s17 = sadd.s32 1, %s892_s14  ;;  %s896_s15 = sphi %s928_s15, %s1223_s15   ;;  %s892_s14 = sphi %s926_s14, %s1222_s14   ;;  %s888_s13 = sphi %s924_s13, %s1221_s13   ;;  %s884_s12 = sphi %s922_s12, %s1220_s12  }
   0x5   : > { %s42_s18 = ssub.s32 %s896_s15, %s943_s16  ;;  %p52_p0 = scmp.ne.s32.totalorder %s892_s14, %s888_s13 }
   0x6   : > { %p43_p1 = scmp.eq.s32.totalorder %s42_s18, 0  ;;  %p53_p2 = scmp.eq.s32.totalorder %s896_s15, 0 }
   0x7   : > { %p726_p3 = scmp.lt.s32.totalorder %s896_s15, 6  ;;  %s146_s20 = sand.u32 1, %s896_s15  }
   0x8   : > { %s953_s19 = scalar_select %p43_p1, %s892_s14, %s45_s17  }
   0x9   : > { %p54_p4 = por %p53_p2, %p52_p0  ;;  %s148_s21 = sand.u32 1, %s892_s14  }
   0xa   : > { %s691_s22 = sshll.u32 %s148_s21, 10  ;;  %s705_s23 = sshll.u32 %s896_s15, 5 }
   0xb   : > { %s155_s26 = scalar_lea.hbm %s1212_s1, %s705_s23  ;;  %s150_s28 = scalar_lea.vmem [#allocation4], %s691_s22 }
   0xc   : > { %s156_s27 = sshll.u32 %s155_s26, 4  ;;  %s158_s29 = sshll.u32 %s150_s28, 4  ;;  %s157_s27 = int_to_ptr.hbm [resolvable:$true] %s156_s27  ;;  %s159_s29 = int_to_ptr.vmem [resolvable:$true] %s158_s29 }
   0xd   : > { %p965_p5 = pnand %p726_p3, %p54_p4  ;;  %s969_s4 = scalar_lea.sflag [#allocation5], %s146_s20 }
   0xe   : > { %s768_s5 = sshra.s32 %s157_s27, 4  ;;  %s775_s9 = scalar_lea.hbm %s1212_s1, 6144  ;;  %s769_s5 = int_to_ptr.hbm [resolvable:$true] %s768_s5 }
   0xf   : > { %s770_s6 = scalar_lea.hbm %s769_s5, 1024  ;;  %p772_p7 = pneg %p965_p5 }
  0x10   : > { %p771_p6 = scmp.ne.s32.totalorder %s769_s5, %s770_s6  ;;  %p776_p10 = scmp.lt.s32.totalorder %s769_s5, %s1212_s1 }
  0x11   : > { %p777_p11 = scmp.lt.s32.totalorder %s775_s9, %s770_s6 }
  0x12   : > { %p773_p8 = pnand %p772_p7, %p771_p6 }
  0x13   : > { %p778_p12 = por %p777_p11, %p776_p10 }
  0x14   : > { %p774_p9 = pneg %p773_p8 }
  0x16   : > { %p779_p13 = pnand %p778_p12, %p774_p9 }
  0x18   : > { %782 = shalt.err (!%p779_p13)
}
  0x19   : > { %s898_s17 = smov 3072   ;;  %s899_s18 = smov 512  }
  0x1a   : > { %s900_s20 = smov 32   ;;  %s986_s22 = sadd.s32 4294967295, %s896_s15  }
  0x1b   : > { %721 = dma.hbm_to_vmem [thread:$0]  (!%p965_p5), %s157_s27, 16384, %s159_s29, %s969_s4, %s898_s17, %s899_s18, %s900_s20  }
  0x1c   : > { %p58_p0 = scmp.ne.s32.totalorder %s888_s13, %s884_s12  ;;  %p59_p1 = scmp.eq.s32.totalorder %s986_s22, 0 }
  0x1d   : > { %p688_p2 = scmp.ge.s32.totalorder %s896_s15, 1  ;;  %p121_p3 = scmp.lt.s32.totalorder %s896_s15, 7 }
  0x1e   : > { %p995_p4 = por %p59_p1, %p58_p0  ;;  %s133_s27 = sshll.u32 %s1211_s0, 4  ;;  %s134_s27 = int_to_ptr.hbm [resolvable:$true] %s133_s27 }
  0x1f   : > { %p999_p6 = pnand %p688_p2, %p121_p3  ;;  %s901_s12 = smov [#allocation2]  }
  0x20   : > { %s135_s28 = sshll.u32 %s901_s12, 4  ;;  %s694_s29 = sshll.u32 %s148_s21, 2  ;;  %s136_s28 = int_to_ptr.vmem [resolvable:$true] %s135_s28 }
  0x21   : > { %p714_p8 = pneg %p999_p6  ;;  %s695_s5 = sshll.u32 %s896_s15, 2 }
  0x22   : > { %s172_s6 = scalar_lea.vmem [#allocation6], %s694_s29  ;;  %s176_s10 = scalar_lea.hbm %s1213_s2, %s695_s5 }
  0x23   : > { %p715_p9 = pnand %p714_p8, %p59_p1  ;;  %s180_s7 = sshll.u32 %s172_s6, 4  ;;  %s181_s7 = int_to_ptr.vmem [resolvable:$true] %s180_s7 }
  0x24   : > { %s178_s11 = sshll.u32 %s176_s10, 4  ;;  %s835_s20 = scalar_lea.hbm %s1213_s2, 24  ;;  %s179_s11 = int_to_ptr.hbm [resolvable:$true] %s178_s11 }
  0x25   : > { %717 = dma.hbm_to_vmem [thread:$0]  (!%p715_p9), %s134_s27, 64, %s136_s28, [#allocation3]  }
  0x26   : > { %s828_s17 = sshra.s32 %s179_s11, 4  ;;  %s829_s17 = int_to_ptr.hbm [resolvable:$true] %s828_s17 }
  0x27   : > { %s830_s18 = scalar_lea.hbm %s829_s17, 4  ;;  %p836_p13 = scmp.lt.s32.totalorder %s829_s17, %s1213_s2 }
  0x28   : > { %p831_p10 = scmp.ne.s32.totalorder %s829_s17, %s830_s18  ;;  %p837_p0 = scmp.lt.s32.totalorder %s835_s20, %s830_s18 }
  0x2a   : > { %p833_p11 = pnand %p831_p10, %p772_p7  ;;  %p838_p2 = por %p837_p0, %p836_p13 }
  0x2c   : > { %p834_p12 = pneg %p833_p11 }
  0x2e   : > { %p839_p3 = pnand %p838_p2, %p834_p12 }
  0x30   : > { %842 = shalt.err (!%p839_p3)
}
  0x31   : > { %724 = dma.hbm_to_vmem [thread:$0]  (!%p965_p5), %s179_s11, 64, %s181_s7, %s969_s4  }
  0x32   : > { %189 = sbr.rel (%p999_p6) target bundleno = 274 (0x112), region = 32 }
  0x37   : > { %875 = dma.done.wait (%p59_p1), [#allocation3], 64  }
  0x38   : > { %877 = vsyncadd (%p59_p1), [#allocation3], 4294967232  ;;  %s196_s27 = sand.u32 1, %s986_s22   ;;  %s198_s12 = sand.u32 1, %s888_s13  }
  0x39   : > { %s698_s28 = sshll.u32 %s198_s12, 10  ;;  %s197_s30 = scalar_lea.sflag [#allocation5], %s196_s27 }
  0x3a   : > { %s1038_s29 = scalar_lea.vmem [#allocation4], %s698_s28 }
  0x3b   : > { %879 = dma.done.wait (%p995_p4), %s197_s30, 16448  }
  0x3c   : > { %881 = vsyncadd (%p995_p4), %s197_s30, 4294950848  ;;  %v329_v0 = vld [vmem:[%s1038_s29 + $0x1e8] sm:$0xff]  ;;  %v328_v4 = vld [vmem:[%s1038_s29 + $0x1e0] sm:$0xff]  ;;  %s699_s4 = sshll.u32 %s198_s12, 2  ;;  %s700_s24 = sshll.u32 %s986_s22, 2  ;;  %vm579_vm4 = vcmask 1041408  }
  0x3d   : > { %v325_v1 = vld [vmem:[%s1038_s29 + $0x1c8] sm:$0xff]  ;;  %452 = vmatpush.msra.mxu2 %v329_v0  ;;  %412 = vmatpush.msra.mxu0 %v328_v4  ;;  %v324_v7 = vld [vmem:[%s1038_s29 + $0x1c0] sm:$0xff]  ;;  %v331_v61 = vld [vmem:[%s1038_s29 + $0x1f8] sm:$0xff]  ;;  %s210_s23 = scalar_lea.vmem [#allocation6], %s699_s4  ;;  %p242_p5 = scmp.lt.s32.totalorder %s700_s24, 23  ;;  %vm581_vm5 = vcmask 1045508  }
  0x3e   : > { %v393_v2 = vld [vmem:[%s1038_s29 + $0x3e8] sm:$0xff]  ;;  %v392_v9 = vld [vmem:[%s1038_s29 + $0x3e0] sm:$0xff]  ;;  %v395_v62 = vld [vmem:[%s1038_s29 + $0x3f8] sm:$0xff]  ;;  %vm583_vm6 = vcmask 1043456  }
  0x3f   : > { %472 = vmatpush.msra.mxu3 %v393_v2  ;;  %v389_v3 = vld [vmem:[%s1038_s29 + $0x3c8] sm:$0xff]  ;;  %453 = vmatpush.msra.mxu2 %v325_v1  ;;  %v320_v11 = vld [vmem:[%s1038_s29 + $0x1a0] sm:$0xff]  ;;  %v327_v1 = vld [vmem:[%s1038_s29 + $0x1d8] sm:$0xff]  ;;  %s1225_s24 = smov (!%p242_p5, %s700_s24), 23 }
  0x40   : > { %v321_v5 = vld [vmem:[%s1038_s29 + $0x1a8] sm:$0xff]  ;;  %413 = vmatpush.msra.mxu0 %v324_v7  ;;  %432 = vmatpush.msra.mxu1 %v392_v9  ;;  %v388_v12 = vld [vmem:[%s1038_s29 + $0x3c0] sm:$0xff]  ;;  %v391_v2 = vld [vmem:[%s1038_s29 + $0x3d8] sm:$0xff]  ;;  %s701_s5 = sshll.u32 %s1225_s24, 1 }
  0x41   : > { %v385_v6 = vld [vmem:[%s1038_s29 + $0x3a8] sm:$0xff]  ;;  %473 = vmatpush.msra.mxu3 %v389_v3  ;;  %454 = vmatpush.msra.mxu2 %v321_v5  ;;  %v316_v13 = vld [vmem:[%s1038_s29 + $0x180] sm:$0xff]  ;;  %v330_v3 = vld [vmem:[%s1038_s29 + $0x1f0] sm:$0xff]  ;;  %s245_s7 = scalar_lea.vmem %s1214_s3, %s701_s5 }
  0x42   : > { %v317_v8 = vld [vmem:[%s1038_s29 + $0x188] sm:$0xff]  ;;  %v384_v14 = vld [vmem:[%s1038_s29 + $0x3a0] sm:$0xff]  ;;  %414 = vmatpush.msra.mxu0 %v320_v11  ;;  %433 = vmatpush.msra.mxu1 %v388_v12  ;;  %v323_v5 = vld [vmem:[%s1038_s29 + $0x1b8] sm:$0xff] }
  0x43   : > { %v381_v10 = vld [vmem:[%s1038_s29 + $0x388] sm:$0xff]  ;;  %474 = vmatpush.msra.mxu3 %v385_v6  ;;  %455 = vmatpush.msra.mxu2 %v317_v8  ;;  %v312_v17 = vld [vmem:[%s1038_s29 + $0x160] sm:$0xff]  ;;  %v387_v6 = vld [vmem:[%s1038_s29 + $0x3b8] sm:$0xff] }
  0x44   : > { %v313_v15 = vld [vmem:[%s1038_s29 + $0x168] sm:$0xff]  ;;  %v380_v18 = vld [vmem:[%s1038_s29 + $0x380] sm:$0xff]  ;;  %415 = vmatpush.msra.mxu0 %v316_v13  ;;  %434 = vmatpush.msra.mxu1 %v384_v14  ;;  %v1115_v7 = vld [vmem:[#allocation2] sm:$0xf] }
  0x45   : > { %v377_v16 = vld [vmem:[%s1038_s29 + $0x368] sm:$0xff]  ;;  %475 = vmatpush.msra.mxu3 %v381_v10  ;;  %456 = vmatpush.msra.mxu2 %v313_v15  ;;  %v308_v21 = vld [vmem:[%s1038_s29 + $0x140] sm:$0xff]  ;;  %v326_v8 = vld [vmem:[%s1038_s29 + $0x1d0] sm:$0xff]  ;;  %v702_v10 = vmul.f32 -1.442695, %v1115_v7 }
  0x46   : > { %v309_v19 = vld [vmem:[%s1038_s29 + $0x148] sm:$0xff]  ;;  %v376_v22 = vld [vmem:[%s1038_s29 + $0x360] sm:$0xff]  ;;  %416 = vmatpush.msra.mxu0 %v312_v17  ;;  %435 = vmatpush.msra.mxu1 %v380_v18  ;;  %v394_v9 = vld [vmem:[%s1038_s29 + $0x3f0] sm:$0xff] }
  0x47   : > { %v373_v20 = vld [vmem:[%s1038_s29 + $0x348] sm:$0xff]  ;;  %476 = vmatpush.msra.mxu3 %v377_v16  ;;  %457 = vmatpush.msra.mxu2 %v309_v19  ;;  %v304_v25 = vld [vmem:[%s1038_s29 + $0x120] sm:$0xff]  ;;  %v319_v11 = vld [vmem:[%s1038_s29 + $0x198] sm:$0xff]  ;;  %764 = vpow2.f32 %v702_v10 }
  0x48   : > { %v305_v23 = vld [vmem:[%s1038_s29 + $0x128] sm:$0xff]  ;;  %v372_v26 = vld [vmem:[%s1038_s29 + $0x340] sm:$0xff]  ;;  %417 = vmatpush.msra.mxu0 %v308_v21  ;;  %436 = vmatpush.msra.mxu1 %v376_v22  ;;  %v383_v12 = vld [vmem:[%s1038_s29 + $0x398] sm:$0xff] }
  0x49   : > { %v369_v24 = vld [vmem:[%s1038_s29 + $0x328] sm:$0xff]  ;;  %477 = vmatpush.msra.mxu3 %v373_v20  ;;  %458 = vmatpush.msra.mxu2 %v305_v23  ;;  %v300_v29 = vld [vmem:[%s1038_s29 + $0x100] sm:$0xff]  ;;  %v322_v13 = vld [vmem:[%s1038_s29 + $0x1b0] sm:$0xff] }
  0x4a   : > { %v301_v27 = vld [vmem:[%s1038_s29 + $0x108] sm:$0xff]  ;;  %v368_v30 = vld [vmem:[%s1038_s29 + $0x320] sm:$0xff]  ;;  %418 = vmatpush.msra.mxu0 %v304_v25  ;;  %437 = vmatpush.msra.mxu1 %v372_v26  ;;  %v390_v14 = vld [vmem:[%s1038_s29 + $0x3d0] sm:$0xff] }
  0x4b   : > { %v365_v28 = vld [vmem:[%s1038_s29 + $0x308] sm:$0xff]  ;;  %478 = vmatpush.msra.mxu3 %v369_v24  ;;  %459 = vmatpush.msra.mxu2 %v301_v27  ;;  %v296_v33 = vld [vmem:[%s1038_s29 + $0xe0] sm:$0xff]  ;;  %v315_v15 = vld [vmem:[%s1038_s29 + $0x178] sm:$0xff] }
  0x4c   : > { %v297_v31 = vld [vmem:[%s1038_s29 + $0xe8] sm:$0xff]  ;;  %v364_v34 = vld [vmem:[%s1038_s29 + $0x300] sm:$0xff]  ;;  %419 = vmatpush.msra.mxu0 %v300_v29  ;;  %438 = vmatpush.msra.mxu1 %v368_v30  ;;  %v379_v16 = vld [vmem:[%s1038_s29 + $0x378] sm:$0xff] }
  0x4d   : > { %v361_v32 = vld [vmem:[%s1038_s29 + $0x2e8] sm:$0xff]  ;;  %479 = vmatpush.msra.mxu3 %v365_v28  ;;  %460 = vmatpush.msra.mxu2 %v297_v31  ;;  %v292_v37 = vld [vmem:[%s1038_s29 + $0xc0] sm:$0xff]  ;;  %v318_v17 = vld [vmem:[%s1038_s29 + $0x190] sm:$0xff]  ;;  %v765_v25 = vpop.eup %764 }
  0x4e   : > { %v293_v35 = vld [vmem:[%s1038_s29 + $0xc8] sm:$0xff]  ;;  %v360_v38 = vld [vmem:[%s1038_s29 + $0x2e0] sm:$0xff]  ;;  %420 = vmatpush.msra.mxu0 %v296_v33  ;;  %439 = vmatpush.msra.mxu1 %v364_v34  ;;  %v386_v18 = vld [vmem:[%s1038_s29 + $0x3b0] sm:$0xff]  ;;  %v1138_v30 = vadd.f32 1.0, %v765_v25 }
  0x4f   : > { %v357_v36 = vld [vmem:[%s1038_s29 + $0x2c8] sm:$0xff]  ;;  %480 = vmatpush.msra.mxu3 %v361_v32  ;;  %461 = vmatpush.msra.mxu2 %v293_v35  ;;  %v288_v41 = vld [vmem:[%s1038_s29 + $0xa0] sm:$0xff]  ;;  %v311_v19 = vld [vmem:[%s1038_s29 + $0x158] sm:$0xff] }
  0x50   : > { %v289_v39 = vld [vmem:[%s1038_s29 + $0xa8] sm:$0xff]  ;;  %v356_v42 = vld [vmem:[%s1038_s29 + $0x2c0] sm:$0xff]  ;;  %421 = vmatpush.msra.mxu0 %v292_v37  ;;  %440 = vmatpush.msra.mxu1 %v360_v38  ;;  %v375_v20 = vld [vmem:[%s1038_s29 + $0x358] sm:$0xff]  ;;  %766 = vrcp.f32 %v1138_v30  ;;  %vm257_vm0 = vweird.f32 %v1138_v30 }
  0x51   : > { %v353_v40 = vld [vmem:[%s1038_s29 + $0x2a8] sm:$0xff]  ;;  %481 = vmatpush.msra.mxu3 %v357_v36  ;;  %462 = vmatpush.msra.mxu2 %v289_v39  ;;  %v284_v45 = vld [vmem:[%s1038_s29 + $0x80] sm:$0xff]  ;;  %v314_v21 = vld [vmem:[%s1038_s29 + $0x170] sm:$0xff] }
  0x52   : > { %v285_v43 = vld [vmem:[%s1038_s29 + $0x88] sm:$0xff]  ;;  %v352_v46 = vld [vmem:[%s1038_s29 + $0x2a0] sm:$0xff]  ;;  %422 = vmatpush.msra.mxu0 %v288_v41  ;;  %441 = vmatpush.msra.mxu1 %v356_v42  ;;  %v382_v22 = vld [vmem:[%s1038_s29 + $0x390] sm:$0xff] }
  0x53   : > { %v349_v44 = vld [vmem:[%s1038_s29 + $0x288] sm:$0xff]  ;;  %482 = vmatpush.msra.mxu3 %v353_v40  ;;  %463 = vmatpush.msra.mxu2 %v285_v43  ;;  %v280_v49 = vld [vmem:[%s1038_s29 + $0x60] sm:$0xff]  ;;  %v307_v23 = vld [vmem:[%s1038_s29 + $0x138] sm:$0xff] }
  0x54   : > { %v281_v47 = vld [vmem:[%s1038_s29 + $0x68] sm:$0xff]  ;;  %v348_v50 = vld [vmem:[%s1038_s29 + $0x280] sm:$0xff]  ;;  %423 = vmatpush.msra.mxu0 %v284_v45  ;;  %442 = vmatpush.msra.mxu1 %v352_v46  ;;  %v371_v24 = vld [vmem:[%s1038_s29 + $0x338] sm:$0xff] }
  0x55   : > { %v345_v48 = vld [vmem:[%s1038_s29 + $0x268] sm:$0xff]  ;;  %483 = vmatpush.msra.mxu3 %v349_v44  ;;  %464 = vmatpush.msra.mxu2 %v281_v47  ;;  %v276_v53 = vld [vmem:[%s1038_s29 + $0x40] sm:$0xff]  ;;  %v310_v26 = vld [vmem:[%s1038_s29 + $0x150] sm:$0xff] }
  0x56   : > { %v277_v51 = vld [vmem:[%s1038_s29 + $0x48] sm:$0xff]  ;;  %v344_v54 = vld [vmem:[%s1038_s29 + $0x260] sm:$0xff]  ;;  %424 = vmatpush.msra.mxu0 %v280_v49  ;;  %443 = vmatpush.msra.mxu1 %v348_v50  ;;  %v378_v27 = vld [vmem:[%s1038_s29 + $0x370] sm:$0xff]  ;;  %v767_v45 = vpop.eup %766 }
  0x57   : > { %v341_v52 = vld [vmem:[%s1038_s29 + $0x248] sm:$0xff]  ;;  %484 = vmatpush.msra.mxu3 %v345_v48  ;;  %465 = vmatpush.msra.mxu2 %v277_v51  ;;  %v272_v57 = vld [vmem:[%s1038_s29 + $0x20] sm:$0xff]  ;;  %v303_v28 = vld [vmem:[%s1038_s29 + $0x118] sm:$0xff]  ;;  %v253_v48 = vmul.f32 %v767_v45, %v1138_v30  ;;  %v263_v51 = vand.u32 2147483648, %v1138_v30  ;;  %vm258_vm1 = vweird.f32 %v767_v45 }
  0x58   : > { %v273_v55 = vld [vmem:[%s1038_s29 + $0x28] sm:$0xff]  ;;  %v340_v58 = vld [vmem:[%s1038_s29 + $0x240] sm:$0xff]  ;;  %425 = vmatpush.msra.mxu0 %v276_v53  ;;  %444 = vmatpush.msra.mxu1 %v344_v54  ;;  %v367_v29 = vld [vmem:[%s1038_s29 + $0x318] sm:$0xff] }
  0x59   : > { %v337_v56 = vld [vmem:[%s1038_s29 + $0x228] sm:$0xff]  ;;  %485 = vmatpush.msra.mxu3 %v341_v52  ;;  %466 = vmatpush.msra.mxu2 %v273_v55  ;;  %v268_v63 = vld [vmem:[%s1038_s29] sm:$0xff]  ;;  %v306_v31 = vld [vmem:[%s1038_s29 + $0x130] sm:$0xff]  ;;  %v254_v54 = vsub.f32 1.0, %v253_v48  ;;  %v261_v55 = vand.u32 2147483647, %v1138_v30 }
  0x5a   : > { %v269_v59 = vld [vmem:[%s1038_s29 + $0x8] sm:$0xff]  ;;  %426 = vmatpush.msra.mxu0 %v272_v57  ;;  %445 = vmatpush.msra.mxu1 %v340_v58  ;;  %v336_v0 = vld [vmem:[%s1038_s29 + $0x220] sm:$0xff]  ;;  %v374_v32 = vld [vmem:[%s1038_s29 + $0x350] sm:$0xff] }
  0x5b   : > { %v333_v60 = vld [vmem:[%s1038_s29 + $0x208] sm:$0xff]  ;;  %486 = vmatpush.msra.mxu3 %v337_v56  ;;  %467 = vmatpush.msra.mxu2 %v269_v59  ;;  %v332_v4 = vld [vmem:[%s1038_s29 + $0x200] sm:$0xff]  ;;  %v299_v33 = vld [vmem:[%s1038_s29 + $0xf8] sm:$0xff]  ;;  %vm262_vm3 = vcmp.eq.f32.partialorder %v261_v55, 8.507059e+37 }
  0x5c   : > { %427 = vmatpush.msra.mxu0 %v268_v63  ;;  %446 = vmatpush.msra.mxu1 %v336_v0  ;;  %v363_v34 = vld [vmem:[%s1038_s29 + $0x2f8] sm:$0xff]  ;;  %v302_v35 = vld [vmem:[%s1038_s29 + $0x110] sm:$0xff]  ;;  %vm1174_vm2 = vmor %vm257_vm0, %vm258_vm1  ;;  %v264_v0 = vor.u32 1.1754944e-38, %v263_v51 }
  0x5d   : > { %487 = vmatpush.msra.mxu3 %v333_v60  ;;  %532 = vmatpush.msrb.mxu2 %v331_v61  ;;  %v370_v36 = vld [vmem:[%s1038_s29 + $0x330] sm:$0xff]  ;;  %v295_v37 = vld [vmem:[%s1038_s29 + $0xd8] sm:$0xff]  ;;  %v255_v60 = vmul.f32 %v767_v45, %v254_v54 }
  0x5e   : > { %492 = vmatpush.msrb.mxu0 %v330_v3  ;;  %447 = vmatpush.msra.mxu1 %v332_v4  ;;  %v359_v38 = vld [vmem:[%s1038_s29 + $0x2d8] sm:$0xff]  ;;  %v298_v39 = vld [vmem:[%s1038_s29 + $0xf0] sm:$0xff] }
  0x5f   : > { %552 = vmatpush.msrb.mxu3 %v395_v62  ;;  %533 = vmatpush.msrb.mxu2 %v327_v1  ;;  %v366_v40 = vld [vmem:[%s1038_s29 + $0x310] sm:$0xff]  ;;  %v291_v41 = vld [vmem:[%s1038_s29 + $0xb8] sm:$0xff]  ;;  %v256_v3 = vadd.f32 %v767_v45, %v255_v60 }
  0x60   : > { %493 = vmatpush.msrb.mxu0 %v326_v8  ;;  %512 = vmatpush.msrb.mxu1 %v394_v9  ;;  %v355_v42 = vld [vmem:[%s1038_s29 + $0x2b8] sm:$0xff]  ;;  %v294_v43 = vld [vmem:[%s1038_s29 + $0xd0] sm:$0xff] }
  0x61   : > { %553 = vmatpush.msrb.mxu3 %v391_v2  ;;  %534 = vmatpush.msrb.mxu2 %v323_v5  ;;  %v362_v44 = vld [vmem:[%s1038_s29 + $0x2f0] sm:$0xff]  ;;  %v287_v46 = vld [vmem:[%s1038_s29 + $0x98] sm:$0xff]  ;;  %v260_v9 = vsel %vm1174_vm2, %v767_v45, %v256_v3 }
  0x62   : > { %494 = vmatpush.msrb.mxu0 %v322_v13  ;;  %513 = vmatpush.msrb.mxu1 %v390_v14  ;;  %v351_v47 = vld [vmem:[%s1038_s29 + $0x298] sm:$0xff]  ;;  %v290_v49 = vld [vmem:[%s1038_s29 + $0xb0] sm:$0xff] }
  0x63   : > { %554 = vmatpush.msrb.mxu3 %v387_v6  ;;  %535 = vmatpush.msrb.mxu2 %v319_v11  ;;  %v358_v50 = vld [vmem:[%s1038_s29 + $0x2d0] sm:$0xff]  ;;  %v283_v52 = vld [vmem:[%s1038_s29 + $0x78] sm:$0xff] }
  0x64   : > { %495 = vmatpush.msrb.mxu0 %v318_v17  ;;  %514 = vmatpush.msrb.mxu1 %v386_v18  ;;  %v347_v53 = vld [vmem:[%s1038_s29 + $0x278] sm:$0xff]  ;;  %v286_v56 = vld [vmem:[%s1038_s29 + $0x90] sm:$0xff] }
  0x65   : > { %555 = vmatpush.msrb.mxu3 %v383_v12  ;;  %536 = vmatpush.msrb.mxu2 %v315_v15  ;;  %v354_v57 = vld [vmem:[%s1038_s29 + $0x2b0] sm:$0xff]  ;;  %v279_v58 = vld [vmem:[%s1038_s29 + $0x58] sm:$0xff]  ;;  %v265_v12 = vsel %vm262_vm3, %v264_v0, %v260_v9 }
  0x66   : > { %496 = vmatpush.msrb.mxu0 %v314_v21  ;;  %515 = vmatpush.msrb.mxu1 %v382_v22  ;;  %v343_v59 = vld [vmem:[%s1038_s29 + $0x258] sm:$0xff]  ;;  %v282_v61 = vld [vmem:[%s1038_s29 + $0x70] sm:$0xff]  ;;  %v267_v13 = vmul.f32 %v265_v12, %v1115_v7 }
  0x67   : > { %556 = vmatpush.msrb.mxu3 %v379_v16  ;;  %537 = vmatpush.msrb.mxu2 %v311_v19  ;;  %v350_v62 = vld [vmem:[%s1038_s29 + $0x290] sm:$0xff]  ;;  %v275_v1 = vld [vmem:[%s1038_s29 + $0x38] sm:$0xff] }
  0x68   : > { %497 = vmatpush.msrb.mxu0 %v310_v26  ;;  %516 = vmatpush.msrb.mxu1 %v378_v27  ;;  %v339_v2 = vld [vmem:[%s1038_s29 + $0x238] sm:$0xff]  ;;  %v278_v4 = vld [vmem:[%s1038_s29 + $0x50] sm:$0xff]  ;;  %407 = vst [vmem:[#allocation1] ss:$4 sm:$0xff] %v267_v13 }
  0x69   : > { %557 = vmatpush.msrb.mxu3 %v375_v20  ;;  %538 = vmatpush.msrb.mxu2 %v307_v23  ;;  %v346_v5 = vld [vmem:[%s1038_s29 + $0x270] sm:$0xff]  ;;  %v271_v6 = vld [vmem:[%s1038_s29 + $0x18] sm:$0xff]  ;;  %v396_v20 = vld [vmem:[%s210_s23] sm:$0xf] }
  0x6a   : > { %498 = vmatpush.msrb.mxu0 %v306_v31  ;;  %517 = vmatpush.msrb.mxu1 %v374_v32  ;;  %v335_v8 = vld [vmem:[%s1038_s29 + $0x218] sm:$0xff]  ;;  %v274_v10 = vld [vmem:[%s1038_s29 + $0x30] sm:$0xff]  ;;  %v399_v21 = vperm.slane %v396_v20, 1  ;;  %v398_v26 = vperm.slane %v396_v20, 0  ;;  %v401_v30 = vperm.slane %v396_v20, 3 }
  0x6b   : > { %558 = vmatpush.msrb.mxu3 %v371_v24  ;;  %539 = vmatpush.msrb.mxu2 %v303_v28  ;;  %v342_v11 = vld [vmem:[%s1038_s29 + $0x250] sm:$0xff]  ;;  %v400_v24 = vperm.slane %v396_v20, 2 }
  0x6c   : > { %499 = vmatpush.msrb.mxu0 %v302_v35  ;;  %518 = vmatpush.msrb.mxu1 %v370_v36  ;;  %v270_v14 = vld [vmem:[%s1038_s29 + $0x10] sm:$0xff] }
  0x6d   : > { %559 = vmatpush.msrb.mxu3 %v367_v29  ;;  %540 = vmatpush.msrb.mxu2 %v299_v33  ;;  %v338_v15 = vld [vmem:[%s1038_s29 + $0x230] sm:$0xff] }
  0x6e   : > { %500 = vmatpush.msrb.mxu0 %v298_v39  ;;  %519 = vmatpush.msrb.mxu1 %v366_v40  ;;  %v334_v16 = vld [vmem:[%s1038_s29 + $0x210] sm:$0xff] }
  0x6f   : > { %560 = vmatpush.msrb.mxu3 %v363_v34  ;;  %541 = vmatpush.msrb.mxu2 %v295_v37  ;;  %v408_v17 = vld.sshfl [vmem:[#allocation1] sm:$0xff pattern:$0x73625140]  ;;  %v409_v18 = vld.sshfl [vmem:[#allocation1 + $0x8] sm:$0xff pattern:$0x73625140] }
  0x70   : > { %501 = vmatpush.msrb.mxu0 %v294_v43  ;;  %520 = vmatpush.msrb.mxu1 %v362_v44 }
  0x71   : > { %561 = vmatpush.msrb.mxu3 %v359_v38  ;;  %542 = vmatpush.msrb.mxu2 %v291_v41 }
  0x72   : > { %502 = vmatpush.msrb.mxu0 %v290_v49  ;;  %521 = vmatpush.msrb.mxu1 %v358_v50 }
  0x73   : > { %562 = vmatpush.msrb.mxu3 %v355_v42  ;;  %543 = vmatpush.msrb.mxu2 %v287_v46 }
  0x74   : > { %503 = vmatpush.msrb.mxu0 %v286_v56  ;;  %522 = vmatpush.msrb.mxu1 %v354_v57 }
  0x75   : > { %563 = vmatpush.msrb.mxu3 %v351_v47  ;;  %544 = vmatpush.msrb.mxu2 %v283_v52 }
  0x76   : > { %504 = vmatpush.msrb.mxu0 %v282_v61  ;;  %523 = vmatpush.msrb.mxu1 %v350_v62 }
  0x77   : > { %564 = vmatpush.msrb.mxu3 %v347_v53  ;;  %545 = vmatpush.msrb.mxu2 %v279_v58 }
  0x78   : > { %505 = vmatpush.msrb.mxu0 %v278_v4  ;;  %524 = vmatpush.msrb.mxu1 %v346_v5 }
  0x79   : > { %565 = vmatpush.msrb.mxu3 %v343_v59  ;;  %546 = vmatpush.msrb.mxu2 %v275_v1 }
  0x7a   : > { %506 = vmatpush.msrb.mxu0 %v274_v10  ;;  %525 = vmatpush.msrb.mxu1 %v342_v11 }
  0x7b   : > { %566 = vmatpush.msrb.mxu3 %v339_v2  ;;  %547 = vmatpush.msrb.mxu2 %v271_v6 }
  0x7c   : > { %507 = vmatpush.msrb.mxu0 %v270_v14  ;;  %526 = vmatpush.msrb.mxu1 %v338_v15 }
  0x7d   : > { %567 = vmatpush.msrb.mxu3 %v335_v8  ;;  %468 = vmatmul.f32.vlgmr.msra.gmra.mxu2 %v408_v17 }
  0x7e   : > { %527 = vmatpush.msrb.mxu1 %v334_v16  ;;  %488 = vmatmul.f32.vlgmr.msra.gmra.mxu3 %v409_v18 }
  0x7f   : > { %428 = vmatmul.f32.vlgmr.msra.gmra.mxu0 %v408_v17  ;;  %448 = vmatmul.f32.vlgmr.msra.gmra.mxu1 %v409_v18 }
  0x85   : > { %548 = vmatmul.f32.vlgmr.msrb.gmra.mxu2 %v408_v17 }
  0x86   : > { %568 = vmatmul.f32.vlgmr.msrb.gmra.mxu3 %v409_v18 }
  0x87   : > { %508 = vmatmul.f32.vlgmr.msrb.gmra.mxu0 %v408_v17  ;;  %528 = vmatmul.f32.vlgmr.msrb.gmra.mxu1 %v409_v18 }
  0xfc   : > { %v429_v7 = vpop.f32.mrf.mxu0  ;;  %v449_v19 = vpop.f32.mrf.mxu1 }
  0xfd   : > { %v430_v31 = vadd.f32 %v429_v7, %v398_v26 }
  0xff   : > { %v450_v38 = vadd.f32 %v449_v19, %v430_v31 }
 0x100   : > { %v469_v22 = vpop.f32.mrf.mxu2 }
 0x101   : > { %v489_v23 = vpop.f32.mrf.mxu3  ;;  %v470_v25 = vadd.f32 %v469_v22, %v399_v21 }
 0x103   : > { %v490_v32 = vadd.f32 %v489_v23, %v470_v25 }
 0x104   : > { %v509_v27 = vpop.f32.mrf.mxu0  ;;  %v529_v29 = vpop.f32.mrf.mxu1 }
 0x105   : > { %v510_v28 = vadd.f32 %v509_v27, %v400_v24  ;;  %v576_v37 = vrot.slane %v490_v32, 6 }
 0x107   : > { %v530_v33 = vadd.f32 %v529_v29, %v510_v28  ;;  %v580_v42 = vsel %vm579_vm4, %v450_v38, %v576_v37 }
 0x108   : > { %v549_v34 = vpop.f32.mrf.mxu2 }
 0x109   : > { %v569_v35 = vpop.f32.mrf.mxu3  ;;  %v550_v36 = vadd.f32 %v549_v34, %v401_v30  ;;  %v577_v39 = vrot.slane %v530_v33, 4 }
 0x10b   : > { %v570_v40 = vadd.f32 %v569_v35, %v550_v36 }
 0x10d   : > { %v578_v41 = vrot.slane %v570_v40, 2 }
 0x10f   : > { %v582_v43 = vsel %vm581_vm5, %v577_v39, %v578_v41 }
 0x110   : > { %v584_v44 = vsel %vm583_vm6, %v580_v42, %v582_v43 }
 0x111   : > { %586 = vst [vmem:[%s245_s7] sm:$0xff] %v584_v44 }
 0x112 PF: > { %p14_p7 = scmp.ge.s32.totalorder %s943_s16, 8   ;;  %s1220_s12 = smov %s888_s13 }
 0x113   : > { %s1221_s13 = smov %s892_s14  ;;  %s1222_s14 = smov %s953_s19 }
 0x114   : > { %s1223_s15 = smov %s943_s16  ;;  %16 = sbr.rel (!%p14_p7) target bundleno = 4 (0x4), region = 88 }
 0x119   :  { %609 = vsyncpa [#allocation3], 1 }
 0x11a   :  { %611 = vsyncpa [#allocation3 + $0x1], 1 }
 0x11b   :  { %612 = vsyncpa [#allocation5], 1 }
 0x11c   :  { %614 = vsyncpa [#allocation5 + $0x1], 1 }

// kernel: joint_transformer_block.10
= control target key start
LH: loop header
LB: loop body
LE: loop exit
PB: predicated region body
PF: predicated region fallthrough
CT: control target
= control target key end

     0   :  { %s1360_s0 = inlined_call_operand.vmem [shape: f32[2,8,256], index: 0, kind: input, shape index: {}]   ;;  %s1361_s1 = inlined_call_operand.vmem [shape: f32[2,1,256], index: 1, kind: input, shape index: {}]   ;;  %s1362_s2 = inlined_call_operand.vmem [shape: f32[2,1,256], index: 2, kind: input, shape index: {}]   ;;  %s1363_s3 = inlined_call_operand.vmem [shape: f32[256,768], index: 3, kind: input, shape index: {}]   ;;  %s1364_s4 = inlined_call_operand.vmem [shape: f32[1,768], index: 4, kind: input, shape index: {}]   ;;  %s1365_s5 = inlined_call_operand.vmem [shape: f32[2,8,768], index: 5, kind: output, shape index: {}]  }
   0x1   :  { %1368 = sst [smem:[#allocation7_spill]] %s1363_s3 }
   0x2   :  { %s1043_s18 = smov 0   ;;  %s1045_s19 = smov 0  }
   0x3   :  { %s1047_s20 = smov 0   ;;  %s1049_s21 = smov 0  }
   0x4   :  { %s1051_s22 = smov 0   ;;  %s1053_s23 = smov 0  }
   0x5   :  { %s1055_s24 = smov 0  }
   0x6 LB: > { %1369 = sst [smem:[#allocation4_spill]] %s1006_s23  ;;  %s27_s25 = sadd.s32 1, %s1002_s22  ;;  %s1010_s24 = sphi %s1055_s24, %s15_s24   ;;  %s1006_s23 = sphi %s1053_s23, %s1380_s23   ;;  %s1002_s22 = sphi %s1051_s22, %s1379_s22   ;;  %s998_s21 = sphi %s1049_s21, %s1373_s21   ;;  %s994_s20 = sphi %s1047_s20, %s1378_s20   ;;  %s990_s19 = sphi %s1045_s19, %s1377_s19   ;;  %s986_s18 = sphi %s1043_s18, %s1376_s18  }
   0x7   : > { %s34_s26 = sadd.s32 1, %s1006_s23  ;;  %p28_p0 = scmp.ge.s32.totalorder %s27_s25, 3 }
   0x8   : > { %s121_s27 = sadd.s32 1, %s990_s19  ;;  %p128_p1 = scmp.ne.s32.totalorder %s990_s19, %s986_s18 }
   0x9   : > { %p129_p2 = scmp.eq.s32.totalorder %s1010_s24, 0  ;;  %s1382_s25 = smov (%p28_p0, %s27_s25), 0 }
   0xa   : > { %1370 = sst [smem:[#allocation5_spill]] %s1382_s25  ;;  %s1384_s26 = smov (!%p28_p0, %s34_s26), %s1006_s23 }
   0xb   : > { %s118_s28 = ssub.s32 %s1002_s22, %s1382_s25  ;;  %p130_p3 = por %p129_p2, %p128_p1 }
   0xc   : > { %p36_p4 = scmp.ge.s32.totalorder %s1384_s26, 2  ;;  %p119_p5 = scmp.eq.s32.totalorder %s118_s28, 0 }
   0xd   : > { %p876_p6 = scmp.ge.s32.totalorder %s1010_s24, 6 }
   0xe   : > { %s1386_s26 = smov (%p36_p4, %s1384_s26), 0 }
   0xf   : > { %1371 = sst [smem:[#allocation6_spill]] %s1386_s26  ;;  %210 = sbr.rel (%p876_p6) target bundleno = 94 (0x5e), region = 16 }
  0x10   : > { %s1092_s29 = scalar_select %p119_p5, %s990_s19, %s121_s27  }
  0x14   : > { %239 = sbr.rel (!%p130_p3) target bundleno = 94 (0x5e), region = 32  ;;  %s241_s30 = sand.u32 (%p130_p3), 1, %s990_s19  }
  0x15   : > { %s892_s6 = sshll.u32 (%p130_p3), %s1002_s22, 4  ;;  %s877_s7 = sshll.u32 (%p130_p3), %s241_s30, 9 }
  0x16   : > { %s1372_s3 = sld [smem:[#allocation7_spill]] (%p130_p3)  ;;  %s1105_s11 = scalar_lea.vmem (%p130_p3), [#allocation3], %s877_s7 }
  0x1c   : > { %s1100_s10 = scalar_lea.vmem %s1372_s3, %s892_s6 }
  0x1d   : > { %v259_v0 = vld [vmem:[%s1100_s10] sm:$0xff]  ;;  %v261_v1 = vld [vmem:[%s1100_s10 + $0x8] sm:$0xff]  ;;  %v263_v2 = vld [vmem:[%s1100_s10 + $0x30] sm:$0xff] }
  0x1e   : > { %260 = vst [vmem:[%s1105_s11] sm:$0xff] %v259_v0  ;;  %v265_v3 = vld [vmem:[%s1100_s10 + $0x38] sm:$0xff]  ;;  %v267_v4 = vld [vmem:[%s1100_s10 + $0x60] sm:$0xff]  ;;  %v269_v5 = vld [vmem:[%s1100_s10 + $0x68] sm:$0xff] }
  0x1f   : > { %262 = vst [vmem:[%s1105_s11 + $0x8] sm:$0xff] %v261_v1  ;;  %v271_v6 = vld [vmem:[%s1100_s10 + $0x90] sm:$0xff]  ;;  %v273_v7 = vld [vmem:[%s1100_s10 + $0x98] sm:$0xff]  ;;  %v275_v8 = vld [vmem:[%s1100_s10 + $0xc0] sm:$0xff] }
  0x20   : > { %264 = vst [vmem:[%s1105_s11 + $0x10] sm:$0xff] %v263_v2  ;;  %v277_v9 = vld [vmem:[%s1100_s10 + $0xc8] sm:$0xff]  ;;  %v279_v10 = vld [vmem:[%s1100_s10 + $0xf0] sm:$0xff]  ;;  %v281_v11 = vld [vmem:[%s1100_s10 + $0xf8] sm:$0xff] }
  0x21   : > { %266 = vst [vmem:[%s1105_s11 + $0x18] sm:$0xff] %v265_v3  ;;  %v283_v12 = vld [vmem:[%s1100_s10 + $0x120] sm:$0xff]  ;;  %v285_v13 = vld [vmem:[%s1100_s10 + $0x128] sm:$0xff]  ;;  %v287_v14 = vld [vmem:[%s1100_s10 + $0x150] sm:$0xff] }
  0x22   : > { %268 = vst [vmem:[%s1105_s11 + $0x20] sm:$0xff] %v267_v4  ;;  %v289_v15 = vld [vmem:[%s1100_s10 + $0x158] sm:$0xff]  ;;  %v291_v16 = vld [vmem:[%s1100_s10 + $0x180] sm:$0xff]  ;;  %v293_v17 = vld [vmem:[%s1100_s10 + $0x188] sm:$0xff] }
  0x23   : > { %270 = vst [vmem:[%s1105_s11 + $0x28] sm:$0xff] %v269_v5  ;;  %v295_v18 = vld [vmem:[%s1100_s10 + $0x1b0] sm:$0xff]  ;;  %v297_v19 = vld [vmem:[%s1100_s10 + $0x1b8] sm:$0xff]  ;;  %v299_v20 = vld [vmem:[%s1100_s10 + $0x1e0] sm:$0xff] }
  0x24   : > { %272 = vst [vmem:[%s1105_s11 + $0x30] sm:$0xff] %v271_v6  ;;  %v301_v21 = vld [vmem:[%s1100_s10 + $0x1e8] sm:$0xff]  ;;  %v303_v22 = vld [vmem:[%s1100_s10 + $0x210] sm:$0xff]  ;;  %v305_v23 = vld [vmem:[%s1100_s10 + $0x218] sm:$0xff] }
  0x25   : > { %274 = vst [vmem:[%s1105_s11 + $0x38] sm:$0xff] %v273_v7  ;;  %v307_v24 = vld [vmem:[%s1100_s10 + $0x240] sm:$0xff]  ;;  %v309_v25 = vld [vmem:[%s1100_s10 + $0x248] sm:$0xff]  ;;  %v311_v26 = vld [vmem:[%s1100_s10 + $0x270] sm:$0xff] }
  0x26   : > { %276 = vst [vmem:[%s1105_s11 + $0x40] sm:$0xff] %v275_v8  ;;  %v313_v27 = vld [vmem:[%s1100_s10 + $0x278] sm:$0xff]  ;;  %v315_v28 = vld [vmem:[%s1100_s10 + $0x2a0] sm:$0xff]  ;;  %v317_v29 = vld [vmem:[%s1100_s10 + $0x2a8] sm:$0xff] }
  0x27   : > { %278 = vst [vmem:[%s1105_s11 + $0x48] sm:$0xff] %v277_v9  ;;  %v319_v30 = vld [vmem:[%s1100_s10 + $0x2d0] sm:$0xff]  ;;  %v321_v31 = vld [vmem:[%s1100_s10 + $0x2d8] sm:$0xff]  ;;  %v323_v32 = vld [vmem:[%s1100_s10 + $0x300] sm:$0xff] }
  0x28   : > { %280 = vst [vmem:[%s1105_s11 + $0x50] sm:$0xff] %v279_v10  ;;  %v325_v33 = vld [vmem:[%s1100_s10 + $0x308] sm:$0xff]  ;;  %v327_v34 = vld [vmem:[%s1100_s10 + $0x330] sm:$0xff]  ;;  %v329_v35 = vld [vmem:[%s1100_s10 + $0x338] sm:$0xff] }
  0x29   : > { %282 = vst [vmem:[%s1105_s11 + $0x58] sm:$0xff] %v281_v11  ;;  %v331_v36 = vld [vmem:[%s1100_s10 + $0x360] sm:$0xff]  ;;  %v333_v37 = vld [vmem:[%s1100_s10 + $0x368] sm:$0xff]  ;;  %v335_v38 = vld [vmem:[%s1100_s10 + $0x390] sm:$0xff] }
  0x2a   : > { %284 = vst [vmem:[%s1105_s11 + $0x60] sm:$0xff] %v283_v12  ;;  %v337_v39 = vld [vmem:[%s1100_s10 + $0x398] sm:$0xff]  ;;  %v339_v40 = vld [vmem:[%s1100_s10 + $0x3c0] sm:$0xff]  ;;  %v341_v41 = vld [vmem:[%s1100_s10 + $0x3c8] sm:$0xff] }
  0x2b   : > { %286 = vst [vmem:[%s1105_s11 + $0x68] sm:$0xff] %v285_v13  ;;  %v343_v42 = vld [vmem:[%s1100_s10 + $0x3f0] sm:$0xff]  ;;  %v345_v43 = vld [vmem:[%s1100_s10 + $0x3f8] sm:$0xff]  ;;  %v347_v44 = vld [vmem:[%s1100_s10 + $0x420] sm:$0xff] }
  0x2c   : > { %288 = vst [vmem:[%s1105_s11 + $0x70] sm:$0xff] %v287_v14  ;;  %v349_v45 = vld [vmem:[%s1100_s10 + $0x428] sm:$0xff]  ;;  %v351_v46 = vld [vmem:[%s1100_s10 + $0x450] sm:$0xff]  ;;  %v353_v47 = vld [vmem:[%s1100_s10 + $0x458] sm:$0xff] }
  0x2d   : > { %290 = vst [vmem:[%s1105_s11 + $0x78] sm:$0xff] %v289_v15  ;;  %v355_v48 = vld [vmem:[%s1100_s10 + $0x480] sm:$0xff]  ;;  %v357_v49 = vld [vmem:[%s1100_s10 + $0x488] sm:$0xff]  ;;  %v359_v50 = vld [vmem:[%s1100_s10 + $0x4b0] sm:$0xff] }
  0x2e   : > { %292 = vst [vmem:[%s1105_s11 + $0x80] sm:$0xff] %v291_v16  ;;  %v361_v51 = vld [vmem:[%s1100_s10 + $0x4b8] sm:$0xff]  ;;  %v363_v52 = vld [vmem:[%s1100_s10 + $0x4e0] sm:$0xff]  ;;  %v365_v53 = vld [vmem:[%s1100_s10 + $0x4e8] sm:$0xff] }
  0x2f   : > { %294 = vst [vmem:[%s1105_s11 + $0x88] sm:$0xff] %v293_v17  ;;  %v367_v54 = vld [vmem:[%s1100_s10 + $0x510] sm:$0xff]  ;;  %v369_v55 = vld [vmem:[%s1100_s10 + $0x518] sm:$0xff]  ;;  %v371_v56 = vld [vmem:[%s1100_s10 + $0x540] sm:$0xff] }
  0x30   : > { %296 = vst [vmem:[%s1105_s11 + $0x90] sm:$0xff] %v295_v18  ;;  %v373_v57 = vld [vmem:[%s1100_s10 + $0x548] sm:$0xff]  ;;  %v375_v58 = vld [vmem:[%s1100_s10 + $0x570] sm:$0xff]  ;;  %v377_v59 = vld [vmem:[%s1100_s10 + $0x578] sm:$0xff] }
  0x31   : > { %298 = vst [vmem:[%s1105_s11 + $0x98] sm:$0xff] %v297_v19  ;;  %v379_v60 = vld [vmem:[%s1100_s10 + $0x5a0] sm:$0xff]  ;;  %v381_v61 = vld [vmem:[%s1100_s10 + $0x5a8] sm:$0xff]  ;;  %v383_v62 = vld [vmem:[%s1100_s10 + $0x5d0] sm:$0xff] }
  0x32   : > { %300 = vst [vmem:[%s1105_s11 + $0xa0] sm:$0xff] %v299_v20  ;;  %v385_v63 = vld [vmem:[%s1100_s10 + $0x5d8] sm:$0xff] }
  0x33   : > { %302 = vst [vmem:[%s1105_s11 + $0xa8] sm:$0xff] %v301_v21 }
  0x34   : > { %304 = vst [vmem:[%s1105_s11 + $0xb0] sm:$0xff] %v303_v22 }
  0x35   : > { %306 = vst [vmem:[%s1105_s11 + $0xb8] sm:$0xff] %v305_v23 }
  0x36   : > { %308 = vst [vmem:[%s1105_s11 + $0xc0] sm:$0xff] %v307_v24 }
  0x37   : > { %310 = vst [vmem:[%s1105_s11 + $0xc8] sm:$0xff] %v309_v25 }
  0x38   : > { %312 = vst [vmem:[%s1105_s11 + $0xd0] sm:$0xff] %v311_v26 }
  0x39   : > { %314 = vst [vmem:[%s1105_s11 + $0xd8] sm:$0xff] %v313_v27 }
  0x3a   : > { %316 = vst [vmem:[%s1105_s11 + $0xe0] sm:$0xff] %v315_v28 }
  0x3b   : > { %318 = vst [vmem:[%s1105_s11 + $0xe8] sm:$0xff] %v317_v29 }
  0x3c   : > { %320 = vst [vmem:[%s1105_s11 + $0xf0] sm:$0xff] %v319_v30 }
  0x3d   : > { %322 = vst [vmem:[%s1105_s11 + $0xf8] sm:$0xff] %v321_v31 }
  0x3e   : > { %324 = vst [vmem:[%s1105_s11 + $0x100] sm:$0xff] %v323_v32 }
  0x3f   : > { %326 = vst [vmem:[%s1105_s11 + $0x108] sm:$0xff] %v325_v33 }
  0x40   : > { %328 = vst [vmem:[%s1105_s11 + $0x110] sm:$0xff] %v327_v34 }
  0x41   : > { %330 = vst [vmem:[%s1105_s11 + $0x118] sm:$0xff] %v329_v35 }
  0x42   : > { %332 = vst [vmem:[%s1105_s11 + $0x120] sm:$0xff] %v331_v36 }
  0x43   : > { %334 = vst [vmem:[%s1105_s11 + $0x128] sm:$0xff] %v333_v37 }
  0x44   : > { %336 = vst [vmem:[%s1105_s11 + $0x130] sm:$0xff] %v335_v38 }
  0x45   : > { %338 = vst [vmem:[%s1105_s11 + $0x138] sm:$0xff] %v337_v39 }
  0x46   : > { %340 = vst [vmem:[%s1105_s11 + $0x140] sm:$0xff] %v339_v40 }
  0x47   : > { %342 = vst [vmem:[%s1105_s11 + $0x148] sm:$0xff] %v341_v41 }
  0x48   : > { %344 = vst [vmem:[%s1105_s11 + $0x150] sm:$0xff] %v343_v42 }
  0x49   : > { %346 = vst [vmem:[%s1105_s11 + $0x158] sm:$0xff] %v345_v43 }
  0x4a   : > { %348 = vst [vmem:[%s1105_s11 + $0x160] sm:$0xff] %v347_v44 }
  0x4b   : > { %350 = vst [vmem:[%s1105_s11 + $0x168] sm:$0xff] %v349_v45 }
  0x4c   : > { %352 = vst [vmem:[%s1105_s11 + $0x170] sm:$0xff] %v351_v46 }
  0x4d   : > { %354 = vst [vmem:[%s1105_s11 + $0x178] sm:$0xff] %v353_v47 }
  0x4e   : > { %356 = vst [vmem:[%s1105_s11 + $0x180] sm:$0xff] %v355_v48 }
  0x4f   : > { %358 = vst [vmem:[%s1105_s11 + $0x188] sm:$0xff] %v357_v49 }
  0x50   : > { %360 = vst [vmem:[%s1105_s11 + $0x190] sm:$0xff] %v359_v50 }
  0x51   : > { %362 = vst [vmem:[%s1105_s11 + $0x198] sm:$0xff] %v361_v51 }
  0x52   : > { %364 = vst [vmem:[%s1105_s11 + $0x1a0] sm:$0xff] %v363_v52 }
  0x53   : > { %366 = vst [vmem:[%s1105_s11 + $0x1a8] sm:$0xff] %v365_v53 }
  0x54   : > { %368 = vst [vmem:[%s1105_s11 + $0x1b0] sm:$0xff] %v367_v54 }
  0x55   : > { %370 = vst [vmem:[%s1105_s11 + $0x1b8] sm:$0xff] %v369_v55 }
  0x56   : > { %372 = vst [vmem:[%s1105_s11 + $0x1c0] sm:$0xff] %v371_v56 }
  0x57   : > { %374 = vst [vmem:[%s1105_s11 + $0x1c8] sm:$0xff] %v373_v57 }
  0x58   : > { %376 = vst [vmem:[%s1105_s11 + $0x1d0] sm:$0xff] %v375_v58 }
  0x59   : > { %378 = vst [vmem:[%s1105_s11 + $0x1d8] sm:$0xff] %v377_v59 }
  0x5a   : > { %380 = vst [vmem:[%s1105_s11 + $0x1e0] sm:$0xff] %v379_v60 }
  0x5b   : > { %382 = vst [vmem:[%s1105_s11 + $0x1e8] sm:$0xff] %v381_v61 }
  0x5c   : > { %384 = vst [vmem:[%s1105_s11 + $0x1f0] sm:$0xff] %v383_v62 }
  0x5d   : > { %386 = vst [vmem:[%s1105_s11 + $0x1f8] sm:$0xff] %v385_v63 }
  0x5e PF: > { %p880_p7 = scmp.ge.s32.totalorder %s1010_s24, 1  ;;  %p399_p8 = scmp.lt.s32.totalorder %s1010_s24, 7 }
  0x60   : > { %p400_p9 = pnand %p880_p7, %p399_p8 }
  0x61   : > { %s406_s12 = sand.u32 (!%p400_p9), 1, %s986_s18   ;;  %p462_p10 = scmp.lt.s32.totalorder (!%p400_p9), %s998_s21, 1 }
  0x62   : > { %403 = sbr.rel (%p400_p9) target bundleno = 555 (0x22b), region = 59  ;;  %s881_s13 = sshll.u32 (!%p400_p9), %s406_s12, 9 }
  0x63   : > { %s886_s14 = sshll.u32 (!%p400_p9), %s994_s20, 1  ;;  %s1263_s27 = scalar_lea.vmem (!%p400_p9), [#allocation3], %s881_s13 }
  0x64   : > { %p481_p11 = scmp.lt.s32.totalorder (!%p400_p9), %s886_s14, 5  ;;  %p889_p12 = scmp.ne.s32.totalorder (!%p400_p9), %s994_s20, 0 }
  0x67   : > { %s1388_s21 = smov (!%p462_p10, %s998_s21), 1  ;;  %s1390_s14 = smov (!%p481_p11, %s886_s14), 5 }
  0x68   : > { %s893_s15 = sshll.u32 %s1388_s21, 4  ;;  %s884_s16 = sshll.u32 %s1388_s21, 1 }
  0x69   : > { %s470_s28 = scalar_lea.vmem %s1360_s0, %s893_s15  ;;  %s1246_s7 = scalar_lea.vmem %s1361_s1, %s884_s16 }
  0x6a   : > { %s1251_s9 = scalar_lea.vmem %s1362_s2, %s884_s16  ;;  %s483_s12 = scalar_lea.vmem %s1364_s4, %s1390_s14 }
  0x6b   : > { %s894_s3 = smul.u32 6, %s1388_s21 }
  0x6c   : > { %502 = sbr.rel (%p889_p12) target bundleno = 386 (0x182), region = 67 }
  0x6d   : > { %s495_s26 = sadd.s32 %s894_s3, %s1390_s14 }
  0x6e   : > { %s888_s25 = sshll.u32 %s495_s26, 3 }
  0x6f   : > { %s1261_s15 = scalar_lea.vmem %s1365_s5, %s888_s25 }
  0x71   : > { %v503_v0 = vld [vmem:[%s470_s28] sm:$0xff]  ;;  %v504_v1 = vld [vmem:[%s470_s28 + $0x8] sm:$0xff]  ;;  %v1012_v3 = vmov 256.0  }
  0x72   : > { %v507_v2 = vadd.f32 %v504_v1, %v503_v0  ;;  %952 = vrcp.f32 %v1012_v3  ;;  %v505_v22 = vld [vmem:[%s1246_s7] sm:$0x3] }
  0x73   : > { %v539_v25 = vadd.f32 1.0, %v505_v22  ;;  %v506_v27 = vld [vmem:[%s1251_s9] sm:$0x3] }
  0x74   : > { %508 = vadd.xlane.f32.xlu0 %v507_v2  ;;  %v548_v32 = vperm.slane %v506_v27, 0  ;;  %v549_v33 = vperm.slane %v506_v27, 1 }
  0x75   : > { %v541_v29 = vperm.slane %v539_v25, 0  ;;  %v542_v30 = vperm.slane %v539_v25, 1 }
  0x78   : > { %v953_v4 = vpop.eup %952 }
  0x79   : > { %v511_v5 = vmul.f32 256.0, %v953_v4  ;;  %vm515_vm0 = vweird.f32 %v953_v4 }
  0x7b   : > { %v512_v6 = vsub.f32 1.0, %v511_v5 }
  0x7d   : > { %v513_v7 = vmul.f32 %v953_v4, %v512_v6 }
  0x7f   : > { %v514_v8 = vadd.f32 %v953_v4, %v513_v7 }
  0x81   : > { %v516_v9 = vsel %vm515_vm0, %v953_v4, %v514_v8 }
  0xe7   : > { %v509_v10 = vpop.xlane.xlu0 %508 }
  0xe8   : > { %v517_v11 = vmul.f32 %v516_v9, %v509_v10 }
  0xea   : > { %v518_v12 = vsub.f32 %v503_v0, %v517_v11  ;;  %v519_v13 = vsub.f32 %v504_v1, %v517_v11 }
  0xec   : > { %v520_v14 = vmul.f32 %v518_v12, %v518_v12  ;;  %v521_v15 = vmul.f32 %v519_v13, %v519_v13 }
  0xee   : > { %v522_v16 = vadd.f32 %v521_v15, %v520_v14 }
  0xf0   : > { %523 = vadd.xlane.f32.xlu0 %v522_v16 }
 0x163   : > { %v524_v17 = vpop.xlane.xlu0 %523 }
 0x164   : > { %v525_v18 = vmul.f32 %v524_v17, %v516_v9 }
 0x166   : > { %v526_v19 = vadd.f32 1e-06, %v525_v18 }
 0x168   : > { %954 = vrsqrt.f32 %v526_v19  ;;  %vm533_vm2 = vweird.f32 %v526_v19 }
 0x16e   : > { %v955_v20 = vpop.eup %954 }
 0x16f   : > { %v528_v21 = vmul.f32 %v955_v20, %v526_v19  ;;  %vm534_vm1 = vweird.f32 %v955_v20 }
 0x170   : > { %vm535_vm3 = vmor %vm533_vm2, %vm534_vm1 }
 0x171   : > { %v529_v23 = vmul.f32 %v955_v20, %v528_v21 }
 0x173   : > { %v530_v24 = vmul.f32 0.5, %v529_v23 }
 0x175   : > { %v531_v26 = vsub.f32 1.5, %v530_v24 }
 0x177   : > { %v532_v28 = vmul.f32 %v955_v20, %v531_v26 }
 0x179   : > { %v536_v31 = vsel %vm535_vm3, %v955_v20, %v532_v28 }
 0x17a   : > { %v537_v34 = vmul.f32 %v536_v31, %v518_v12  ;;  %v538_v35 = vmul.f32 %v536_v31, %v519_v13 }
 0x17c   : > { %v545_v36 = vmul.f32 %v541_v29, %v537_v34  ;;  %v546_v37 = vmul.f32 %v542_v30, %v538_v35 }
 0x17e   : > { %v552_v38 = vadd.f32 %v548_v32, %v545_v36  ;;  %v553_v39 = vadd.f32 %v549_v33, %v546_v37 }
 0x180   : > { %554 = vst [vmem:[#allocation2] sm:$0xff] %v552_v38 }
 0x181   : > { %555 = vst [vmem:[#allocation2 + $0x8] sm:$0xff] %v553_v39 }
 0x182 PF: > { %v589_v40 = vld [vmem:[%s1263_s27 + $0xf8] sm:$0xff]  ;;  %v587_v41 = vld [vmem:[%s1263_s27 + $0xe8] sm:$0xff]  ;;  %v588_v44 = vld [vmem:[%s1263_s27 + $0xf0] sm:$0xff] }
 0x183   : > { %v621_v42 = vld [vmem:[%s1263_s27 + $0x1f8] sm:$0xff]  ;;  %668 = vmatpush.msra.mxu2 %v589_v40  ;;  %v619_v43 = vld [vmem:[%s1263_s27 + $0x1e8] sm:$0xff]  ;;  %628 = vmatpush.msra.mxu0 %v588_v44  ;;  %v586_v47 = vld [vmem:[%s1263_s27 + $0xe0] sm:$0xff] }
 0x184   : > { %688 = vmatpush.msra.mxu3 %v621_v42  ;;  %v585_v45 = vld [vmem:[%s1263_s27 + $0xd8] sm:$0xff]  ;;  %v583_v48 = vld [vmem:[%s1263_s27 + $0xc8] sm:$0xff]  ;;  %v620_v49 = vld [vmem:[%s1263_s27 + $0x1f0] sm:$0xff] }
 0x185   : > { %v617_v46 = vld [vmem:[%s1263_s27 + $0x1d8] sm:$0xff]  ;;  %669 = vmatpush.msra.mxu2 %v587_v41  ;;  %629 = vmatpush.msra.mxu0 %v586_v47  ;;  %v615_v50 = vld [vmem:[%s1263_s27 + $0x1c8] sm:$0xff]  ;;  %v584_v51 = vld [vmem:[%s1263_s27 + $0xd0] sm:$0xff] }
 0x186   : > { %689 = vmatpush.msra.mxu3 %v619_v43  ;;  %648 = vmatpush.msra.mxu1 %v620_v49  ;;  %v618_v52 = vld [vmem:[%s1263_s27 + $0x1e0] sm:$0xff]  ;;  %v616_v54 = vld [vmem:[%s1263_s27 + $0x1d0] sm:$0xff]  ;;  %v581_v55 = vld [vmem:[%s1263_s27 + $0xb8] sm:$0xff] }
 0x187   : > { %670 = vmatpush.msra.mxu2 %v585_v45  ;;  %v582_v53 = vld [vmem:[%s1263_s27 + $0xc0] sm:$0xff]  ;;  %630 = vmatpush.msra.mxu0 %v584_v51  ;;  %v613_v56 = vld [vmem:[%s1263_s27 + $0x1b8] sm:$0xff]  ;;  %v580_v57 = vld [vmem:[%s1263_s27 + $0xb0] sm:$0xff] }
 0x188   : > { %690 = vmatpush.msra.mxu3 %v617_v46  ;;  %649 = vmatpush.msra.mxu1 %v618_v52  ;;  %v614_v58 = vld [vmem:[%s1263_s27 + $0x1c0] sm:$0xff]  ;;  %v579_v59 = vld [vmem:[%s1263_s27 + $0xa8] sm:$0xff]  ;;  %v612_v62 = vld [vmem:[%s1263_s27 + $0x1b0] sm:$0xff] }
 0x189   : > { %671 = vmatpush.msra.mxu2 %v583_v48  ;;  %631 = vmatpush.msra.mxu0 %v582_v53  ;;  %v611_v60 = vld [vmem:[%s1263_s27 + $0x1a8] sm:$0xff]  ;;  %v578_v61 = vld [vmem:[%s1263_s27 + $0xa0] sm:$0xff]  ;;  %v577_v63 = vld [vmem:[%s1263_s27 + $0x98] sm:$0xff] }
 0x18a   : > { %691 = vmatpush.msra.mxu3 %v615_v50  ;;  %650 = vmatpush.msra.mxu1 %v616_v54  ;;  %v609_v0 = vld [vmem:[%s1263_s27 + $0x198] sm:$0xff]  ;;  %v576_v1 = vld [vmem:[%s1263_s27 + $0x90] sm:$0xff]  ;;  %v610_v2 = vld [vmem:[%s1263_s27 + $0x1a0] sm:$0xff] }
 0x18b   : > { %672 = vmatpush.msra.mxu2 %v581_v55  ;;  %632 = vmatpush.msra.mxu0 %v580_v57  ;;  %v575_v3 = vld [vmem:[%s1263_s27 + $0x88] sm:$0xff]  ;;  %v574_v5 = vld [vmem:[%s1263_s27 + $0x80] sm:$0xff]  ;;  %v608_v6 = vld [vmem:[%s1263_s27 + $0x190] sm:$0xff] }
 0x18c   : > { %692 = vmatpush.msra.mxu3 %v613_v56  ;;  %651 = vmatpush.msra.mxu1 %v614_v58  ;;  %v607_v4 = vld [vmem:[%s1263_s27 + $0x188] sm:$0xff]  ;;  %v573_v7 = vld [vmem:[%s1263_s27 + $0x78] sm:$0xff]  ;;  %v572_v9 = vld [vmem:[%s1263_s27 + $0x70] sm:$0xff] }
 0x18d   : > { %673 = vmatpush.msra.mxu2 %v579_v59  ;;  %633 = vmatpush.msra.mxu0 %v578_v61  ;;  %v605_v8 = vld [vmem:[%s1263_s27 + $0x178] sm:$0xff]  ;;  %v606_v10 = vld [vmem:[%s1263_s27 + $0x180] sm:$0xff]  ;;  %v571_v11 = vld [vmem:[%s1263_s27 + $0x68] sm:$0xff] }
 0x18e   : > { %693 = vmatpush.msra.mxu3 %v611_v60  ;;  %652 = vmatpush.msra.mxu1 %v612_v62  ;;  %v603_v12 = vld [vmem:[%s1263_s27 + $0x168] sm:$0xff]  ;;  %v570_v13 = vld [vmem:[%s1263_s27 + $0x60] sm:$0xff]  ;;  %v604_v14 = vld [vmem:[%s1263_s27 + $0x170] sm:$0xff] }
 0x18f   : > { %674 = vmatpush.msra.mxu2 %v577_v63  ;;  %634 = vmatpush.msra.mxu0 %v576_v1  ;;  %v569_v15 = vld [vmem:[%s1263_s27 + $0x58] sm:$0xff]  ;;  %v568_v17 = vld [vmem:[%s1263_s27 + $0x50] sm:$0xff]  ;;  %v602_v18 = vld [vmem:[%s1263_s27 + $0x160] sm:$0xff] }
 0x190   : > { %694 = vmatpush.msra.mxu3 %v609_v0  ;;  %653 = vmatpush.msra.mxu1 %v610_v2  ;;  %v601_v16 = vld [vmem:[%s1263_s27 + $0x158] sm:$0xff]  ;;  %v567_v19 = vld [vmem:[%s1263_s27 + $0x48] sm:$0xff]  ;;  %v566_v21 = vld [vmem:[%s1263_s27 + $0x40] sm:$0xff] }
 0x191   : > { %675 = vmatpush.msra.mxu2 %v575_v3  ;;  %635 = vmatpush.msra.mxu0 %v574_v5  ;;  %v599_v20 = vld [vmem:[%s1263_s27 + $0x148] sm:$0xff]  ;;  %v600_v22 = vld [vmem:[%s1263_s27 + $0x150] sm:$0xff]  ;;  %v565_v23 = vld [vmem:[%s1263_s27 + $0x38] sm:$0xff] }
 0x192   : > { %695 = vmatpush.msra.mxu3 %v607_v4  ;;  %654 = vmatpush.msra.mxu1 %v608_v6  ;;  %v597_v24 = vld [vmem:[%s1263_s27 + $0x138] sm:$0xff]  ;;  %v564_v25 = vld [vmem:[%s1263_s27 + $0x30] sm:$0xff]  ;;  %v598_v26 = vld [vmem:[%s1263_s27 + $0x140] sm:$0xff] }
 0x193   : > { %676 = vmatpush.msra.mxu2 %v573_v7  ;;  %636 = vmatpush.msra.mxu0 %v572_v9  ;;  %v563_v27 = vld [vmem:[%s1263_s27 + $0x28] sm:$0xff]  ;;  %v562_v29 = vld [vmem:[%s1263_s27 + $0x20] sm:$0xff]  ;;  %v596_v30 = vld [vmem:[%s1263_s27 + $0x130] sm:$0xff] }
 0x194   : > { %696 = vmatpush.msra.mxu3 %v605_v8  ;;  %655 = vmatpush.msra.mxu1 %v606_v10  ;;  %v595_v28 = vld [vmem:[%s1263_s27 + $0x128] sm:$0xff]  ;;  %v561_v31 = vld [vmem:[%s1263_s27 + $0x18] sm:$0xff]  ;;  %v560_v33 = vld [vmem:[%s1263_s27 + $0x10] sm:$0xff] }
 0x195   : > { %677 = vmatpush.msra.mxu2 %v571_v11  ;;  %637 = vmatpush.msra.mxu0 %v570_v13  ;;  %v593_v32 = vld [vmem:[%s1263_s27 + $0x118] sm:$0xff]  ;;  %v594_v34 = vld [vmem:[%s1263_s27 + $0x120] sm:$0xff]  ;;  %v559_v35 = vld [vmem:[%s1263_s27 + $0x8] sm:$0xff] }
 0x196   : > { %697 = vmatpush.msra.mxu3 %v603_v12  ;;  %656 = vmatpush.msra.mxu1 %v604_v14  ;;  %v591_v36 = vld [vmem:[%s1263_s27 + $0x108] sm:$0xff]  ;;  %v556_v37 = vld [vmem:[#allocation2] sm:$0xff]  ;;  %v557_v38 = vld [vmem:[#allocation2 + $0x8] sm:$0xff] }
 0x197   : > { %678 = vmatpush.msra.mxu2 %v569_v15  ;;  %638 = vmatpush.msra.mxu0 %v568_v17  ;;  %v558_v39 = vld [vmem:[%s1263_s27] sm:$0xff]  ;;  %v592_v40 = vld [vmem:[%s1263_s27 + $0x110] sm:$0xff] }
 0x198   : > { %698 = vmatpush.msra.mxu3 %v601_v16  ;;  %657 = vmatpush.msra.mxu1 %v602_v18  ;;  %v590_v41 = vld [vmem:[%s1263_s27 + $0x100] sm:$0xff]  ;;  %v622_v42 = vld [vmem:[%s483_s12] sm:$0x3] }
 0x199   : > { %679 = vmatpush.msra.mxu2 %v567_v19  ;;  %639 = vmatpush.msra.mxu0 %v566_v21  ;;  %v624_v43 = vperm.slane %v622_v42, 0  ;;  %v625_v46 = vperm.slane %v622_v42, 1 }
 0x19a   : > { %699 = vmatpush.msra.mxu3 %v599_v20  ;;  %658 = vmatpush.msra.mxu1 %v600_v22 }
 0x19b   : > { %680 = vmatpush.msra.mxu2 %v565_v23  ;;  %640 = vmatpush.msra.mxu0 %v564_v25 }
 0x19c   : > { %700 = vmatpush.msra.mxu3 %v597_v24  ;;  %659 = vmatpush.msra.mxu1 %v598_v26 }
 0x19d   : > { %681 = vmatpush.msra.mxu2 %v563_v27  ;;  %641 = vmatpush.msra.mxu0 %v562_v29 }
 0x19e   : > { %701 = vmatpush.msra.mxu3 %v595_v28  ;;  %660 = vmatpush.msra.mxu1 %v596_v30 }
 0x19f   : > { %682 = vmatpush.msra.mxu2 %v561_v31  ;;  %642 = vmatpush.msra.mxu0 %v560_v33 }
 0x1a0   : > { %702 = vmatpush.msra.mxu3 %v593_v32  ;;  %661 = vmatpush.msra.mxu1 %v594_v34 }
 0x1a1   : > { %683 = vmatpush.msra.mxu2 %v559_v35  ;;  %643 = vmatpush.msra.mxu0 %v558_v39 }
 0x1a2   : > { %703 = vmatpush.msra.mxu3 %v591_v36  ;;  %684 = vmatmul.f32.vlgmr.msra.gmra.mxu2 %v556_v37 }
 0x1a3   : > { %704 = vmatmul.f32.vlgmr.msra.gmra.mxu3 %v557_v38  ;;  %662 = vmatpush.msra.mxu1 %v592_v40 }
 0x1a4   : > { %644 = vmatmul.f32.vlgmr.msra.gmra.mxu0 %v556_v37 }
 0x1a5   : > { %663 = vmatpush.msra.mxu1 %v590_v41 }
 0x1a6   : > { %664 = vmatmul.f32.vlgmr.msra.gmra.mxu1 %v557_v38 }
 0x221   : > { %v645_v44 = vpop.f32.mrf.mxu0 }
 0x222   : > { %v646_v45 = vadd.f32 %v645_v44, %v624_v43 }
 0x223   : > { %v665_v47 = vpop.f32.mrf.mxu1 }
 0x224   : > { %v666_v48 = vadd.f32 %v665_v47, %v646_v45 }
 0x225   : > { %v685_v49 = vpop.f32.mrf.mxu2 }
 0x226   : > { %v705_v50 = vpop.f32.mrf.mxu3  ;;  %v686_v51 = vadd.f32 %v685_v49, %v625_v46  ;;  %708 = vst [vmem:[%s1261_s15] sm:$0xff] %v666_v48 }
 0x228   : > { %v706_v52 = vadd.f32 %v705_v50, %v686_v51 }
 0x22a   : > { %709 = vst [vmem:[%s1261_s15 + $0x8] sm:$0xff] %v706_v52 }
 0x22b PF: > { %s15_s24 = sadd.s32 1, %s1010_s24   ;;  %s1373_s21 = sld [smem:[#allocation4_spill]] }
 0x22c   : > { %p12_p13 = scmp.ge.s32.totalorder %s15_s24, 8   ;;  %s1374_s23 = sld [smem:[#allocation5_spill]] }
 0x22d   : > { %s1375_s25 = sld [smem:[#allocation6_spill]]  ;;  %s1376_s18 = smov %s990_s19 }
 0x22e   : > { %s1377_s19 = smov %s1092_s29  ;;  %s1378_s20 = smov %s1002_s22 }
 0x22f   :  { %14 = sbr.rel (!%p12_p13) target bundleno = 6 (0x6), region = 114 }
 0x232   : > { %s1379_s22 = smov %s1374_s23 }
 0x233   : > { %s1380_s23 = smov %s1375_s25 }

// kernel: joint_transformer_block.9
= control target key start
LH: loop header
LB: loop body
LE: loop exit
PB: predicated region body
PF: predicated region fallthrough
CT: control target
= control target key end

     0   :  { %s1477_s0 = inlined_call_operand.vmem [shape: f32[2,16,256], index: 0, kind: input, shape index: {}]   ;;  %s1478_s1 = inlined_call_operand.vmem [shape: f32[2,1,256], index: 1, kind: input, shape index: {}]   ;;  %s1479_s2 = inlined_call_operand.vmem [shape: f32[2,1,256], index: 2, kind: input, shape index: {}]   ;;  %s1480_s3 = inlined_call_operand.vmem [shape: f32[256,768], index: 3, kind: input, shape index: {}]   ;;  %s1481_s4 = inlined_call_operand.vmem [shape: f32[1,768], index: 4, kind: input, shape index: {}]   ;;  %s1482_s5 = inlined_call_operand.vmem [shape: f32[2,16,768], index: 5, kind: output, shape index: {}]  }
   0x1   :  { %1488 = sst [smem:[#allocation11_spill]] %s1480_s3 }
   0x2   :  { %s1117_s18 = smov 0   ;;  %s1119_s19 = smov 0  }
   0x3   :  { %s1121_s20 = smov 0   ;;  %s1123_s21 = smov 0  }
   0x4   :  { %s1125_s22 = smov 0   ;;  %s1127_s23 = smov 0  }
   0x5   :  { %s1129_s24 = smov 0   ;;  %s1131_s25 = smov 0  }
   0x6   :  { %s1133_s26 = smov 0  }
   0x7 LB: > { %1489 = sst [smem:[#allocation5_spill]] %s1064_s21  ;;  %s911_s27 = sadd.s32 4294967295, %s1084_s26   ;;  %s1084_s26 = sphi %s1133_s26, %s15_s26   ;;  %s1080_s25 = sphi %s1131_s25, %s1502_s25   ;;  %s1076_s24 = sphi %s1129_s24, %s1501_s24   ;;  %s1072_s23 = sphi %s1127_s23, %s1500_s23   ;;  %s1068_s22 = sphi %s1125_s22, %s1499_s22   ;;  %s1064_s21 = sphi %s1123_s21, %s1498_s21   ;;  %s1060_s20 = sphi %s1121_s20, %s1497_s20   ;;  %s1056_s19 = sphi %s1119_s19, %s1504_s19   ;;  %s1052_s18 = sphi %s1117_s18, %s1503_s18  }
   0x8   : > { %1490 = sst [smem:[#allocation6_spill]] %s1076_s24  ;;  %s27_s28 = sadd.s32 1, %s1076_s24 }
   0x9   : > { %1491 = sst [smem:[#allocation7_spill]] %s1080_s25  ;;  %p28_p0 = scmp.ge.s32.totalorder %s27_s28, 3 }
   0xa   : > { %s34_s29 = sadd.s32 1, %s1080_s25  ;;  %s121_s30 = sadd.s32 1, %s1064_s21 }
   0xb   : > { %p128_p1 = scmp.ne.s32.totalorder %s1064_s21, %s1060_s20  ;;  %s1506_s28 = smov (%p28_p0, %s27_s28), 0 }
   0xc   : > { %1492 = sst [smem:[#allocation8_spill]] %s1506_s28  ;;  %s1508_s29 = smov (!%p28_p0, %s34_s29), %s1080_s25 }
   0xd   : > { %s118_s6 = ssub.s32 %s1076_s24, %s1506_s28  ;;  %p129_p2 = scmp.eq.s32.totalorder %s1084_s26, 0 }
   0xe   : > { %p36_p3 = scmp.ge.s32.totalorder %s1508_s29, 2  ;;  %p119_p4 = scmp.eq.s32.totalorder %s118_s6, 0 }
   0xf   : > { %p130_p5 = por %p129_p2, %p128_p1  ;;  %s177_s7 = sadd.s32 1, %s1056_s19 }
  0x10   : > { %s1510_s29 = smov (%p36_p3, %s1508_s29), 0  ;;  %p187_p6 = scmp.ne.s32.totalorder %s1056_s19, %s1052_s18 }
  0x11   : > { %1493 = sst [smem:[#allocation9_spill]] %s1510_s29  ;;  %s170_s9 = ssub.s32 %s1080_s25, %s1510_s29 }
  0x12   : > { %s1178_s8 = scalar_select %p119_p4, %s1064_s21, %s121_s30  }
  0x13   : > { %s174_s10 = sor.u32 %s170_s9, %s118_s6  ;;  %p188_p7 = scmp.eq.s32.totalorder %s911_s27, 5 }
  0x14   : > { %1494 = sst [smem:[#allocation10_spill]] %s1178_s8  ;;  %p175_p8 = scmp.eq.s32.totalorder %s174_s10, 0 }
  0x15   : > { %p1184_p9 = por %p188_p7, %p187_p6  ;;  %p914_p10 = scmp.ge.s32.totalorder %s1084_s26, 6 }
  0x16   : > { %s1189_s12 = scalar_select %p175_p8, %s1056_s19, %s177_s7  }
  0x17   : > { %210 = sbr.rel (%p914_p10) target bundleno = 102 (0x66), region = 16 }
  0x1c   : > { %241 = sbr.rel (!%p130_p5) target bundleno = 102 (0x66), region = 32  ;;  %s243_s13 = sand.u32 (%p130_p5), 1, %s1064_s21  }
  0x1d   : > { %s932_s14 = sshll.u32 (%p130_p5), %s1076_s24, 4  ;;  %s915_s15 = sshll.u32 (%p130_p5), %s243_s13, 9 }
  0x1e   : > { %s1496_s3 = sld [smem:[#allocation11_spill]] (%p130_p5)  ;;  %s1202_s30 = scalar_lea.vmem (%p130_p5), [#allocation3], %s915_s15 }
  0x24   : > { %s1197_s27 = scalar_lea.vmem %s1496_s3, %s932_s14 }
  0x25   : > { %v261_v0 = vld [vmem:[%s1197_s27] sm:$0xff]  ;;  %v263_v1 = vld [vmem:[%s1197_s27 + $0x8] sm:$0xff]  ;;  %v265_v2 = vld [vmem:[%s1197_s27 + $0x30] sm:$0xff] }
  0x26   : > { %262 = vst [vmem:[%s1202_s30] sm:$0xff] %v261_v0  ;;  %v267_v3 = vld [vmem:[%s1197_s27 + $0x38] sm:$0xff]  ;;  %v269_v4 = vld [vmem:[%s1197_s27 + $0x60] sm:$0xff]  ;;  %v271_v5 = vld [vmem:[%s1197_s27 + $0x68] sm:$0xff] }
  0x27   : > { %264 = vst [vmem:[%s1202_s30 + $0x8] sm:$0xff] %v263_v1  ;;  %v273_v6 = vld [vmem:[%s1197_s27 + $0x90] sm:$0xff]  ;;  %v275_v7 = vld [vmem:[%s1197_s27 + $0x98] sm:$0xff]  ;;  %v277_v8 = vld [vmem:[%s1197_s27 + $0xc0] sm:$0xff] }
  0x28   : > { %266 = vst [vmem:[%s1202_s30 + $0x10] sm:$0xff] %v265_v2  ;;  %v279_v9 = vld [vmem:[%s1197_s27 + $0xc8] sm:$0xff]  ;;  %v281_v10 = vld [vmem:[%s1197_s27 + $0xf0] sm:$0xff]  ;;  %v283_v11 = vld [vmem:[%s1197_s27 + $0xf8] sm:$0xff] }
  0x29   : > { %268 = vst [vmem:[%s1202_s30 + $0x18] sm:$0xff] %v267_v3  ;;  %v285_v12 = vld [vmem:[%s1197_s27 + $0x120] sm:$0xff]  ;;  %v287_v13 = vld [vmem:[%s1197_s27 + $0x128] sm:$0xff]  ;;  %v289_v14 = vld [vmem:[%s1197_s27 + $0x150] sm:$0xff] }
  0x2a   : > { %270 = vst [vmem:[%s1202_s30 + $0x20] sm:$0xff] %v269_v4  ;;  %v291_v15 = vld [vmem:[%s1197_s27 + $0x158] sm:$0xff]  ;;  %v293_v16 = vld [vmem:[%s1197_s27 + $0x180] sm:$0xff]  ;;  %v295_v17 = vld [vmem:[%s1197_s27 + $0x188] sm:$0xff] }
  0x2b   : > { %272 = vst [vmem:[%s1202_s30 + $0x28] sm:$0xff] %v271_v5  ;;  %v297_v18 = vld [vmem:[%s1197_s27 + $0x1b0] sm:$0xff]  ;;  %v299_v19 = vld [vmem:[%s1197_s27 + $0x1b8] sm:$0xff]  ;;  %v301_v20 = vld [vmem:[%s1197_s27 + $0x1e0] sm:$0xff] }
  0x2c   : > { %274 = vst [vmem:[%s1202_s30 + $0x30] sm:$0xff] %v273_v6  ;;  %v303_v21 = vld [vmem:[%s1197_s27 + $0x1e8] sm:$0xff]  ;;  %v305_v22 = vld [vmem:[%s1197_s27 + $0x210] sm:$0xff]  ;;  %v307_v23 = vld [vmem:[%s1197_s27 + $0x218] sm:$0xff] }
  0x2d   : > { %276 = vst [vmem:[%s1202_s30 + $0x38] sm:$0xff] %v275_v7  ;;  %v309_v24 = vld [vmem:[%s1197_s27 + $0x240] sm:$0xff]  ;;  %v311_v25 = vld [vmem:[%s1197_s27 + $0x248] sm:$0xff]  ;;  %v313_v26 = vld [vmem:[%s1197_s27 + $0x270] sm:$0xff] }
  0x2e   : > { %278 = vst [vmem:[%s1202_s30 + $0x40] sm:$0xff] %v277_v8  ;;  %v315_v27 = vld [vmem:[%s1197_s27 + $0x278] sm:$0xff]  ;;  %v317_v28 = vld [vmem:[%s1197_s27 + $0x2a0] sm:$0xff]  ;;  %v319_v29 = vld [vmem:[%s1197_s27 + $0x2a8] sm:$0xff] }
  0x2f   : > { %280 = vst [vmem:[%s1202_s30 + $0x48] sm:$0xff] %v279_v9  ;;  %v321_v30 = vld [vmem:[%s1197_s27 + $0x2d0] sm:$0xff]  ;;  %v323_v31 = vld [vmem:[%s1197_s27 + $0x2d8] sm:$0xff]  ;;  %v325_v32 = vld [vmem:[%s1197_s27 + $0x300] sm:$0xff] }
  0x30   : > { %282 = vst [vmem:[%s1202_s30 + $0x50] sm:$0xff] %v281_v10  ;;  %v327_v33 = vld [vmem:[%s1197_s27 + $0x308] sm:$0xff]  ;;  %v329_v34 = vld [vmem:[%s1197_s27 + $0x330] sm:$0xff]  ;;  %v331_v35 = vld [vmem:[%s1197_s27 + $0x338] sm:$0xff] }
  0x31   : > { %284 = vst [vmem:[%s1202_s30 + $0x58] sm:$0xff] %v283_v11  ;;  %v333_v36 = vld [vmem:[%s1197_s27 + $0x360] sm:$0xff]  ;;  %v335_v37 = vld [vmem:[%s1197_s27 + $0x368] sm:$0xff]  ;;  %v337_v38 = vld [vmem:[%s1197_s27 + $0x390] sm:$0xff] }
  0x32   : > { %286 = vst [vmem:[%s1202_s30 + $0x60] sm:$0xff] %v285_v12  ;;  %v339_v39 = vld [vmem:[%s1197_s27 + $0x398] sm:$0xff]  ;;  %v341_v40 = vld [vmem:[%s1197_s27 + $0x3c0] sm:$0xff]  ;;  %v343_v41 = vld [vmem:[%s1197_s27 + $0x3c8] sm:$0xff] }
  0x33   : > { %288 = vst [vmem:[%s1202_s30 + $0x68] sm:$0xff] %v287_v13  ;;  %v345_v42 = vld [vmem:[%s1197_s27 + $0x3f0] sm:$0xff]  ;;  %v347_v43 = vld [vmem:[%s1197_s27 + $0x3f8] sm:$0xff]  ;;  %v349_v44 = vld [vmem:[%s1197_s27 + $0x420] sm:$0xff] }
  0x34   : > { %290 = vst [vmem:[%s1202_s30 + $0x70] sm:$0xff] %v289_v14  ;;  %v351_v45 = vld [vmem:[%s1197_s27 + $0x428] sm:$0xff]  ;;  %v353_v46 = vld [vmem:[%s1197_s27 + $0x450] sm:$0xff]  ;;  %v355_v47 = vld [vmem:[%s1197_s27 + $0x458] sm:$0xff] }
  0x35   : > { %292 = vst [vmem:[%s1202_s30 + $0x78] sm:$0xff] %v291_v15  ;;  %v357_v48 = vld [vmem:[%s1197_s27 + $0x480] sm:$0xff]  ;;  %v359_v49 = vld [vmem:[%s1197_s27 + $0x488] sm:$0xff]  ;;  %v361_v50 = vld [vmem:[%s1197_s27 + $0x4b0] sm:$0xff] }
  0x36   : > { %294 = vst [vmem:[%s1202_s30 + $0x80] sm:$0xff] %v293_v16  ;;  %v363_v51 = vld [vmem:[%s1197_s27 + $0x4b8] sm:$0xff]  ;;  %v365_v52 = vld [vmem:[%s1197_s27 + $0x4e0] sm:$0xff]  ;;  %v367_v53 = vld [vmem:[%s1197_s27 + $0x4e8] sm:$0xff] }
  0x37   : > { %296 = vst [vmem:[%s1202_s30 + $0x88] sm:$0xff] %v295_v17  ;;  %v369_v54 = vld [vmem:[%s1197_s27 + $0x510] sm:$0xff]  ;;  %v371_v55 = vld [vmem:[%s1197_s27 + $0x518] sm:$0xff]  ;;  %v373_v56 = vld [vmem:[%s1197_s27 + $0x540] sm:$0xff] }
  0x38   : > { %298 = vst [vmem:[%s1202_s30 + $0x90] sm:$0xff] %v297_v18  ;;  %v375_v57 = vld [vmem:[%s1197_s27 + $0x548] sm:$0xff]  ;;  %v377_v58 = vld [vmem:[%s1197_s27 + $0x570] sm:$0xff]  ;;  %v379_v59 = vld [vmem:[%s1197_s27 + $0x578] sm:$0xff] }
  0x39   : > { %300 = vst [vmem:[%s1202_s30 + $0x98] sm:$0xff] %v299_v19  ;;  %v381_v60 = vld [vmem:[%s1197_s27 + $0x5a0] sm:$0xff]  ;;  %v383_v61 = vld [vmem:[%s1197_s27 + $0x5a8] sm:$0xff]  ;;  %v385_v62 = vld [vmem:[%s1197_s27 + $0x5d0] sm:$0xff] }
  0x3a   : > { %302 = vst [vmem:[%s1202_s30 + $0xa0] sm:$0xff] %v301_v20  ;;  %v387_v63 = vld [vmem:[%s1197_s27 + $0x5d8] sm:$0xff] }
  0x3b   : > { %304 = vst [vmem:[%s1202_s30 + $0xa8] sm:$0xff] %v303_v21 }
  0x3c   : > { %306 = vst [vmem:[%s1202_s30 + $0xb0] sm:$0xff] %v305_v22 }
  0x3d   : > { %308 = vst [vmem:[%s1202_s30 + $0xb8] sm:$0xff] %v307_v23 }
  0x3e   : > { %310 = vst [vmem:[%s1202_s30 + $0xc0] sm:$0xff] %v309_v24 }
  0x3f   : > { %312 = vst [vmem:[%s1202_s30 + $0xc8] sm:$0xff] %v311_v25 }
  0x40   : > { %314 = vst [vmem:[%s1202_s30 + $0xd0] sm:$0xff] %v313_v26 }
  0x41   : > { %316 = vst [vmem:[%s1202_s30 + $0xd8] sm:$0xff] %v315_v27 }
  0x42   : > { %318 = vst [vmem:[%s1202_s30 + $0xe0] sm:$0xff] %v317_v28 }
  0x43   : > { %320 = vst [vmem:[%s1202_s30 + $0xe8] sm:$0xff] %v319_v29 }
  0x44   : > { %322 = vst [vmem:[%s1202_s30 + $0xf0] sm:$0xff] %v321_v30 }
  0x45   : > { %324 = vst [vmem:[%s1202_s30 + $0xf8] sm:$0xff] %v323_v31 }
  0x46   : > { %326 = vst [vmem:[%s1202_s30 + $0x100] sm:$0xff] %v325_v32 }
  0x47   : > { %328 = vst [vmem:[%s1202_s30 + $0x108] sm:$0xff] %v327_v33 }
  0x48   : > { %330 = vst [vmem:[%s1202_s30 + $0x110] sm:$0xff] %v329_v34 }
  0x49   : > { %332 = vst [vmem:[%s1202_s30 + $0x118] sm:$0xff] %v331_v35 }
  0x4a   : > { %334 = vst [vmem:[%s1202_s30 + $0x120] sm:$0xff] %v333_v36 }
  0x4b   : > { %336 = vst [vmem:[%s1202_s30 + $0x128] sm:$0xff] %v335_v37 }
  0x4c   : > { %338 = vst [vmem:[%s1202_s30 + $0x130] sm:$0xff] %v337_v38 }
  0x4d   : > { %340 = vst [vmem:[%s1202_s30 + $0x138] sm:$0xff] %v339_v39 }
  0x4e   : > { %342 = vst [vmem:[%s1202_s30 + $0x140] sm:$0xff] %v341_v40 }
  0x4f   : > { %344 = vst [vmem:[%s1202_s30 + $0x148] sm:$0xff] %v343_v41 }
  0x50   : > { %346 = vst [vmem:[%s1202_s30 + $0x150] sm:$0xff] %v345_v42 }
  0x51   : > { %348 = vst [vmem:[%s1202_s30 + $0x158] sm:$0xff] %v347_v43 }
  0x52   : > { %350 = vst [vmem:[%s1202_s30 + $0x160] sm:$0xff] %v349_v44 }
  0x53   : > { %352 = vst [vmem:[%s1202_s30 + $0x168] sm:$0xff] %v351_v45 }
  0x54   : > { %354 = vst [vmem:[%s1202_s30 + $0x170] sm:$0xff] %v353_v46 }
  0x55   : > { %356 = vst [vmem:[%s1202_s30 + $0x178] sm:$0xff] %v355_v47 }
  0x56   : > { %358 = vst [vmem:[%s1202_s30 + $0x180] sm:$0xff] %v357_v48 }
  0x57   : > { %360 = vst [vmem:[%s1202_s30 + $0x188] sm:$0xff] %v359_v49 }
  0x58   : > { %362 = vst [vmem:[%s1202_s30 + $0x190] sm:$0xff] %v361_v50 }
  0x59   : > { %364 = vst [vmem:[%s1202_s30 + $0x198] sm:$0xff] %v363_v51 }
  0x5a   : > { %366 = vst [vmem:[%s1202_s30 + $0x1a0] sm:$0xff] %v365_v52 }
  0x5b   : > { %368 = vst [vmem:[%s1202_s30 + $0x1a8] sm:$0xff] %v367_v53 }
  0x5c   : > { %370 = vst [vmem:[%s1202_s30 + $0x1b0] sm:$0xff] %v369_v54 }
  0x5d   : > { %372 = vst [vmem:[%s1202_s30 + $0x1b8] sm:$0xff] %v371_v55 }
  0x5e   : > { %374 = vst [vmem:[%s1202_s30 + $0x1c0] sm:$0xff] %v373_v56 }
  0x5f   : > { %376 = vst [vmem:[%s1202_s30 + $0x1c8] sm:$0xff] %v375_v57 }
  0x60   : > { %378 = vst [vmem:[%s1202_s30 + $0x1d0] sm:$0xff] %v377_v58 }
  0x61   : > { %380 = vst [vmem:[%s1202_s30 + $0x1d8] sm:$0xff] %v379_v59 }
  0x62   : > { %382 = vst [vmem:[%s1202_s30 + $0x1e0] sm:$0xff] %v381_v60 }
  0x63   : > { %384 = vst [vmem:[%s1202_s30 + $0x1e8] sm:$0xff] %v383_v61 }
  0x64   : > { %386 = vst [vmem:[%s1202_s30 + $0x1f0] sm:$0xff] %v385_v62 }
  0x65   : > { %388 = vst [vmem:[%s1202_s30 + $0x1f8] sm:$0xff] %v387_v63 }
  0x66 PF: > { %p918_p11 = scmp.ge.s32.totalorder %s1084_s26, 1  ;;  %p401_p12 = scmp.lt.s32.totalorder %s1084_s26, 7 }
  0x68   : > { %p402_p13 = pnand %p918_p11, %p401_p12 }
  0x69   : > { %s408_s6 = sand.u32 (!%p402_p13), 1, %s1060_s20   ;;  %s453_s7 = sand.u32 (!%p402_p13), 1, %s1052_s18  }
  0x6a   : > { %405 = sbr.rel (%p402_p13) target bundleno = 587 (0x24b), region = 59  ;;  %s919_s9 = sshll.u32 (!%p402_p13), %s408_s6, 9 }
  0x6b   : > { %s920_s10 = sshll.u32 (!%p402_p13), %s453_s7, 5  ;;  %p457_p0 = scmp.lt.s32.totalorder (!%p402_p13), %s1072_s23, 1 }
  0x6c   : > { %s1335_s13 = sshll.u32 (!%p402_p13), %s1068_s22, 1  ;;  %s1359_s21 = scalar_lea.vmem (!%p402_p13), [#allocation3], %s919_s9 }
  0x6d   : > { %p477_p1 = scmp.lt.s32.totalorder (!%p402_p13), %s1335_s13, 5  ;;  %p926_p2 = scmp.ne.s32.totalorder (!%p402_p13), %s1068_s22, 0 }
  0x6f   : > { %s458_s14 = scalar_select %p457_p0, %s1072_s23, 1 }
  0x70   : > { %s1340_s15 = scalar_select %p477_p1, %s1335_s13, 5 }
  0x71   : > { %s933_s16 = sshll.u32 %s458_s14, 5  ;;  %s923_s17 = sshll.u32 %s458_s14, 1 }
  0x72   : > { %s465_s3 = scalar_lea.vmem %s1477_s0, %s933_s16  ;;  %s1348_s6 = scalar_lea.vmem %s1478_s1, %s923_s17 }
  0x73   : > { %s1353_s28 = scalar_lea.vmem %s1479_s2, %s923_s17  ;;  %s479_s8 = scalar_lea.vmem %s1481_s4, %s1340_s15 }
  0x74   : > { %s1361_s14 = scalar_lea.vmem [#allocation4], %s920_s10  ;;  %486 = sbr.rel (%p926_p2) target bundleno = 402 (0x192), region = 67 }
  0x79   : > { %v487_v0 = vld [vmem:[%s465_s3] sm:$0xff]  ;;  %v488_v1 = vld [vmem:[%s465_s3 + $0x8] sm:$0xff]  ;;  %v489_v3 = vld [vmem:[%s465_s3 + $0x10] sm:$0xff]  ;;  %v1086_v6 = vmov 256.0  }
  0x7a   : > { %v493_v2 = vadd.f32 %v488_v1, %v487_v0  ;;  %v490_v4 = vld [vmem:[%s465_s3 + $0x18] sm:$0xff]  ;;  %1008 = vrcp.f32 %v1086_v6  ;;  %v491_v35 = vld [vmem:[%s1348_s6] sm:$0x3] }
  0x7b   : > { %v496_v5 = vadd.f32 %v490_v4, %v489_v3  ;;  %v550_v38 = vadd.f32 1.0, %v491_v35  ;;  %v492_v41 = vld [vmem:[%s1353_s28] sm:$0x3] }
  0x7c   : > { %494 = vadd.xlane.f32.xlu0 %v493_v2  ;;  %v561_v48 = vperm.slane %v492_v41, 0  ;;  %v562_v49 = vperm.slane %v492_v41, 1 }
  0x7d   : > { %v552_v44 = vperm.slane %v550_v38, 0  ;;  %v553_v45 = vperm.slane %v550_v38, 1 }
  0x80   : > { %v1009_v7 = vpop.eup %1008 }
  0x81   : > { %v500_v8 = vmul.f32 256.0, %v1009_v7  ;;  %vm504_vm0 = vweird.f32 %v1009_v7 }
  0x83   : > { %v501_v9 = vsub.f32 1.0, %v500_v8 }
  0x84   : > { %497 = vadd.xlane.f32.xlu0 %v496_v5 }
  0x85   : > { %v502_v10 = vmul.f32 %v1009_v7, %v501_v9 }
  0x87   : > { %v503_v11 = vadd.f32 %v1009_v7, %v502_v10 }
  0x89   : > { %v505_v12 = vsel %vm504_vm0, %v1009_v7, %v503_v11 }
  0xef   : > { %v495_v13 = vpop.xlane.xlu0 %494 }
  0xf0   : > { %v506_v14 = vmul.f32 %v505_v12, %v495_v13 }
  0xf2   : > { %v508_v15 = vsub.f32 %v487_v0, %v506_v14  ;;  %v509_v16 = vsub.f32 %v488_v1, %v506_v14 }
  0xf4   : > { %v512_v17 = vmul.f32 %v508_v15, %v508_v15  ;;  %v513_v18 = vmul.f32 %v509_v16, %v509_v16 }
  0xf6   : > { %v516_v19 = vadd.f32 %v513_v18, %v512_v17 }
  0xf7   : > { %v498_v20 = vpop.xlane.xlu0 %497 }
  0xf8   : > { %v507_v21 = vmul.f32 %v505_v12, %v498_v20  ;;  %517 = vadd.xlane.f32.xlu1 %v516_v19 }
  0xfa   : > { %v510_v22 = vsub.f32 %v489_v3, %v507_v21  ;;  %v511_v23 = vsub.f32 %v490_v4, %v507_v21 }
  0xfc   : > { %v514_v24 = vmul.f32 %v510_v22, %v510_v22  ;;  %v515_v25 = vmul.f32 %v511_v23, %v511_v23 }
  0xfe   : > { %v519_v26 = vadd.f32 %v515_v25, %v514_v24 }
 0x100   : > { %520 = vadd.xlane.f32.xlu1 %v519_v26 }
 0x16b   : > { %v518_v27 = vpop.xlane.xlu1 %517 }
 0x16c   : > { %v522_v28 = vmul.f32 %v518_v27, %v505_v12 }
 0x16e   : > { %v524_v29 = vadd.f32 1e-06, %v522_v28 }
 0x170   : > { %1010 = vrsqrt.f32 %v524_v29  ;;  %vm532_vm2 = vweird.f32 %v524_v29 }
 0x173   : > { %v521_v30 = vpop.xlane.xlu1 %520 }
 0x174   : > { %v523_v31 = vmul.f32 %v521_v30, %v505_v12 }
 0x176   : > { %v1011_v32 = vpop.eup %1010  ;;  %v525_v33 = vadd.f32 1e-06, %v523_v31 }
 0x177   : > { %v527_v34 = vmul.f32 %v1011_v32, %v524_v29  ;;  %vm533_vm1 = vweird.f32 %v1011_v32 }
 0x178   : > { %1012 = vrsqrt.f32 %v525_v33  ;;  %vm534_vm3 = vmor %vm532_vm2, %vm533_vm1  ;;  %vm542_vm5 = vweird.f32 %v525_v33 }
 0x179   : > { %v528_v36 = vmul.f32 %v1011_v32, %v527_v34 }
 0x17b   : > { %v529_v37 = vmul.f32 0.5, %v528_v36 }
 0x17d   : > { %v530_v39 = vsub.f32 1.5, %v529_v37 }
 0x17e   : > { %v1013_v40 = vpop.eup %1012 }
 0x17f   : > { %v531_v42 = vmul.f32 %v1011_v32, %v530_v39  ;;  %v537_v43 = vmul.f32 %v1013_v40, %v525_v33  ;;  %vm543_vm4 = vweird.f32 %v1013_v40 }
 0x180   : > { %vm544_vm6 = vmor %vm542_vm5, %vm543_vm4 }
 0x181   : > { %v535_v46 = vsel %vm534_vm3, %v1011_v32, %v531_v42  ;;  %v538_v47 = vmul.f32 %v1013_v40, %v537_v43 }
 0x182   : > { %v546_v50 = vmul.f32 %v535_v46, %v508_v15  ;;  %v547_v51 = vmul.f32 %v535_v46, %v509_v16 }
 0x183   : > { %v539_v52 = vmul.f32 0.5, %v538_v47 }
 0x184   : > { %v556_v53 = vmul.f32 %v552_v44, %v546_v50  ;;  %v557_v54 = vmul.f32 %v553_v45, %v547_v51 }
 0x185   : > { %v540_v55 = vsub.f32 1.5, %v539_v52 }
 0x186   : > { %v565_v56 = vadd.f32 %v561_v48, %v556_v53  ;;  %v566_v57 = vadd.f32 %v562_v49, %v557_v54 }
 0x187   : > { %v541_v58 = vmul.f32 %v1013_v40, %v540_v55 }
 0x188   : > { %569 = vst [vmem:[#allocation2 + $0x10] sm:$0xff] %v565_v56 }
 0x189   : > { %570 = vst [vmem:[#allocation2] sm:$0xff] %v566_v57  ;;  %v545_v59 = vsel %vm544_vm6, %v1013_v40, %v541_v58 }
 0x18a   : > { %v548_v60 = vmul.f32 %v545_v59, %v510_v22  ;;  %v549_v61 = vmul.f32 %v545_v59, %v511_v23 }
 0x18c   : > { %v558_v62 = vmul.f32 %v552_v44, %v548_v60  ;;  %v559_v63 = vmul.f32 %v553_v45, %v549_v61 }
 0x18e   : > { %v567_v0 = vadd.f32 %v561_v48, %v558_v62  ;;  %v568_v1 = vadd.f32 %v562_v49, %v559_v63 }
 0x190   : > { %571 = vst [vmem:[#allocation2 + $0x18] sm:$0xff] %v567_v0 }
 0x191   : > { %572 = vst [vmem:[#allocation2 + $0x8] sm:$0xff] %v568_v1 }
 0x192 PF: > { %v608_v2 = vld [vmem:[%s1359_s21 + $0xf8] sm:$0xff]  ;;  %v606_v3 = vld [vmem:[%s1359_s21 + $0xe8] sm:$0xff]  ;;  %v607_v6 = vld [vmem:[%s1359_s21 + $0xf0] sm:$0xff] }
 0x193   : > { %v640_v4 = vld [vmem:[%s1359_s21 + $0x1f8] sm:$0xff]  ;;  %693 = vmatpush.msra.mxu2 %v608_v2  ;;  %v638_v5 = vld [vmem:[%s1359_s21 + $0x1e8] sm:$0xff]  ;;  %647 = vmatpush.msra.mxu0 %v607_v6  ;;  %v605_v9 = vld [vmem:[%s1359_s21 + $0xe0] sm:$0xff] }
 0x194   : > { %716 = vmatpush.msra.mxu3 %v640_v4  ;;  %v604_v7 = vld [vmem:[%s1359_s21 + $0xd8] sm:$0xff]  ;;  %v602_v10 = vld [vmem:[%s1359_s21 + $0xc8] sm:$0xff]  ;;  %v639_v11 = vld [vmem:[%s1359_s21 + $0x1f0] sm:$0xff] }
 0x195   : > { %v636_v8 = vld [vmem:[%s1359_s21 + $0x1d8] sm:$0xff]  ;;  %694 = vmatpush.msra.mxu2 %v606_v3  ;;  %648 = vmatpush.msra.mxu0 %v605_v9  ;;  %v634_v12 = vld [vmem:[%s1359_s21 + $0x1c8] sm:$0xff]  ;;  %v603_v13 = vld [vmem:[%s1359_s21 + $0xd0] sm:$0xff] }
 0x196   : > { %717 = vmatpush.msra.mxu3 %v638_v5  ;;  %670 = vmatpush.msra.mxu1 %v639_v11  ;;  %v637_v14 = vld [vmem:[%s1359_s21 + $0x1e0] sm:$0xff]  ;;  %v635_v16 = vld [vmem:[%s1359_s21 + $0x1d0] sm:$0xff]  ;;  %v600_v17 = vld [vmem:[%s1359_s21 + $0xb8] sm:$0xff] }
 0x197   : > { %695 = vmatpush.msra.mxu2 %v604_v7  ;;  %v601_v15 = vld [vmem:[%s1359_s21 + $0xc0] sm:$0xff]  ;;  %649 = vmatpush.msra.mxu0 %v603_v13  ;;  %v632_v18 = vld [vmem:[%s1359_s21 + $0x1b8] sm:$0xff]  ;;  %v599_v19 = vld [vmem:[%s1359_s21 + $0xb0] sm:$0xff] }
 0x198   : > { %718 = vmatpush.msra.mxu3 %v636_v8  ;;  %671 = vmatpush.msra.mxu1 %v637_v14  ;;  %v633_v20 = vld [vmem:[%s1359_s21 + $0x1c0] sm:$0xff]  ;;  %v598_v21 = vld [vmem:[%s1359_s21 + $0xa8] sm:$0xff]  ;;  %v631_v24 = vld [vmem:[%s1359_s21 + $0x1b0] sm:$0xff] }
 0x199   : > { %696 = vmatpush.msra.mxu2 %v602_v10  ;;  %650 = vmatpush.msra.mxu0 %v601_v15  ;;  %v630_v22 = vld [vmem:[%s1359_s21 + $0x1a8] sm:$0xff]  ;;  %v597_v23 = vld [vmem:[%s1359_s21 + $0xa0] sm:$0xff]  ;;  %v596_v25 = vld [vmem:[%s1359_s21 + $0x98] sm:$0xff] }
 0x19a   : > { %719 = vmatpush.msra.mxu3 %v634_v12  ;;  %672 = vmatpush.msra.mxu1 %v635_v16  ;;  %v628_v26 = vld [vmem:[%s1359_s21 + $0x198] sm:$0xff]  ;;  %v595_v27 = vld [vmem:[%s1359_s21 + $0x90] sm:$0xff]  ;;  %v629_v28 = vld [vmem:[%s1359_s21 + $0x1a0] sm:$0xff] }
 0x19b   : > { %697 = vmatpush.msra.mxu2 %v600_v17  ;;  %651 = vmatpush.msra.mxu0 %v599_v19  ;;  %v594_v29 = vld [vmem:[%s1359_s21 + $0x88] sm:$0xff]  ;;  %v593_v31 = vld [vmem:[%s1359_s21 + $0x80] sm:$0xff]  ;;  %v627_v32 = vld [vmem:[%s1359_s21 + $0x190] sm:$0xff] }
 0x19c   : > { %720 = vmatpush.msra.mxu3 %v632_v18  ;;  %673 = vmatpush.msra.mxu1 %v633_v20  ;;  %v626_v30 = vld [vmem:[%s1359_s21 + $0x188] sm:$0xff]  ;;  %v592_v33 = vld [vmem:[%s1359_s21 + $0x78] sm:$0xff]  ;;  %v591_v35 = vld [vmem:[%s1359_s21 + $0x70] sm:$0xff] }
 0x19d   : > { %698 = vmatpush.msra.mxu2 %v598_v21  ;;  %652 = vmatpush.msra.mxu0 %v597_v23  ;;  %v624_v34 = vld [vmem:[%s1359_s21 + $0x178] sm:$0xff]  ;;  %v625_v36 = vld [vmem:[%s1359_s21 + $0x180] sm:$0xff]  ;;  %v590_v37 = vld [vmem:[%s1359_s21 + $0x68] sm:$0xff] }
 0x19e   : > { %721 = vmatpush.msra.mxu3 %v630_v22  ;;  %674 = vmatpush.msra.mxu1 %v631_v24  ;;  %v622_v38 = vld [vmem:[%s1359_s21 + $0x168] sm:$0xff]  ;;  %v589_v39 = vld [vmem:[%s1359_s21 + $0x60] sm:$0xff]  ;;  %v623_v40 = vld [vmem:[%s1359_s21 + $0x170] sm:$0xff] }
 0x19f   : > { %699 = vmatpush.msra.mxu2 %v596_v25  ;;  %653 = vmatpush.msra.mxu0 %v595_v27  ;;  %v588_v41 = vld [vmem:[%s1359_s21 + $0x58] sm:$0xff]  ;;  %v587_v43 = vld [vmem:[%s1359_s21 + $0x50] sm:$0xff]  ;;  %v621_v44 = vld [vmem:[%s1359_s21 + $0x160] sm:$0xff] }
 0x1a0   : > { %722 = vmatpush.msra.mxu3 %v628_v26  ;;  %675 = vmatpush.msra.mxu1 %v629_v28  ;;  %v620_v42 = vld [vmem:[%s1359_s21 + $0x158] sm:$0xff]  ;;  %v586_v45 = vld [vmem:[%s1359_s21 + $0x48] sm:$0xff]  ;;  %v585_v47 = vld [vmem:[%s1359_s21 + $0x40] sm:$0xff] }
 0x1a1   : > { %700 = vmatpush.msra.mxu2 %v594_v29  ;;  %654 = vmatpush.msra.mxu0 %v593_v31  ;;  %v618_v46 = vld [vmem:[%s1359_s21 + $0x148] sm:$0xff]  ;;  %v619_v48 = vld [vmem:[%s1359_s21 + $0x150] sm:$0xff]  ;;  %v584_v49 = vld [vmem:[%s1359_s21 + $0x38] sm:$0xff] }
 0x1a2   : > { %723 = vmatpush.msra.mxu3 %v626_v30  ;;  %676 = vmatpush.msra.mxu1 %v627_v32  ;;  %v616_v50 = vld [vmem:[%s1359_s21 + $0x138] sm:$0xff]  ;;  %v583_v51 = vld [vmem:[%s1359_s21 + $0x30] sm:$0xff]  ;;  %v617_v52 = vld [vmem:[%s1359_s21 + $0x140] sm:$0xff] }
 0x1a3   : > { %701 = vmatpush.msra.mxu2 %v592_v33  ;;  %655 = vmatpush.msra.mxu0 %v591_v35  ;;  %v582_v53 = vld [vmem:[%s1359_s21 + $0x28] sm:$0xff]  ;;  %v581_v55 = vld [vmem:[%s1359_s21 + $0x20] sm:$0xff]  ;;  %v615_v56 = vld [vmem:[%s1359_s21 + $0x130] sm:$0xff] }
 0x1a4   : > { %724 = vmatpush.msra.mxu3 %v624_v34  ;;  %677 = vmatpush.msra.mxu1 %v625_v36  ;;  %v614_v54 = vld [vmem:[%s1359_s21 + $0x128] sm:$0xff]  ;;  %v580_v57 = vld [vmem:[%s1359_s21 + $0x18] sm:$0xff]  ;;  %v579_v59 = vld [vmem:[%s1359_s21 + $0x10] sm:$0xff] }
 0x1a5   : > { %702 = vmatpush.msra.mxu2 %v590_v37  ;;  %656 = vmatpush.msra.mxu0 %v589_v39  ;;  %v612_v58 = vld [vmem:[%s1359_s21 + $0x118] sm:$0xff]  ;;  %v613_v60 = vld [vmem:[%s1359_s21 + $0x120] sm:$0xff]  ;;  %v578_v61 = vld [vmem:[%s1359_s21 + $0x8] sm:$0xff] }
 0x1a6   : > { %725 = vmatpush.msra.mxu3 %v622_v38  ;;  %678 = vmatpush.msra.mxu1 %v623_v40  ;;  %v610_v62 = vld [vmem:[%s1359_s21 + $0x108] sm:$0xff]  ;;  %v573_v63 = vld [vmem:[#allocation2 + $0x10] sm:$0xff]  ;;  %v574_v0 = vld [vmem:[#allocation2] sm:$0xff] }
 0x1a7   : > { %703 = vmatpush.msra.mxu2 %v588_v41  ;;  %657 = vmatpush.msra.mxu0 %v587_v43  ;;  %v577_v1 = vld [vmem:[%s1359_s21] sm:$0xff]  ;;  %v611_v2 = vld [vmem:[%s1359_s21 + $0x110] sm:$0xff]  ;;  %v575_v4 = vld [vmem:[#allocation2 + $0x18] sm:$0xff] }
 0x1a8   : > { %726 = vmatpush.msra.mxu3 %v620_v42  ;;  %679 = vmatpush.msra.mxu1 %v621_v44  ;;  %v609_v3 = vld [vmem:[%s1359_s21 + $0x100] sm:$0xff]  ;;  %v576_v5 = vld [vmem:[#allocation2 + $0x8] sm:$0xff]  ;;  %s934_s21 = smul.u32 (%p1184_p9), 12, %s1072_s23 }
 0x1a9   : > { %704 = vmatpush.msra.mxu2 %v586_v45  ;;  %658 = vmatpush.msra.mxu0 %v585_v47  ;;  %v641_v6 = vld [vmem:[%s479_s8] sm:$0x3] }
 0x1aa   : > { %727 = vmatpush.msra.mxu3 %v618_v46  ;;  %680 = vmatpush.msra.mxu1 %v619_v48  ;;  %v643_v7 = vperm.slane %v641_v6, 0  ;;  %v644_v10 = vperm.slane %v641_v6, 1  ;;  %s755_s24 = sadd.s32 (%p1184_p9), %s934_s21, %s1335_s13 }
 0x1ab   : > { %705 = vmatpush.msra.mxu2 %v584_v49  ;;  %659 = vmatpush.msra.mxu0 %v583_v51  ;;  %s929_s25 = sshll.u32 (%p1184_p9), %s755_s24, 3 }
 0x1ac   : > { %728 = vmatpush.msra.mxu3 %v616_v50  ;;  %681 = vmatpush.msra.mxu1 %v617_v52  ;;  %s757_s8 = scalar_lea.vmem (%p1184_p9), %s1482_s5, %s929_s25 }
 0x1ad   : > { %706 = vmatpush.msra.mxu2 %v582_v53  ;;  %660 = vmatpush.msra.mxu0 %v581_v55 }
 0x1ae   : > { %729 = vmatpush.msra.mxu3 %v614_v54  ;;  %682 = vmatpush.msra.mxu1 %v615_v56 }
 0x1af   : > { %707 = vmatpush.msra.mxu2 %v580_v57  ;;  %661 = vmatpush.msra.mxu0 %v579_v59 }
 0x1b0   : > { %730 = vmatpush.msra.mxu3 %v612_v58  ;;  %683 = vmatpush.msra.mxu1 %v613_v60 }
 0x1b1   : > { %708 = vmatpush.msra.mxu2 %v578_v61  ;;  %662 = vmatpush.msra.mxu0 %v577_v1 }
 0x1b2   : > { %731 = vmatpush.msra.mxu3 %v610_v62  ;;  %709 = vmatmul.f32.vlgmr.msra.gmra.mxu2 %v573_v63 }
 0x1b3   : > { %732 = vmatmul.f32.vlgmr.msra.gmra.mxu3 %v574_v0  ;;  %684 = vmatpush.msra.mxu1 %v611_v2 }
 0x1b4   : > { %663 = vmatmul.f32.vlgmr.msra.gmra.mxu0 %v573_v63 }
 0x1b5   : > { %685 = vmatpush.msra.mxu1 %v609_v3 }
 0x1b6   : > { %686 = vmatmul.f32.vlgmr.msra.gmra.mxu1 %v574_v0 }
 0x1ba   : > { %712 = vmatmul.f32.gmra.mxu2 %v575_v4 }
 0x1bb   : > { %735 = vmatmul.f32.gmra.mxu3 %v576_v5 }
 0x1bc   : > { %666 = vmatmul.f32.gmra.mxu0 %v575_v4 }
 0x1be   : > { %689 = vmatmul.f32.gmra.mxu1 %v576_v5 }
 0x231   : > { %v664_v8 = vpop.f32.mrf.mxu0 }
 0x232   : > { %v665_v9 = vadd.f32 %v664_v8, %v643_v7 }
 0x233   : > { %v687_v11 = vpop.f32.mrf.mxu1 }
 0x234   : > { %v688_v12 = vadd.f32 %v687_v11, %v665_v9 }
 0x235   : > { %v710_v13 = vpop.f32.mrf.mxu2 }
 0x236   : > { %v733_v14 = vpop.f32.mrf.mxu3  ;;  %v711_v15 = vadd.f32 %v710_v13, %v644_v10  ;;  %739 = vst [vmem:[%s1361_s14] sm:$0xff] %v688_v12 }
 0x238   : > { %v734_v16 = vadd.f32 %v733_v14, %v711_v15 }
 0x239   : > { %v667_v17 = vpop.f32.mrf.mxu0 }
 0x23a   : > { %740 = vst [vmem:[%s1361_s14 + $0x8] sm:$0xff] %v734_v16  ;;  %v668_v18 = vadd.f32 %v667_v17, %v643_v7 }
 0x23b   : > { %v690_v19 = vpop.f32.mrf.mxu1 }
 0x23c   : > { %v691_v20 = vadd.f32 %v690_v19, %v668_v18 }
 0x23d   : > { %v713_v21 = vpop.f32.mrf.mxu2  ;;  %v770_v25 = vld [vmem:[%s1361_s14] sm:$0xff] (%p1184_p9) }
 0x23e   : > { %v736_v22 = vpop.f32.mrf.mxu3  ;;  %v714_v23 = vadd.f32 %v713_v21, %v644_v10  ;;  %741 = vst [vmem:[%s1361_s14 + $0x10] sm:$0xff] %v691_v20  ;;  %749 = sbr.rel (!%p1184_p9) target bundleno = 587 (0x24b), region = 71 }
 0x23f   : > { %771 = vst [vmem:[%s757_s8] sm:$0xff] (%p1184_p9), %v770_v25 }
 0x240   : > { %v737_v24 = vadd.f32 %v736_v22, %v714_v23 }
 0x241   : > { %v772_v26 = vld [vmem:[%s1361_s14 + $0x8] sm:$0xff] (%p1184_p9) }
 0x242   : > { %742 = vst [vmem:[%s1361_s14 + $0x18] sm:$0xff] %v737_v24 }
 0x243   : > { %773 = vst [vmem:[%s757_s8 + $0x8] sm:$0xff] %v772_v26 }
 0x245   : > { %v774_v27 = vld [vmem:[%s1361_s14 + $0x10] sm:$0xff] }
 0x246   : > { %775 = vst [vmem:[%s757_s8 + $0x30] sm:$0xff] %v774_v27 }
 0x249   : > { %v776_v28 = vld [vmem:[%s1361_s14 + $0x18] sm:$0xff] }
 0x24a   : > { %777 = vst [vmem:[%s757_s8 + $0x38] sm:$0xff] %v776_v28 }
 0x24b PF: > { %s15_s26 = sadd.s32 1, %s1084_s26   ;;  %s1497_s20 = sld [smem:[#allocation5_spill]] }
 0x24c   : > { %p12_p3 = scmp.ge.s32.totalorder %s15_s26, 8   ;;  %s1498_s21 = sld [smem:[#allocation10_spill]] }
 0x24d   : > { %s1499_s22 = sld [smem:[#allocation6_spill]]  ;;  %s1503_s18 = smov %s1056_s19 }
 0x24e   : > { %s1500_s23 = sld [smem:[#allocation7_spill]]  ;;  %s1504_s19 = smov %s1189_s12 }
 0x24f   : > { %s1501_s24 = sld [smem:[#allocation8_spill]]  ;;  %14 = sbr.rel (!%p12_p3) target bundleno = 7 (0x7), region = 137 }
 0x250   : > { %s1502_s25 = sld [smem:[#allocation9_spill]] }

// kernel: joint_transformer_block.11
= control target key start
LH: loop header
LB: loop body
LE: loop exit
PB: predicated region body
PF: predicated region fallthrough
CT: control target
= control target key end

     0   :  { %s816_s12 = smov 0   ;;  %s818_s13 = smov 0   ;;  %s959_s0 = inlined_call_operand.vmem [shape: f32[2,24,768], index: 0, kind: input, shape index: {}, may-alias: {0,1,2}]   ;;  %s960_s1 = inlined_call_operand.vmem [shape: f32[2,24,768], index: 1, kind: input, shape index: {}, may-alias: {0,1,2}]   ;;  %s961_s2 = inlined_call_operand.vmem [shape: f32[2,24,768], index: 2, kind: input, shape index: {}, may-alias: {0,1,2}]   ;;  %s962_s3 = inlined_call_operand.vmem [shape: f32[2,24,256], index: 3, kind: output, shape index: {}]  }
   0x1   :  { %s820_s14 = smov 0   ;;  %s822_s15 = smov 0  }
   0x2   :  { %s824_s16 = smov 0   ;;  %s826_s17 = smov 0  }
   0x3   :  { %s828_s18 = smov 0   ;;  %s830_s19 = smov 0  }
   0x4   :  { %s832_s20 = smov 0  }
   0x5 LB: > { %965 = sst [smem:[#allocation5_spill]] %s782_s18  ;;  %s28_s21 = sadd.s32 1, %s774_s16  ;;  %s790_s20 = sphi %s832_s20, %s13_s20   ;;  %s786_s19 = sphi %s830_s19, %s982_s19   ;;  %s782_s18 = sphi %s828_s18, %s976_s18   ;;  %s778_s17 = sphi %s826_s17, %s981_s17   ;;  %s774_s16 = sphi %s824_s16, %s980_s16   ;;  %s770_s15 = sphi %s822_s15, %s973_s15   ;;  %s766_s14 = sphi %s820_s14, %s972_s14   ;;  %s762_s13 = sphi %s818_s13, %s979_s13   ;;  %s758_s12 = sphi %s816_s12, %s978_s12  }
   0x6   : > { %966 = sst [smem:[#allocation6_spill]] %s786_s19  ;;  %p29_p0 = scmp.ge.s32.totalorder %s28_s21, 3 }
   0x7   : > { %s31_s22 = sadd.s32 1, %s778_s17  ;;  %p620_p1 = scmp.ge.s32.totalorder %s790_s20, 1 }
   0x8   : > { %s984_s21 = smov (%p29_p0, %s28_s21), 0  ;;  %s986_s22 = smov (!%p29_p0, %s31_s22), %s778_s17 }
   0x9   : > { %967 = sst [smem:[#allocation7_spill]] %s984_s21  ;;  %p228_p2 = scmp.lt.s32.totalorder %s790_s20, 37 }
   0xa   : > { %p33_p3 = scmp.ge.s32.totalorder %s986_s22, 3  ;;  %s35_s23 = sadd.s32 1, %s782_s18 }
   0xb   : > { %p229_p4 = pnand %p620_p1, %p228_p2  ;;  %s39_s24 = sadd.s32 1, %s786_s19 }
   0xc   : > { %s988_s22 = smov (%p33_p3, %s986_s22), 0  ;;  %s990_s23 = smov (!%p33_p3, %s35_s23), %s782_s18 }
   0xd   : > { %968 = sst [smem:[#allocation8_spill]] %s988_s22  ;;  %p37_p5 = scmp.ge.s32.totalorder %s990_s23, 2 }
   0xe   : > { %p292_p7 = scmp.lt.s32.totalorder (!%p229_p4), %s770_s15, 1  ;;  %p294_p8 = scmp.lt.s32.totalorder (!%p229_p4), %s762_s13, 2 }
   0xf   : > { %s992_s23 = smov (%p37_p5, %s990_s23), 0  ;;  %s994_s24 = smov (!%p37_p5, %s39_s24), %s786_s19 }
  0x10   : > { %969 = sst [smem:[#allocation9_spill]] %s992_s23  ;;  %p41_p6 = scmp.ge.s32.totalorder %s994_s24, 2 }
  0x11   : > { %232 = sbr.rel (%p229_p4) target bundleno = 676 (0x2a4), region = 32  ;;  %p296_p9 = scmp.lt.s32.totalorder (!%p229_p4), %s766_s14, 5 }
  0x12   : > { %s996_s24 = smov (%p41_p6, %s994_s24), 0  ;;  %s304_s27 = sadd.s32 (!%p229_p4), 2, %s766_s14 }
  0x13   : > { %970 = sst [smem:[#allocation10_spill]] %s996_s24  ;;  %p307_p10 = scmp.lt.s32.totalorder (!%p229_p4), %s758_s12, 2 }
  0x14   : > { %s318_s30 = sadd.s32 (!%p229_p4), 4, %s766_s14  ;;  %p309_p11 = scmp.lt.s32.totalorder (!%p229_p4), %s304_s27, 5 }
  0x15   : > { %p323_p12 = scmp.lt.s32.totalorder (!%p229_p4), %s318_s30, 5  ;;  %p336_p13 = scmp.lt.s32.totalorder (!%p229_p4), %s766_s14, 1 }
  0x16   : > { %s998_s15 = smov (!%p292_p7, %s770_s15), 1  ;;  %s1000_s13 = smov (!%p294_p8, %s762_s13), 2 }
  0x17   : > { %s297_s25 = scalar_select %p296_p9, %s766_s14, 5 }
  0x18   : > { %s631_s26 = smul.u32 6, %s1000_s13  ;;  %s1002_s27 = smov (!%p309_p11, %s304_s27), 5 }
  0x19   : > { %s632_s28 = smul.u32 18, %s998_s15  ;;  %s1004_s30 = smov (!%p323_p12, %s318_s30), 5 }
  0x1a   : > { %s299_s29 = sadd.s32 %s631_s26, %s297_s25  ;;  %s624_s25 = sshll.u32 %s1000_s13, 1 }
  0x1b   : > { %s301_s4 = sadd.s32 %s632_s28, %s299_s29  ;;  %s1006_s14 = smov (!%p336_p13, %s766_s14), 1 }
  0x1c   : > { %s889_s5 = sshll.u32 %s301_s4, 3  ;;  %s339_s18 = sadd.s32 %s624_s25, %s1006_s14 }
  0x1d   : > { %s308_s9 = scalar_select %p307_p10, %s758_s12, 2 }
  0x1e   : > { %p626_p0 = scmp.ne.s32.totalorder %s758_s12, 0 }
  0x1f   : > { %s633_s10 = smul.u32 6, %s308_s9 }
  0x20   : > { %s634_s9 = smul.u32 6, %s998_s15 }
  0x21   : > { %s312_s11 = sadd.s32 %s633_s10, %s1002_s27  ;;  %s326_s29 = sadd.s32 %s633_s10, %s1004_s30 }
  0x22   : > { %s314_s26 = sadd.s32 %s632_s28, %s312_s11  ;;  %s328_s4 = sadd.s32 %s632_s28, %s326_s29 }
  0x23   : > { %s622_s24 = sshll.u32 %s314_s26, 3  ;;  %s901_s6 = sshll.u32 %s328_s4, 3 }
  0x24   : > { %s316_s21 = scalar_lea.vmem %s960_s1, %s622_s24  ;;  %s330_s19 = scalar_lea.vmem %s961_s2, %s901_s6 }
  0x25   : > { %s341_s27 = sadd.s32 %s634_s9, %s339_s18  ;;  %347 = sbr.rel (%p626_p0) target bundleno = 46 (0x2e), region = 36 }
  0x26   : > { %s625_s13 = sshll.u32 %s341_s27, 3 }
  0x27   : > { %s912_s28 = scalar_lea.vmem %s962_s3, %s625_s13 }
  0x2a   : > { %vm348_vm0 = vcmask 7168   ;;  %v792_v0 = vmov -inf   ;;  %v793_v1 = vmov 0.0  }
  0x2b   : > { %349 = vst.msk [vmem:[#allocation2] sm:$0xff] %vm348_vm0, %v792_v0 }
  0x2c   : > { %350 = vst.msk [vmem:[#allocation3] sm:$0xff] %vm348_vm0, %v793_v1 }
  0x2d   : > { %351 = vst [vmem:[#allocation4] sm:$0xff] %v793_v1 }
  0x2e PF: > { %v354_v2 = vld [vmem:[%s316_s21] sm:$0xff]  ;;  %s971_s18 = scalar_lea.vmem %s959_s0, %s889_s5  ;;  %vm377_vm1 = vcmask 64512   ;;  %v794_v7 = vmov 0   ;;  %vm399_vm2 = vcmask 7168   ;;  %p628_p1 = scmp.ne.s32.totalorder %s758_s12, 2 }
  0x2f   : > { %v352_v3 = vld [vmem:[%s971_s18] sm:$0xff]  ;;  %371 = vmatpush.xpose.msra.mxu0 %v354_v2  ;;  %711 = vset.pattern.permute.xlu0 %v794_v7 }
  0x30   : > { %v353_v4 = vmul.f32 0.088388346, %v352_v3  ;;  %712 = vset.pattern.permute.xlu1 %v794_v7  ;;  %v355_v14 = vld [vmem:[%s330_s19] sm:$0xff] }
  0x31   : > { %426 = vmatpush.msra.mxu1 %v355_v14 }
  0x32   : > { %372 = vmatmul.f32.vlgmr.msra.gmra.mxu0 %v353_v4  ;;  %v376_v8 = vld [vmem:[#allocation2] sm:$0xff] }
  0x33   : > { %v393_v21 = vld [vmem:[#allocation3] sm:$0xff] }
  0x34   : > { %v401_v25 = vld [vmem:[#allocation4] sm:$0xff] }
  0xaf   : > { %v373_v5 = vpop.f32.mrf.mxu0 }
  0xb0   : > { %v378_v6 = vsel %vm377_vm1, %v373_v5, -inf }
  0xb1   : > { %379 = vmax.xlane.f32.xlu0 %v378_v6 }
 0x124   : > { %v380_v9 = vpop.xlane.xlu0 %379 }
 0x125   : > { %v381_v10 = vmax.f32 %v376_v8, %v380_v9 }
 0x127   : > { %v382_v11 = vsub.f32 %v376_v8, %v381_v10  ;;  %433 = vst.msk [vmem:[#allocation2] sm:$0xff] %vm399_vm2, %v381_v10  ;;  %387 = vperm.xlu0 %711, %v381_v10  }
 0x129   : > { %v383_v12 = vmul.f32 1.442695, %v382_v11 }
 0x12b   : > { %713 = vpow2.f32 %v383_v12 }
 0x131   : > { %v714_v13 = vpop.eup %713 }
 0x132   : > { %404 = vperm.xlu1 %712, %v714_v13   ;;  %v394_v22 = vmul.f32 %v714_v13, %v393_v21 }
 0x199   : > { %v388_v15 = vpop.permute.xlu0 %387 }
 0x19a   : > { %v390_v16 = vsub.f32 %v373_v5, %v388_v15 }
 0x19c   : > { %v391_v17 = vmul.f32 1.442695, %v390_v16 }
 0x19e   : > { %715 = vpow2.f32 %v391_v17 }
 0x1a4   : > { %v716_v18 = vpop.eup %715  ;;  %v405_v20 = vpop.permute.xlu1 %404 }
 0x1a5   : > { %627 = vmatmul.msk.f32.vlgmr.msra.gmra.mxu1 %vm377_vm1, %v716_v18  ;;  %v395_v19 = vsel %vm377_vm1, %v716_v18, 0.0  ;;  %v407_v26 = vmul.f32 %v405_v20, %v401_v25 }
 0x1a6   : > { %396 = vadd.xlane.f32.xlu1 %v395_v19 }
 0x219   : > { %v397_v23 = vpop.xlane.xlu1 %396 }
 0x21a   : > { %v398_v24 = vadd.f32 %v397_v23, %v394_v22 }
 0x21c   : > { %400 = vst.msk [vmem:[#allocation3] sm:$0xff] %vm399_vm2, %v398_v24 }
 0x221   : > { %437 = sbr.rel (%p628_p1) target bundleno = 676 (0x2a4), region = 40 }
 0x222   : > { %v428_v27 = vpop.f32.mrf.mxu1 }
 0x223   : > { %v431_v28 = vadd.f32 %v428_v27, %v407_v26 }
 0x225   : > { %432 = vst [vmem:[#allocation4] sm:$0xff] %v431_v28 }
 0x226   : > { %v439_v29 = vld [vmem:[#allocation3] sm:$0xff]  ;;  %v795_v30 = vmov 0  }
 0x227   : > { %717 = vset.pattern.permute.xlu0 %v795_v30  ;;  %718 = vrcp.f32 %v439_v29 }
 0x22c   : > { %v438_v32 = vld [vmem:[#allocation4] sm:$0xff] }
 0x22d   : > { %v719_v31 = vpop.eup %718 }
 0x22e   : > { %443 = vperm.xlu0 %717, %v719_v31  }
 0x2a0   : > { %v444_v33 = vpop.permute.xlu0 %443 }
 0x2a1   : > { %v446_v34 = vmul.f32 %v444_v33, %v438_v32 }
 0x2a3   : > { %447 = vst [vmem:[%s912_s28] sm:$0xff] %v446_v34 }
 0x2a4 PF: > { %s13_s20 = sadd.s32 1, %s790_s20   ;;  %s972_s14 = sld [smem:[#allocation5_spill]] }
 0x2a5   : > { %p10_p2 = scmp.ge.s32.totalorder %s13_s20, 38   ;;  %s973_s15 = sld [smem:[#allocation6_spill]] }
 0x2a6   : > { %s974_s19 = sld [smem:[#allocation7_spill]]  ;;  %s978_s12 = smov %s774_s16 }
 0x2a7   : > { %s975_s23 = sld [smem:[#allocation8_spill]]  ;;  %s979_s13 = smov %s778_s17 }
 0x2a8   : > { %s976_s18 = sld [smem:[#allocation9_spill]] }
 0x2a9   : > { %s977_s24 = sld [smem:[#allocation10_spill]] }
 0x2ab   :  { %12 = sbr.rel (!%p10_p2) target bundleno = 5 (0x5), region = 76 }
 0x2ac   : > { %s980_s16 = smov %s974_s19 }
 0x2ad   : > { %s981_s17 = smov %s975_s23 }
 0x2af   : > { %s982_s19 = smov %s977_s24 }

// kernel: joint_transformer_block.12
= control target key start
LH: loop header
LB: loop body
LE: loop exit
PB: predicated region body
PF: predicated region fallthrough
CT: control target
= control target key end

     0   :  { %s879_s18 = smov 0   ;;  %s881_s19 = smov 0   ;;  %s1134_s0 = inlined_call_operand.vmem [shape: f32[2,16,256], index: 0, kind: input, shape index: {}]   ;;  %s1135_s1 = inlined_call_operand.vmem [shape: f32[256,256], index: 1, kind: input, shape index: {}]   ;;  %s1136_s2 = inlined_call_operand.vmem [shape: f32[1,256], index: 2, kind: input, shape index: {}]   ;;  %s1137_s3 = inlined_call_operand.vmem [shape: f32[2,16,256], index: 3, kind: input, shape index: {}]   ;;  %s1138_s4 = inlined_call_operand.vmem [shape: f32[2,1,256], index: 4, kind: input, shape index: {}]   ;;  %s1139_s5 = inlined_call_operand.vmem [shape: f32[2,16,256], index: 5, kind: output, shape index: {}]  }
   0x1   :  { %s883_s20 = smov 0  }
   0x2 LB: > { %s34_s21 = sadd.s32 1, %s843_s19  ;;  %p788_p0 = scmp.ge.s32.totalorder %s847_s20, 1  ;;  %s847_s20 = sphi %s883_s20, %s15_s20   ;;  %s843_s19 = sphi %s881_s19, %s1141_s19   ;;  %s839_s18 = sphi %s879_s18, %s1140_s18  }
   0x3   : > { %p36_p1 = scmp.ge.s32.totalorder %s34_s21, 2  ;;  %p280_p2 = scmp.lt.s32.totalorder %s847_s20, 3 }
   0x5   : > { %s1143_s21 = smov (%p36_p1, %s34_s21), 0  ;;  %p281_p3 = pnand %p788_p0, %p280_p2 }
   0x6   : > { %p354_p4 = scmp.lt.s32.totalorder (!%p281_p3), %s839_s18, 1 }
   0x7   : > { %284 = sbr.rel (%p281_p3) target bundleno = 193 (0xc1), region = 40 }
   0xc   : > { %v451_v0 = vld [vmem:[%s1135_s1 + $0xf8] sm:$0xff]  ;;  %v449_v1 = vld [vmem:[%s1135_s1 + $0xe8] sm:$0xff]  ;;  %v450_v4 = vld [vmem:[%s1135_s1 + $0xf0] sm:$0xff]  ;;  %s1145_s18 = smov (!%p354_p4, %s839_s18), 1 }
   0xd   : > { %v483_v2 = vld [vmem:[%s1135_s1 + $0x1f8] sm:$0xff]  ;;  %536 = vmatpush.msra.mxu2 %v451_v0  ;;  %v481_v3 = vld [vmem:[%s1135_s1 + $0x1e8] sm:$0xff]  ;;  %490 = vmatpush.msra.mxu0 %v450_v4  ;;  %v448_v7 = vld [vmem:[%s1135_s1 + $0xe0] sm:$0xff]  ;;  %s1059_s15 = sshll.u32 %s1145_s18, 5  ;;  %s793_s29 = sshll.u32 %s1145_s18, 1 }
   0xe   : > { %559 = vmatpush.msra.mxu3 %v483_v2  ;;  %v447_v5 = vld [vmem:[%s1135_s1 + $0xd8] sm:$0xff]  ;;  %v445_v8 = vld [vmem:[%s1135_s1 + $0xc8] sm:$0xff]  ;;  %v482_v9 = vld [vmem:[%s1135_s1 + $0x1f0] sm:$0xff]  ;;  %s362_s9 = scalar_lea.vmem %s1134_s0, %s1059_s15  ;;  %s398_s10 = scalar_lea.vmem %s1138_s4, %s793_s29 }
   0xf   : > { %v479_v6 = vld [vmem:[%s1135_s1 + $0x1d8] sm:$0xff]  ;;  %537 = vmatpush.msra.mxu2 %v449_v1  ;;  %491 = vmatpush.msra.mxu0 %v448_v7  ;;  %v477_v10 = vld [vmem:[%s1135_s1 + $0x1c8] sm:$0xff]  ;;  %v446_v11 = vld [vmem:[%s1135_s1 + $0xd0] sm:$0xff]  ;;  %s413_s14 = scalar_lea.vmem %s1139_s5, %s1059_s15 }
  0x10   : > { %560 = vmatpush.msra.mxu3 %v481_v3  ;;  %513 = vmatpush.msra.mxu1 %v482_v9  ;;  %v480_v12 = vld [vmem:[%s1135_s1 + $0x1e0] sm:$0xff]  ;;  %v478_v14 = vld [vmem:[%s1135_s1 + $0x1d0] sm:$0xff]  ;;  %v443_v15 = vld [vmem:[%s1135_s1 + $0xb8] sm:$0xff] }
  0x11   : > { %538 = vmatpush.msra.mxu2 %v447_v5  ;;  %v444_v13 = vld [vmem:[%s1135_s1 + $0xc0] sm:$0xff]  ;;  %492 = vmatpush.msra.mxu0 %v446_v11  ;;  %v475_v16 = vld [vmem:[%s1135_s1 + $0x1b8] sm:$0xff]  ;;  %v442_v17 = vld [vmem:[%s1135_s1 + $0xb0] sm:$0xff] }
  0x12   : > { %561 = vmatpush.msra.mxu3 %v479_v6  ;;  %514 = vmatpush.msra.mxu1 %v480_v12  ;;  %v476_v18 = vld [vmem:[%s1135_s1 + $0x1c0] sm:$0xff]  ;;  %v441_v19 = vld [vmem:[%s1135_s1 + $0xa8] sm:$0xff]  ;;  %v474_v22 = vld [vmem:[%s1135_s1 + $0x1b0] sm:$0xff] }
  0x13   : > { %539 = vmatpush.msra.mxu2 %v445_v8  ;;  %493 = vmatpush.msra.mxu0 %v444_v13  ;;  %v473_v20 = vld [vmem:[%s1135_s1 + $0x1a8] sm:$0xff]  ;;  %v440_v21 = vld [vmem:[%s1135_s1 + $0xa0] sm:$0xff]  ;;  %v439_v23 = vld [vmem:[%s1135_s1 + $0x98] sm:$0xff] }
  0x14   : > { %562 = vmatpush.msra.mxu3 %v477_v10  ;;  %515 = vmatpush.msra.mxu1 %v478_v14  ;;  %v471_v24 = vld [vmem:[%s1135_s1 + $0x198] sm:$0xff]  ;;  %v438_v25 = vld [vmem:[%s1135_s1 + $0x90] sm:$0xff]  ;;  %v472_v26 = vld [vmem:[%s1135_s1 + $0x1a0] sm:$0xff] }
  0x15   : > { %540 = vmatpush.msra.mxu2 %v443_v15  ;;  %494 = vmatpush.msra.mxu0 %v442_v17  ;;  %v437_v27 = vld [vmem:[%s1135_s1 + $0x88] sm:$0xff]  ;;  %v436_v29 = vld [vmem:[%s1135_s1 + $0x80] sm:$0xff]  ;;  %v470_v30 = vld [vmem:[%s1135_s1 + $0x190] sm:$0xff] }
  0x16   : > { %563 = vmatpush.msra.mxu3 %v475_v16  ;;  %516 = vmatpush.msra.mxu1 %v476_v18  ;;  %v469_v28 = vld [vmem:[%s1135_s1 + $0x188] sm:$0xff]  ;;  %v435_v31 = vld [vmem:[%s1135_s1 + $0x78] sm:$0xff]  ;;  %v434_v33 = vld [vmem:[%s1135_s1 + $0x70] sm:$0xff] }
  0x17   : > { %541 = vmatpush.msra.mxu2 %v441_v19  ;;  %495 = vmatpush.msra.mxu0 %v440_v21  ;;  %v467_v32 = vld [vmem:[%s1135_s1 + $0x178] sm:$0xff]  ;;  %v468_v34 = vld [vmem:[%s1135_s1 + $0x180] sm:$0xff]  ;;  %v433_v35 = vld [vmem:[%s1135_s1 + $0x68] sm:$0xff] }
  0x18   : > { %564 = vmatpush.msra.mxu3 %v473_v20  ;;  %517 = vmatpush.msra.mxu1 %v474_v22  ;;  %v465_v36 = vld [vmem:[%s1135_s1 + $0x168] sm:$0xff]  ;;  %v432_v37 = vld [vmem:[%s1135_s1 + $0x60] sm:$0xff]  ;;  %v466_v38 = vld [vmem:[%s1135_s1 + $0x170] sm:$0xff] }
  0x19   : > { %542 = vmatpush.msra.mxu2 %v439_v23  ;;  %496 = vmatpush.msra.mxu0 %v438_v25  ;;  %v431_v39 = vld [vmem:[%s1135_s1 + $0x58] sm:$0xff]  ;;  %v430_v41 = vld [vmem:[%s1135_s1 + $0x50] sm:$0xff]  ;;  %v464_v42 = vld [vmem:[%s1135_s1 + $0x160] sm:$0xff] }
  0x1a   : > { %565 = vmatpush.msra.mxu3 %v471_v24  ;;  %518 = vmatpush.msra.mxu1 %v472_v26  ;;  %v463_v40 = vld [vmem:[%s1135_s1 + $0x158] sm:$0xff]  ;;  %v429_v43 = vld [vmem:[%s1135_s1 + $0x48] sm:$0xff]  ;;  %v428_v45 = vld [vmem:[%s1135_s1 + $0x40] sm:$0xff] }
  0x1b   : > { %543 = vmatpush.msra.mxu2 %v437_v27  ;;  %497 = vmatpush.msra.mxu0 %v436_v29  ;;  %v461_v44 = vld [vmem:[%s1135_s1 + $0x148] sm:$0xff]  ;;  %v462_v46 = vld [vmem:[%s1135_s1 + $0x150] sm:$0xff]  ;;  %v427_v47 = vld [vmem:[%s1135_s1 + $0x38] sm:$0xff] }
  0x1c   : > { %566 = vmatpush.msra.mxu3 %v469_v28  ;;  %519 = vmatpush.msra.mxu1 %v470_v30  ;;  %v459_v48 = vld [vmem:[%s1135_s1 + $0x138] sm:$0xff]  ;;  %v426_v49 = vld [vmem:[%s1135_s1 + $0x30] sm:$0xff]  ;;  %v460_v50 = vld [vmem:[%s1135_s1 + $0x140] sm:$0xff] }
  0x1d   : > { %544 = vmatpush.msra.mxu2 %v435_v31  ;;  %498 = vmatpush.msra.mxu0 %v434_v33  ;;  %v425_v51 = vld [vmem:[%s1135_s1 + $0x28] sm:$0xff]  ;;  %v424_v53 = vld [vmem:[%s1135_s1 + $0x20] sm:$0xff]  ;;  %v458_v54 = vld [vmem:[%s1135_s1 + $0x130] sm:$0xff] }
  0x1e   : > { %567 = vmatpush.msra.mxu3 %v467_v32  ;;  %520 = vmatpush.msra.mxu1 %v468_v34  ;;  %v457_v52 = vld [vmem:[%s1135_s1 + $0x128] sm:$0xff]  ;;  %v423_v55 = vld [vmem:[%s1135_s1 + $0x18] sm:$0xff]  ;;  %v422_v57 = vld [vmem:[%s1135_s1 + $0x10] sm:$0xff] }
  0x1f   : > { %545 = vmatpush.msra.mxu2 %v433_v35  ;;  %499 = vmatpush.msra.mxu0 %v432_v37  ;;  %v455_v56 = vld [vmem:[%s1135_s1 + $0x118] sm:$0xff]  ;;  %v456_v58 = vld [vmem:[%s1135_s1 + $0x120] sm:$0xff]  ;;  %v421_v59 = vld [vmem:[%s1135_s1 + $0x8] sm:$0xff] }
  0x20   : > { %568 = vmatpush.msra.mxu3 %v465_v36  ;;  %521 = vmatpush.msra.mxu1 %v466_v38  ;;  %v453_v60 = vld [vmem:[%s1135_s1 + $0x108] sm:$0xff]  ;;  %v416_v61 = vld [vmem:[%s362_s9] sm:$0xff]  ;;  %v454_v0 = vld [vmem:[%s1135_s1 + $0x110] sm:$0xff] }
  0x21   : > { %546 = vmatpush.msra.mxu2 %v431_v39  ;;  %500 = vmatpush.msra.mxu0 %v430_v41  ;;  %v417_v62 = vld [vmem:[%s362_s9 + $0x8] sm:$0xff]  ;;  %v420_v63 = vld [vmem:[%s1135_s1] sm:$0xff]  ;;  %v418_v2 = vld [vmem:[%s362_s9 + $0x10] sm:$0xff] }
  0x22   : > { %569 = vmatpush.msra.mxu3 %v463_v40  ;;  %522 = vmatpush.msra.mxu1 %v464_v42  ;;  %v452_v1 = vld [vmem:[%s1135_s1 + $0x100] sm:$0xff]  ;;  %v419_v3 = vld [vmem:[%s362_s9 + $0x18] sm:$0xff]  ;;  %s1115_s9 = scalar_lea.vmem %s1137_s3, %s1059_s15 }
  0x23   : > { %547 = vmatpush.msra.mxu2 %v429_v43  ;;  %501 = vmatpush.msra.mxu0 %v428_v45  ;;  %v484_v4 = vld [vmem:[%s1136_s2] sm:$0x3]  ;;  %v583_v21 = vld [vmem:[%s1115_s9 + $0x8] sm:$0xff]  ;;  %v584_v29 = vld [vmem:[%s1115_s9 + $0x10] sm:$0xff] }
  0x24   : > { %570 = vmatpush.msra.mxu3 %v461_v44  ;;  %523 = vmatpush.msra.mxu1 %v462_v46  ;;  %v486_v5 = vperm.slane %v484_v4, 0  ;;  %v586_v6 = vld [vmem:[%s398_s10] sm:$0x3]  ;;  %v487_v9 = vperm.slane %v484_v4, 1  ;;  %v585_v35 = vld [vmem:[%s1115_s9 + $0x18] sm:$0xff] }
  0x25   : > { %548 = vmatpush.msra.mxu2 %v427_v47  ;;  %502 = vmatpush.msra.mxu0 %v426_v49  ;;  %v588_v10 = vperm.slane %v586_v6, 0  ;;  %v582_v14 = vld [vmem:[%s1115_s9] sm:$0xff]  ;;  %v589_v18 = vperm.slane %v586_v6, 1 }
  0x26   : > { %571 = vmatpush.msra.mxu3 %v459_v48  ;;  %524 = vmatpush.msra.mxu1 %v460_v50 }
  0x27   : > { %549 = vmatpush.msra.mxu2 %v425_v51  ;;  %503 = vmatpush.msra.mxu0 %v424_v53 }
  0x28   : > { %572 = vmatpush.msra.mxu3 %v457_v52  ;;  %525 = vmatpush.msra.mxu1 %v458_v54 }
  0x29   : > { %550 = vmatpush.msra.mxu2 %v423_v55  ;;  %504 = vmatpush.msra.mxu0 %v422_v57 }
  0x2a   : > { %573 = vmatpush.msra.mxu3 %v455_v56  ;;  %526 = vmatpush.msra.mxu1 %v456_v58 }
  0x2b   : > { %551 = vmatpush.msra.mxu2 %v421_v59  ;;  %505 = vmatpush.msra.mxu0 %v420_v63 }
  0x2c   : > { %574 = vmatpush.msra.mxu3 %v453_v60  ;;  %552 = vmatmul.f32.vlgmr.msra.gmra.mxu2 %v416_v61 }
  0x2d   : > { %575 = vmatmul.f32.vlgmr.msra.gmra.mxu3 %v417_v62  ;;  %527 = vmatpush.msra.mxu1 %v454_v0 }
  0x2e   : > { %506 = vmatmul.f32.vlgmr.msra.gmra.mxu0 %v416_v61 }
  0x2f   : > { %528 = vmatpush.msra.mxu1 %v452_v1 }
  0x30   : > { %529 = vmatmul.f32.vlgmr.msra.gmra.mxu1 %v417_v62 }
  0x34   : > { %555 = vmatmul.f32.gmra.mxu2 %v418_v2 }
  0x35   : > { %578 = vmatmul.f32.gmra.mxu3 %v419_v3 }
  0x36   : > { %509 = vmatmul.f32.gmra.mxu0 %v418_v2 }
  0x38   : > { %532 = vmatmul.f32.gmra.mxu1 %v419_v3 }
  0xab   : > { %v507_v7 = vpop.f32.mrf.mxu0 }
  0xac   : > { %v508_v8 = vadd.f32 %v507_v7, %v486_v5 }
  0xad   : > { %v530_v11 = vpop.f32.mrf.mxu1 }
  0xae   : > { %v531_v12 = vadd.f32 %v530_v11, %v508_v8 }
  0xaf   : > { %v553_v13 = vpop.f32.mrf.mxu2 }
  0xb0   : > { %v576_v15 = vpop.f32.mrf.mxu3  ;;  %v554_v16 = vadd.f32 %v553_v13, %v487_v9  ;;  %v592_v17 = vmul.f32 %v588_v10, %v531_v12 }
  0xb2   : > { %v596_v19 = vadd.f32 %v592_v17, %v582_v14  ;;  %v577_v20 = vadd.f32 %v576_v15, %v554_v16 }
  0xb3   : > { %v510_v22 = vpop.f32.mrf.mxu0 }
  0xb4   : > { %600 = vst [vmem:[%s413_s14] sm:$0xff] %v596_v19  ;;  %v593_v23 = vmul.f32 %v589_v18, %v577_v20  ;;  %v511_v24 = vadd.f32 %v510_v22, %v486_v5 }
  0xb5   : > { %v533_v25 = vpop.f32.mrf.mxu1 }
  0xb6   : > { %v597_v26 = vadd.f32 %v593_v23, %v583_v21  ;;  %v534_v27 = vadd.f32 %v533_v25, %v511_v24 }
  0xb7   : > { %v556_v28 = vpop.f32.mrf.mxu2 }
  0xb8   : > { %v579_v30 = vpop.f32.mrf.mxu3  ;;  %601 = vst [vmem:[%s413_s14 + $0x8] sm:$0xff] %v597_v26  ;;  %v557_v31 = vadd.f32 %v556_v28, %v487_v9  ;;  %v594_v32 = vmul.f32 %v588_v10, %v534_v27 }
  0xba   : > { %v598_v33 = vadd.f32 %v594_v32, %v584_v29  ;;  %v580_v34 = vadd.f32 %v579_v30, %v557_v31 }
  0xbc   : > { %602 = vst [vmem:[%s413_s14 + $0x10] sm:$0xff] %v598_v33  ;;  %v595_v36 = vmul.f32 %v589_v18, %v580_v34 }
  0xbe   : > { %v599_v37 = vadd.f32 %v595_v36, %v585_v35 }
  0xc0   : > { %603 = vst [vmem:[%s413_s14 + $0x18] sm:$0xff] %v599_v37 }
  0xc1 PF: > { %s15_s20 = sadd.s32 1, %s847_s20   ;;  %s1140_s18 = smov %s843_s19 }
  0xc2   : > { %p12_p5 = scmp.ge.s32.totalorder %s15_s20, 4   ;;  %s1141_s19 = smov %s1143_s21 }
  0xc4   :  { %14 = sbr.rel (!%p12_p5) target bundleno = 2 (0x2), region = 82 }

// kernel: joint_transformer_block.13
= control target key start
LH: loop header
LB: loop body
LE: loop exit
PB: predicated region body
PF: predicated region fallthrough
CT: control target
= control target key end

     0   :  { %s841_s18 = smov 0   ;;  %s843_s19 = smov 0   ;;  %s1090_s0 = inlined_call_operand.vmem [shape: f32[2,8,256], index: 0, kind: input, shape index: {}]   ;;  %s1091_s1 = inlined_call_operand.vmem [shape: f32[256,256], index: 1, kind: input, shape index: {}]   ;;  %s1092_s2 = inlined_call_operand.vmem [shape: f32[1,256], index: 2, kind: input, shape index: {}]   ;;  %s1093_s3 = inlined_call_operand.vmem [shape: f32[2,8,256], index: 3, kind: input, shape index: {}]   ;;  %s1094_s4 = inlined_call_operand.vmem [shape: f32[2,1,256], index: 4, kind: input, shape index: {}]   ;;  %s1095_s5 = inlined_call_operand.vmem [shape: f32[2,8,256], index: 5, kind: output, shape index: {}]  }
   0x1   :  { %s845_s20 = smov 0  }
   0x2 LB: > { %s34_s21 = sadd.s32 1, %s805_s19  ;;  %p750_p0 = scmp.ge.s32.totalorder %s809_s20, 1  ;;  %s809_s20 = sphi %s845_s20, %s15_s20   ;;  %s805_s19 = sphi %s843_s19, %s1097_s19   ;;  %s801_s18 = sphi %s841_s18, %s1096_s18  }
   0x3   : > { %p36_p1 = scmp.ge.s32.totalorder %s34_s21, 2  ;;  %p276_p2 = scmp.lt.s32.totalorder %s809_s20, 3 }
   0x5   : > { %s1099_s21 = smov (%p36_p1, %s34_s21), 0  ;;  %p277_p3 = pnand %p750_p0, %p276_p2 }
   0x6   : > { %p346_p4 = scmp.lt.s32.totalorder (!%p277_p3), %s801_s18, 1 }
   0x7   : > { %280 = sbr.rel (%p277_p3) target bundleno = 185 (0xb9), region = 40 }
   0xc   : > { %v436_v0 = vld [vmem:[%s1091_s1 + $0xf8] sm:$0xff]  ;;  %v434_v1 = vld [vmem:[%s1091_s1 + $0xe8] sm:$0xff]  ;;  %v435_v4 = vld [vmem:[%s1091_s1 + $0xf0] sm:$0xff]  ;;  %s1101_s18 = smov (!%p346_p4, %s801_s18), 1 }
   0xd   : > { %v468_v2 = vld [vmem:[%s1091_s1 + $0x1f8] sm:$0xff]  ;;  %515 = vmatpush.msra.mxu2 %v436_v0  ;;  %v466_v3 = vld [vmem:[%s1091_s1 + $0x1e8] sm:$0xff]  ;;  %475 = vmatpush.msra.mxu0 %v435_v4  ;;  %v433_v7 = vld [vmem:[%s1091_s1 + $0xe0] sm:$0xff]  ;;  %s1021_s15 = sshll.u32 %s1101_s18, 4  ;;  %s755_s29 = sshll.u32 %s1101_s18, 1 }
   0xe   : > { %535 = vmatpush.msra.mxu3 %v468_v2  ;;  %v432_v5 = vld [vmem:[%s1091_s1 + $0xd8] sm:$0xff]  ;;  %v430_v8 = vld [vmem:[%s1091_s1 + $0xc8] sm:$0xff]  ;;  %v467_v9 = vld [vmem:[%s1091_s1 + $0x1f0] sm:$0xff]  ;;  %s354_s9 = scalar_lea.vmem %s1090_s0, %s1021_s15  ;;  %s378_s12 = scalar_lea.vmem %s1093_s3, %s1021_s15 }
   0xf   : > { %v464_v6 = vld [vmem:[%s1091_s1 + $0x1d8] sm:$0xff]  ;;  %516 = vmatpush.msra.mxu2 %v434_v1  ;;  %476 = vmatpush.msra.mxu0 %v433_v7  ;;  %v462_v10 = vld [vmem:[%s1091_s1 + $0x1c8] sm:$0xff]  ;;  %v431_v11 = vld [vmem:[%s1091_s1 + $0xd0] sm:$0xff]  ;;  %s401_s14 = scalar_lea.vmem %s1095_s5, %s1021_s15 }
  0x10   : > { %536 = vmatpush.msra.mxu3 %v466_v3  ;;  %495 = vmatpush.msra.mxu1 %v467_v9  ;;  %v465_v12 = vld [vmem:[%s1091_s1 + $0x1e0] sm:$0xff]  ;;  %v463_v14 = vld [vmem:[%s1091_s1 + $0x1d0] sm:$0xff]  ;;  %v428_v15 = vld [vmem:[%s1091_s1 + $0xb8] sm:$0xff] }
  0x11   : > { %517 = vmatpush.msra.mxu2 %v432_v5  ;;  %v429_v13 = vld [vmem:[%s1091_s1 + $0xc0] sm:$0xff]  ;;  %477 = vmatpush.msra.mxu0 %v431_v11  ;;  %v460_v16 = vld [vmem:[%s1091_s1 + $0x1b8] sm:$0xff]  ;;  %v427_v17 = vld [vmem:[%s1091_s1 + $0xb0] sm:$0xff] }
  0x12   : > { %537 = vmatpush.msra.mxu3 %v464_v6  ;;  %496 = vmatpush.msra.mxu1 %v465_v12  ;;  %v461_v18 = vld [vmem:[%s1091_s1 + $0x1c0] sm:$0xff]  ;;  %v426_v19 = vld [vmem:[%s1091_s1 + $0xa8] sm:$0xff]  ;;  %v459_v22 = vld [vmem:[%s1091_s1 + $0x1b0] sm:$0xff] }
  0x13   : > { %518 = vmatpush.msra.mxu2 %v430_v8  ;;  %478 = vmatpush.msra.mxu0 %v429_v13  ;;  %v458_v20 = vld [vmem:[%s1091_s1 + $0x1a8] sm:$0xff]  ;;  %v425_v21 = vld [vmem:[%s1091_s1 + $0xa0] sm:$0xff]  ;;  %v424_v23 = vld [vmem:[%s1091_s1 + $0x98] sm:$0xff] }
  0x14   : > { %538 = vmatpush.msra.mxu3 %v462_v10  ;;  %497 = vmatpush.msra.mxu1 %v463_v14  ;;  %v456_v24 = vld [vmem:[%s1091_s1 + $0x198] sm:$0xff]  ;;  %v423_v25 = vld [vmem:[%s1091_s1 + $0x90] sm:$0xff]  ;;  %v457_v26 = vld [vmem:[%s1091_s1 + $0x1a0] sm:$0xff] }
  0x15   : > { %519 = vmatpush.msra.mxu2 %v428_v15  ;;  %479 = vmatpush.msra.mxu0 %v427_v17  ;;  %v422_v27 = vld [vmem:[%s1091_s1 + $0x88] sm:$0xff]  ;;  %v421_v29 = vld [vmem:[%s1091_s1 + $0x80] sm:$0xff]  ;;  %v455_v30 = vld [vmem:[%s1091_s1 + $0x190] sm:$0xff] }
  0x16   : > { %539 = vmatpush.msra.mxu3 %v460_v16  ;;  %498 = vmatpush.msra.mxu1 %v461_v18  ;;  %v454_v28 = vld [vmem:[%s1091_s1 + $0x188] sm:$0xff]  ;;  %v420_v31 = vld [vmem:[%s1091_s1 + $0x78] sm:$0xff]  ;;  %v419_v33 = vld [vmem:[%s1091_s1 + $0x70] sm:$0xff] }
  0x17   : > { %520 = vmatpush.msra.mxu2 %v426_v19  ;;  %480 = vmatpush.msra.mxu0 %v425_v21  ;;  %v452_v32 = vld [vmem:[%s1091_s1 + $0x178] sm:$0xff]  ;;  %v453_v34 = vld [vmem:[%s1091_s1 + $0x180] sm:$0xff]  ;;  %v418_v35 = vld [vmem:[%s1091_s1 + $0x68] sm:$0xff] }
  0x18   : > { %540 = vmatpush.msra.mxu3 %v458_v20  ;;  %499 = vmatpush.msra.mxu1 %v459_v22  ;;  %v450_v36 = vld [vmem:[%s1091_s1 + $0x168] sm:$0xff]  ;;  %v417_v37 = vld [vmem:[%s1091_s1 + $0x60] sm:$0xff]  ;;  %v451_v38 = vld [vmem:[%s1091_s1 + $0x170] sm:$0xff] }
  0x19   : > { %521 = vmatpush.msra.mxu2 %v424_v23  ;;  %481 = vmatpush.msra.mxu0 %v423_v25  ;;  %v416_v39 = vld [vmem:[%s1091_s1 + $0x58] sm:$0xff]  ;;  %v415_v41 = vld [vmem:[%s1091_s1 + $0x50] sm:$0xff]  ;;  %v449_v42 = vld [vmem:[%s1091_s1 + $0x160] sm:$0xff] }
  0x1a   : > { %541 = vmatpush.msra.mxu3 %v456_v24  ;;  %500 = vmatpush.msra.mxu1 %v457_v26  ;;  %v448_v40 = vld [vmem:[%s1091_s1 + $0x158] sm:$0xff]  ;;  %v414_v43 = vld [vmem:[%s1091_s1 + $0x48] sm:$0xff]  ;;  %v413_v45 = vld [vmem:[%s1091_s1 + $0x40] sm:$0xff] }
  0x1b   : > { %522 = vmatpush.msra.mxu2 %v422_v27  ;;  %482 = vmatpush.msra.mxu0 %v421_v29  ;;  %v446_v44 = vld [vmem:[%s1091_s1 + $0x148] sm:$0xff]  ;;  %v447_v46 = vld [vmem:[%s1091_s1 + $0x150] sm:$0xff]  ;;  %v412_v47 = vld [vmem:[%s1091_s1 + $0x38] sm:$0xff] }
  0x1c   : > { %542 = vmatpush.msra.mxu3 %v454_v28  ;;  %501 = vmatpush.msra.mxu1 %v455_v30  ;;  %v444_v48 = vld [vmem:[%s1091_s1 + $0x138] sm:$0xff]  ;;  %v411_v49 = vld [vmem:[%s1091_s1 + $0x30] sm:$0xff]  ;;  %v445_v50 = vld [vmem:[%s1091_s1 + $0x140] sm:$0xff] }
  0x1d   : > { %523 = vmatpush.msra.mxu2 %v420_v31  ;;  %483 = vmatpush.msra.mxu0 %v419_v33  ;;  %v410_v51 = vld [vmem:[%s1091_s1 + $0x28] sm:$0xff]  ;;  %v409_v53 = vld [vmem:[%s1091_s1 + $0x20] sm:$0xff]  ;;  %v443_v54 = vld [vmem:[%s1091_s1 + $0x130] sm:$0xff] }
  0x1e   : > { %543 = vmatpush.msra.mxu3 %v452_v32  ;;  %502 = vmatpush.msra.mxu1 %v453_v34  ;;  %v442_v52 = vld [vmem:[%s1091_s1 + $0x128] sm:$0xff]  ;;  %v408_v55 = vld [vmem:[%s1091_s1 + $0x18] sm:$0xff]  ;;  %v407_v57 = vld [vmem:[%s1091_s1 + $0x10] sm:$0xff] }
  0x1f   : > { %524 = vmatpush.msra.mxu2 %v418_v35  ;;  %484 = vmatpush.msra.mxu0 %v417_v37  ;;  %v440_v56 = vld [vmem:[%s1091_s1 + $0x118] sm:$0xff]  ;;  %v441_v58 = vld [vmem:[%s1091_s1 + $0x120] sm:$0xff]  ;;  %v406_v59 = vld [vmem:[%s1091_s1 + $0x8] sm:$0xff] }
  0x20   : > { %544 = vmatpush.msra.mxu3 %v450_v36  ;;  %503 = vmatpush.msra.mxu1 %v451_v38  ;;  %v438_v60 = vld [vmem:[%s1091_s1 + $0x108] sm:$0xff]  ;;  %v403_v61 = vld [vmem:[%s354_s9] sm:$0xff]  ;;  %v439_v0 = vld [vmem:[%s1091_s1 + $0x110] sm:$0xff] }
  0x21   : > { %525 = vmatpush.msra.mxu2 %v416_v39  ;;  %485 = vmatpush.msra.mxu0 %v415_v41  ;;  %v404_v62 = vld [vmem:[%s354_s9 + $0x8] sm:$0xff]  ;;  %v405_v63 = vld [vmem:[%s1091_s1] sm:$0xff]  ;;  %s387_s9 = scalar_lea.vmem %s1094_s4, %s755_s29 }
  0x22   : > { %545 = vmatpush.msra.mxu3 %v448_v40  ;;  %504 = vmatpush.msra.mxu1 %v449_v42  ;;  %v437_v1 = vld [vmem:[%s1091_s1 + $0x100] sm:$0xff]  ;;  %v556_v19 = vld [vmem:[%s378_s12 + $0x8] sm:$0xff] }
  0x23   : > { %526 = vmatpush.msra.mxu2 %v414_v43  ;;  %486 = vmatpush.msra.mxu0 %v413_v45  ;;  %v469_v2 = vld [vmem:[%s1092_s2] sm:$0x3] }
  0x24   : > { %546 = vmatpush.msra.mxu3 %v446_v44  ;;  %505 = vmatpush.msra.mxu1 %v447_v46  ;;  %v471_v3 = vperm.slane %v469_v2, 0  ;;  %v557_v4 = vld [vmem:[%s387_s9] sm:$0x3]  ;;  %v472_v7 = vperm.slane %v469_v2, 1 }
  0x25   : > { %527 = vmatpush.msra.mxu2 %v412_v47  ;;  %487 = vmatpush.msra.mxu0 %v411_v49  ;;  %v559_v8 = vperm.slane %v557_v4, 0  ;;  %v555_v12 = vld [vmem:[%s378_s12] sm:$0xff]  ;;  %v560_v16 = vperm.slane %v557_v4, 1 }
  0x26   : > { %547 = vmatpush.msra.mxu3 %v444_v48  ;;  %506 = vmatpush.msra.mxu1 %v445_v50 }
  0x27   : > { %528 = vmatpush.msra.mxu2 %v410_v51  ;;  %488 = vmatpush.msra.mxu0 %v409_v53 }
  0x28   : > { %548 = vmatpush.msra.mxu3 %v442_v52  ;;  %507 = vmatpush.msra.mxu1 %v443_v54 }
  0x29   : > { %529 = vmatpush.msra.mxu2 %v408_v55  ;;  %489 = vmatpush.msra.mxu0 %v407_v57 }
  0x2a   : > { %549 = vmatpush.msra.mxu3 %v440_v56  ;;  %508 = vmatpush.msra.mxu1 %v441_v58 }
  0x2b   : > { %530 = vmatpush.msra.mxu2 %v406_v59  ;;  %490 = vmatpush.msra.mxu0 %v405_v63 }
  0x2c   : > { %550 = vmatpush.msra.mxu3 %v438_v60  ;;  %531 = vmatmul.f32.vlgmr.msra.gmra.mxu2 %v403_v61 }
  0x2d   : > { %551 = vmatmul.f32.vlgmr.msra.gmra.mxu3 %v404_v62  ;;  %509 = vmatpush.msra.mxu1 %v439_v0 }
  0x2e   : > { %491 = vmatmul.f32.vlgmr.msra.gmra.mxu0 %v403_v61 }
  0x2f   : > { %510 = vmatpush.msra.mxu1 %v437_v1 }
  0x30   : > { %511 = vmatmul.f32.vlgmr.msra.gmra.mxu1 %v404_v62 }
  0xab   : > { %v492_v5 = vpop.f32.mrf.mxu0 }
  0xac   : > { %v493_v6 = vadd.f32 %v492_v5, %v471_v3 }
  0xad   : > { %v512_v9 = vpop.f32.mrf.mxu1 }
  0xae   : > { %v513_v10 = vadd.f32 %v512_v9, %v493_v6 }
  0xaf   : > { %v532_v11 = vpop.f32.mrf.mxu2 }
  0xb0   : > { %v552_v13 = vpop.f32.mrf.mxu3  ;;  %v533_v14 = vadd.f32 %v532_v11, %v472_v7  ;;  %v563_v15 = vmul.f32 %v559_v8, %v513_v10 }
  0xb2   : > { %v565_v17 = vadd.f32 %v563_v15, %v555_v12  ;;  %v553_v18 = vadd.f32 %v552_v13, %v533_v14 }
  0xb4   : > { %567 = vst [vmem:[%s401_s14] sm:$0xff] %v565_v17  ;;  %v564_v20 = vmul.f32 %v560_v16, %v553_v18 }
  0xb6   : > { %v566_v21 = vadd.f32 %v564_v20, %v556_v19 }
  0xb8   : > { %568 = vst [vmem:[%s401_s14 + $0x8] sm:$0xff] %v566_v21 }
  0xb9 PF: > { %s15_s20 = sadd.s32 1, %s809_s20   ;;  %s1096_s18 = smov %s805_s19 }
  0xba   : > { %p12_p5 = scmp.ge.s32.totalorder %s15_s20, 4   ;;  %s1097_s19 = smov %s1099_s21 }
  0xbc   :  { %14 = sbr.rel (!%p12_p5) target bundleno = 2 (0x2), region = 82 }

// kernel: joint_transformer_block.14
= control target key start
LH: loop header
LB: loop body
LE: loop exit
PB: predicated region body
PF: predicated region fallthrough
CT: control target
= control target key end

     0   :  { %s2901_s0 = inlined_call_operand.vmem [shape: f32[2,16,256], index: 0, kind: input, shape index: {}]   ;;  %s2902_s1 = inlined_call_operand.vmem [shape: f32[2,1,256], index: 1, kind: input, shape index: {}]   ;;  %s2903_s2 = inlined_call_operand.vmem [shape: f32[2,1,256], index: 2, kind: input, shape index: {}]   ;;  %s2904_s3 = inlined_call_operand.vmem [shape: f32[2,1,256], index: 3, kind: input, shape index: {}]   ;;  %s2905_s4 = inlined_call_operand.vmem [shape: f32[256,1024], index: 4, kind: input, shape index: {}]   ;;  %s2906_s5 = inlined_call_operand.vmem [shape: f32[1,1024], index: 5, kind: input, shape index: {}]   ;;  %s2907_s6 = inlined_call_operand.vmem [shape: f32[1024,256], index: 6, kind: input, shape index: {}]   ;;  %s2908_s7 = inlined_call_operand.vmem [shape: f32[1,256], index: 7, kind: input, shape index: {}]   ;;  %s2909_s8 = inlined_call_operand.hbm [shape: f32[2,16,256], index: 8, kind: output, shape index: {}]  }
   0x1   :  { %2922 = sst [smem:[#allocation19_spill]] %s2901_s0 }
   0x2   :  { %2923 = sst [smem:[#allocation20_spill]] %s2905_s4 }
   0x3   :  { %2924 = sst [smem:[#allocation21_spill]] %s2909_s8 }
   0x4   :  { %13 = vsyncpa [#allocation6], 0 }
   0x5   :  { %15 = vsyncpa [#allocation6 + $0x1], 0  ;;  %s2077_s27 = smov 0   ;;  %s2079_s28 = smov 0  }
   0x6   :  { %s2081_s29 = smov 0   ;;  %s2083_s30 = smov 0  }
   0x7   :  { %s2085_s9 = smov 0   ;;  %s2087_s10 = smov 0  }
   0x8   :  { %s2089_s11 = smov 0   ;;  %s2091_s12 = smov 0  }
   0x9   :  { %s2093_s13 = smov 0   ;;  %s2095_s14 = smov 0  }
   0xa LB: > { %2925 = sst [smem:[#allocation8_spill]] %s1990_s27  ;;  %s1773_s15 = sadd.s32 4294967295, %s2026_s14   ;;  %s2026_s14 = sphi %s2095_s14, %s21_s14   ;;  %s2022_s13 = sphi %s2093_s13, %s2953_s13   ;;  %s2018_s12 = sphi %s2091_s12, %s2952_s12   ;;  %s2014_s11 = sphi %s2089_s11, %s2951_s11   ;;  %s2010_s10 = sphi %s2087_s10, %s2950_s10   ;;  %s2006_s9 = sphi %s2085_s9, %s2949_s9   ;;  %s2002_s30 = sphi %s2083_s30, %s2948_s30   ;;  %s1998_s29 = sphi %s2081_s29, %s2947_s29   ;;  %s1994_s28 = sphi %s2079_s28, %s2955_s28   ;;  %s1990_s27 = sphi %s2077_s27, %s2954_s27  }
   0xb   : > { %2926 = sst [smem:[#allocation9_spill]] %s1998_s29  ;;  %s1774_s16 = sadd.s32 4294967294, %s2026_s14  }
   0xc   : > { %2927 = sst [smem:[#allocation10_spill]] %s2006_s9  ;;  %s33_s17 = sadd.s32 1, %s2018_s12 }
   0xd   : > { %2928 = sst [smem:[#allocation11_spill]] %s2018_s12  ;;  %s40_s18 = sadd.s32 1, %s2022_s13 }
   0xe   : > { %2929 = sst [smem:[#allocation12_spill]] %s2022_s13  ;;  %p34_p0 = scmp.ge.s32.totalorder %s33_s17, 2 }
   0xf   : > { %2930 = sst [smem:[#allocation13_spill]] %s2026_s14  ;;  %s153_s19 = sadd.s32 1, %s2006_s9 }
  0x10   : > { %p160_p1 = scmp.ne.s32.totalorder %s2006_s9, %s2002_s30  ;;  %p161_p2 = scmp.eq.s32.totalorder %s2026_s14, 0 }
  0x11   : > { %s2957_s17 = smov (%p34_p0, %s33_s17), 0  ;;  %s2959_s18 = smov (!%p34_p0, %s40_s18), %s2022_s13 }
  0x12   : > { %2931 = sst [smem:[#allocation14_spill]] %s2957_s17  ;;  %s150_s20 = ssub.s32 %s2018_s12, %s2957_s17 }
  0x13   : > { %p2140_p3 = por %p161_p2, %p160_p1  ;;  %p42_p4 = scmp.ge.s32.totalorder %s2959_s18, 2 }
  0x14   : > { %p151_p5 = scmp.eq.s32.totalorder %s150_s20, 0  ;;  %s254_s22 = sadd.s32 1, %s1998_s29 }
  0x15   : > { %p264_p6 = scmp.ne.s32.totalorder %s1998_s29, %s1994_s28  ;;  %s2961_s18 = smov (%p42_p4, %s2959_s18), 0 }
  0x16   : > { %2933 = sst [smem:[#allocation15_spill]] %s2961_s18  ;;  %s249_s24 = ssub.s32 %s2022_s13, %s2961_s18 }
  0x17   : > { %s2150_s23 = scalar_select %p151_p5, %s2006_s9, %s153_s19  }
  0x18   : > { %p265_p7 = scmp.eq.s32.totalorder %s1773_s15, 3  ;;  %p252_p8 = scmp.eq.s32.totalorder %s249_s24, 0 }
  0x19   : > { %2934 = sst [smem:[#allocation16_spill]] %s2150_s23  ;;  %p270_p9 = scmp.ne.s32.totalorder %s1994_s28, %s1990_s27 }
  0x1a   : > { %p2156_p10 = por %p265_p7, %p264_p6  ;;  %p271_p11 = scmp.eq.s32.totalorder %s1774_s16, 3 }
  0x1b   : > { %s2161_s26 = scalar_select %p252_p8, %s1998_s29, %s254_s22  }
  0x1c   : > { %p2163_p12 = por %p271_p11, %p270_p9  ;;  %p1776_p13 = scmp.ge.s32.totalorder %s2026_s14, 4 }
  0x1d   : > { %2936 = sst [smem:[#allocation17_spill]] %s2161_s26 }
  0x1e   : > { %s2937_s20 = scalar_select %p2163_p12, 1, 0 }
  0x1f   : > { %290 = sbr.rel (%p1776_p13) target bundleno = 174 (0xae), region = 20 }
  0x20   : > { %2938 = sst [smem:[#allocation18_spill]] %s2937_s20 }
  0x24   : > { %328 = sbr.rel (!%p2140_p3) target bundleno = 174 (0xae), region = 40  ;;  %s330_s15 = sand.u32 (%p2140_p3), 1, %s2006_s9  }
  0x25   : > { %s1799_s19 = sshll.u32 (%p2140_p3), %s2018_s12, 5  ;;  %s1777_s24 = sshll.u32 (%p2140_p3), %s330_s15, 10 }
  0x26   : > { %s2939_s4 = sld [smem:[#allocation20_spill]] (%p2140_p3)  ;;  %s2180_s21 = scalar_lea.vmem (%p2140_p3), [#allocation4], %s1777_s24 }
  0x2c   : > { %s2175_s16 = scalar_lea.vmem %s2939_s4, %s1799_s19 }
  0x2d   : > { %v348_v0 = vld [vmem:[%s2175_s16] sm:$0xff]  ;;  %v350_v1 = vld [vmem:[%s2175_s16 + $0x8] sm:$0xff]  ;;  %v352_v2 = vld [vmem:[%s2175_s16 + $0x10] sm:$0xff] }
  0x2e   : > { %349 = vst [vmem:[%s2180_s21] sm:$0xff] %v348_v0  ;;  %v354_v3 = vld [vmem:[%s2175_s16 + $0x18] sm:$0xff]  ;;  %v356_v4 = vld [vmem:[%s2175_s16 + $0x40] sm:$0xff]  ;;  %v358_v5 = vld [vmem:[%s2175_s16 + $0x48] sm:$0xff] }
  0x2f   : > { %351 = vst [vmem:[%s2180_s21 + $0x8] sm:$0xff] %v350_v1  ;;  %v360_v6 = vld [vmem:[%s2175_s16 + $0x50] sm:$0xff]  ;;  %v362_v7 = vld [vmem:[%s2175_s16 + $0x58] sm:$0xff]  ;;  %v364_v8 = vld [vmem:[%s2175_s16 + $0x80] sm:$0xff] }
  0x30   : > { %353 = vst [vmem:[%s2180_s21 + $0x10] sm:$0xff] %v352_v2  ;;  %v366_v9 = vld [vmem:[%s2175_s16 + $0x88] sm:$0xff]  ;;  %v368_v10 = vld [vmem:[%s2175_s16 + $0x90] sm:$0xff]  ;;  %v370_v11 = vld [vmem:[%s2175_s16 + $0x98] sm:$0xff] }
  0x31   : > { %355 = vst [vmem:[%s2180_s21 + $0x18] sm:$0xff] %v354_v3  ;;  %v372_v12 = vld [vmem:[%s2175_s16 + $0xc0] sm:$0xff]  ;;  %v374_v13 = vld [vmem:[%s2175_s16 + $0xc8] sm:$0xff]  ;;  %v376_v14 = vld [vmem:[%s2175_s16 + $0xd0] sm:$0xff] }
  0x32   : > { %357 = vst [vmem:[%s2180_s21 + $0x20] sm:$0xff] %v356_v4  ;;  %v378_v15 = vld [vmem:[%s2175_s16 + $0xd8] sm:$0xff]  ;;  %v380_v16 = vld [vmem:[%s2175_s16 + $0x100] sm:$0xff]  ;;  %v382_v17 = vld [vmem:[%s2175_s16 + $0x108] sm:$0xff] }
  0x33   : > { %359 = vst [vmem:[%s2180_s21 + $0x28] sm:$0xff] %v358_v5  ;;  %v384_v18 = vld [vmem:[%s2175_s16 + $0x110] sm:$0xff]  ;;  %v386_v19 = vld [vmem:[%s2175_s16 + $0x118] sm:$0xff]  ;;  %v388_v20 = vld [vmem:[%s2175_s16 + $0x140] sm:$0xff] }
  0x34   : > { %361 = vst [vmem:[%s2180_s21 + $0x30] sm:$0xff] %v360_v6  ;;  %v390_v21 = vld [vmem:[%s2175_s16 + $0x148] sm:$0xff]  ;;  %v392_v22 = vld [vmem:[%s2175_s16 + $0x150] sm:$0xff]  ;;  %v394_v23 = vld [vmem:[%s2175_s16 + $0x158] sm:$0xff] }
  0x35   : > { %363 = vst [vmem:[%s2180_s21 + $0x38] sm:$0xff] %v362_v7  ;;  %v396_v24 = vld [vmem:[%s2175_s16 + $0x180] sm:$0xff]  ;;  %v398_v25 = vld [vmem:[%s2175_s16 + $0x188] sm:$0xff]  ;;  %v400_v26 = vld [vmem:[%s2175_s16 + $0x190] sm:$0xff] }
  0x36   : > { %365 = vst [vmem:[%s2180_s21 + $0x40] sm:$0xff] %v364_v8  ;;  %v402_v27 = vld [vmem:[%s2175_s16 + $0x198] sm:$0xff]  ;;  %v404_v28 = vld [vmem:[%s2175_s16 + $0x1c0] sm:$0xff]  ;;  %v406_v29 = vld [vmem:[%s2175_s16 + $0x1c8] sm:$0xff] }
  0x37   : > { %367 = vst [vmem:[%s2180_s21 + $0x48] sm:$0xff] %v366_v9  ;;  %v408_v30 = vld [vmem:[%s2175_s16 + $0x1d0] sm:$0xff]  ;;  %v410_v31 = vld [vmem:[%s2175_s16 + $0x1d8] sm:$0xff]  ;;  %v412_v32 = vld [vmem:[%s2175_s16 + $0x200] sm:$0xff] }
  0x38   : > { %369 = vst [vmem:[%s2180_s21 + $0x50] sm:$0xff] %v368_v10  ;;  %v414_v33 = vld [vmem:[%s2175_s16 + $0x208] sm:$0xff]  ;;  %v416_v34 = vld [vmem:[%s2175_s16 + $0x210] sm:$0xff]  ;;  %v418_v35 = vld [vmem:[%s2175_s16 + $0x218] sm:$0xff] }
  0x39   : > { %371 = vst [vmem:[%s2180_s21 + $0x58] sm:$0xff] %v370_v11  ;;  %v420_v36 = vld [vmem:[%s2175_s16 + $0x240] sm:$0xff]  ;;  %v422_v37 = vld [vmem:[%s2175_s16 + $0x248] sm:$0xff]  ;;  %v424_v38 = vld [vmem:[%s2175_s16 + $0x250] sm:$0xff] }
  0x3a   : > { %373 = vst [vmem:[%s2180_s21 + $0x60] sm:$0xff] %v372_v12  ;;  %v426_v39 = vld [vmem:[%s2175_s16 + $0x258] sm:$0xff]  ;;  %v428_v40 = vld [vmem:[%s2175_s16 + $0x280] sm:$0xff]  ;;  %v430_v41 = vld [vmem:[%s2175_s16 + $0x288] sm:$0xff] }
  0x3b   : > { %375 = vst [vmem:[%s2180_s21 + $0x68] sm:$0xff] %v374_v13  ;;  %v432_v42 = vld [vmem:[%s2175_s16 + $0x290] sm:$0xff]  ;;  %v434_v43 = vld [vmem:[%s2175_s16 + $0x298] sm:$0xff]  ;;  %v436_v44 = vld [vmem:[%s2175_s16 + $0x2c0] sm:$0xff] }
  0x3c   : > { %377 = vst [vmem:[%s2180_s21 + $0x70] sm:$0xff] %v376_v14  ;;  %v438_v45 = vld [vmem:[%s2175_s16 + $0x2c8] sm:$0xff]  ;;  %v440_v46 = vld [vmem:[%s2175_s16 + $0x2d0] sm:$0xff]  ;;  %v442_v47 = vld [vmem:[%s2175_s16 + $0x2d8] sm:$0xff] }
  0x3d   : > { %379 = vst [vmem:[%s2180_s21 + $0x78] sm:$0xff] %v378_v15  ;;  %v444_v48 = vld [vmem:[%s2175_s16 + $0x300] sm:$0xff]  ;;  %v446_v49 = vld [vmem:[%s2175_s16 + $0x308] sm:$0xff]  ;;  %v448_v50 = vld [vmem:[%s2175_s16 + $0x310] sm:$0xff] }
  0x3e   : > { %381 = vst [vmem:[%s2180_s21 + $0x80] sm:$0xff] %v380_v16  ;;  %v450_v51 = vld [vmem:[%s2175_s16 + $0x318] sm:$0xff]  ;;  %v452_v52 = vld [vmem:[%s2175_s16 + $0x340] sm:$0xff]  ;;  %v454_v53 = vld [vmem:[%s2175_s16 + $0x348] sm:$0xff] }
  0x3f   : > { %383 = vst [vmem:[%s2180_s21 + $0x88] sm:$0xff] %v382_v17  ;;  %v456_v54 = vld [vmem:[%s2175_s16 + $0x350] sm:$0xff]  ;;  %v458_v55 = vld [vmem:[%s2175_s16 + $0x358] sm:$0xff]  ;;  %v460_v56 = vld [vmem:[%s2175_s16 + $0x380] sm:$0xff] }
  0x40   : > { %385 = vst [vmem:[%s2180_s21 + $0x90] sm:$0xff] %v384_v18  ;;  %v462_v57 = vld [vmem:[%s2175_s16 + $0x388] sm:$0xff]  ;;  %v464_v58 = vld [vmem:[%s2175_s16 + $0x390] sm:$0xff]  ;;  %v466_v59 = vld [vmem:[%s2175_s16 + $0x398] sm:$0xff] }
  0x41   : > { %387 = vst [vmem:[%s2180_s21 + $0x98] sm:$0xff] %v386_v19  ;;  %v468_v60 = vld [vmem:[%s2175_s16 + $0x3c0] sm:$0xff]  ;;  %v470_v61 = vld [vmem:[%s2175_s16 + $0x3c8] sm:$0xff]  ;;  %v472_v62 = vld [vmem:[%s2175_s16 + $0x3d0] sm:$0xff] }
  0x42   : > { %389 = vst [vmem:[%s2180_s21 + $0xa0] sm:$0xff] %v388_v20  ;;  %v474_v63 = vld [vmem:[%s2175_s16 + $0x3d8] sm:$0xff]  ;;  %v476_v0 = vld [vmem:[%s2175_s16 + $0x400] sm:$0xff]  ;;  %v478_v1 = vld [vmem:[%s2175_s16 + $0x408] sm:$0xff] }
  0x43   : > { %391 = vst [vmem:[%s2180_s21 + $0xa8] sm:$0xff] %v390_v21  ;;  %v480_v2 = vld [vmem:[%s2175_s16 + $0x410] sm:$0xff]  ;;  %v482_v3 = vld [vmem:[%s2175_s16 + $0x418] sm:$0xff]  ;;  %v484_v4 = vld [vmem:[%s2175_s16 + $0x440] sm:$0xff] }
  0x44   : > { %393 = vst [vmem:[%s2180_s21 + $0xb0] sm:$0xff] %v392_v22  ;;  %v486_v5 = vld [vmem:[%s2175_s16 + $0x448] sm:$0xff]  ;;  %v488_v6 = vld [vmem:[%s2175_s16 + $0x450] sm:$0xff]  ;;  %v490_v7 = vld [vmem:[%s2175_s16 + $0x458] sm:$0xff] }
  0x45   : > { %395 = vst [vmem:[%s2180_s21 + $0xb8] sm:$0xff] %v394_v23  ;;  %v492_v8 = vld [vmem:[%s2175_s16 + $0x480] sm:$0xff]  ;;  %v494_v9 = vld [vmem:[%s2175_s16 + $0x488] sm:$0xff]  ;;  %v496_v10 = vld [vmem:[%s2175_s16 + $0x490] sm:$0xff] }
  0x46   : > { %397 = vst [vmem:[%s2180_s21 + $0xc0] sm:$0xff] %v396_v24  ;;  %v498_v11 = vld [vmem:[%s2175_s16 + $0x498] sm:$0xff]  ;;  %v500_v12 = vld [vmem:[%s2175_s16 + $0x4c0] sm:$0xff]  ;;  %v502_v13 = vld [vmem:[%s2175_s16 + $0x4c8] sm:$0xff] }
  0x47   : > { %399 = vst [vmem:[%s2180_s21 + $0xc8] sm:$0xff] %v398_v25  ;;  %v504_v14 = vld [vmem:[%s2175_s16 + $0x4d0] sm:$0xff]  ;;  %v506_v15 = vld [vmem:[%s2175_s16 + $0x4d8] sm:$0xff]  ;;  %v508_v16 = vld [vmem:[%s2175_s16 + $0x500] sm:$0xff] }
  0x48   : > { %401 = vst [vmem:[%s2180_s21 + $0xd0] sm:$0xff] %v400_v26  ;;  %v510_v17 = vld [vmem:[%s2175_s16 + $0x508] sm:$0xff]  ;;  %v512_v18 = vld [vmem:[%s2175_s16 + $0x510] sm:$0xff]  ;;  %v514_v19 = vld [vmem:[%s2175_s16 + $0x518] sm:$0xff] }
  0x49   : > { %403 = vst [vmem:[%s2180_s21 + $0xd8] sm:$0xff] %v402_v27  ;;  %v516_v20 = vld [vmem:[%s2175_s16 + $0x540] sm:$0xff]  ;;  %v518_v21 = vld [vmem:[%s2175_s16 + $0x548] sm:$0xff]  ;;  %v520_v22 = vld [vmem:[%s2175_s16 + $0x550] sm:$0xff] }
  0x4a   : > { %405 = vst [vmem:[%s2180_s21 + $0xe0] sm:$0xff] %v404_v28  ;;  %v522_v23 = vld [vmem:[%s2175_s16 + $0x558] sm:$0xff]  ;;  %v524_v24 = vld [vmem:[%s2175_s16 + $0x580] sm:$0xff]  ;;  %v526_v25 = vld [vmem:[%s2175_s16 + $0x588] sm:$0xff] }
  0x4b   : > { %407 = vst [vmem:[%s2180_s21 + $0xe8] sm:$0xff] %v406_v29  ;;  %v528_v26 = vld [vmem:[%s2175_s16 + $0x590] sm:$0xff]  ;;  %v530_v27 = vld [vmem:[%s2175_s16 + $0x598] sm:$0xff]  ;;  %v532_v28 = vld [vmem:[%s2175_s16 + $0x5c0] sm:$0xff] }
  0x4c   : > { %409 = vst [vmem:[%s2180_s21 + $0xf0] sm:$0xff] %v408_v30  ;;  %v534_v29 = vld [vmem:[%s2175_s16 + $0x5c8] sm:$0xff]  ;;  %v536_v30 = vld [vmem:[%s2175_s16 + $0x5d0] sm:$0xff] }
  0x4d   : > { %411 = vst [vmem:[%s2180_s21 + $0xf8] sm:$0xff] %v410_v31  ;;  %v538_v31 = vld [vmem:[%s2175_s16 + $0x5d8] sm:$0xff] }
  0x4e   : > { %413 = vst [vmem:[%s2180_s21 + $0x100] sm:$0xff] %v412_v32  ;;  %v540_v32 = vld [vmem:[%s2175_s16 + $0x600] sm:$0xff] }
  0x4f   : > { %415 = vst [vmem:[%s2180_s21 + $0x108] sm:$0xff] %v414_v33  ;;  %v542_v33 = vld [vmem:[%s2175_s16 + $0x608] sm:$0xff] }
  0x50   : > { %417 = vst [vmem:[%s2180_s21 + $0x110] sm:$0xff] %v416_v34  ;;  %v544_v34 = vld [vmem:[%s2175_s16 + $0x610] sm:$0xff] }
  0x51   : > { %419 = vst [vmem:[%s2180_s21 + $0x118] sm:$0xff] %v418_v35  ;;  %v546_v35 = vld [vmem:[%s2175_s16 + $0x618] sm:$0xff] }
  0x52   : > { %421 = vst [vmem:[%s2180_s21 + $0x120] sm:$0xff] %v420_v36  ;;  %v548_v36 = vld [vmem:[%s2175_s16 + $0x640] sm:$0xff] }
  0x53   : > { %423 = vst [vmem:[%s2180_s21 + $0x128] sm:$0xff] %v422_v37  ;;  %v550_v37 = vld [vmem:[%s2175_s16 + $0x648] sm:$0xff] }
  0x54   : > { %425 = vst [vmem:[%s2180_s21 + $0x130] sm:$0xff] %v424_v38  ;;  %v552_v38 = vld [vmem:[%s2175_s16 + $0x650] sm:$0xff] }
  0x55   : > { %427 = vst [vmem:[%s2180_s21 + $0x138] sm:$0xff] %v426_v39  ;;  %v554_v39 = vld [vmem:[%s2175_s16 + $0x658] sm:$0xff] }
  0x56   : > { %429 = vst [vmem:[%s2180_s21 + $0x140] sm:$0xff] %v428_v40  ;;  %v556_v40 = vld [vmem:[%s2175_s16 + $0x680] sm:$0xff] }
  0x57   : > { %431 = vst [vmem:[%s2180_s21 + $0x148] sm:$0xff] %v430_v41  ;;  %v558_v41 = vld [vmem:[%s2175_s16 + $0x688] sm:$0xff] }
  0x58   : > { %433 = vst [vmem:[%s2180_s21 + $0x150] sm:$0xff] %v432_v42  ;;  %v560_v42 = vld [vmem:[%s2175_s16 + $0x690] sm:$0xff] }
  0x59   : > { %435 = vst [vmem:[%s2180_s21 + $0x158] sm:$0xff] %v434_v43  ;;  %v562_v43 = vld [vmem:[%s2175_s16 + $0x698] sm:$0xff] }
  0x5a   : > { %437 = vst [vmem:[%s2180_s21 + $0x160] sm:$0xff] %v436_v44  ;;  %v564_v44 = vld [vmem:[%s2175_s16 + $0x6c0] sm:$0xff] }
  0x5b   : > { %439 = vst [vmem:[%s2180_s21 + $0x168] sm:$0xff] %v438_v45  ;;  %v566_v45 = vld [vmem:[%s2175_s16 + $0x6c8] sm:$0xff] }
  0x5c   : > { %441 = vst [vmem:[%s2180_s21 + $0x170] sm:$0xff] %v440_v46  ;;  %v568_v46 = vld [vmem:[%s2175_s16 + $0x6d0] sm:$0xff] }
  0x5d   : > { %443 = vst [vmem:[%s2180_s21 + $0x178] sm:$0xff] %v442_v47  ;;  %v570_v47 = vld [vmem:[%s2175_s16 + $0x6d8] sm:$0xff] }
  0x5e   : > { %445 = vst [vmem:[%s2180_s21 + $0x180] sm:$0xff] %v444_v48  ;;  %v572_v48 = vld [vmem:[%s2175_s16 + $0x700] sm:$0xff] }
  0x5f   : > { %447 = vst [vmem:[%s2180_s21 + $0x188] sm:$0xff] %v446_v49  ;;  %v574_v49 = vld [vmem:[%s2175_s16 + $0x708] sm:$0xff] }
  0x60   : > { %449 = vst [vmem:[%s2180_s21 + $0x190] sm:$0xff] %v448_v50  ;;  %v576_v50 = vld [vmem:[%s2175_s16 + $0x710] sm:$0xff] }
  0x61   : > { %451 = vst [vmem:[%s2180_s21 + $0x198] sm:$0xff] %v450_v51  ;;  %v578_v51 = vld [vmem:[%s2175_s16 + $0x718] sm:$0xff] }
  0x62   : > { %453 = vst [vmem:[%s2180_s21 + $0x1a0] sm:$0xff] %v452_v52  ;;  %v580_v52 = vld [vmem:[%s2175_s16 + $0x740] sm:$0xff] }
  0x63   : > { %455 = vst [vmem:[%s2180_s21 + $0x1a8] sm:$0xff] %v454_v53  ;;  %v582_v53 = vld [vmem:[%s2175_s16 + $0x748] sm:$0xff] }
  0x64   : > { %457 = vst [vmem:[%s2180_s21 + $0x1b0] sm:$0xff] %v456_v54  ;;  %v584_v54 = vld [vmem:[%s2175_s16 + $0x750] sm:$0xff] }
  0x65   : > { %459 = vst [vmem:[%s2180_s21 + $0x1b8] sm:$0xff] %v458_v55  ;;  %v586_v55 = vld [vmem:[%s2175_s16 + $0x758] sm:$0xff] }
  0x66   : > { %461 = vst [vmem:[%s2180_s21 + $0x1c0] sm:$0xff] %v460_v56  ;;  %v588_v56 = vld [vmem:[%s2175_s16 + $0x780] sm:$0xff] }
  0x67   : > { %463 = vst [vmem:[%s2180_s21 + $0x1c8] sm:$0xff] %v462_v57  ;;  %v590_v57 = vld [vmem:[%s2175_s16 + $0x788] sm:$0xff] }
  0x68   : > { %465 = vst [vmem:[%s2180_s21 + $0x1d0] sm:$0xff] %v464_v58  ;;  %v592_v58 = vld [vmem:[%s2175_s16 + $0x790] sm:$0xff] }
  0x69   : > { %467 = vst [vmem:[%s2180_s21 + $0x1d8] sm:$0xff] %v466_v59  ;;  %v594_v59 = vld [vmem:[%s2175_s16 + $0x798] sm:$0xff] }
  0x6a   : > { %469 = vst [vmem:[%s2180_s21 + $0x1e0] sm:$0xff] %v468_v60  ;;  %v596_v60 = vld [vmem:[%s2175_s16 + $0x7c0] sm:$0xff] }
  0x6b   : > { %471 = vst [vmem:[%s2180_s21 + $0x1e8] sm:$0xff] %v470_v61  ;;  %v598_v61 = vld [vmem:[%s2175_s16 + $0x7c8] sm:$0xff] }
  0x6c   : > { %473 = vst [vmem:[%s2180_s21 + $0x1f0] sm:$0xff] %v472_v62  ;;  %v600_v62 = vld [vmem:[%s2175_s16 + $0x7d0] sm:$0xff] }
  0x6d   : > { %475 = vst [vmem:[%s2180_s21 + $0x1f8] sm:$0xff] %v474_v63  ;;  %v602_v63 = vld [vmem:[%s2175_s16 + $0x7d8] sm:$0xff] }
  0x6e   : > { %477 = vst [vmem:[%s2180_s21 + $0x200] sm:$0xff] %v476_v0 }
  0x6f   : > { %479 = vst [vmem:[%s2180_s21 + $0x208] sm:$0xff] %v478_v1 }
  0x70   : > { %481 = vst [vmem:[%s2180_s21 + $0x210] sm:$0xff] %v480_v2 }
  0x71   : > { %483 = vst [vmem:[%s2180_s21 + $0x218] sm:$0xff] %v482_v3 }
  0x72   : > { %485 = vst [vmem:[%s2180_s21 + $0x220] sm:$0xff] %v484_v4 }
  0x73   : > { %487 = vst [vmem:[%s2180_s21 + $0x228] sm:$0xff] %v486_v5 }
  0x74   : > { %489 = vst [vmem:[%s2180_s21 + $0x230] sm:$0xff] %v488_v6 }
  0x75   : > { %491 = vst [vmem:[%s2180_s21 + $0x238] sm:$0xff] %v490_v7 }
  0x76   : > { %493 = vst [vmem:[%s2180_s21 + $0x240] sm:$0xff] %v492_v8 }
  0x77   : > { %495 = vst [vmem:[%s2180_s21 + $0x248] sm:$0xff] %v494_v9 }
  0x78   : > { %497 = vst [vmem:[%s2180_s21 + $0x250] sm:$0xff] %v496_v10 }
  0x79   : > { %499 = vst [vmem:[%s2180_s21 + $0x258] sm:$0xff] %v498_v11 }
  0x7a   : > { %501 = vst [vmem:[%s2180_s21 + $0x260] sm:$0xff] %v500_v12 }
  0x7b   : > { %503 = vst [vmem:[%s2180_s21 + $0x268] sm:$0xff] %v502_v13 }
  0x7c   : > { %505 = vst [vmem:[%s2180_s21 + $0x270] sm:$0xff] %v504_v14 }
  0x7d   : > { %507 = vst [vmem:[%s2180_s21 + $0x278] sm:$0xff] %v506_v15 }
  0x7e   : > { %509 = vst [vmem:[%s2180_s21 + $0x280] sm:$0xff] %v508_v16 }
  0x7f   : > { %511 = vst [vmem:[%s2180_s21 + $0x288] sm:$0xff] %v510_v17 }
  0x80   : > { %513 = vst [vmem:[%s2180_s21 + $0x290] sm:$0xff] %v512_v18 }
  0x81   : > { %515 = vst [vmem:[%s2180_s21 + $0x298] sm:$0xff] %v514_v19 }
  0x82   : > { %517 = vst [vmem:[%s2180_s21 + $0x2a0] sm:$0xff] %v516_v20 }
  0x83   : > { %519 = vst [vmem:[%s2180_s21 + $0x2a8] sm:$0xff] %v518_v21 }
  0x84   : > { %521 = vst [vmem:[%s2180_s21 + $0x2b0] sm:$0xff] %v520_v22 }
  0x85   : > { %523 = vst [vmem:[%s2180_s21 + $0x2b8] sm:$0xff] %v522_v23 }
  0x86   : > { %525 = vst [vmem:[%s2180_s21 + $0x2c0] sm:$0xff] %v524_v24 }
  0x87   : > { %527 = vst [vmem:[%s2180_s21 + $0x2c8] sm:$0xff] %v526_v25 }
  0x88   : > { %529 = vst [vmem:[%s2180_s21 + $0x2d0] sm:$0xff] %v528_v26 }
  0x89   : > { %531 = vst [vmem:[%s2180_s21 + $0x2d8] sm:$0xff] %v530_v27 }
  0x8a   : > { %533 = vst [vmem:[%s2180_s21 + $0x2e0] sm:$0xff] %v532_v28 }
  0x8b   : > { %535 = vst [vmem:[%s2180_s21 + $0x2e8] sm:$0xff] %v534_v29 }
  0x8c   : > { %537 = vst [vmem:[%s2180_s21 + $0x2f0] sm:$0xff] %v536_v30 }
  0x8d   : > { %539 = vst [vmem:[%s2180_s21 + $0x2f8] sm:$0xff] %v538_v31 }
  0x8e   : > { %541 = vst [vmem:[%s2180_s21 + $0x300] sm:$0xff] %v540_v32 }
  0x8f   : > { %543 = vst [vmem:[%s2180_s21 + $0x308] sm:$0xff] %v542_v33 }
  0x90   : > { %545 = vst [vmem:[%s2180_s21 + $0x310] sm:$0xff] %v544_v34 }
  0x91   : > { %547 = vst [vmem:[%s2180_s21 + $0x318] sm:$0xff] %v546_v35 }
  0x92   : > { %549 = vst [vmem:[%s2180_s21 + $0x320] sm:$0xff] %v548_v36 }
  0x93   : > { %551 = vst [vmem:[%s2180_s21 + $0x328] sm:$0xff] %v550_v37 }
  0x94   : > { %553 = vst [vmem:[%s2180_s21 + $0x330] sm:$0xff] %v552_v38 }
  0x95   : > { %555 = vst [vmem:[%s2180_s21 + $0x338] sm:$0xff] %v554_v39 }
  0x96   : > { %557 = vst [vmem:[%s2180_s21 + $0x340] sm:$0xff] %v556_v40 }
  0x97   : > { %559 = vst [vmem:[%s2180_s21 + $0x348] sm:$0xff] %v558_v41 }
  0x98   : > { %561 = vst [vmem:[%s2180_s21 + $0x350] sm:$0xff] %v560_v42 }
  0x99   : > { %563 = vst [vmem:[%s2180_s21 + $0x358] sm:$0xff] %v562_v43 }
  0x9a   : > { %565 = vst [vmem:[%s2180_s21 + $0x360] sm:$0xff] %v564_v44 }
  0x9b   : > { %567 = vst [vmem:[%s2180_s21 + $0x368] sm:$0xff] %v566_v45 }
  0x9c   : > { %569 = vst [vmem:[%s2180_s21 + $0x370] sm:$0xff] %v568_v46 }
  0x9d   : > { %571 = vst [vmem:[%s2180_s21 + $0x378] sm:$0xff] %v570_v47 }
  0x9e   : > { %573 = vst [vmem:[%s2180_s21 + $0x380] sm:$0xff] %v572_v48 }
  0x9f   : > { %575 = vst [vmem:[%s2180_s21 + $0x388] sm:$0xff] %v574_v49 }
  0xa0   : > { %577 = vst [vmem:[%s2180_s21 + $0x390] sm:$0xff] %v576_v50 }
  0xa1   : > { %579 = vst [vmem:[%s2180_s21 + $0x398] sm:$0xff] %v578_v51 }
  0xa2   : > { %581 = vst [vmem:[%s2180_s21 + $0x3a0] sm:$0xff] %v580_v52 }
  0xa3   : > { %583 = vst [vmem:[%s2180_s21 + $0x3a8] sm:$0xff] %v582_v53 }
  0xa4   : > { %585 = vst [vmem:[%s2180_s21 + $0x3b0] sm:$0xff] %v584_v54 }
  0xa5   : > { %587 = vst [vmem:[%s2180_s21 + $0x3b8] sm:$0xff] %v586_v55 }
  0xa6   : > { %589 = vst [vmem:[%s2180_s21 + $0x3c0] sm:$0xff] %v588_v56 }
  0xa7   : > { %591 = vst [vmem:[%s2180_s21 + $0x3c8] sm:$0xff] %v590_v57 }
  0xa8   : > { %593 = vst [vmem:[%s2180_s21 + $0x3d0] sm:$0xff] %v592_v58 }
  0xa9   : > { %595 = vst [vmem:[%s2180_s21 + $0x3d8] sm:$0xff] %v594_v59 }
  0xaa   : > { %597 = vst [vmem:[%s2180_s21 + $0x3e0] sm:$0xff] %v596_v60 }
  0xab   : > { %599 = vst [vmem:[%s2180_s21 + $0x3e8] sm:$0xff] %v598_v61 }
  0xac   : > { %601 = vst [vmem:[%s2180_s21 + $0x3f0] sm:$0xff] %v600_v62 }
  0xad   : > { %603 = vst [vmem:[%s2180_s21 + $0x3f8] sm:$0xff] %v602_v63 }
  0xae PF: > { %p1780_p0 = scmp.ge.s32.totalorder %s2026_s14, 1  ;;  %p626_p1 = scmp.lt.s32.totalorder %s2026_s14, 5 }
  0xb0   : > { %p627_p2 = pnand %p1780_p0, %p626_p1 }
  0xb1   : > { %s633_s17 = sand.u32 (!%p627_p2), 1, %s2002_s30   ;;  %s2914_s18 = sand.u32 (!%p627_p2), 1, %s1994_s28  }
  0xb2   : > { %630 = sbr.rel (%p627_p2) target bundleno = 900 (0x384), region = 71  ;;  %s1781_s22 = sshll.u32 (!%p627_p2), %s633_s17, 10 }
  0xb3   : > { %s1782_s15 = sshll.u32 (!%p627_p2), %s2914_s18, 5  ;;  %p699_p3 = scmp.lt.s32.totalorder (!%p627_p2), %s2014_s11, 1 }
  0xb4   : > { %s1788_s19 = sshll.u32 (!%p627_p2), %s2010_s10, 2  ;;  %s1789_s24 = sshll.u32 (!%p627_p2), %s2010_s10, 6 }
  0xb5   : > { %p723_p4 = scmp.lt.s32.totalorder (!%p627_p2), %s1788_s19, 7  ;;  %s2940_s0 = sld [smem:[#allocation19_spill]] (!%p627_p2) }
  0xb6   : > { %p728_p5 = scmp.lt.s32.totalorder (!%p627_p2), %s1789_s24, 127  ;;  %s2475_s17 = scalar_lea.vmem (!%p627_p2), [#allocation4], %s1781_s22 }
  0xb7   : > { %s700_s16 = scalar_select %p699_p3, %s2014_s11, 1 }
  0xb8   : > { %s2963_s19 = smov (!%p723_p4, %s1788_s19), 7  ;;  %s2965_s24 = smov (!%p728_p5, %s1789_s24), 127 }
  0xb9   : > { %s1800_s21 = sshll.u32 %s700_s16, 5  ;;  %s2447_s4 = sshll.u32 %s700_s16, 1 }
  0xba   : > { %s712_s23 = scalar_lea.vmem %s2902_s1, %s2447_s4  ;;  %s716_s29 = scalar_lea.vmem %s2903_s2, %s2447_s4 }
  0xbb   : > { %s2452_s30 = scalar_lea.vmem %s2940_s0, %s1800_s21  ;;  %s720_s16 = scalar_lea.vmem %s2904_s3, %s2447_s4 }
  0xbc   : > { %s725_s12 = scalar_lea.vmem %s2906_s5, %s2963_s19  ;;  %s1801_s13 = sshll.u32 %s2965_s24, 4 }
  0xbd   : > { %s2473_s18 = scalar_lea.vmem %s2907_s6, %s1801_s13  ;;  %s2477_s9 = scalar_lea.vmem [#allocation5], %s1782_s15 }
  0xbe   : > { %p1792_p6 = scmp.ne.s32.totalorder %s2010_s10, 0 }
  0xc0   : > { %738 = sbr.rel (%p1792_p6) target bundleno = 478 (0x1de), region = 79 }
  0xc5   : > { %v739_v0 = vld [vmem:[%s2452_s30] sm:$0xff]  ;;  %v740_v1 = vld [vmem:[%s2452_s30 + $0x8] sm:$0xff]  ;;  %v741_v3 = vld [vmem:[%s2452_s30 + $0x10] sm:$0xff]  ;;  %v2028_v6 = vmov 256.0   ;;  %v2029_v30 = vmov 0.0  }
  0xc6   : > { %v743_v2 = vadd.f32 %v740_v1, %v739_v0  ;;  %v742_v4 = vld [vmem:[%s2452_s30 + $0x18] sm:$0xff]  ;;  %1894 = vrcp.f32 %v2028_v6  ;;  %825 = vst [vmem:[#allocation3] sm:$0xff] %v2029_v30  ;;  %v800_v36 = vld [vmem:[%s712_s23] sm:$0x3] }
  0xc7   : > { %v746_v5 = vadd.f32 %v742_v4, %v741_v3  ;;  %826 = vst [vmem:[#allocation3 + $0x18] sm:$0xff] %v2029_v30  ;;  %v801_v39 = vadd.f32 1.0, %v800_v36  ;;  %v811_v42 = vld [vmem:[%s716_s29] sm:$0x3] }
  0xc8   : > { %744 = vadd.xlane.f32.xlu0 %v743_v2  ;;  %827 = vst [vmem:[#allocation3 + $0x8] sm:$0xff] %v2029_v30  ;;  %v813_v49 = vperm.slane %v811_v42, 0  ;;  %v814_v50 = vperm.slane %v811_v42, 1 }
  0xc9   : > { %828 = vst [vmem:[#allocation3 + $0x10] sm:$0xff] %v2029_v30  ;;  %v803_v45 = vperm.slane %v801_v39, 0  ;;  %v804_v46 = vperm.slane %v801_v39, 1 }
  0xcc   : > { %v1895_v7 = vpop.eup %1894 }
  0xcd   : > { %v750_v8 = vmul.f32 256.0, %v1895_v7  ;;  %vm754_vm0 = vweird.f32 %v1895_v7 }
  0xcf   : > { %v751_v9 = vsub.f32 1.0, %v750_v8 }
  0xd0   : > { %747 = vadd.xlane.f32.xlu0 %v746_v5 }
  0xd1   : > { %v752_v10 = vmul.f32 %v1895_v7, %v751_v9 }
  0xd3   : > { %v753_v11 = vadd.f32 %v1895_v7, %v752_v10 }
  0xd5   : > { %v755_v12 = vsel %vm754_vm0, %v1895_v7, %v753_v11 }
 0x13b   : > { %v745_v13 = vpop.xlane.xlu0 %744 }
 0x13c   : > { %v756_v14 = vmul.f32 %v755_v12, %v745_v13 }
 0x13e   : > { %v758_v15 = vsub.f32 %v739_v0, %v756_v14  ;;  %v759_v16 = vsub.f32 %v740_v1, %v756_v14 }
 0x140   : > { %v762_v17 = vmul.f32 %v758_v15, %v758_v15  ;;  %v763_v18 = vmul.f32 %v759_v16, %v759_v16 }
 0x142   : > { %v766_v19 = vadd.f32 %v763_v18, %v762_v17 }
 0x143   : > { %v748_v20 = vpop.xlane.xlu0 %747 }
 0x144   : > { %v757_v21 = vmul.f32 %v755_v12, %v748_v20  ;;  %767 = vadd.xlane.f32.xlu1 %v766_v19 }
 0x146   : > { %v760_v22 = vsub.f32 %v741_v3, %v757_v21  ;;  %v761_v23 = vsub.f32 %v742_v4, %v757_v21 }
 0x148   : > { %v764_v24 = vmul.f32 %v760_v22, %v760_v22  ;;  %v765_v25 = vmul.f32 %v761_v23, %v761_v23 }
 0x14a   : > { %v769_v26 = vadd.f32 %v765_v25, %v764_v24 }
 0x14c   : > { %770 = vadd.xlane.f32.xlu1 %v769_v26 }
 0x1b7   : > { %v768_v27 = vpop.xlane.xlu1 %767 }
 0x1b8   : > { %v772_v28 = vmul.f32 %v768_v27, %v755_v12 }
 0x1ba   : > { %v774_v29 = vadd.f32 1e-06, %v772_v28 }
 0x1bc   : > { %1896 = vrsqrt.f32 %v774_v29  ;;  %vm782_vm2 = vweird.f32 %v774_v29 }
 0x1bf   : > { %v771_v31 = vpop.xlane.xlu1 %770 }
 0x1c0   : > { %v773_v32 = vmul.f32 %v771_v31, %v755_v12 }
 0x1c2   : > { %v1897_v33 = vpop.eup %1896  ;;  %v775_v34 = vadd.f32 1e-06, %v773_v32 }
 0x1c3   : > { %v777_v35 = vmul.f32 %v1897_v33, %v774_v29  ;;  %vm783_vm1 = vweird.f32 %v1897_v33 }
 0x1c4   : > { %1898 = vrsqrt.f32 %v775_v34  ;;  %vm784_vm3 = vmor %vm782_vm2, %vm783_vm1  ;;  %vm792_vm5 = vweird.f32 %v775_v34 }
 0x1c5   : > { %v778_v37 = vmul.f32 %v1897_v33, %v777_v35 }
 0x1c7   : > { %v779_v38 = vmul.f32 0.5, %v778_v37 }
 0x1c9   : > { %v780_v40 = vsub.f32 1.5, %v779_v38 }
 0x1ca   : > { %v1899_v41 = vpop.eup %1898 }
 0x1cb   : > { %v781_v43 = vmul.f32 %v1897_v33, %v780_v40  ;;  %v787_v44 = vmul.f32 %v1899_v41, %v775_v34  ;;  %vm793_vm4 = vweird.f32 %v1899_v41 }
 0x1cc   : > { %vm794_vm6 = vmor %vm792_vm5, %vm793_vm4 }
 0x1cd   : > { %v785_v47 = vsel %vm784_vm3, %v1897_v33, %v781_v43  ;;  %v788_v48 = vmul.f32 %v1899_v41, %v787_v44 }
 0x1ce   : > { %v796_v51 = vmul.f32 %v785_v47, %v758_v15  ;;  %v797_v52 = vmul.f32 %v785_v47, %v759_v16 }
 0x1cf   : > { %v789_v53 = vmul.f32 0.5, %v788_v48 }
 0x1d0   : > { %v807_v54 = vmul.f32 %v803_v45, %v796_v51  ;;  %v808_v55 = vmul.f32 %v804_v46, %v797_v52 }
 0x1d1   : > { %v790_v56 = vsub.f32 1.5, %v789_v53 }
 0x1d2   : > { %v817_v57 = vadd.f32 %v813_v49, %v807_v54  ;;  %v818_v58 = vadd.f32 %v814_v50, %v808_v55 }
 0x1d3   : > { %v791_v59 = vmul.f32 %v1899_v41, %v790_v56 }
 0x1d4   : > { %821 = vst [vmem:[#allocation2 + $0x10] sm:$0xff] %v817_v57 }
 0x1d5   : > { %822 = vst [vmem:[#allocation2] sm:$0xff] %v818_v58  ;;  %v795_v60 = vsel %vm794_vm6, %v1899_v41, %v791_v59 }
 0x1d6   : > { %v798_v61 = vmul.f32 %v795_v60, %v760_v22  ;;  %v799_v62 = vmul.f32 %v795_v60, %v761_v23 }
 0x1d8   : > { %v809_v63 = vmul.f32 %v803_v45, %v798_v61  ;;  %v810_v0 = vmul.f32 %v804_v46, %v799_v62 }
 0x1da   : > { %v819_v1 = vadd.f32 %v813_v49, %v809_v63  ;;  %v820_v2 = vadd.f32 %v814_v50, %v810_v0 }
 0x1dc   : > { %823 = vst [vmem:[#allocation2 + $0x18] sm:$0xff] %v819_v1 }
 0x1dd   : > { %824 = vst [vmem:[#allocation2 + $0x8] sm:$0xff] %v820_v2 }
 0x1de PF: > { %v893_v3 = vld [vmem:[%s2475_s17 + $0x1e0] sm:$0xff]  ;;  %v894_v4 = vld [vmem:[%s2475_s17 + $0x1e8] sm:$0xff]  ;;  %v2556_v1 = vld [vmem:[#allocation2 + $0x10] sm:$0xff]  ;;  %p1793_p7 = scmp.ne.s32.totalorder %s2010_s10, 1 }
 0x1df   : > { %v889_v5 = vld [vmem:[%s2475_s17 + $0x1c0] sm:$0xff]  ;;  %971 = vmatpush.msra.mxu0 %v893_v3  ;;  %1017 = vmatpush.msra.mxu2 %v894_v4  ;;  %v890_v7 = vld [vmem:[%s2475_s17 + $0x1c8] sm:$0xff]  ;;  %v895_v2 = vld [vmem:[%s2475_s17 + $0x1f0] sm:$0xff] }
 0x1e0   : > { %v957_v6 = vld [vmem:[%s2475_s17 + $0x3e0] sm:$0xff]  ;;  %v958_v8 = vld [vmem:[%s2475_s17 + $0x3e8] sm:$0xff]  ;;  %v896_v3 = vld [vmem:[%s2475_s17 + $0x1f8] sm:$0xff] }
 0x1e1   : > { %994 = vmatpush.msra.mxu1 %v957_v6  ;;  %1040 = vmatpush.msra.mxu3 %v958_v8  ;;  %v885_v9 = vld [vmem:[%s2475_s17 + $0x1a0] sm:$0xff]  ;;  %v886_v11 = vld [vmem:[%s2475_s17 + $0x1a8] sm:$0xff]  ;;  %v959_v8 = vld [vmem:[%s2475_s17 + $0x3f0] sm:$0xff] }
 0x1e2   : > { %v953_v10 = vld [vmem:[%s2475_s17 + $0x3c0] sm:$0xff]  ;;  %972 = vmatpush.msra.mxu0 %v889_v5  ;;  %1018 = vmatpush.msra.mxu2 %v890_v7  ;;  %v954_v12 = vld [vmem:[%s2475_s17 + $0x3c8] sm:$0xff]  ;;  %v891_v7 = vld [vmem:[%s2475_s17 + $0x1d0] sm:$0xff] }
 0x1e3   : > { %v949_v13 = vld [vmem:[%s2475_s17 + $0x3a0] sm:$0xff]  ;;  %995 = vmatpush.msra.mxu1 %v953_v10  ;;  %1041 = vmatpush.msra.mxu3 %v954_v12  ;;  %v882_v15 = vld [vmem:[%s2475_s17 + $0x188] sm:$0xff]  ;;  %v960_v10 = vld [vmem:[%s2475_s17 + $0x3f8] sm:$0xff] }
 0x1e4   : > { %v881_v14 = vld [vmem:[%s2475_s17 + $0x180] sm:$0xff]  ;;  %v950_v16 = vld [vmem:[%s2475_s17 + $0x3a8] sm:$0xff]  ;;  %973 = vmatpush.msra.mxu0 %v885_v9  ;;  %1019 = vmatpush.msra.mxu2 %v886_v11  ;;  %v892_v9 = vld [vmem:[%s2475_s17 + $0x1d8] sm:$0xff] }
 0x1e5   : > { %v945_v17 = vld [vmem:[%s2475_s17 + $0x380] sm:$0xff]  ;;  %v946_v18 = vld [vmem:[%s2475_s17 + $0x388] sm:$0xff]  ;;  %996 = vmatpush.msra.mxu1 %v949_v13  ;;  %1042 = vmatpush.msra.mxu3 %v950_v16  ;;  %v887_v11 = vld [vmem:[%s2475_s17 + $0x1b0] sm:$0xff] }
 0x1e6   : > { %v877_v19 = vld [vmem:[%s2475_s17 + $0x160] sm:$0xff]  ;;  %v878_v20 = vld [vmem:[%s2475_s17 + $0x168] sm:$0xff]  ;;  %974 = vmatpush.msra.mxu0 %v881_v14  ;;  %1020 = vmatpush.msra.mxu2 %v882_v15  ;;  %v955_v12 = vld [vmem:[%s2475_s17 + $0x3d0] sm:$0xff] }
 0x1e7   : > { %v941_v21 = vld [vmem:[%s2475_s17 + $0x360] sm:$0xff]  ;;  %v942_v22 = vld [vmem:[%s2475_s17 + $0x368] sm:$0xff]  ;;  %997 = vmatpush.msra.mxu1 %v945_v17  ;;  %1043 = vmatpush.msra.mxu3 %v946_v18  ;;  %v888_v13 = vld [vmem:[%s2475_s17 + $0x1b8] sm:$0xff] }
 0x1e8   : > { %v873_v23 = vld [vmem:[%s2475_s17 + $0x140] sm:$0xff]  ;;  %v874_v24 = vld [vmem:[%s2475_s17 + $0x148] sm:$0xff]  ;;  %975 = vmatpush.msra.mxu0 %v877_v19  ;;  %1021 = vmatpush.msra.mxu2 %v878_v20  ;;  %v956_v14 = vld [vmem:[%s2475_s17 + $0x3d8] sm:$0xff] }
 0x1e9   : > { %v937_v25 = vld [vmem:[%s2475_s17 + $0x340] sm:$0xff]  ;;  %v938_v26 = vld [vmem:[%s2475_s17 + $0x348] sm:$0xff]  ;;  %998 = vmatpush.msra.mxu1 %v941_v21  ;;  %1044 = vmatpush.msra.mxu3 %v942_v22  ;;  %v883_v15 = vld [vmem:[%s2475_s17 + $0x190] sm:$0xff] }
 0x1ea   : > { %v869_v27 = vld [vmem:[%s2475_s17 + $0x120] sm:$0xff]  ;;  %v870_v28 = vld [vmem:[%s2475_s17 + $0x128] sm:$0xff]  ;;  %976 = vmatpush.msra.mxu0 %v873_v23  ;;  %1022 = vmatpush.msra.mxu2 %v874_v24  ;;  %v951_v16 = vld [vmem:[%s2475_s17 + $0x3b0] sm:$0xff] }
 0x1eb   : > { %v933_v29 = vld [vmem:[%s2475_s17 + $0x320] sm:$0xff]  ;;  %v934_v30 = vld [vmem:[%s2475_s17 + $0x328] sm:$0xff]  ;;  %999 = vmatpush.msra.mxu1 %v937_v25  ;;  %1045 = vmatpush.msra.mxu3 %v938_v26  ;;  %v884_v17 = vld [vmem:[%s2475_s17 + $0x198] sm:$0xff] }
 0x1ec   : > { %v865_v31 = vld [vmem:[%s2475_s17 + $0x100] sm:$0xff]  ;;  %v866_v32 = vld [vmem:[%s2475_s17 + $0x108] sm:$0xff]  ;;  %977 = vmatpush.msra.mxu0 %v869_v27  ;;  %1023 = vmatpush.msra.mxu2 %v870_v28  ;;  %v952_v18 = vld [vmem:[%s2475_s17 + $0x3b8] sm:$0xff] }
 0x1ed   : > { %v929_v33 = vld [vmem:[%s2475_s17 + $0x300] sm:$0xff]  ;;  %v930_v34 = vld [vmem:[%s2475_s17 + $0x308] sm:$0xff]  ;;  %1000 = vmatpush.msra.mxu1 %v933_v29  ;;  %1046 = vmatpush.msra.mxu3 %v934_v30  ;;  %v2580_v19 = vld [vmem:[#allocation2 + $0x18] sm:$0xff] }
 0x1ee   : > { %v861_v35 = vld [vmem:[%s2475_s17 + $0xe0] sm:$0xff]  ;;  %v862_v36 = vld [vmem:[%s2475_s17 + $0xe8] sm:$0xff]  ;;  %978 = vmatpush.msra.mxu0 %v865_v31  ;;  %1024 = vmatpush.msra.mxu2 %v866_v32  ;;  %v879_v20 = vld [vmem:[%s2475_s17 + $0x170] sm:$0xff] }
 0x1ef   : > { %v925_v37 = vld [vmem:[%s2475_s17 + $0x2e0] sm:$0xff]  ;;  %v926_v38 = vld [vmem:[%s2475_s17 + $0x2e8] sm:$0xff]  ;;  %1001 = vmatpush.msra.mxu1 %v929_v33  ;;  %1047 = vmatpush.msra.mxu3 %v930_v34  ;;  %v947_v21 = vld [vmem:[%s2475_s17 + $0x390] sm:$0xff] }
 0x1f0   : > { %v857_v39 = vld [vmem:[%s2475_s17 + $0xc0] sm:$0xff]  ;;  %v858_v40 = vld [vmem:[%s2475_s17 + $0xc8] sm:$0xff]  ;;  %979 = vmatpush.msra.mxu0 %v861_v35  ;;  %1025 = vmatpush.msra.mxu2 %v862_v36  ;;  %v880_v22 = vld [vmem:[%s2475_s17 + $0x178] sm:$0xff] }
 0x1f1   : > { %v921_v41 = vld [vmem:[%s2475_s17 + $0x2c0] sm:$0xff]  ;;  %v922_v42 = vld [vmem:[%s2475_s17 + $0x2c8] sm:$0xff]  ;;  %1002 = vmatpush.msra.mxu1 %v925_v37  ;;  %1048 = vmatpush.msra.mxu3 %v926_v38  ;;  %v948_v23 = vld [vmem:[%s2475_s17 + $0x398] sm:$0xff] }
 0x1f2   : > { %v853_v43 = vld [vmem:[%s2475_s17 + $0xa0] sm:$0xff]  ;;  %v854_v44 = vld [vmem:[%s2475_s17 + $0xa8] sm:$0xff]  ;;  %980 = vmatpush.msra.mxu0 %v857_v39  ;;  %1026 = vmatpush.msra.mxu2 %v858_v40  ;;  %v875_v25 = vld [vmem:[%s2475_s17 + $0x150] sm:$0xff] }
 0x1f3   : > { %v917_v45 = vld [vmem:[%s2475_s17 + $0x2a0] sm:$0xff]  ;;  %v918_v46 = vld [vmem:[%s2475_s17 + $0x2a8] sm:$0xff]  ;;  %1003 = vmatpush.msra.mxu1 %v921_v41  ;;  %1049 = vmatpush.msra.mxu3 %v922_v42  ;;  %v943_v26 = vld [vmem:[%s2475_s17 + $0x370] sm:$0xff] }
 0x1f4   : > { %v849_v47 = vld [vmem:[%s2475_s17 + $0x80] sm:$0xff]  ;;  %v850_v48 = vld [vmem:[%s2475_s17 + $0x88] sm:$0xff]  ;;  %981 = vmatpush.msra.mxu0 %v853_v43  ;;  %1027 = vmatpush.msra.mxu2 %v854_v44  ;;  %v876_v27 = vld [vmem:[%s2475_s17 + $0x158] sm:$0xff] }
 0x1f5   : > { %v913_v49 = vld [vmem:[%s2475_s17 + $0x280] sm:$0xff]  ;;  %v914_v50 = vld [vmem:[%s2475_s17 + $0x288] sm:$0xff]  ;;  %1004 = vmatpush.msra.mxu1 %v917_v45  ;;  %1050 = vmatpush.msra.mxu3 %v918_v46  ;;  %v944_v28 = vld [vmem:[%s2475_s17 + $0x378] sm:$0xff] }
 0x1f6   : > { %v845_v51 = vld [vmem:[%s2475_s17 + $0x60] sm:$0xff]  ;;  %v846_v52 = vld [vmem:[%s2475_s17 + $0x68] sm:$0xff]  ;;  %982 = vmatpush.msra.mxu0 %v849_v47  ;;  %1028 = vmatpush.msra.mxu2 %v850_v48  ;;  %v871_v29 = vld [vmem:[%s2475_s17 + $0x130] sm:$0xff] }
 0x1f7   : > { %v909_v53 = vld [vmem:[%s2475_s17 + $0x260] sm:$0xff]  ;;  %v910_v54 = vld [vmem:[%s2475_s17 + $0x268] sm:$0xff]  ;;  %1005 = vmatpush.msra.mxu1 %v913_v49  ;;  %1051 = vmatpush.msra.mxu3 %v914_v50  ;;  %v939_v30 = vld [vmem:[%s2475_s17 + $0x350] sm:$0xff] }
 0x1f8   : > { %v841_v55 = vld [vmem:[%s2475_s17 + $0x40] sm:$0xff]  ;;  %v842_v56 = vld [vmem:[%s2475_s17 + $0x48] sm:$0xff]  ;;  %983 = vmatpush.msra.mxu0 %v845_v51  ;;  %1029 = vmatpush.msra.mxu2 %v846_v52  ;;  %v872_v31 = vld [vmem:[%s2475_s17 + $0x138] sm:$0xff] }
 0x1f9   : > { %v905_v57 = vld [vmem:[%s2475_s17 + $0x240] sm:$0xff]  ;;  %v906_v58 = vld [vmem:[%s2475_s17 + $0x248] sm:$0xff]  ;;  %1006 = vmatpush.msra.mxu1 %v909_v53  ;;  %1052 = vmatpush.msra.mxu3 %v910_v54  ;;  %v940_v32 = vld [vmem:[%s2475_s17 + $0x358] sm:$0xff] }
 0x1fa   : > { %v837_v59 = vld [vmem:[%s2475_s17 + $0x20] sm:$0xff]  ;;  %v838_v60 = vld [vmem:[%s2475_s17 + $0x28] sm:$0xff]  ;;  %984 = vmatpush.msra.mxu0 %v841_v55  ;;  %1030 = vmatpush.msra.mxu2 %v842_v56  ;;  %v867_v33 = vld [vmem:[%s2475_s17 + $0x110] sm:$0xff] }
 0x1fb   : > { %v901_v61 = vld [vmem:[%s2475_s17 + $0x220] sm:$0xff]  ;;  %v902_v62 = vld [vmem:[%s2475_s17 + $0x228] sm:$0xff]  ;;  %1007 = vmatpush.msra.mxu1 %v905_v57  ;;  %1053 = vmatpush.msra.mxu3 %v906_v58  ;;  %v935_v34 = vld [vmem:[%s2475_s17 + $0x330] sm:$0xff] }
 0x1fc   : > { %v833_v63 = vld [vmem:[%s2475_s17] sm:$0xff]  ;;  %v834_v0 = vld [vmem:[%s2475_s17 + $0x8] sm:$0xff]  ;;  %985 = vmatpush.msra.mxu0 %v837_v59  ;;  %1031 = vmatpush.msra.mxu2 %v838_v60  ;;  %v868_v35 = vld [vmem:[%s2475_s17 + $0x118] sm:$0xff] }
 0x1fd   : > { %1008 = vmatpush.msra.mxu1 %v901_v61  ;;  %1054 = vmatpush.msra.mxu3 %v902_v62  ;;  %v897_v4 = vld [vmem:[%s2475_s17 + $0x200] sm:$0xff]  ;;  %v898_v5 = vld [vmem:[%s2475_s17 + $0x208] sm:$0xff]  ;;  %v936_v36 = vld [vmem:[%s2475_s17 + $0x338] sm:$0xff] }
 0x1fe   : > { %986 = vmatpush.msra.mxu0 %v833_v63  ;;  %1032 = vmatpush.msra.mxu2 %v834_v0  ;;  %v2564_v6 = vld [vmem:[#allocation2] sm:$0xff]  ;;  %v2588_v24 = vld [vmem:[#allocation2 + $0x8] sm:$0xff]  ;;  %v863_v37 = vld [vmem:[%s2475_s17 + $0xf0] sm:$0xff] }
 0x1ff   : > { %987 = vmatmul.f32.vlgmr.msra.gmra.mxu0 %v2556_v1  ;;  %1033 = vmatmul.f32.vlgmr.msra.gmra.mxu2 %v2556_v1  ;;  %v931_v38 = vld [vmem:[%s2475_s17 + $0x310] sm:$0xff]  ;;  %v864_v39 = vld [vmem:[%s2475_s17 + $0xf8] sm:$0xff] }
 0x200   : > { %1063 = vmatpush.msrb.mxu0 %v895_v2  ;;  %1109 = vmatpush.msrb.mxu2 %v896_v3  ;;  %v932_v40 = vld [vmem:[%s2475_s17 + $0x318] sm:$0xff]  ;;  %v859_v41 = vld [vmem:[%s2475_s17 + $0xd0] sm:$0xff] }
 0x201   : > { %1009 = vmatpush.msra.mxu1 %v897_v4  ;;  %1055 = vmatpush.msra.mxu3 %v898_v5  ;;  %v927_v42 = vld [vmem:[%s2475_s17 + $0x2f0] sm:$0xff]  ;;  %v860_v43 = vld [vmem:[%s2475_s17 + $0xd8] sm:$0xff] }
 0x202   : > { %1010 = vmatmul.f32.vlgmr.msra.gmra.mxu1 %v2564_v6  ;;  %1056 = vmatmul.f32.vlgmr.msra.gmra.mxu3 %v2564_v6  ;;  %v928_v44 = vld [vmem:[%s2475_s17 + $0x2f8] sm:$0xff]  ;;  %v855_v45 = vld [vmem:[%s2475_s17 + $0xb0] sm:$0xff] }
 0x203   : > { %1064 = vmatpush.msrb.mxu0 %v891_v7  ;;  %1086 = vmatpush.msrb.mxu1 %v959_v8  ;;  %v923_v46 = vld [vmem:[%s2475_s17 + $0x2d0] sm:$0xff]  ;;  %v856_v47 = vld [vmem:[%s2475_s17 + $0xb8] sm:$0xff] }
 0x204   : > { %1110 = vmatpush.msrb.mxu2 %v892_v9  ;;  %1132 = vmatpush.msrb.mxu3 %v960_v10  ;;  %v924_v48 = vld [vmem:[%s2475_s17 + $0x2d8] sm:$0xff]  ;;  %v851_v49 = vld [vmem:[%s2475_s17 + $0x90] sm:$0xff] }
 0x205   : > { %1065 = vmatpush.msrb.mxu0 %v887_v11  ;;  %1087 = vmatpush.msrb.mxu1 %v955_v12  ;;  %v919_v50 = vld [vmem:[%s2475_s17 + $0x2b0] sm:$0xff]  ;;  %v852_v51 = vld [vmem:[%s2475_s17 + $0x98] sm:$0xff]  ;;  %v1259_v11 = vld [vmem:[%s2473_s18 + $0xe0] sm:$0xff] }
 0x206   : > { %1111 = vmatpush.msrb.mxu2 %v888_v13  ;;  %1133 = vmatpush.msrb.mxu3 %v956_v14  ;;  %v920_v52 = vld [vmem:[%s2475_s17 + $0x2b8] sm:$0xff]  ;;  %v847_v53 = vld [vmem:[%s2475_s17 + $0x70] sm:$0xff]  ;;  %v1291_v12 = vld [vmem:[%s2473_s18 + $0x1e0] sm:$0xff] }
 0x207   : > { %1066 = vmatpush.msrb.mxu0 %v883_v15  ;;  %1088 = vmatpush.msrb.mxu1 %v951_v16  ;;  %v915_v54 = vld [vmem:[%s2475_s17 + $0x290] sm:$0xff]  ;;  %v848_v55 = vld [vmem:[%s2475_s17 + $0x78] sm:$0xff]  ;;  %v1287_v15 = vld [vmem:[%s2473_s18 + $0x1c0] sm:$0xff] }
 0x208   : > { %1112 = vmatpush.msrb.mxu2 %v884_v17  ;;  %1134 = vmatpush.msrb.mxu3 %v952_v18  ;;  %v916_v56 = vld [vmem:[%s2475_s17 + $0x298] sm:$0xff]  ;;  %v843_v57 = vld [vmem:[%s2475_s17 + $0x50] sm:$0xff]  ;;  %v1251_v17 = vld [vmem:[%s2473_s18 + $0xa0] sm:$0xff] }
 0x209   : > { %990 = vmatmul.f32.gmra.mxu0 %v2580_v19  ;;  %1036 = vmatmul.f32.gmra.mxu2 %v2580_v19  ;;  %v911_v58 = vld [vmem:[%s2475_s17 + $0x270] sm:$0xff]  ;;  %v844_v59 = vld [vmem:[%s2475_s17 + $0x58] sm:$0xff]  ;;  %v1283_v18 = vld [vmem:[%s2473_s18 + $0x1a0] sm:$0xff] }
 0x20a   : > { %1067 = vmatpush.msrb.mxu0 %v879_v20  ;;  %1089 = vmatpush.msrb.mxu1 %v947_v21  ;;  %v912_v60 = vld [vmem:[%s2475_s17 + $0x278] sm:$0xff]  ;;  %v839_v61 = vld [vmem:[%s2475_s17 + $0x30] sm:$0xff] }
 0x20b   : > { %1113 = vmatpush.msrb.mxu2 %v880_v22  ;;  %1135 = vmatpush.msrb.mxu3 %v948_v23  ;;  %v907_v62 = vld [vmem:[%s2475_s17 + $0x250] sm:$0xff]  ;;  %v840_v63 = vld [vmem:[%s2475_s17 + $0x38] sm:$0xff]  ;;  %v1243_v23 = vld [vmem:[%s2473_s18 + $0x60] sm:$0xff] }
 0x20c   : > { %1013 = vmatmul.f32.gmra.mxu1 %v2588_v24  ;;  %1059 = vmatmul.f32.gmra.mxu3 %v2588_v24  ;;  %v908_v0 = vld [vmem:[%s2475_s17 + $0x258] sm:$0xff]  ;;  %v835_v2 = vld [vmem:[%s2475_s17 + $0x10] sm:$0xff] }
 0x20d   : > { %1068 = vmatpush.msrb.mxu0 %v875_v25  ;;  %1090 = vmatpush.msrb.mxu1 %v943_v26  ;;  %v903_v3 = vld [vmem:[%s2475_s17 + $0x230] sm:$0xff]  ;;  %v836_v4 = vld [vmem:[%s2475_s17 + $0x18] sm:$0xff]  ;;  %v1279_v25 = vld [vmem:[%s2473_s18 + $0x180] sm:$0xff] }
 0x20e   : > { %1114 = vmatpush.msrb.mxu2 %v876_v27  ;;  %1136 = vmatpush.msrb.mxu3 %v944_v28  ;;  %v904_v5 = vld [vmem:[%s2475_s17 + $0x238] sm:$0xff]  ;;  %v899_v7 = vld [vmem:[%s2475_s17 + $0x210] sm:$0xff]  ;;  %v1239_v26 = vld [vmem:[%s2473_s18 + $0x40] sm:$0xff] }
 0x20f   : > { %1069 = vmatpush.msrb.mxu0 %v871_v29  ;;  %1091 = vmatpush.msrb.mxu1 %v939_v30  ;;  %v900_v8 = vld [vmem:[%s2475_s17 + $0x218] sm:$0xff]  ;;  %v1261_v9 = vld [vmem:[%s2473_s18 + $0xf0] sm:$0xff]  ;;  %v1275_v29 = vld [vmem:[%s2473_s18 + $0x160] sm:$0xff] }
 0x210   : > { %1115 = vmatpush.msrb.mxu2 %v872_v31  ;;  %1137 = vmatpush.msrb.mxu3 %v940_v32  ;;  %v1293_v10 = vld [vmem:[%s2473_s18 + $0x1f0] sm:$0xff]  ;;  %v1235_v30 = vld [vmem:[%s2473_s18 + $0x20] sm:$0xff] }
 0x211   : > { %1070 = vmatpush.msrb.mxu0 %v867_v33  ;;  %1092 = vmatpush.msrb.mxu1 %v935_v34  ;;  %v1257_v13 = vld [vmem:[%s2473_s18 + $0xd0] sm:$0xff]  ;;  %v1271_v33 = vld [vmem:[%s2473_s18 + $0x140] sm:$0xff] }
 0x212   : > { %1116 = vmatpush.msrb.mxu2 %v868_v35  ;;  %1138 = vmatpush.msrb.mxu3 %v936_v36  ;;  %v1289_v14 = vld [vmem:[%s2473_s18 + $0x1d0] sm:$0xff]  ;;  %v1231_v34 = vld [vmem:[%s2473_s18] sm:$0xff] }
 0x213   : > { %1071 = vmatpush.msrb.mxu0 %v863_v37  ;;  %1093 = vmatpush.msrb.mxu1 %v931_v38  ;;  %v1285_v16 = vld [vmem:[%s2473_s18 + $0x1b0] sm:$0xff]  ;;  %v1262_v37 = vld [vmem:[%s2473_s18 + $0xf8] sm:$0xff]  ;;  %v1267_v38 = vld [vmem:[%s2473_s18 + $0x120] sm:$0xff] }
 0x214   : > { %1117 = vmatpush.msrb.mxu2 %v864_v39  ;;  %1139 = vmatpush.msrb.mxu3 %v932_v40  ;;  %v1249_v20 = vld [vmem:[%s2473_s18 + $0x90] sm:$0xff]  ;;  %v1323_v39 = vld [vmem:[%s2473_s18 + $0x2e0] sm:$0xff]  ;;  %v1260_v40 = vld [vmem:[%s2473_s18 + $0xe8] sm:$0xff] }
 0x215   : > { %1072 = vmatpush.msrb.mxu0 %v859_v41  ;;  %1094 = vmatpush.msrb.mxu1 %v927_v42  ;;  %v1281_v21 = vld [vmem:[%s2473_s18 + $0x190] sm:$0xff] }
 0x216   : > { %1118 = vmatpush.msrb.mxu2 %v860_v43  ;;  %1140 = vmatpush.msrb.mxu3 %v928_v44  ;;  %v1245_v22 = vld [vmem:[%s2473_s18 + $0x70] sm:$0xff]  ;;  %v1258_v43 = vld [vmem:[%s2473_s18 + $0xd8] sm:$0xff]  ;;  %v1263_v44 = vld [vmem:[%s2473_s18 + $0x100] sm:$0xff] }
 0x217   : > { %1073 = vmatpush.msrb.mxu0 %v855_v45  ;;  %1095 = vmatpush.msrb.mxu1 %v923_v46  ;;  %v1277_v27 = vld [vmem:[%s2473_s18 + $0x170] sm:$0xff]  ;;  %v1319_v45 = vld [vmem:[%s2473_s18 + $0x2c0] sm:$0xff] }
 0x218   : > { %1119 = vmatpush.msrb.mxu2 %v856_v47  ;;  %1141 = vmatpush.msrb.mxu3 %v924_v48  ;;  %v1237_v28 = vld [vmem:[%s2473_s18 + $0x30] sm:$0xff]  ;;  %v1256_v47 = vld [vmem:[%s2473_s18 + $0xc8] sm:$0xff]  ;;  %v1294_v48 = vld [vmem:[%s2473_s18 + $0x1f8] sm:$0xff] }
 0x219   : > { %1074 = vmatpush.msrb.mxu0 %v851_v49  ;;  %1096 = vmatpush.msrb.mxu1 %v919_v50  ;;  %v1273_v31 = vld [vmem:[%s2473_s18 + $0x150] sm:$0xff]  ;;  %v1355_v50 = vld [vmem:[%s2473_s18 + $0x3e0] sm:$0xff] }
 0x21a   : > { %1120 = vmatpush.msrb.mxu2 %v852_v51  ;;  %1142 = vmatpush.msrb.mxu3 %v920_v52  ;;  %v1233_v32 = vld [vmem:[%s2473_s18 + $0x10] sm:$0xff]  ;;  %v1254_v51 = vld [vmem:[%s2473_s18 + $0xb8] sm:$0xff]  ;;  %v1292_v52 = vld [vmem:[%s2473_s18 + $0x1e8] sm:$0xff] }
 0x21b   : > { %1075 = vmatpush.msrb.mxu0 %v847_v53  ;;  %1097 = vmatpush.msrb.mxu1 %v915_v54  ;;  %v1269_v35 = vld [vmem:[%s2473_s18 + $0x130] sm:$0xff]  ;;  %v1315_v53 = vld [vmem:[%s2473_s18 + $0x2a0] sm:$0xff] }
 0x21c   : > { %1121 = vmatpush.msrb.mxu2 %v848_v55  ;;  %1143 = vmatpush.msrb.mxu3 %v916_v56  ;;  %v1325_v36 = vld [vmem:[%s2473_s18 + $0x2f0] sm:$0xff]  ;;  %v1252_v55 = vld [vmem:[%s2473_s18 + $0xa8] sm:$0xff]  ;;  %v1290_v56 = vld [vmem:[%s2473_s18 + $0x1d8] sm:$0xff] }
 0x21d   : > { %1076 = vmatpush.msrb.mxu0 %v843_v57  ;;  %1098 = vmatpush.msrb.mxu1 %v911_v58  ;;  %v1265_v41 = vld [vmem:[%s2473_s18 + $0x110] sm:$0xff]  ;;  %v1351_v57 = vld [vmem:[%s2473_s18 + $0x3c0] sm:$0xff] }
 0x21e   : > { %1122 = vmatpush.msrb.mxu2 %v844_v59  ;;  %1144 = vmatpush.msrb.mxu3 %v912_v60  ;;  %v1321_v42 = vld [vmem:[%s2473_s18 + $0x2d0] sm:$0xff]  ;;  %v1250_v59 = vld [vmem:[%s2473_s18 + $0x98] sm:$0xff]  ;;  %v2704_v60 = vld [vmem:[%s725_s12] sm:$0xf] }
 0x21f   : > { %1077 = vmatpush.msrb.mxu0 %v839_v61  ;;  %1099 = vmatpush.msrb.mxu1 %v907_v62  ;;  %v1357_v46 = vld [vmem:[%s2473_s18 + $0x3f0] sm:$0xff]  ;;  %v1288_v61 = vld [vmem:[%s2473_s18 + $0x1c8] sm:$0xff] }
 0x220   : > { %1123 = vmatpush.msrb.mxu2 %v840_v63  ;;  %1145 = vmatpush.msrb.mxu3 %v908_v0  ;;  %v1317_v49 = vld [vmem:[%s2473_s18 + $0x2b0] sm:$0xff]  ;;  %v1311_v63 = vld [vmem:[%s2473_s18 + $0x280] sm:$0xff]  ;;  %v1248_v0 = vld [vmem:[%s2473_s18 + $0x88] sm:$0xff] }
 0x221   : > { %1078 = vmatpush.msrb.mxu0 %v835_v2  ;;  %1100 = vmatpush.msrb.mxu1 %v903_v3  ;;  %v1353_v54 = vld [vmem:[%s2473_s18 + $0x3d0] sm:$0xff]  ;;  %v1286_v2 = vld [vmem:[%s2473_s18 + $0x1b8] sm:$0xff]  ;;  %v1347_v3 = vld [vmem:[%s2473_s18 + $0x3a0] sm:$0xff] }
 0x222   : > { %1124 = vmatpush.msrb.mxu2 %v836_v4  ;;  %1146 = vmatpush.msrb.mxu3 %v904_v5  ;;  %v1313_v58 = vld [vmem:[%s2473_s18 + $0x290] sm:$0xff]  ;;  %v963_v4 = vperm.slane %v2704_v60, 0 }
 0x223   : > { %1079 = vmatmul.f32.vlgmr.msrb.gmra.mxu0 %v2556_v1  ;;  %1125 = vmatmul.f32.vlgmr.msrb.gmra.mxu2 %v2556_v1  ;;  %v1255_v1 = vld [vmem:[%s2473_s18 + $0xc0] sm:$0xff]  ;;  %v1349_v62 = vld [vmem:[%s2473_s18 + $0x3b0] sm:$0xff] }
 0x224   : > { %1101 = vmatpush.msrb.mxu1 %v899_v7  ;;  %1147 = vmatpush.msrb.mxu3 %v900_v8  ;;  %v1309_v5 = vld [vmem:[%s2473_s18 + $0x270] sm:$0xff]  ;;  %v1246_v7 = vld [vmem:[%s2473_s18 + $0x78] sm:$0xff]  ;;  %v1284_v8 = vld [vmem:[%s2473_s18 + $0x1a8] sm:$0xff] }
 0x225   : > { %1102 = vmatmul.f32.vlgmr.msrb.gmra.mxu1 %v2564_v6  ;;  %1148 = vmatmul.f32.vlgmr.msrb.gmra.mxu3 %v2564_v6  ;;  %v1253_v6 = vld [vmem:[%s2473_s18 + $0xb0] sm:$0xff] }
 0x226   : > { %1359 = vmatpush.msra.mxu0 %v1261_v9  ;;  %1382 = vmatpush.msra.mxu1 %v1293_v10  ;;  %v1345_v9 = vld [vmem:[%s2473_s18 + $0x390] sm:$0xff]  ;;  %v1307_v10 = vld [vmem:[%s2473_s18 + $0x260] sm:$0xff] }
 0x227   : > { %1405 = vmatpush.msra.mxu2 %v1325_v36  ;;  %1428 = vmatpush.msra.mxu3 %v1357_v46  ;;  %v1272_v46 = vld [vmem:[%s2473_s18 + $0x148] sm:$0xff] }
 0x228   : > { %1360 = vmatpush.msra.mxu0 %v1259_v11  ;;  %1383 = vmatpush.msra.mxu1 %v1291_v12  ;;  %v1244_v11 = vld [vmem:[%s2473_s18 + $0x68] sm:$0xff] }
 0x229   : > { %1406 = vmatpush.msra.mxu2 %v1323_v39  ;;  %1429 = vmatpush.msra.mxu3 %v1355_v50  ;;  %v1274_v39 = vld [vmem:[%s2473_s18 + $0x158] sm:$0xff]  ;;  %v1232_v50 = vld [vmem:[%s2473_s18 + $0x8] sm:$0xff] }
 0x22a   : > { %1361 = vmatpush.msra.mxu0 %v1257_v13  ;;  %1384 = vmatpush.msra.mxu1 %v1289_v14  ;;  %v1282_v13 = vld [vmem:[%s2473_s18 + $0x198] sm:$0xff] }
 0x22b   : > { %1082 = vmatmul.f32.gmra.mxu0 %v2580_v19  ;;  %1128 = vmatmul.f32.gmra.mxu2 %v2580_v19  ;;  %v1247_v19 = vld [vmem:[%s2473_s18 + $0x80] sm:$0xff] }
 0x22c   : > { %1362 = vmatpush.msra.mxu0 %v1255_v1  ;;  %1385 = vmatpush.msra.mxu1 %v1287_v15  ;;  %v964_v15 = vperm.slane %v2704_v60, 1 }
 0x22d   : > { %1105 = vmatmul.f32.gmra.mxu1 %v2588_v24  ;;  %1151 = vmatmul.f32.gmra.mxu3 %v2588_v24  ;;  %v1241_v24 = vld [vmem:[%s2473_s18 + $0x50] sm:$0xff] }
 0x22e   : > { %1363 = vmatpush.msra.mxu0 %v1253_v6  ;;  %1386 = vmatpush.msra.mxu1 %v1285_v16  ;;  %v1305_v6 = vld [vmem:[%s2473_s18 + $0x250] sm:$0xff]  ;;  %v1343_v16 = vld [vmem:[%s2473_s18 + $0x380] sm:$0xff] }
 0x22f   : > { %1407 = vmatpush.msra.mxu2 %v1321_v42  ;;  %1430 = vmatpush.msra.mxu3 %v1353_v54  ;;  %v1335_v42 = vld [vmem:[%s2473_s18 + $0x340] sm:$0xff]  ;;  %v1270_v54 = vld [vmem:[%s2473_s18 + $0x138] sm:$0xff] }
 0x230   : > { %1364 = vmatpush.msra.mxu0 %v1251_v17  ;;  %1387 = vmatpush.msra.mxu1 %v1283_v18  ;;  %v1242_v17 = vld [vmem:[%s2473_s18 + $0x58] sm:$0xff] }
 0x231   : > { %1408 = vmatpush.msra.mxu2 %v1319_v45  ;;  %1431 = vmatpush.msra.mxu3 %v1351_v57  ;;  %v1268_v57 = vld [vmem:[%s2473_s18 + $0x128] sm:$0xff] }
 0x232   : > { %1365 = vmatpush.msra.mxu0 %v1249_v20  ;;  %1388 = vmatpush.msra.mxu1 %v1281_v21  ;;  %v1280_v20 = vld [vmem:[%s2473_s18 + $0x188] sm:$0xff]  ;;  %v1303_v21 = vld [vmem:[%s2473_s18 + $0x240] sm:$0xff] }
 0x233   : > { %1409 = vmatpush.msra.mxu2 %v1317_v49  ;;  %1432 = vmatpush.msra.mxu3 %v1349_v62  ;;  %v1333_v49 = vld [vmem:[%s2473_s18 + $0x330] sm:$0xff]  ;;  %v1324_v62 = vld [vmem:[%s2473_s18 + $0x2e8] sm:$0xff] }
 0x234   : > { %1366 = vmatpush.msra.mxu0 %v1247_v19  ;;  %1389 = vmatpush.msra.mxu1 %v1279_v25  ;;  %v1341_v19 = vld [vmem:[%s2473_s18 + $0x370] sm:$0xff]  ;;  %v1278_v25 = vld [vmem:[%s2473_s18 + $0x178] sm:$0xff] }
 0x235   : > { %1410 = vmatpush.msra.mxu2 %v1315_v53  ;;  %1433 = vmatpush.msra.mxu3 %v1347_v3 }
 0x236   : > { %1367 = vmatpush.msra.mxu0 %v1245_v22  ;;  %1390 = vmatpush.msra.mxu1 %v1277_v27  ;;  %v1240_v22 = vld [vmem:[%s2473_s18 + $0x48] sm:$0xff]  ;;  %v1301_v27 = vld [vmem:[%s2473_s18 + $0x230] sm:$0xff] }
 0x237   : > { %1411 = vmatpush.msra.mxu2 %v1313_v58  ;;  %1434 = vmatpush.msra.mxu3 %v1345_v9  ;;  %v1264_v9 = vld [vmem:[%s2473_s18 + $0x108] sm:$0xff] }
 0x238   : > { %1368 = vmatpush.msra.mxu0 %v1243_v23  ;;  %1391 = vmatpush.msra.mxu1 %v1275_v29  ;;  %v1238_v29 = vld [vmem:[%s2473_s18 + $0x38] sm:$0xff] }
 0x239   : > { %1412 = vmatpush.msra.mxu2 %v1311_v63  ;;  %1435 = vmatpush.msra.mxu3 %v1343_v16 }
 0x23a   : > { %1369 = vmatpush.msra.mxu0 %v1241_v24  ;;  %1392 = vmatpush.msra.mxu1 %v1273_v31  ;;  %v1276_v31 = vld [vmem:[%s2473_s18 + $0x168] sm:$0xff] }
 0x23b   : > { %1413 = vmatpush.msra.mxu2 %v1309_v5  ;;  %1436 = vmatpush.msra.mxu3 %v1341_v19  ;;  %v1322_v5 = vld [vmem:[%s2473_s18 + $0x2d8] sm:$0xff] }
 0x23c   : > { %1370 = vmatpush.msra.mxu0 %v1239_v26  ;;  %1393 = vmatpush.msra.mxu1 %v1271_v33  ;;  %v1299_v33 = vld [vmem:[%s2473_s18 + $0x220] sm:$0xff] }
 0x23d   : > { %1414 = vmatpush.msra.mxu2 %v1307_v10 }
 0x23e   : > { %1371 = vmatpush.msra.mxu0 %v1237_v28  ;;  %1394 = vmatpush.msra.mxu1 %v1269_v35  ;;  %v1339_v28 = vld [vmem:[%s2473_s18 + $0x360] sm:$0xff]  ;;  %v1236_v35 = vld [vmem:[%s2473_s18 + $0x28] sm:$0xff] }
 0x23f   : > { %1415 = vmatpush.msra.mxu2 %v1305_v6  ;;  %1437 = vmatpush.msra.mxu3 %v1339_v28  ;;  %v1356_v6 = vld [vmem:[%s2473_s18 + $0x3e8] sm:$0xff] }
 0x240   : > { %1372 = vmatpush.msra.mxu0 %v1235_v30  ;;  %1395 = vmatpush.msra.mxu1 %v1267_v38  ;;  %v1312_v28 = vld [vmem:[%s2473_s18 + $0x288] sm:$0xff] }
 0x241   : > { %1416 = vmatpush.msra.mxu2 %v1303_v21  ;;  %v1354_v21 = vld [vmem:[%s2473_s18 + $0x3d8] sm:$0xff] }
 0x242   : > { %1373 = vmatpush.msra.mxu0 %v1233_v32  ;;  %1396 = vmatpush.msra.mxu1 %v1265_v41  ;;  %v1297_v41 = vld [vmem:[%s2473_s18 + $0x210] sm:$0xff] }
 0x243   : > { %1417 = vmatpush.msra.mxu2 %v1301_v27 }
 0x244   : > { %1374 = vmatpush.msra.mxu0 %v1231_v34  ;;  %1397 = vmatpush.msra.mxu1 %v1263_v44  ;;  %v1337_v34 = vld [vmem:[%s2473_s18 + $0x350] sm:$0xff] }
 0x245   : > { %1418 = vmatpush.msra.mxu2 %v1299_v33  ;;  %1438 = vmatpush.msra.mxu3 %v1337_v34 }
 0x246   : > { %1451 = vmatpush.msrb.mxu0 %v1262_v37  ;;  %1474 = vmatpush.msrb.mxu1 %v1294_v48  ;;  %v1295_v48 = vld [vmem:[%s2473_s18 + $0x200] sm:$0xff] }
 0x247   : > { %1419 = vmatpush.msra.mxu2 %v1297_v41  ;;  %1439 = vmatpush.msra.mxu3 %v1335_v42  ;;  %v1346_v41 = vld [vmem:[%s2473_s18 + $0x398] sm:$0xff] }
 0x248   : > { %1452 = vmatpush.msrb.mxu0 %v1260_v40  ;;  %1475 = vmatpush.msrb.mxu1 %v1292_v52 }
 0x249   : > { %1420 = vmatpush.msra.mxu2 %v1295_v48  ;;  %1440 = vmatpush.msra.mxu3 %v1333_v49  ;;  %v1304_v48 = vld [vmem:[%s2473_s18 + $0x248] sm:$0xff]  ;;  %v1342_v49 = vld [vmem:[%s2473_s18 + $0x378] sm:$0xff] }
 0x24a   : > { %1453 = vmatpush.msrb.mxu0 %v1258_v43  ;;  %1476 = vmatpush.msrb.mxu1 %v1290_v56  ;;  %v1234_v43 = vld [vmem:[%s2473_s18 + $0x18] sm:$0xff]  ;;  %v1331_v56 = vld [vmem:[%s2473_s18 + $0x320] sm:$0xff] }
 0x24b   : > { %1441 = vmatpush.msra.mxu3 %v1331_v56  ;;  %v966_v56 = vperm.slane %v2704_v60, 3 }
 0x24c   : > { %1454 = vmatpush.msrb.mxu0 %v1256_v47  ;;  %1477 = vmatpush.msrb.mxu1 %v1288_v61 }
 0x24e   : > { %1455 = vmatpush.msrb.mxu0 %v1254_v51  ;;  %1478 = vmatpush.msrb.mxu1 %v1286_v2  ;;  %v1266_v2 = vld [vmem:[%s2473_s18 + $0x118] sm:$0xff] }
 0x250   : > { %1456 = vmatpush.msrb.mxu0 %v1252_v55  ;;  %1479 = vmatpush.msrb.mxu1 %v1284_v8  ;;  %v1326_v55 = vld [vmem:[%s2473_s18 + $0x2f8] sm:$0xff]  ;;  %v1327_v8 = vld [vmem:[%s2473_s18 + $0x300] sm:$0xff] }
 0x251   : > { %1497 = vmatpush.msrb.mxu2 %v1326_v55 }
 0x252   : > { %1457 = vmatpush.msrb.mxu0 %v1250_v59  ;;  %1480 = vmatpush.msrb.mxu1 %v1282_v13  ;;  %v1320_v13 = vld [vmem:[%s2473_s18 + $0x2c8] sm:$0xff] }
 0x253   : > { %1498 = vmatpush.msrb.mxu2 %v1324_v62  ;;  %v1336_v62 = vld [vmem:[%s2473_s18 + $0x348] sm:$0xff] }
 0x254   : > { %1458 = vmatpush.msrb.mxu0 %v1248_v0  ;;  %1481 = vmatpush.msrb.mxu1 %v1280_v20  ;;  %v1329_v0 = vld [vmem:[%s2473_s18 + $0x310] sm:$0xff] }
 0x255   : > { %1442 = vmatpush.msra.mxu3 %v1329_v0  ;;  %1499 = vmatpush.msrb.mxu2 %v1322_v5 }
 0x256   : > { %1459 = vmatpush.msrb.mxu0 %v1246_v7  ;;  %1482 = vmatpush.msrb.mxu1 %v1278_v25 }
 0x257   : > { %1443 = vmatpush.msra.mxu3 %v1327_v8  ;;  %1500 = vmatpush.msrb.mxu2 %v1320_v13  ;;  %v1296_v8 = vld [vmem:[%s2473_s18 + $0x208] sm:$0xff] }
 0x258   : > { %1460 = vmatpush.msrb.mxu0 %v1244_v11  ;;  %1483 = vmatpush.msrb.mxu1 %v1276_v31 }
 0x25a   : > { %1461 = vmatpush.msrb.mxu0 %v1242_v17  ;;  %1484 = vmatpush.msrb.mxu1 %v1274_v39 }
 0x25c   : > { %1462 = vmatpush.msrb.mxu0 %v1240_v22  ;;  %1485 = vmatpush.msrb.mxu1 %v1272_v46  ;;  %v1316_v22 = vld [vmem:[%s2473_s18 + $0x2a8] sm:$0xff] }
 0x25e   : > { %1463 = vmatpush.msrb.mxu0 %v1238_v29  ;;  %1486 = vmatpush.msrb.mxu1 %v1270_v54  ;;  %v1350_v29 = vld [vmem:[%s2473_s18 + $0x3b8] sm:$0xff]  ;;  %v1340_v54 = vld [vmem:[%s2473_s18 + $0x368] sm:$0xff] }
 0x260   : > { %1464 = vmatpush.msrb.mxu0 %v1236_v35  ;;  %1487 = vmatpush.msrb.mxu1 %v1268_v57  ;;  %v1310_v35 = vld [vmem:[%s2473_s18 + $0x278] sm:$0xff] }
 0x262   : > { %1465 = vmatpush.msrb.mxu0 %v1234_v43  ;;  %1488 = vmatpush.msrb.mxu1 %v1266_v2  ;;  %v965_v43 = vperm.slane %v2704_v60, 2  ;;  %v1298_v2 = vld [vmem:[%s2473_s18 + $0x218] sm:$0xff] }
 0x264   : > { %1466 = vmatpush.msrb.mxu0 %v1232_v50  ;;  %1489 = vmatpush.msrb.mxu1 %v1264_v9  ;;  %v1334_v9 = vld [vmem:[%s2473_s18 + $0x338] sm:$0xff] }
 0x27c   : > { %v988_v12 = vpop.f32.mrf.mxu0 }
 0x27d   : > { %v989_v14 = vadd.f32 %v988_v12, %v963_v4 }
 0x27f   : > { %v1011_v1 = vpop.f32.mrf.mxu1 }
 0x280   : > { %v2726_v18 = vadd.f32 %v1011_v1, %v989_v14  ;;  %v1358_v14 = vld [vmem:[%s2473_s18 + $0x3f8] sm:$0xff] }
 0x281   : > { %1520 = vmatpush.msrb.mxu3 %v1358_v14  ;;  %v1332_v14 = vld [vmem:[%s2473_s18 + $0x328] sm:$0xff] }
 0x282   : > { %v1163_v23 = vmul.f32 0.044715, %v2726_v18  ;;  %v1034_v24 = vpop.f32.mrf.mxu2  ;;  %v1155_v1 = vmul.f32 0.5, %v2726_v18 }
 0x283   : > { %v1035_v26 = vadd.f32 %v1034_v24, %v964_v15  ;;  %1521 = vmatpush.msrb.mxu3 %v1356_v6  ;;  %v1352_v24 = vld [vmem:[%s2473_s18 + $0x3c8] sm:$0xff] }
 0x284   : > { %v1171_v30 = vmul.f32 %v1163_v23, %v2726_v18 }
 0x285   : > { %v1057_v32 = vpop.f32.mrf.mxu3  ;;  %1522 = vmatpush.msrb.mxu3 %v1354_v21 }
 0x286   : > { %v1179_v36 = vmul.f32 %v1171_v30, %v2726_v18  ;;  %v991_v37 = vpop.f32.mrf.mxu0  ;;  %v2745_v38 = vadd.f32 %v1057_v32, %v1035_v26  ;;  %v1314_v26 = vld [vmem:[%s2473_s18 + $0x298] sm:$0xff] }
 0x287   : > { %v992_v40 = vadd.f32 %v991_v37, %v963_v4  ;;  %1523 = vmatpush.msrb.mxu3 %v1352_v24 }
 0x288   : > { %v1164_v44 = vmul.f32 0.044715, %v2745_v38  ;;  %v1187_v45 = vadd.f32 %v1179_v36, %v2726_v18  ;;  %v1156_v32 = vmul.f32 0.5, %v2745_v38  ;;  %v1348_v36 = vld [vmem:[%s2473_s18 + $0x3a8] sm:$0xff] }
 0x289   : > { %v1014_v47 = vpop.f32.mrf.mxu1  ;;  %1524 = vmatpush.msrb.mxu3 %v1350_v29 }
 0x28a   : > { %v1172_v51 = vmul.f32 %v1164_v44, %v2745_v38  ;;  %v2760_v52 = vadd.f32 %v1014_v47, %v992_v40  ;;  %v1195_v53 = vmul.f32 0.7978846, %v1187_v45  ;;  %v1308_v40 = vld [vmem:[%s2473_s18 + $0x268] sm:$0xff]  ;;  %v1306_v45 = vld [vmem:[%s2473_s18 + $0x258] sm:$0xff] }
 0x28b   : > { %1525 = vmatpush.msrb.mxu3 %v1348_v36 }
 0x28c   : > { %v1180_v58 = vmul.f32 %v1172_v51, %v2745_v38  ;;  %v1037_v59 = vpop.f32.mrf.mxu2  ;;  %1900 = vtanh.f32 %v1195_v53  ;;  %v1167_v61 = vmul.f32 0.044715, %v2760_v52  ;;  %v1159_v39 = vmul.f32 0.5, %v2760_v52  ;;  %v1302_v53 = vld [vmem:[%s2473_s18 + $0x238] sm:$0xff] }
 0x28d   : > { %v1038_v63 = vadd.f32 %v1037_v59, %v964_v15  ;;  %v1318_v15 = vld [vmem:[%s2473_s18 + $0x2b8] sm:$0xff]  ;;  %1526 = vmatpush.msrb.mxu3 %v1346_v41  ;;  %v1300_v59 = vld [vmem:[%s2473_s18 + $0x228] sm:$0xff] }
 0x28e   : > { %v1188_v3 = vadd.f32 %v1180_v58, %v2745_v38  ;;  %v1175_v4 = vmul.f32 %v1167_v61, %v2760_v52  ;;  %1501 = vmatpush.msrb.mxu2 %v1318_v15  ;;  %v1344_v38 = vld [vmem:[%s2473_s18 + $0x388] sm:$0xff]  ;;  %v1338_v61 = vld [vmem:[%s2473_s18 + $0x358] sm:$0xff] }
 0x28f   : > { %v1060_v7 = vpop.f32.mrf.mxu3  ;;  %1527 = vmatpush.msrb.mxu3 %v1344_v38 }
 0x290   : > { %v2778_v10 = vadd.f32 %v1060_v7, %v1038_v63  ;;  %v1196_v11 = vmul.f32 0.7978846, %v1188_v3  ;;  %v1183_v12 = vmul.f32 %v1175_v4, %v2760_v52  ;;  %1502 = vmatpush.msrb.mxu2 %v1316_v22 }
 0x291   : > { %1528 = vmatpush.msrb.mxu3 %v1342_v49 }
 0x292   : > { %v1901_v16 = vpop.eup %1900  ;;  %1902 = vtanh.f32 %v1196_v11  ;;  %v1191_v17 = vadd.f32 %v1183_v12, %v2760_v52  ;;  %v1168_v20 = vmul.f32 0.044715, %v2778_v10  ;;  %1503 = vmatpush.msrb.mxu2 %v1314_v26  ;;  %v1160_v57 = vmul.f32 0.5, %v2778_v10 }
 0x293   : > { %v1211_v19 = vadd.f32 1.0, %v1901_v16  ;;  %1529 = vmatpush.msrb.mxu3 %v1340_v54 }
 0x294   : > { %v1199_v18 = vmul.f32 0.7978846, %v1191_v17  ;;  %v1176_v23 = vmul.f32 %v1168_v20, %v2778_v10  ;;  %1504 = vmatpush.msrb.mxu2 %v1312_v28  ;;  %v1328_v17 = vld [vmem:[%s2473_s18 + $0x308] sm:$0xff] }
 0x295   : > { %v2792_v25 = vmul.f32 %v1211_v19, %v1155_v1  ;;  %1530 = vmatpush.msrb.mxu3 %v1338_v61  ;;  %v1330_v1 = vld [vmem:[%s2473_s18 + $0x318] sm:$0xff]  ;;  %v1227_v61 = vld [vmem:[#allocation3] sm:$0xff] }
 0x296   : > { %1904 = vtanh.f32 %v1199_v18  ;;  %v1184_v27 = vmul.f32 %v1176_v23, %v2778_v10  ;;  %1505 = vmatpush.msrb.mxu2 %v1310_v35 }
 0x297   : > { %1375 = vmatmul.f32.vlgmr.msra.gmra.mxu0 %v2792_v25  ;;  %1531 = vmatpush.msrb.mxu3 %v1336_v62 }
 0x298   : > { %v1903_v30 = vpop.eup %1902  ;;  %v1192_v31 = vadd.f32 %v1184_v27, %v2778_v10  ;;  %1506 = vmatpush.msrb.mxu2 %v1308_v40 }
 0x299   : > { %v1212_v33 = vadd.f32 1.0, %v1903_v30  ;;  %1532 = vmatpush.msrb.mxu3 %v1334_v9 }
 0x29a   : > { %v1200_v34 = vmul.f32 0.7978846, %v1192_v31  ;;  %1507 = vmatpush.msrb.mxu2 %v1306_v45 }
 0x29b   : > { %v2803_v37 = vmul.f32 %v1212_v33, %v1156_v32  ;;  %1533 = vmatpush.msrb.mxu3 %v1332_v14  ;;  %v1228_v14 = vld [vmem:[#allocation3 + $0x18] sm:$0xff] }
 0x29c   : > { %v1905_v42 = vpop.eup %1904  ;;  %1906 = vtanh.f32 %v1200_v34  ;;  %1508 = vmatpush.msrb.mxu2 %v1304_v48 }
 0x29d   : > { %1398 = vmatmul.f32.vlgmr.msra.gmra.mxu1 %v2803_v37  ;;  %v1215_v44 = vadd.f32 1.0, %v1905_v42  ;;  %1534 = vmatpush.msrb.mxu3 %v1330_v1 }
 0x29e   : > { %1509 = vmatpush.msrb.mxu2 %v1302_v53 }
 0x29f   : > { %v2812_v46 = vmul.f32 %v1215_v44, %v1159_v39  ;;  %1535 = vmatpush.msrb.mxu3 %v1328_v17 }
 0x2a0   : > { %v1080_v47 = vpop.f32.mrf.mxu0  ;;  %1510 = vmatpush.msrb.mxu2 %v1300_v59 }
 0x2a1   : > { %v1081_v50 = vadd.f32 %v1080_v47, %v965_v43  ;;  %1378 = vmatmul.f32.gmra.mxu0 %v2812_v46 }
 0x2a2   : > { %v1907_v51 = vpop.eup %1906  ;;  %v1103_v52 = vpop.f32.mrf.mxu1  ;;  %1511 = vmatpush.msrb.mxu2 %v1298_v2 }
 0x2a3   : > { %v1104_v55 = vadd.f32 %v1103_v52, %v1081_v50  ;;  %v1216_v58 = vadd.f32 1.0, %v1907_v51 }
 0x2a4   : > { %1512 = vmatpush.msrb.mxu2 %v1296_v8 }
 0x2a5   : > { %v1165_v63 = vmul.f32 0.044715, %v1104_v55  ;;  %v1224_v0 = vmul.f32 %v1216_v58, %v1160_v57  ;;  %v1157_v35 = vmul.f32 0.5, %v1104_v55 }
 0x2a6   : > { %v1126_v3 = vpop.f32.mrf.mxu2 }
 0x2a7   : > { %v1173_v4 = vmul.f32 %v1165_v63, %v1104_v55  ;;  %v1127_v5 = vadd.f32 %v1126_v3, %v966_v56  ;;  %1401 = vmatmul.f32.gmra.mxu1 %v1224_v0 }
 0x2a8   : > { %v1083_v60 = vpop.f32.mrf.mxu0  ;;  %v1149_v7 = vpop.f32.mrf.mxu3 }
 0x2a9   : > { %v1181_v10 = vmul.f32 %v1173_v4, %v1104_v55  ;;  %v1084_v11 = vadd.f32 %v1083_v60, %v965_v43  ;;  %v1150_v12 = vadd.f32 %v1149_v7, %v1127_v5  ;;  %1467 = vmatmul.f32.vlgmr.msrb.gmra.mxu0 %v2792_v25  ;;  %v1229_v60 = vld [vmem:[#allocation3 + $0x8] sm:$0xff] }
 0x2aa   : > { %v1106_v13 = vpop.f32.mrf.mxu1 }
 0x2ab   : > { %v1166_v15 = vmul.f32 0.044715, %v1150_v12  ;;  %v1107_v6 = vadd.f32 %v1106_v13, %v1084_v11  ;;  %v1189_v16 = vadd.f32 %v1181_v10, %v1104_v55  ;;  %v1158_v38 = vmul.f32 0.5, %v1150_v12 }
 0x2ad   : > { %v1174_v20 = vmul.f32 %v1166_v15, %v1150_v12  ;;  %v1197_v21 = vmul.f32 0.7978846, %v1189_v16  ;;  %v1169_v19 = vmul.f32 0.044715, %v1107_v6 }
 0x2ae   : > { %v1129_v22 = vpop.f32.mrf.mxu2 }
 0x2af   : > { %v1182_v18 = vmul.f32 %v1174_v20, %v1150_v12  ;;  %v1130_v23 = vadd.f32 %v1129_v22, %v966_v56  ;;  %1490 = vmatmul.f32.vlgmr.msrb.gmra.mxu1 %v2803_v37  ;;  %1908 = vtanh.f32 %v1197_v21  ;;  %v1177_v24 = vmul.f32 %v1169_v19, %v1107_v6  ;;  %v1230_v22 = vld [vmem:[#allocation3 + $0x10] sm:$0xff] }
 0x2b0   : > { %v1152_v25 = vpop.f32.mrf.mxu3 }
 0x2b1   : > { %v1153_v26 = vadd.f32 %v1152_v25, %v1130_v23  ;;  %1470 = vmatmul.f32.gmra.mxu0 %v2812_v46  ;;  %v1190_v27 = vadd.f32 %v1182_v18, %v1150_v12  ;;  %v1185_v28 = vmul.f32 %v1177_v24, %v1107_v6  ;;  %v1161_v46 = vmul.f32 0.5, %v1107_v6 }
 0x2b3   : > { %v1198_v29 = vmul.f32 0.7978846, %v1190_v27  ;;  %v1193_v30 = vadd.f32 %v1185_v28, %v1107_v6  ;;  %v1170_v31 = vmul.f32 0.044715, %v1153_v26  ;;  %v1162_v50 = vmul.f32 0.5, %v1153_v26 }
 0x2b5   : > { %v1909_v32 = vpop.eup %1908  ;;  %1910 = vtanh.f32 %v1198_v29  ;;  %v1201_v33 = vmul.f32 0.7978846, %v1193_v30  ;;  %v1178_v34 = vmul.f32 %v1170_v31, %v1153_v26 }
 0x2b6   : > { %v1213_v36 = vadd.f32 1.0, %v1909_v32 }
 0x2b7   : > { %1493 = vmatmul.f32.gmra.mxu1 %v1224_v0  ;;  %1912 = vtanh.f32 %v1201_v33  ;;  %v1186_v37 = vmul.f32 %v1178_v34, %v1153_v26 }
 0x2b8   : > { %v1221_v39 = vmul.f32 %v1213_v36, %v1157_v35 }
 0x2b9   : > { %v1194_v40 = vadd.f32 %v1186_v37, %v1153_v26 }
 0x2ba   : > { %1421 = vmatmul.f32.vlgmr.msra.gmra.mxu2 %v1221_v39 }
 0x2bb   : > { %v1911_v41 = vpop.eup %1910  ;;  %v1202_v42 = vmul.f32 0.7978846, %v1194_v40 }
 0x2bc   : > { %v1214_v43 = vadd.f32 1.0, %v1911_v41 }
 0x2bd   : > { %v1913_v44 = vpop.eup %1912  ;;  %1914 = vtanh.f32 %v1202_v42 }
 0x2be   : > { %v1222_v45 = vmul.f32 %v1214_v43, %v1158_v38  ;;  %v1217_v47 = vadd.f32 1.0, %v1913_v44 }
 0x2c0   : > { %1444 = vmatmul.f32.vlgmr.msra.gmra.mxu3 %v1222_v45  ;;  %v1225_v48 = vmul.f32 %v1217_v47, %v1161_v46 }
 0x2c2   : > { %1424 = vmatmul.f32.gmra.mxu2 %v1225_v48 }
 0x2c3   : > { %v1915_v49 = vpop.eup %1914 }
 0x2c4   : > { %v1218_v51 = vadd.f32 1.0, %v1915_v49 }
 0x2c6   : > { %v1226_v52 = vmul.f32 %v1218_v51, %v1162_v50 }
 0x2c8   : > { %1447 = vmatmul.f32.gmra.mxu3 %v1226_v52 }
 0x2ca   : > { %1513 = vmatmul.f32.vlgmr.msrb.gmra.mxu2 %v1221_v39 }
 0x2d0   : > { %1536 = vmatmul.f32.vlgmr.msrb.gmra.mxu3 %v1222_v45 }
 0x2d2   : > { %1516 = vmatmul.f32.gmra.mxu2 %v1225_v48 }
 0x2d8   : > { %1539 = vmatmul.f32.gmra.mxu3 %v1226_v52 }
 0x314   : > { %v1376_v54 = vpop.f32.mrf.mxu0 }
 0x31a   : > { %v1399_v53 = vpop.f32.mrf.mxu1 }
 0x31b   : > { %v1400_v56 = vadd.f32 %v1399_v53, %v1376_v54 }
 0x31e   : > { %v1379_v59 = vpop.f32.mrf.mxu0 }
 0x324   : > { %v1402_v57 = vpop.f32.mrf.mxu1 }
 0x325   : > { %v1403_v3 = vadd.f32 %v1402_v57, %v1379_v59 }
 0x326   : > { %v1468_v9 = vpop.f32.mrf.mxu0 }
 0x32c   : > { %v1491_v5 = vpop.f32.mrf.mxu1 }
 0x32d   : > { %v1492_v12 = vadd.f32 %v1491_v5, %v1468_v9 }
 0x32e   : > { %v1471_v17 = vpop.f32.mrf.mxu0 }
 0x334   : > { %v1494_v6 = vpop.f32.mrf.mxu1 }
 0x335   : > { %v1495_v21 = vadd.f32 %v1494_v6, %v1471_v17 }
 0x33d   : > { %v1422_v55 = vpop.f32.mrf.mxu2 }
 0x33e   : > { %v1423_v58 = vadd.f32 %v1422_v55, %v1400_v56 }
 0x343   : > { %v1445_v62 = vpop.f32.mrf.mxu3 }
 0x344   : > { %v1446_v63 = vadd.f32 %v1445_v62, %v1423_v58 }
 0x345   : > { %v1425_v0 = vpop.f32.mrf.mxu2 }
 0x346   : > { %v1543_v2 = vadd.f32 %v1446_v63, %v1227_v61  ;;  %v1426_v4 = vadd.f32 %v1425_v0, %v1403_v3 }
 0x348   : > { %1547 = vst [vmem:[#allocation3] sm:$0xff] %v1543_v2 }
 0x34b   : > { %v1448_v7 = vpop.f32.mrf.mxu3 }
 0x34c   : > { %v1449_v8 = vadd.f32 %v1448_v7, %v1426_v4 }
 0x34d   : > { %v1514_v10 = vpop.f32.mrf.mxu2 }
 0x34e   : > { %v1545_v11 = vadd.f32 %v1449_v8, %v1229_v60  ;;  %v1515_v13 = vadd.f32 %v1514_v10, %v1492_v12 }
 0x350   : > { %1549 = vst [vmem:[#allocation3 + $0x8] sm:$0xff] %v1545_v11 }
 0x353   : > { %v1537_v1 = vpop.f32.mrf.mxu3 }
 0x354   : > { %v1538_v15 = vadd.f32 %v1537_v1, %v1515_v13 }
 0x355   : > { %v1517_v20 = vpop.f32.mrf.mxu2 }
 0x356   : > { %v1544_v16 = vadd.f32 %v1538_v15, %v1228_v14  ;;  %v1518_v19 = vadd.f32 %v1517_v20, %v1495_v21 }
 0x358   : > { %1548 = vst [vmem:[#allocation3 + $0x18] sm:$0xff] %v1544_v16 }
 0x35b   : > { %v1540_v18 = vpop.f32.mrf.mxu3 }
 0x35c   : > { %v1541_v23 = vadd.f32 %v1540_v18, %v1518_v19  ;;  %1554 = sbr.rel (%p1793_p7) target bundleno = 879 (0x36f), region = 83 }
 0x35e   : > { %v1546_v24 = vadd.f32 %v1541_v23, %v1230_v22 }
 0x360   : > { %1550 = vst [vmem:[#allocation3 + $0x10] sm:$0xff] %v1546_v24 }
 0x361   : > { %v1555_v25 = vld [vmem:[#allocation3] sm:$0xff]  ;;  %v1556_v29 = vld [vmem:[#allocation3 + $0x18] sm:$0xff]  ;;  %v1557_v33 = vld [vmem:[#allocation3 + $0x8] sm:$0xff] }
 0x362   : > { %v1559_v26 = vld [vmem:[%s2908_s7] sm:$0x3]  ;;  %v1570_v41 = vld [vmem:[%s2452_s30 + $0x8] sm:$0xff]  ;;  %v1571_v42 = vld [vmem:[%s2452_s30 + $0x10] sm:$0xff] }
 0x363   : > { %v1561_v27 = vperm.slane %v1559_v26, 0  ;;  %v1573_v28 = vld [vmem:[%s720_s16] sm:$0x3]  ;;  %v1562_v30 = vperm.slane %v1559_v26, 1  ;;  %v1572_v45 = vld [vmem:[%s2452_s30 + $0x18] sm:$0xff] }
 0x364   : > { %v1575_v31 = vperm.slane %v1573_v28, 0  ;;  %v1576_v32 = vperm.slane %v1573_v28, 1  ;;  %v1569_v40 = vld [vmem:[%s2452_s30] sm:$0xff] }
 0x365   : > { %v1565_v35 = vadd.f32 %v1561_v27, %v1555_v25  ;;  %v1566_v36 = vadd.f32 %v1562_v30, %v1556_v29  ;;  %v1567_v37 = vadd.f32 %v1561_v27, %v1557_v33 }
 0x367   : > { %v1558_v34 = vld [vmem:[#allocation3 + $0x10] sm:$0xff]  ;;  %v1579_v38 = vmul.f32 %v1575_v31, %v1565_v35  ;;  %v1580_v43 = vmul.f32 %v1576_v32, %v1566_v36  ;;  %v1581_v44 = vmul.f32 %v1575_v31, %v1567_v37 }
 0x368   : > { %v1568_v39 = vadd.f32 %v1562_v30, %v1558_v34 }
 0x369   : > { %v1583_v47 = vadd.f32 %v1579_v38, %v1569_v40  ;;  %v1584_v48 = vadd.f32 %v1580_v43, %v1570_v41  ;;  %v1585_v49 = vadd.f32 %v1581_v44, %v1571_v42 }
 0x36a   : > { %v1582_v46 = vmul.f32 %v1576_v32, %v1568_v39 }
 0x36b   : > { %1587 = vst [vmem:[%s2477_s9] sm:$0xff] %v1583_v47 }
 0x36c   : > { %v1586_v50 = vadd.f32 %v1582_v46, %v1572_v45  ;;  %1588 = vst [vmem:[%s2477_s9 + $0x8] sm:$0xff] %v1584_v48 }
 0x36d   : > { %1589 = vst [vmem:[%s2477_s9 + $0x10] sm:$0xff] %v1585_v49 }
 0x36e   : > { %1590 = vst [vmem:[%s2477_s9 + $0x18] sm:$0xff] %v1586_v50 }
 0x36f PF: > { %s1802_s4 = sshll.u32 %s2014_s11, 5  ;;  %s2941_s24 = sld [smem:[#allocation21_spill]] }
 0x370   : > { %s1607_s30 = sshll.u32 %s2477_s9, 4  ;;  %s2942_s13 = sand.u32 1, %s1994_s28   ;;  %s1608_s30 = int_to_ptr.vmem [resolvable:$true] %s1607_s30 }
 0x371   : > { %s1592_s21 = scalar_lea.sflag [#allocation6], %s2942_s13 }
 0x375   : > { %s1606_s16 = scalar_lea.hbm %s2941_s24, %s1802_s4  ;;  %s1936_s11 = scalar_lea.hbm %s2941_s24, 64 }
 0x376   : > { %s1609_s12 = sshll.u32 %s1606_s16, 4  ;;  %s1610_s12 = int_to_ptr.hbm [resolvable:$true] %s1609_s12 }
 0x377   : > { %s1930_s18 = sshra.s32 %s1610_s12, 4  ;;  %s1931_s18 = int_to_ptr.hbm [resolvable:$true] %s1930_s18 }
 0x378   : > { %s1932_s17 = scalar_lea.hbm %s1931_s18, 32  ;;  %p1937_p13 = scmp.lt.s32.totalorder %s1931_s18, %s2941_s24 }
 0x379   : > { %p1933_p8 = scmp.ne.s32.totalorder %s1931_s18, %s1932_s17  ;;  %p1938_p0 = scmp.lt.s32.totalorder %s1936_s11, %s1932_s17 }
 0x37b   : > { %p1934_p9 = pnand %p1933_p8, %p2156_p10  ;;  %p1939_p1 = por %p1938_p0, %p1937_p13 }
 0x37d   : > { %p1935_p11 = pneg %p1934_p9 }
 0x37f   : > { %p1940_p2 = pnand %p1939_p1, %p1935_p11 }
 0x381   : > { %1943 = shalt.err (!%p1940_p2)
}
 0x382   : > { %s2030_s9 = smov 256   ;;  %s2031_s29 = smov 16  }
 0x383   : > { %1803 = dma.vmem_to_hbm [thread:$0]  (%p2156_p10), %s1608_s30, 512, %s1610_s12, %s1592_s21, %s2030_s9, %s2030_s9, %s2031_s29  }
 0x384 PF: > { %s2943_s23 = sld [smem:[#allocation13_spill]] }
 0x385   : > { %s2944_s26 = sld [smem:[#allocation8_spill]] }
 0x38a   : > { %p1809_p3 = scmp.ge.s32.totalorder %s2943_s23, 2 }
 0x38b   : > { %s1624_s22 = sand.u32 1, %s2944_s26  }
 0x38c   : > { %p1806_p4 = pnand %p1809_p3, %p2163_p12  ;;  %s1625_s15 = scalar_lea.sflag [#allocation6], %s1624_s22 }
 0x38e   : > { %p1807_p5 = pneg %p1806_p4 }
 0x390   : > { %1985 = dma.done.wait (%p1807_p5), %s1625_s15, 512  }
 0x391   : > { %1987 = vsyncadd (%p1807_p5), %s1625_s15, 4294966784  ;;  %s21_s14 = sadd.s32 1, %s2943_s23   ;;  %s2946_s4 = sld [smem:[#allocation9_spill]] }
 0x392   : > { %p18_p6 = scmp.ge.s32.totalorder %s21_s14, 6   ;;  %s2947_s29 = sld [smem:[#allocation17_spill]] }
 0x393   : > { %s2948_s30 = sld [smem:[#allocation10_spill]]  ;;  %s2954_s27 = smov %s1994_s28 }
 0x394   : > { %s2949_s9 = sld [smem:[#allocation16_spill]]  ;;  %20 = sbr.rel (!%p18_p6) target bundleno = 10 (0xa), region = 141 }
 0x395   : > { %s2950_s10 = sld [smem:[#allocation11_spill]] }
 0x396   : > { %s2951_s11 = sld [smem:[#allocation12_spill]] }
 0x397   : > { %s2952_s12 = sld [smem:[#allocation14_spill]]  ;;  %s2955_s28 = smov %s2946_s4 }
 0x398   : > { %s2953_s13 = sld [smem:[#allocation15_spill]] }
 0x399   :  { %1631 = vsyncpa [#allocation6], 1 }
 0x39a   :  { %1633 = vsyncpa [#allocation6 + $0x1], 1 }

// kernel: joint_transformer_block.15
= control target key start
LH: loop header
LB: loop body
LE: loop exit
PB: predicated region body
PF: predicated region fallthrough
CT: control target
= control target key end

     0   :  { %s2673_s0 = inlined_call_operand.vmem [shape: f32[2,8,256], index: 0, kind: input, shape index: {}]   ;;  %s2674_s1 = inlined_call_operand.vmem [shape: f32[2,1,256], index: 1, kind: input, shape index: {}]   ;;  %s2675_s2 = inlined_call_operand.vmem [shape: f32[2,1,256], index: 2, kind: input, shape index: {}]   ;;  %s2676_s3 = inlined_call_operand.vmem [shape: f32[2,1,256], index: 3, kind: input, shape index: {}]   ;;  %s2677_s4 = inlined_call_operand.vmem [shape: f32[256,1024], index: 4, kind: input, shape index: {}]   ;;  %s2678_s5 = inlined_call_operand.vmem [shape: f32[1,1024], index: 5, kind: input, shape index: {}]   ;;  %s2679_s6 = inlined_call_operand.vmem [shape: f32[1024,256], index: 6, kind: input, shape index: {}]   ;;  %s2680_s7 = inlined_call_operand.vmem [shape: f32[1,256], index: 7, kind: input, shape index: {}]   ;;  %s2681_s8 = inlined_call_operand.hbm [shape: f32[2,8,256], index: 8, kind: output, shape index: {}]  }
   0x1   :  { %2694 = sst [smem:[#allocation19_spill]] %s2673_s0 }
   0x2   :  { %2695 = sst [smem:[#allocation20_spill]] %s2677_s4 }
   0x3   :  { %2696 = sst [smem:[#allocation21_spill]] %s2681_s8 }
   0x4   :  { %13 = vsyncpa [#allocation6], 0 }
   0x5   :  { %15 = vsyncpa [#allocation6 + $0x1], 0  ;;  %s1915_s27 = smov 0   ;;  %s1917_s28 = smov 0  }
   0x6   :  { %s1919_s29 = smov 0   ;;  %s1921_s30 = smov 0  }
   0x7   :  { %s1923_s9 = smov 0   ;;  %s1925_s10 = smov 0  }
   0x8   :  { %s1927_s11 = smov 0   ;;  %s1929_s12 = smov 0  }
   0x9   :  { %s1931_s13 = smov 0   ;;  %s1933_s14 = smov 0  }
   0xa LB: > { %2697 = sst [smem:[#allocation8_spill]] %s1830_s27  ;;  %s1625_s15 = sadd.s32 4294967295, %s1866_s14   ;;  %s1866_s14 = sphi %s1933_s14, %s21_s14   ;;  %s1862_s13 = sphi %s1931_s13, %s2725_s13   ;;  %s1858_s12 = sphi %s1929_s12, %s2724_s12   ;;  %s1854_s11 = sphi %s1927_s11, %s2723_s11   ;;  %s1850_s10 = sphi %s1925_s10, %s2722_s10   ;;  %s1846_s9 = sphi %s1923_s9, %s2721_s9   ;;  %s1842_s30 = sphi %s1921_s30, %s2720_s30   ;;  %s1838_s29 = sphi %s1919_s29, %s2719_s29   ;;  %s1834_s28 = sphi %s1917_s28, %s2727_s28   ;;  %s1830_s27 = sphi %s1915_s27, %s2726_s27  }
   0xb   : > { %2698 = sst [smem:[#allocation9_spill]] %s1838_s29  ;;  %s1626_s16 = sadd.s32 4294967294, %s1866_s14  }
   0xc   : > { %2699 = sst [smem:[#allocation10_spill]] %s1846_s9  ;;  %s33_s17 = sadd.s32 1, %s1858_s12 }
   0xd   : > { %2700 = sst [smem:[#allocation11_spill]] %s1858_s12  ;;  %s40_s18 = sadd.s32 1, %s1862_s13 }
   0xe   : > { %2701 = sst [smem:[#allocation12_spill]] %s1862_s13  ;;  %p34_p0 = scmp.ge.s32.totalorder %s33_s17, 2 }
   0xf   : > { %2702 = sst [smem:[#allocation13_spill]] %s1866_s14  ;;  %s153_s19 = sadd.s32 1, %s1846_s9 }
  0x10   : > { %p160_p1 = scmp.ne.s32.totalorder %s1846_s9, %s1842_s30  ;;  %p161_p2 = scmp.eq.s32.totalorder %s1866_s14, 0 }
  0x11   : > { %s2729_s17 = smov (%p34_p0, %s33_s17), 0  ;;  %s2731_s18 = smov (!%p34_p0, %s40_s18), %s1862_s13 }
  0x12   : > { %2703 = sst [smem:[#allocation14_spill]] %s2729_s17  ;;  %s150_s20 = ssub.s32 %s1858_s12, %s2729_s17 }
  0x13   : > { %p1978_p3 = por %p161_p2, %p160_p1  ;;  %p42_p4 = scmp.ge.s32.totalorder %s2731_s18, 2 }
  0x14   : > { %p151_p5 = scmp.eq.s32.totalorder %s150_s20, 0  ;;  %s254_s22 = sadd.s32 1, %s1838_s29 }
  0x15   : > { %p264_p6 = scmp.ne.s32.totalorder %s1838_s29, %s1834_s28  ;;  %s2733_s18 = smov (%p42_p4, %s2731_s18), 0 }
  0x16   : > { %2705 = sst [smem:[#allocation15_spill]] %s2733_s18  ;;  %s249_s24 = ssub.s32 %s1862_s13, %s2733_s18 }
  0x17   : > { %s1988_s23 = scalar_select %p151_p5, %s1846_s9, %s153_s19  }
  0x18   : > { %p265_p7 = scmp.eq.s32.totalorder %s1625_s15, 3  ;;  %p252_p8 = scmp.eq.s32.totalorder %s249_s24, 0 }
  0x19   : > { %2706 = sst [smem:[#allocation16_spill]] %s1988_s23  ;;  %p270_p9 = scmp.ne.s32.totalorder %s1834_s28, %s1830_s27 }
  0x1a   : > { %p1994_p10 = por %p265_p7, %p264_p6  ;;  %p271_p11 = scmp.eq.s32.totalorder %s1626_s16, 3 }
  0x1b   : > { %s1999_s26 = scalar_select %p252_p8, %s1838_s29, %s254_s22  }
  0x1c   : > { %p2001_p12 = por %p271_p11, %p270_p9  ;;  %p1628_p13 = scmp.ge.s32.totalorder %s1866_s14, 4 }
  0x1d   : > { %2708 = sst [smem:[#allocation17_spill]] %s1999_s26 }
  0x1e   : > { %s2709_s20 = scalar_select %p2001_p12, 1, 0 }
  0x1f   : > { %290 = sbr.rel (%p1628_p13) target bundleno = 174 (0xae), region = 20 }
  0x20   : > { %2710 = sst [smem:[#allocation18_spill]] %s2709_s20 }
  0x24   : > { %326 = sbr.rel (!%p1978_p3) target bundleno = 174 (0xae), region = 40  ;;  %s328_s15 = sand.u32 (%p1978_p3), 1, %s1846_s9  }
  0x25   : > { %s1651_s19 = sshll.u32 (%p1978_p3), %s1858_s12, 5  ;;  %s1629_s24 = sshll.u32 (%p1978_p3), %s328_s15, 10 }
  0x26   : > { %s2711_s4 = sld [smem:[#allocation20_spill]] (%p1978_p3)  ;;  %s2018_s21 = scalar_lea.vmem (%p1978_p3), [#allocation4], %s1629_s24 }
  0x2c   : > { %s2013_s16 = scalar_lea.vmem %s2711_s4, %s1651_s19 }
  0x2d   : > { %v346_v0 = vld [vmem:[%s2013_s16] sm:$0xff]  ;;  %v348_v1 = vld [vmem:[%s2013_s16 + $0x8] sm:$0xff]  ;;  %v350_v2 = vld [vmem:[%s2013_s16 + $0x10] sm:$0xff] }
  0x2e   : > { %347 = vst [vmem:[%s2018_s21] sm:$0xff] %v346_v0  ;;  %v352_v3 = vld [vmem:[%s2013_s16 + $0x18] sm:$0xff]  ;;  %v354_v4 = vld [vmem:[%s2013_s16 + $0x40] sm:$0xff]  ;;  %v356_v5 = vld [vmem:[%s2013_s16 + $0x48] sm:$0xff] }
  0x2f   : > { %349 = vst [vmem:[%s2018_s21 + $0x8] sm:$0xff] %v348_v1  ;;  %v358_v6 = vld [vmem:[%s2013_s16 + $0x50] sm:$0xff]  ;;  %v360_v7 = vld [vmem:[%s2013_s16 + $0x58] sm:$0xff]  ;;  %v362_v8 = vld [vmem:[%s2013_s16 + $0x80] sm:$0xff] }
  0x30   : > { %351 = vst [vmem:[%s2018_s21 + $0x10] sm:$0xff] %v350_v2  ;;  %v364_v9 = vld [vmem:[%s2013_s16 + $0x88] sm:$0xff]  ;;  %v366_v10 = vld [vmem:[%s2013_s16 + $0x90] sm:$0xff]  ;;  %v368_v11 = vld [vmem:[%s2013_s16 + $0x98] sm:$0xff] }
  0x31   : > { %353 = vst [vmem:[%s2018_s21 + $0x18] sm:$0xff] %v352_v3  ;;  %v370_v12 = vld [vmem:[%s2013_s16 + $0xc0] sm:$0xff]  ;;  %v372_v13 = vld [vmem:[%s2013_s16 + $0xc8] sm:$0xff]  ;;  %v374_v14 = vld [vmem:[%s2013_s16 + $0xd0] sm:$0xff] }
  0x32   : > { %355 = vst [vmem:[%s2018_s21 + $0x20] sm:$0xff] %v354_v4  ;;  %v376_v15 = vld [vmem:[%s2013_s16 + $0xd8] sm:$0xff]  ;;  %v378_v16 = vld [vmem:[%s2013_s16 + $0x100] sm:$0xff]  ;;  %v380_v17 = vld [vmem:[%s2013_s16 + $0x108] sm:$0xff] }
  0x33   : > { %357 = vst [vmem:[%s2018_s21 + $0x28] sm:$0xff] %v356_v5  ;;  %v382_v18 = vld [vmem:[%s2013_s16 + $0x110] sm:$0xff]  ;;  %v384_v19 = vld [vmem:[%s2013_s16 + $0x118] sm:$0xff]  ;;  %v386_v20 = vld [vmem:[%s2013_s16 + $0x140] sm:$0xff] }
  0x34   : > { %359 = vst [vmem:[%s2018_s21 + $0x30] sm:$0xff] %v358_v6  ;;  %v388_v21 = vld [vmem:[%s2013_s16 + $0x148] sm:$0xff]  ;;  %v390_v22 = vld [vmem:[%s2013_s16 + $0x150] sm:$0xff]  ;;  %v392_v23 = vld [vmem:[%s2013_s16 + $0x158] sm:$0xff] }
  0x35   : > { %361 = vst [vmem:[%s2018_s21 + $0x38] sm:$0xff] %v360_v7  ;;  %v394_v24 = vld [vmem:[%s2013_s16 + $0x180] sm:$0xff]  ;;  %v396_v25 = vld [vmem:[%s2013_s16 + $0x188] sm:$0xff]  ;;  %v398_v26 = vld [vmem:[%s2013_s16 + $0x190] sm:$0xff] }
  0x36   : > { %363 = vst [vmem:[%s2018_s21 + $0x40] sm:$0xff] %v362_v8  ;;  %v400_v27 = vld [vmem:[%s2013_s16 + $0x198] sm:$0xff]  ;;  %v402_v28 = vld [vmem:[%s2013_s16 + $0x1c0] sm:$0xff]  ;;  %v404_v29 = vld [vmem:[%s2013_s16 + $0x1c8] sm:$0xff] }
  0x37   : > { %365 = vst [vmem:[%s2018_s21 + $0x48] sm:$0xff] %v364_v9  ;;  %v406_v30 = vld [vmem:[%s2013_s16 + $0x1d0] sm:$0xff]  ;;  %v408_v31 = vld [vmem:[%s2013_s16 + $0x1d8] sm:$0xff]  ;;  %v410_v32 = vld [vmem:[%s2013_s16 + $0x200] sm:$0xff] }
  0x38   : > { %367 = vst [vmem:[%s2018_s21 + $0x50] sm:$0xff] %v366_v10  ;;  %v412_v33 = vld [vmem:[%s2013_s16 + $0x208] sm:$0xff]  ;;  %v414_v34 = vld [vmem:[%s2013_s16 + $0x210] sm:$0xff]  ;;  %v416_v35 = vld [vmem:[%s2013_s16 + $0x218] sm:$0xff] }
  0x39   : > { %369 = vst [vmem:[%s2018_s21 + $0x58] sm:$0xff] %v368_v11  ;;  %v418_v36 = vld [vmem:[%s2013_s16 + $0x240] sm:$0xff]  ;;  %v420_v37 = vld [vmem:[%s2013_s16 + $0x248] sm:$0xff]  ;;  %v422_v38 = vld [vmem:[%s2013_s16 + $0x250] sm:$0xff] }
  0x3a   : > { %371 = vst [vmem:[%s2018_s21 + $0x60] sm:$0xff] %v370_v12  ;;  %v424_v39 = vld [vmem:[%s2013_s16 + $0x258] sm:$0xff]  ;;  %v426_v40 = vld [vmem:[%s2013_s16 + $0x280] sm:$0xff]  ;;  %v428_v41 = vld [vmem:[%s2013_s16 + $0x288] sm:$0xff] }
  0x3b   : > { %373 = vst [vmem:[%s2018_s21 + $0x68] sm:$0xff] %v372_v13  ;;  %v430_v42 = vld [vmem:[%s2013_s16 + $0x290] sm:$0xff]  ;;  %v432_v43 = vld [vmem:[%s2013_s16 + $0x298] sm:$0xff]  ;;  %v434_v44 = vld [vmem:[%s2013_s16 + $0x2c0] sm:$0xff] }
  0x3c   : > { %375 = vst [vmem:[%s2018_s21 + $0x70] sm:$0xff] %v374_v14  ;;  %v436_v45 = vld [vmem:[%s2013_s16 + $0x2c8] sm:$0xff]  ;;  %v438_v46 = vld [vmem:[%s2013_s16 + $0x2d0] sm:$0xff]  ;;  %v440_v47 = vld [vmem:[%s2013_s16 + $0x2d8] sm:$0xff] }
  0x3d   : > { %377 = vst [vmem:[%s2018_s21 + $0x78] sm:$0xff] %v376_v15  ;;  %v442_v48 = vld [vmem:[%s2013_s16 + $0x300] sm:$0xff]  ;;  %v444_v49 = vld [vmem:[%s2013_s16 + $0x308] sm:$0xff]  ;;  %v446_v50 = vld [vmem:[%s2013_s16 + $0x310] sm:$0xff] }
  0x3e   : > { %379 = vst [vmem:[%s2018_s21 + $0x80] sm:$0xff] %v378_v16  ;;  %v448_v51 = vld [vmem:[%s2013_s16 + $0x318] sm:$0xff]  ;;  %v450_v52 = vld [vmem:[%s2013_s16 + $0x340] sm:$0xff]  ;;  %v452_v53 = vld [vmem:[%s2013_s16 + $0x348] sm:$0xff] }
  0x3f   : > { %381 = vst [vmem:[%s2018_s21 + $0x88] sm:$0xff] %v380_v17  ;;  %v454_v54 = vld [vmem:[%s2013_s16 + $0x350] sm:$0xff]  ;;  %v456_v55 = vld [vmem:[%s2013_s16 + $0x358] sm:$0xff]  ;;  %v458_v56 = vld [vmem:[%s2013_s16 + $0x380] sm:$0xff] }
  0x40   : > { %383 = vst [vmem:[%s2018_s21 + $0x90] sm:$0xff] %v382_v18  ;;  %v460_v57 = vld [vmem:[%s2013_s16 + $0x388] sm:$0xff]  ;;  %v462_v58 = vld [vmem:[%s2013_s16 + $0x390] sm:$0xff]  ;;  %v464_v59 = vld [vmem:[%s2013_s16 + $0x398] sm:$0xff] }
  0x41   : > { %385 = vst [vmem:[%s2018_s21 + $0x98] sm:$0xff] %v384_v19  ;;  %v466_v60 = vld [vmem:[%s2013_s16 + $0x3c0] sm:$0xff]  ;;  %v468_v61 = vld [vmem:[%s2013_s16 + $0x3c8] sm:$0xff]  ;;  %v470_v62 = vld [vmem:[%s2013_s16 + $0x3d0] sm:$0xff] }
  0x42   : > { %387 = vst [vmem:[%s2018_s21 + $0xa0] sm:$0xff] %v386_v20  ;;  %v472_v63 = vld [vmem:[%s2013_s16 + $0x3d8] sm:$0xff]  ;;  %v474_v0 = vld [vmem:[%s2013_s16 + $0x400] sm:$0xff]  ;;  %v476_v1 = vld [vmem:[%s2013_s16 + $0x408] sm:$0xff] }
  0x43   : > { %389 = vst [vmem:[%s2018_s21 + $0xa8] sm:$0xff] %v388_v21  ;;  %v478_v2 = vld [vmem:[%s2013_s16 + $0x410] sm:$0xff]  ;;  %v480_v3 = vld [vmem:[%s2013_s16 + $0x418] sm:$0xff]  ;;  %v482_v4 = vld [vmem:[%s2013_s16 + $0x440] sm:$0xff] }
  0x44   : > { %391 = vst [vmem:[%s2018_s21 + $0xb0] sm:$0xff] %v390_v22  ;;  %v484_v5 = vld [vmem:[%s2013_s16 + $0x448] sm:$0xff]  ;;  %v486_v6 = vld [vmem:[%s2013_s16 + $0x450] sm:$0xff]  ;;  %v488_v7 = vld [vmem:[%s2013_s16 + $0x458] sm:$0xff] }
  0x45   : > { %393 = vst [vmem:[%s2018_s21 + $0xb8] sm:$0xff] %v392_v23  ;;  %v490_v8 = vld [vmem:[%s2013_s16 + $0x480] sm:$0xff]  ;;  %v492_v9 = vld [vmem:[%s2013_s16 + $0x488] sm:$0xff]  ;;  %v494_v10 = vld [vmem:[%s2013_s16 + $0x490] sm:$0xff] }
  0x46   : > { %395 = vst [vmem:[%s2018_s21 + $0xc0] sm:$0xff] %v394_v24  ;;  %v496_v11 = vld [vmem:[%s2013_s16 + $0x498] sm:$0xff]  ;;  %v498_v12 = vld [vmem:[%s2013_s16 + $0x4c0] sm:$0xff]  ;;  %v500_v13 = vld [vmem:[%s2013_s16 + $0x4c8] sm:$0xff] }
  0x47   : > { %397 = vst [vmem:[%s2018_s21 + $0xc8] sm:$0xff] %v396_v25  ;;  %v502_v14 = vld [vmem:[%s2013_s16 + $0x4d0] sm:$0xff]  ;;  %v504_v15 = vld [vmem:[%s2013_s16 + $0x4d8] sm:$0xff]  ;;  %v506_v16 = vld [vmem:[%s2013_s16 + $0x500] sm:$0xff] }
  0x48   : > { %399 = vst [vmem:[%s2018_s21 + $0xd0] sm:$0xff] %v398_v26  ;;  %v508_v17 = vld [vmem:[%s2013_s16 + $0x508] sm:$0xff]  ;;  %v510_v18 = vld [vmem:[%s2013_s16 + $0x510] sm:$0xff]  ;;  %v512_v19 = vld [vmem:[%s2013_s16 + $0x518] sm:$0xff] }
  0x49   : > { %401 = vst [vmem:[%s2018_s21 + $0xd8] sm:$0xff] %v400_v27  ;;  %v514_v20 = vld [vmem:[%s2013_s16 + $0x540] sm:$0xff]  ;;  %v516_v21 = vld [vmem:[%s2013_s16 + $0x548] sm:$0xff]  ;;  %v518_v22 = vld [vmem:[%s2013_s16 + $0x550] sm:$0xff] }
  0x4a   : > { %403 = vst [vmem:[%s2018_s21 + $0xe0] sm:$0xff] %v402_v28  ;;  %v520_v23 = vld [vmem:[%s2013_s16 + $0x558] sm:$0xff]  ;;  %v522_v24 = vld [vmem:[%s2013_s16 + $0x580] sm:$0xff]  ;;  %v524_v25 = vld [vmem:[%s2013_s16 + $0x588] sm:$0xff] }
  0x4b   : > { %405 = vst [vmem:[%s2018_s21 + $0xe8] sm:$0xff] %v404_v29  ;;  %v526_v26 = vld [vmem:[%s2013_s16 + $0x590] sm:$0xff]  ;;  %v528_v27 = vld [vmem:[%s2013_s16 + $0x598] sm:$0xff]  ;;  %v530_v28 = vld [vmem:[%s2013_s16 + $0x5c0] sm:$0xff] }
  0x4c   : > { %407 = vst [vmem:[%s2018_s21 + $0xf0] sm:$0xff] %v406_v30  ;;  %v532_v29 = vld [vmem:[%s2013_s16 + $0x5c8] sm:$0xff]  ;;  %v534_v30 = vld [vmem:[%s2013_s16 + $0x5d0] sm:$0xff] }
  0x4d   : > { %409 = vst [vmem:[%s2018_s21 + $0xf8] sm:$0xff] %v408_v31  ;;  %v536_v31 = vld [vmem:[%s2013_s16 + $0x5d8] sm:$0xff] }
  0x4e   : > { %411 = vst [vmem:[%s2018_s21 + $0x100] sm:$0xff] %v410_v32  ;;  %v538_v32 = vld [vmem:[%s2013_s16 + $0x600] sm:$0xff] }
  0x4f   : > { %413 = vst [vmem:[%s2018_s21 + $0x108] sm:$0xff] %v412_v33  ;;  %v540_v33 = vld [vmem:[%s2013_s16 + $0x608] sm:$0xff] }
  0x50   : > { %415 = vst [vmem:[%s2018_s21 + $0x110] sm:$0xff] %v414_v34  ;;  %v542_v34 = vld [vmem:[%s2013_s16 + $0x610] sm:$0xff] }
  0x51   : > { %417 = vst [vmem:[%s2018_s21 + $0x118] sm:$0xff] %v416_v35  ;;  %v544_v35 = vld [vmem:[%s2013_s16 + $0x618] sm:$0xff] }
  0x52   : > { %419 = vst [vmem:[%s2018_s21 + $0x120] sm:$0xff] %v418_v36  ;;  %v546_v36 = vld [vmem:[%s2013_s16 + $0x640] sm:$0xff] }
  0x53   : > { %421 = vst [vmem:[%s2018_s21 + $0x128] sm:$0xff] %v420_v37  ;;  %v548_v37 = vld [vmem:[%s2013_s16 + $0x648] sm:$0xff] }
  0x54   : > { %423 = vst [vmem:[%s2018_s21 + $0x130] sm:$0xff] %v422_v38  ;;  %v550_v38 = vld [vmem:[%s2013_s16 + $0x650] sm:$0xff] }
  0x55   : > { %425 = vst [vmem:[%s2018_s21 + $0x138] sm:$0xff] %v424_v39  ;;  %v552_v39 = vld [vmem:[%s2013_s16 + $0x658] sm:$0xff] }
  0x56   : > { %427 = vst [vmem:[%s2018_s21 + $0x140] sm:$0xff] %v426_v40  ;;  %v554_v40 = vld [vmem:[%s2013_s16 + $0x680] sm:$0xff] }
  0x57   : > { %429 = vst [vmem:[%s2018_s21 + $0x148] sm:$0xff] %v428_v41  ;;  %v556_v41 = vld [vmem:[%s2013_s16 + $0x688] sm:$0xff] }
  0x58   : > { %431 = vst [vmem:[%s2018_s21 + $0x150] sm:$0xff] %v430_v42  ;;  %v558_v42 = vld [vmem:[%s2013_s16 + $0x690] sm:$0xff] }
  0x59   : > { %433 = vst [vmem:[%s2018_s21 + $0x158] sm:$0xff] %v432_v43  ;;  %v560_v43 = vld [vmem:[%s2013_s16 + $0x698] sm:$0xff] }
  0x5a   : > { %435 = vst [vmem:[%s2018_s21 + $0x160] sm:$0xff] %v434_v44  ;;  %v562_v44 = vld [vmem:[%s2013_s16 + $0x6c0] sm:$0xff] }
  0x5b   : > { %437 = vst [vmem:[%s2018_s21 + $0x168] sm:$0xff] %v436_v45  ;;  %v564_v45 = vld [vmem:[%s2013_s16 + $0x6c8] sm:$0xff] }
  0x5c   : > { %439 = vst [vmem:[%s2018_s21 + $0x170] sm:$0xff] %v438_v46  ;;  %v566_v46 = vld [vmem:[%s2013_s16 + $0x6d0] sm:$0xff] }
  0x5d   : > { %441 = vst [vmem:[%s2018_s21 + $0x178] sm:$0xff] %v440_v47  ;;  %v568_v47 = vld [vmem:[%s2013_s16 + $0x6d8] sm:$0xff] }
  0x5e   : > { %443 = vst [vmem:[%s2018_s21 + $0x180] sm:$0xff] %v442_v48  ;;  %v570_v48 = vld [vmem:[%s2013_s16 + $0x700] sm:$0xff] }
  0x5f   : > { %445 = vst [vmem:[%s2018_s21 + $0x188] sm:$0xff] %v444_v49  ;;  %v572_v49 = vld [vmem:[%s2013_s16 + $0x708] sm:$0xff] }
  0x60   : > { %447 = vst [vmem:[%s2018_s21 + $0x190] sm:$0xff] %v446_v50  ;;  %v574_v50 = vld [vmem:[%s2013_s16 + $0x710] sm:$0xff] }
  0x61   : > { %449 = vst [vmem:[%s2018_s21 + $0x198] sm:$0xff] %v448_v51  ;;  %v576_v51 = vld [vmem:[%s2013_s16 + $0x718] sm:$0xff] }
  0x62   : > { %451 = vst [vmem:[%s2018_s21 + $0x1a0] sm:$0xff] %v450_v52  ;;  %v578_v52 = vld [vmem:[%s2013_s16 + $0x740] sm:$0xff] }
  0x63   : > { %453 = vst [vmem:[%s2018_s21 + $0x1a8] sm:$0xff] %v452_v53  ;;  %v580_v53 = vld [vmem:[%s2013_s16 + $0x748] sm:$0xff] }
  0x64   : > { %455 = vst [vmem:[%s2018_s21 + $0x1b0] sm:$0xff] %v454_v54  ;;  %v582_v54 = vld [vmem:[%s2013_s16 + $0x750] sm:$0xff] }
  0x65   : > { %457 = vst [vmem:[%s2018_s21 + $0x1b8] sm:$0xff] %v456_v55  ;;  %v584_v55 = vld [vmem:[%s2013_s16 + $0x758] sm:$0xff] }
  0x66   : > { %459 = vst [vmem:[%s2018_s21 + $0x1c0] sm:$0xff] %v458_v56  ;;  %v586_v56 = vld [vmem:[%s2013_s16 + $0x780] sm:$0xff] }
  0x67   : > { %461 = vst [vmem:[%s2018_s21 + $0x1c8] sm:$0xff] %v460_v57  ;;  %v588_v57 = vld [vmem:[%s2013_s16 + $0x788] sm:$0xff] }
  0x68   : > { %463 = vst [vmem:[%s2018_s21 + $0x1d0] sm:$0xff] %v462_v58  ;;  %v590_v58 = vld [vmem:[%s2013_s16 + $0x790] sm:$0xff] }
  0x69   : > { %465 = vst [vmem:[%s2018_s21 + $0x1d8] sm:$0xff] %v464_v59  ;;  %v592_v59 = vld [vmem:[%s2013_s16 + $0x798] sm:$0xff] }
  0x6a   : > { %467 = vst [vmem:[%s2018_s21 + $0x1e0] sm:$0xff] %v466_v60  ;;  %v594_v60 = vld [vmem:[%s2013_s16 + $0x7c0] sm:$0xff] }
  0x6b   : > { %469 = vst [vmem:[%s2018_s21 + $0x1e8] sm:$0xff] %v468_v61  ;;  %v596_v61 = vld [vmem:[%s2013_s16 + $0x7c8] sm:$0xff] }
  0x6c   : > { %471 = vst [vmem:[%s2018_s21 + $0x1f0] sm:$0xff] %v470_v62  ;;  %v598_v62 = vld [vmem:[%s2013_s16 + $0x7d0] sm:$0xff] }
  0x6d   : > { %473 = vst [vmem:[%s2018_s21 + $0x1f8] sm:$0xff] %v472_v63  ;;  %v600_v63 = vld [vmem:[%s2013_s16 + $0x7d8] sm:$0xff] }
  0x6e   : > { %475 = vst [vmem:[%s2018_s21 + $0x200] sm:$0xff] %v474_v0 }
  0x6f   : > { %477 = vst [vmem:[%s2018_s21 + $0x208] sm:$0xff] %v476_v1 }
  0x70   : > { %479 = vst [vmem:[%s2018_s21 + $0x210] sm:$0xff] %v478_v2 }
  0x71   : > { %481 = vst [vmem:[%s2018_s21 + $0x218] sm:$0xff] %v480_v3 }
  0x72   : > { %483 = vst [vmem:[%s2018_s21 + $0x220] sm:$0xff] %v482_v4 }
  0x73   : > { %485 = vst [vmem:[%s2018_s21 + $0x228] sm:$0xff] %v484_v5 }
  0x74   : > { %487 = vst [vmem:[%s2018_s21 + $0x230] sm:$0xff] %v486_v6 }
  0x75   : > { %489 = vst [vmem:[%s2018_s21 + $0x238] sm:$0xff] %v488_v7 }
  0x76   : > { %491 = vst [vmem:[%s2018_s21 + $0x240] sm:$0xff] %v490_v8 }
  0x77   : > { %493 = vst [vmem:[%s2018_s21 + $0x248] sm:$0xff] %v492_v9 }
  0x78   : > { %495 = vst [vmem:[%s2018_s21 + $0x250] sm:$0xff] %v494_v10 }
  0x79   : > { %497 = vst [vmem:[%s2018_s21 + $0x258] sm:$0xff] %v496_v11 }
  0x7a   : > { %499 = vst [vmem:[%s2018_s21 + $0x260] sm:$0xff] %v498_v12 }
  0x7b   : > { %501 = vst [vmem:[%s2018_s21 + $0x268] sm:$0xff] %v500_v13 }
  0x7c   : > { %503 = vst [vmem:[%s2018_s21 + $0x270] sm:$0xff] %v502_v14 }
  0x7d   : > { %505 = vst [vmem:[%s2018_s21 + $0x278] sm:$0xff] %v504_v15 }
  0x7e   : > { %507 = vst [vmem:[%s2018_s21 + $0x280] sm:$0xff] %v506_v16 }
  0x7f   : > { %509 = vst [vmem:[%s2018_s21 + $0x288] sm:$0xff] %v508_v17 }
  0x80   : > { %511 = vst [vmem:[%s2018_s21 + $0x290] sm:$0xff] %v510_v18 }
  0x81   : > { %513 = vst [vmem:[%s2018_s21 + $0x298] sm:$0xff] %v512_v19 }
  0x82   : > { %515 = vst [vmem:[%s2018_s21 + $0x2a0] sm:$0xff] %v514_v20 }
  0x83   : > { %517 = vst [vmem:[%s2018_s21 + $0x2a8] sm:$0xff] %v516_v21 }
  0x84   : > { %519 = vst [vmem:[%s2018_s21 + $0x2b0] sm:$0xff] %v518_v22 }
  0x85   : > { %521 = vst [vmem:[%s2018_s21 + $0x2b8] sm:$0xff] %v520_v23 }
  0x86   : > { %523 = vst [vmem:[%s2018_s21 + $0x2c0] sm:$0xff] %v522_v24 }
  0x87   : > { %525 = vst [vmem:[%s2018_s21 + $0x2c8] sm:$0xff] %v524_v25 }
  0x88   : > { %527 = vst [vmem:[%s2018_s21 + $0x2d0] sm:$0xff] %v526_v26 }
  0x89   : > { %529 = vst [vmem:[%s2018_s21 + $0x2d8] sm:$0xff] %v528_v27 }
  0x8a   : > { %531 = vst [vmem:[%s2018_s21 + $0x2e0] sm:$0xff] %v530_v28 }
  0x8b   : > { %533 = vst [vmem:[%s2018_s21 + $0x2e8] sm:$0xff] %v532_v29 }
  0x8c   : > { %535 = vst [vmem:[%s2018_s21 + $0x2f0] sm:$0xff] %v534_v30 }
  0x8d   : > { %537 = vst [vmem:[%s2018_s21 + $0x2f8] sm:$0xff] %v536_v31 }
  0x8e   : > { %539 = vst [vmem:[%s2018_s21 + $0x300] sm:$0xff] %v538_v32 }
  0x8f   : > { %541 = vst [vmem:[%s2018_s21 + $0x308] sm:$0xff] %v540_v33 }
  0x90   : > { %543 = vst [vmem:[%s2018_s21 + $0x310] sm:$0xff] %v542_v34 }
  0x91   : > { %545 = vst [vmem:[%s2018_s21 + $0x318] sm:$0xff] %v544_v35 }
  0x92   : > { %547 = vst [vmem:[%s2018_s21 + $0x320] sm:$0xff] %v546_v36 }
  0x93   : > { %549 = vst [vmem:[%s2018_s21 + $0x328] sm:$0xff] %v548_v37 }
  0x94   : > { %551 = vst [vmem:[%s2018_s21 + $0x330] sm:$0xff] %v550_v38 }
  0x95   : > { %553 = vst [vmem:[%s2018_s21 + $0x338] sm:$0xff] %v552_v39 }
  0x96   : > { %555 = vst [vmem:[%s2018_s21 + $0x340] sm:$0xff] %v554_v40 }
  0x97   : > { %557 = vst [vmem:[%s2018_s21 + $0x348] sm:$0xff] %v556_v41 }
  0x98   : > { %559 = vst [vmem:[%s2018_s21 + $0x350] sm:$0xff] %v558_v42 }
  0x99   : > { %561 = vst [vmem:[%s2018_s21 + $0x358] sm:$0xff] %v560_v43 }
  0x9a   : > { %563 = vst [vmem:[%s2018_s21 + $0x360] sm:$0xff] %v562_v44 }
  0x9b   : > { %565 = vst [vmem:[%s2018_s21 + $0x368] sm:$0xff] %v564_v45 }
  0x9c   : > { %567 = vst [vmem:[%s2018_s21 + $0x370] sm:$0xff] %v566_v46 }
  0x9d   : > { %569 = vst [vmem:[%s2018_s21 + $0x378] sm:$0xff] %v568_v47 }
  0x9e   : > { %571 = vst [vmem:[%s2018_s21 + $0x380] sm:$0xff] %v570_v48 }
  0x9f   : > { %573 = vst [vmem:[%s2018_s21 + $0x388] sm:$0xff] %v572_v49 }
  0xa0   : > { %575 = vst [vmem:[%s2018_s21 + $0x390] sm:$0xff] %v574_v50 }
  0xa1   : > { %577 = vst [vmem:[%s2018_s21 + $0x398] sm:$0xff] %v576_v51 }
  0xa2   : > { %579 = vst [vmem:[%s2018_s21 + $0x3a0] sm:$0xff] %v578_v52 }
  0xa3   : > { %581 = vst [vmem:[%s2018_s21 + $0x3a8] sm:$0xff] %v580_v53 }
  0xa4   : > { %583 = vst [vmem:[%s2018_s21 + $0x3b0] sm:$0xff] %v582_v54 }
  0xa5   : > { %585 = vst [vmem:[%s2018_s21 + $0x3b8] sm:$0xff] %v584_v55 }
  0xa6   : > { %587 = vst [vmem:[%s2018_s21 + $0x3c0] sm:$0xff] %v586_v56 }
  0xa7   : > { %589 = vst [vmem:[%s2018_s21 + $0x3c8] sm:$0xff] %v588_v57 }
  0xa8   : > { %591 = vst [vmem:[%s2018_s21 + $0x3d0] sm:$0xff] %v590_v58 }
  0xa9   : > { %593 = vst [vmem:[%s2018_s21 + $0x3d8] sm:$0xff] %v592_v59 }
  0xaa   : > { %595 = vst [vmem:[%s2018_s21 + $0x3e0] sm:$0xff] %v594_v60 }
  0xab   : > { %597 = vst [vmem:[%s2018_s21 + $0x3e8] sm:$0xff] %v596_v61 }
  0xac   : > { %599 = vst [vmem:[%s2018_s21 + $0x3f0] sm:$0xff] %v598_v62 }
  0xad   : > { %601 = vst [vmem:[%s2018_s21 + $0x3f8] sm:$0xff] %v600_v63 }
  0xae PF: > { %p1632_p0 = scmp.ge.s32.totalorder %s1866_s14, 1  ;;  %p624_p1 = scmp.lt.s32.totalorder %s1866_s14, 5 }
  0xb0   : > { %p625_p2 = pnand %p1632_p0, %p624_p1 }
  0xb1   : > { %s631_s17 = sand.u32 (!%p625_p2), 1, %s1842_s30   ;;  %s2686_s18 = sand.u32 (!%p625_p2), 1, %s1834_s28  }
  0xb2   : > { %628 = sbr.rel (%p625_p2) target bundleno = 873 (0x369), region = 71  ;;  %s1633_s22 = sshll.u32 (!%p625_p2), %s631_s17, 10 }
  0xb3   : > { %s1634_s15 = sshll.u32 (!%p625_p2), %s2686_s18, 4  ;;  %p695_p3 = scmp.lt.s32.totalorder (!%p625_p2), %s1854_s11, 1 }
  0xb4   : > { %s1640_s19 = sshll.u32 (!%p625_p2), %s1850_s10, 2  ;;  %s1641_s24 = sshll.u32 (!%p625_p2), %s1850_s10, 6 }
  0xb5   : > { %p718_p4 = scmp.lt.s32.totalorder (!%p625_p2), %s1640_s19, 7  ;;  %s2712_s0 = sld [smem:[#allocation19_spill]] (!%p625_p2) }
  0xb6   : > { %p723_p5 = scmp.lt.s32.totalorder (!%p625_p2), %s1641_s24, 127  ;;  %s2313_s17 = scalar_lea.vmem (!%p625_p2), [#allocation4], %s1633_s22 }
  0xb7   : > { %s696_s16 = scalar_select %p695_p3, %s1854_s11, 1 }
  0xb8   : > { %s2735_s19 = smov (!%p718_p4, %s1640_s19), 7  ;;  %s2737_s24 = smov (!%p723_p5, %s1641_s24), 127 }
  0xb9   : > { %s1652_s21 = sshll.u32 %s696_s16, 4  ;;  %s2285_s4 = sshll.u32 %s696_s16, 1 }
  0xba   : > { %s707_s23 = scalar_lea.vmem %s2674_s1, %s2285_s4  ;;  %s711_s29 = scalar_lea.vmem %s2675_s2, %s2285_s4 }
  0xbb   : > { %s2290_s30 = scalar_lea.vmem %s2712_s0, %s1652_s21  ;;  %s715_s16 = scalar_lea.vmem %s2676_s3, %s2285_s4 }
  0xbc   : > { %s720_s12 = scalar_lea.vmem %s2678_s5, %s2735_s19  ;;  %s1653_s13 = sshll.u32 %s2737_s24, 4 }
  0xbd   : > { %s2311_s18 = scalar_lea.vmem %s2679_s6, %s1653_s13  ;;  %s2315_s9 = scalar_lea.vmem [#allocation5], %s1634_s15 }
  0xbe   : > { %p1644_p6 = scmp.ne.s32.totalorder %s1850_s10, 0 }
  0xc0   : > { %732 = sbr.rel (%p1644_p6) target bundleno = 470 (0x1d6), region = 79 }
  0xc5   : > { %v733_v0 = vld [vmem:[%s2290_s30] sm:$0xff]  ;;  %v734_v1 = vld [vmem:[%s2290_s30 + $0x8] sm:$0xff]  ;;  %v1868_v3 = vmov 256.0   ;;  %v1869_v17 = vmov 0.0  }
  0xc6   : > { %v735_v2 = vadd.f32 %v734_v1, %v733_v0  ;;  %1744 = vrcp.f32 %v1868_v3  ;;  %786 = vst [vmem:[#allocation3 + $0x8] sm:$0xff] %v1869_v17  ;;  %v767_v23 = vld [vmem:[%s707_s23] sm:$0x3] }
  0xc7   : > { %787 = vst [vmem:[#allocation3] sm:$0xff] %v1869_v17  ;;  %v768_v26 = vadd.f32 1.0, %v767_v23  ;;  %v776_v28 = vld [vmem:[%s711_s29] sm:$0x3] }
  0xc8   : > { %736 = vadd.xlane.f32.xlu0 %v735_v2  ;;  %v778_v33 = vperm.slane %v776_v28, 0  ;;  %v779_v34 = vperm.slane %v776_v28, 1 }
  0xc9   : > { %v770_v30 = vperm.slane %v768_v26, 0  ;;  %v771_v31 = vperm.slane %v768_v26, 1 }
  0xcc   : > { %v1745_v4 = vpop.eup %1744 }
  0xcd   : > { %v739_v5 = vmul.f32 256.0, %v1745_v4  ;;  %vm743_vm0 = vweird.f32 %v1745_v4 }
  0xcf   : > { %v740_v6 = vsub.f32 1.0, %v739_v5 }
  0xd1   : > { %v741_v7 = vmul.f32 %v1745_v4, %v740_v6 }
  0xd3   : > { %v742_v8 = vadd.f32 %v1745_v4, %v741_v7 }
  0xd5   : > { %v744_v9 = vsel %vm743_vm0, %v1745_v4, %v742_v8 }
 0x13b   : > { %v737_v10 = vpop.xlane.xlu0 %736 }
 0x13c   : > { %v745_v11 = vmul.f32 %v744_v9, %v737_v10 }
 0x13e   : > { %v746_v12 = vsub.f32 %v733_v0, %v745_v11  ;;  %v747_v13 = vsub.f32 %v734_v1, %v745_v11 }
 0x140   : > { %v748_v14 = vmul.f32 %v746_v12, %v746_v12  ;;  %v749_v15 = vmul.f32 %v747_v13, %v747_v13 }
 0x142   : > { %v750_v16 = vadd.f32 %v749_v15, %v748_v14 }
 0x144   : > { %751 = vadd.xlane.f32.xlu0 %v750_v16 }
 0x1b7   : > { %v752_v18 = vpop.xlane.xlu0 %751 }
 0x1b8   : > { %v753_v19 = vmul.f32 %v752_v18, %v744_v9 }
 0x1ba   : > { %v754_v20 = vadd.f32 1e-06, %v753_v19 }
 0x1bc   : > { %1746 = vrsqrt.f32 %v754_v20  ;;  %vm761_vm2 = vweird.f32 %v754_v20 }
 0x1c2   : > { %v1747_v21 = vpop.eup %1746 }
 0x1c3   : > { %v756_v22 = vmul.f32 %v1747_v21, %v754_v20  ;;  %vm762_vm1 = vweird.f32 %v1747_v21 }
 0x1c4   : > { %vm763_vm3 = vmor %vm761_vm2, %vm762_vm1 }
 0x1c5   : > { %v757_v24 = vmul.f32 %v1747_v21, %v756_v22 }
 0x1c7   : > { %v758_v25 = vmul.f32 0.5, %v757_v24 }
 0x1c9   : > { %v759_v27 = vsub.f32 1.5, %v758_v25 }
 0x1cb   : > { %v760_v29 = vmul.f32 %v1747_v21, %v759_v27 }
 0x1cd   : > { %v764_v32 = vsel %vm763_vm3, %v1747_v21, %v760_v29 }
 0x1ce   : > { %v765_v35 = vmul.f32 %v764_v32, %v746_v12  ;;  %v766_v36 = vmul.f32 %v764_v32, %v747_v13 }
 0x1d0   : > { %v774_v37 = vmul.f32 %v770_v30, %v765_v35  ;;  %v775_v38 = vmul.f32 %v771_v31, %v766_v36 }
 0x1d2   : > { %v782_v39 = vadd.f32 %v778_v33, %v774_v37  ;;  %v783_v40 = vadd.f32 %v779_v34, %v775_v38 }
 0x1d4   : > { %784 = vst [vmem:[#allocation2] sm:$0xff] %v782_v39 }
 0x1d5   : > { %785 = vst [vmem:[#allocation2 + $0x8] sm:$0xff] %v783_v40 }
 0x1d6 PF: > { %v850_v41 = vld [vmem:[%s2313_s17 + $0x1e0] sm:$0xff]  ;;  %v851_v42 = vld [vmem:[%s2313_s17 + $0x1e8] sm:$0xff]  ;;  %v852_v40 = vld [vmem:[%s2313_s17 + $0x1f0] sm:$0xff]  ;;  %p1645_p7 = scmp.ne.s32.totalorder %s1850_s10, 1 }
 0x1d7   : > { %v846_v43 = vld [vmem:[%s2313_s17 + $0x1c0] sm:$0xff]  ;;  %928 = vmatpush.msra.mxu0 %v850_v41  ;;  %968 = vmatpush.msra.mxu2 %v851_v42  ;;  %v847_v45 = vld [vmem:[%s2313_s17 + $0x1c8] sm:$0xff]  ;;  %v853_v41 = vld [vmem:[%s2313_s17 + $0x1f8] sm:$0xff] }
 0x1d8   : > { %v914_v44 = vld [vmem:[%s2313_s17 + $0x3e0] sm:$0xff]  ;;  %v915_v46 = vld [vmem:[%s2313_s17 + $0x3e8] sm:$0xff] }
 0x1d9   : > { %948 = vmatpush.msra.mxu1 %v914_v44  ;;  %988 = vmatpush.msra.mxu3 %v915_v46  ;;  %v842_v47 = vld [vmem:[%s2313_s17 + $0x1a0] sm:$0xff]  ;;  %v843_v49 = vld [vmem:[%s2313_s17 + $0x1a8] sm:$0xff]  ;;  %v916_v46 = vld [vmem:[%s2313_s17 + $0x3f0] sm:$0xff] }
 0x1da   : > { %v910_v48 = vld [vmem:[%s2313_s17 + $0x3c0] sm:$0xff]  ;;  %929 = vmatpush.msra.mxu0 %v846_v43  ;;  %969 = vmatpush.msra.mxu2 %v847_v45  ;;  %v911_v50 = vld [vmem:[%s2313_s17 + $0x3c8] sm:$0xff]  ;;  %v848_v45 = vld [vmem:[%s2313_s17 + $0x1d0] sm:$0xff] }
 0x1db   : > { %v906_v51 = vld [vmem:[%s2313_s17 + $0x3a0] sm:$0xff]  ;;  %949 = vmatpush.msra.mxu1 %v910_v48  ;;  %989 = vmatpush.msra.mxu3 %v911_v50  ;;  %v839_v53 = vld [vmem:[%s2313_s17 + $0x188] sm:$0xff]  ;;  %v917_v48 = vld [vmem:[%s2313_s17 + $0x3f8] sm:$0xff] }
 0x1dc   : > { %v838_v52 = vld [vmem:[%s2313_s17 + $0x180] sm:$0xff]  ;;  %v907_v54 = vld [vmem:[%s2313_s17 + $0x3a8] sm:$0xff]  ;;  %930 = vmatpush.msra.mxu0 %v842_v47  ;;  %970 = vmatpush.msra.mxu2 %v843_v49  ;;  %v849_v47 = vld [vmem:[%s2313_s17 + $0x1d8] sm:$0xff] }
 0x1dd   : > { %v902_v55 = vld [vmem:[%s2313_s17 + $0x380] sm:$0xff]  ;;  %v903_v56 = vld [vmem:[%s2313_s17 + $0x388] sm:$0xff]  ;;  %950 = vmatpush.msra.mxu1 %v906_v51  ;;  %990 = vmatpush.msra.mxu3 %v907_v54  ;;  %v844_v49 = vld [vmem:[%s2313_s17 + $0x1b0] sm:$0xff] }
 0x1de   : > { %v834_v57 = vld [vmem:[%s2313_s17 + $0x160] sm:$0xff]  ;;  %v835_v58 = vld [vmem:[%s2313_s17 + $0x168] sm:$0xff]  ;;  %931 = vmatpush.msra.mxu0 %v838_v52  ;;  %971 = vmatpush.msra.mxu2 %v839_v53  ;;  %v912_v50 = vld [vmem:[%s2313_s17 + $0x3d0] sm:$0xff] }
 0x1df   : > { %v898_v59 = vld [vmem:[%s2313_s17 + $0x360] sm:$0xff]  ;;  %v899_v60 = vld [vmem:[%s2313_s17 + $0x368] sm:$0xff]  ;;  %951 = vmatpush.msra.mxu1 %v902_v55  ;;  %991 = vmatpush.msra.mxu3 %v903_v56  ;;  %v845_v51 = vld [vmem:[%s2313_s17 + $0x1b8] sm:$0xff] }
 0x1e0   : > { %v830_v61 = vld [vmem:[%s2313_s17 + $0x140] sm:$0xff]  ;;  %v831_v62 = vld [vmem:[%s2313_s17 + $0x148] sm:$0xff]  ;;  %932 = vmatpush.msra.mxu0 %v834_v57  ;;  %972 = vmatpush.msra.mxu2 %v835_v58  ;;  %v913_v52 = vld [vmem:[%s2313_s17 + $0x3d8] sm:$0xff] }
 0x1e1   : > { %v894_v63 = vld [vmem:[%s2313_s17 + $0x340] sm:$0xff]  ;;  %v895_v0 = vld [vmem:[%s2313_s17 + $0x348] sm:$0xff]  ;;  %952 = vmatpush.msra.mxu1 %v898_v59  ;;  %992 = vmatpush.msra.mxu3 %v899_v60  ;;  %v840_v53 = vld [vmem:[%s2313_s17 + $0x190] sm:$0xff] }
 0x1e2   : > { %v826_v1 = vld [vmem:[%s2313_s17 + $0x120] sm:$0xff]  ;;  %v827_v2 = vld [vmem:[%s2313_s17 + $0x128] sm:$0xff]  ;;  %933 = vmatpush.msra.mxu0 %v830_v61  ;;  %973 = vmatpush.msra.mxu2 %v831_v62  ;;  %v908_v54 = vld [vmem:[%s2313_s17 + $0x3b0] sm:$0xff] }
 0x1e3   : > { %v890_v3 = vld [vmem:[%s2313_s17 + $0x320] sm:$0xff]  ;;  %v891_v4 = vld [vmem:[%s2313_s17 + $0x328] sm:$0xff]  ;;  %953 = vmatpush.msra.mxu1 %v894_v63  ;;  %993 = vmatpush.msra.mxu3 %v895_v0  ;;  %v841_v55 = vld [vmem:[%s2313_s17 + $0x198] sm:$0xff] }
 0x1e4   : > { %v822_v5 = vld [vmem:[%s2313_s17 + $0x100] sm:$0xff]  ;;  %v823_v6 = vld [vmem:[%s2313_s17 + $0x108] sm:$0xff]  ;;  %934 = vmatpush.msra.mxu0 %v826_v1  ;;  %974 = vmatpush.msra.mxu2 %v827_v2  ;;  %v909_v56 = vld [vmem:[%s2313_s17 + $0x3b8] sm:$0xff] }
 0x1e5   : > { %v886_v7 = vld [vmem:[%s2313_s17 + $0x300] sm:$0xff]  ;;  %v887_v8 = vld [vmem:[%s2313_s17 + $0x308] sm:$0xff]  ;;  %954 = vmatpush.msra.mxu1 %v890_v3  ;;  %994 = vmatpush.msra.mxu3 %v891_v4  ;;  %v836_v57 = vld [vmem:[%s2313_s17 + $0x170] sm:$0xff] }
 0x1e6   : > { %v818_v9 = vld [vmem:[%s2313_s17 + $0xe0] sm:$0xff]  ;;  %v819_v10 = vld [vmem:[%s2313_s17 + $0xe8] sm:$0xff]  ;;  %935 = vmatpush.msra.mxu0 %v822_v5  ;;  %975 = vmatpush.msra.mxu2 %v823_v6  ;;  %v904_v58 = vld [vmem:[%s2313_s17 + $0x390] sm:$0xff] }
 0x1e7   : > { %v882_v11 = vld [vmem:[%s2313_s17 + $0x2e0] sm:$0xff]  ;;  %v883_v12 = vld [vmem:[%s2313_s17 + $0x2e8] sm:$0xff]  ;;  %955 = vmatpush.msra.mxu1 %v886_v7  ;;  %995 = vmatpush.msra.mxu3 %v887_v8  ;;  %v837_v59 = vld [vmem:[%s2313_s17 + $0x178] sm:$0xff] }
 0x1e8   : > { %v814_v13 = vld [vmem:[%s2313_s17 + $0xc0] sm:$0xff]  ;;  %v815_v14 = vld [vmem:[%s2313_s17 + $0xc8] sm:$0xff]  ;;  %936 = vmatpush.msra.mxu0 %v818_v9  ;;  %976 = vmatpush.msra.mxu2 %v819_v10  ;;  %v905_v60 = vld [vmem:[%s2313_s17 + $0x398] sm:$0xff] }
 0x1e9   : > { %v878_v15 = vld [vmem:[%s2313_s17 + $0x2c0] sm:$0xff]  ;;  %v879_v16 = vld [vmem:[%s2313_s17 + $0x2c8] sm:$0xff]  ;;  %956 = vmatpush.msra.mxu1 %v882_v11  ;;  %996 = vmatpush.msra.mxu3 %v883_v12  ;;  %v832_v61 = vld [vmem:[%s2313_s17 + $0x150] sm:$0xff] }
 0x1ea   : > { %v810_v17 = vld [vmem:[%s2313_s17 + $0xa0] sm:$0xff]  ;;  %v811_v18 = vld [vmem:[%s2313_s17 + $0xa8] sm:$0xff]  ;;  %937 = vmatpush.msra.mxu0 %v814_v13  ;;  %977 = vmatpush.msra.mxu2 %v815_v14  ;;  %v900_v62 = vld [vmem:[%s2313_s17 + $0x370] sm:$0xff] }
 0x1eb   : > { %v874_v19 = vld [vmem:[%s2313_s17 + $0x2a0] sm:$0xff]  ;;  %v875_v20 = vld [vmem:[%s2313_s17 + $0x2a8] sm:$0xff]  ;;  %957 = vmatpush.msra.mxu1 %v878_v15  ;;  %997 = vmatpush.msra.mxu3 %v879_v16  ;;  %v833_v63 = vld [vmem:[%s2313_s17 + $0x158] sm:$0xff] }
 0x1ec   : > { %v806_v21 = vld [vmem:[%s2313_s17 + $0x80] sm:$0xff]  ;;  %v807_v22 = vld [vmem:[%s2313_s17 + $0x88] sm:$0xff]  ;;  %938 = vmatpush.msra.mxu0 %v810_v17  ;;  %978 = vmatpush.msra.mxu2 %v811_v18  ;;  %v901_v0 = vld [vmem:[%s2313_s17 + $0x378] sm:$0xff] }
 0x1ed   : > { %v870_v23 = vld [vmem:[%s2313_s17 + $0x280] sm:$0xff]  ;;  %v871_v24 = vld [vmem:[%s2313_s17 + $0x288] sm:$0xff]  ;;  %958 = vmatpush.msra.mxu1 %v874_v19  ;;  %998 = vmatpush.msra.mxu3 %v875_v20  ;;  %v828_v1 = vld [vmem:[%s2313_s17 + $0x130] sm:$0xff] }
 0x1ee   : > { %v802_v25 = vld [vmem:[%s2313_s17 + $0x60] sm:$0xff]  ;;  %v803_v26 = vld [vmem:[%s2313_s17 + $0x68] sm:$0xff]  ;;  %939 = vmatpush.msra.mxu0 %v806_v21  ;;  %979 = vmatpush.msra.mxu2 %v807_v22  ;;  %v896_v2 = vld [vmem:[%s2313_s17 + $0x350] sm:$0xff] }
 0x1ef   : > { %v866_v27 = vld [vmem:[%s2313_s17 + $0x260] sm:$0xff]  ;;  %v867_v28 = vld [vmem:[%s2313_s17 + $0x268] sm:$0xff]  ;;  %959 = vmatpush.msra.mxu1 %v870_v23  ;;  %999 = vmatpush.msra.mxu3 %v871_v24  ;;  %v829_v3 = vld [vmem:[%s2313_s17 + $0x138] sm:$0xff] }
 0x1f0   : > { %v798_v29 = vld [vmem:[%s2313_s17 + $0x40] sm:$0xff]  ;;  %v799_v30 = vld [vmem:[%s2313_s17 + $0x48] sm:$0xff]  ;;  %940 = vmatpush.msra.mxu0 %v802_v25  ;;  %980 = vmatpush.msra.mxu2 %v803_v26  ;;  %v897_v4 = vld [vmem:[%s2313_s17 + $0x358] sm:$0xff] }
 0x1f1   : > { %v862_v31 = vld [vmem:[%s2313_s17 + $0x240] sm:$0xff]  ;;  %v863_v32 = vld [vmem:[%s2313_s17 + $0x248] sm:$0xff]  ;;  %960 = vmatpush.msra.mxu1 %v866_v27  ;;  %1000 = vmatpush.msra.mxu3 %v867_v28  ;;  %v824_v5 = vld [vmem:[%s2313_s17 + $0x110] sm:$0xff] }
 0x1f2   : > { %v794_v33 = vld [vmem:[%s2313_s17 + $0x20] sm:$0xff]  ;;  %v795_v34 = vld [vmem:[%s2313_s17 + $0x28] sm:$0xff]  ;;  %941 = vmatpush.msra.mxu0 %v798_v29  ;;  %981 = vmatpush.msra.mxu2 %v799_v30  ;;  %v892_v6 = vld [vmem:[%s2313_s17 + $0x330] sm:$0xff] }
 0x1f3   : > { %v858_v35 = vld [vmem:[%s2313_s17 + $0x220] sm:$0xff]  ;;  %v859_v36 = vld [vmem:[%s2313_s17 + $0x228] sm:$0xff]  ;;  %961 = vmatpush.msra.mxu1 %v862_v31  ;;  %1001 = vmatpush.msra.mxu3 %v863_v32  ;;  %v825_v7 = vld [vmem:[%s2313_s17 + $0x118] sm:$0xff] }
 0x1f4   : > { %v790_v37 = vld [vmem:[%s2313_s17] sm:$0xff]  ;;  %v791_v38 = vld [vmem:[%s2313_s17 + $0x8] sm:$0xff]  ;;  %942 = vmatpush.msra.mxu0 %v794_v33  ;;  %982 = vmatpush.msra.mxu2 %v795_v34  ;;  %v893_v8 = vld [vmem:[%s2313_s17 + $0x338] sm:$0xff] }
 0x1f5   : > { %v2392_v39 = vld [vmem:[#allocation2] sm:$0xff]  ;;  %962 = vmatpush.msra.mxu1 %v858_v35  ;;  %1002 = vmatpush.msra.mxu3 %v859_v36  ;;  %v855_v43 = vld [vmem:[%s2313_s17 + $0x208] sm:$0xff]  ;;  %v820_v9 = vld [vmem:[%s2313_s17 + $0xf0] sm:$0xff] }
 0x1f6   : > { %v854_v42 = vld [vmem:[%s2313_s17 + $0x200] sm:$0xff]  ;;  %943 = vmatpush.msra.mxu0 %v790_v37  ;;  %983 = vmatpush.msra.mxu2 %v791_v38  ;;  %v2399_v44 = vld [vmem:[#allocation2 + $0x8] sm:$0xff]  ;;  %v888_v10 = vld [vmem:[%s2313_s17 + $0x310] sm:$0xff] }
 0x1f7   : > { %984 = vmatmul.f32.vlgmr.msra.gmra.mxu2 %v2392_v39  ;;  %963 = vmatpush.msra.mxu1 %v854_v42  ;;  %v821_v11 = vld [vmem:[%s2313_s17 + $0xf8] sm:$0xff]  ;;  %v816_v13 = vld [vmem:[%s2313_s17 + $0xd0] sm:$0xff] }
 0x1f8   : > { %1008 = vmatpush.msrb.mxu0 %v852_v40  ;;  %1048 = vmatpush.msrb.mxu2 %v853_v41  ;;  %v889_v12 = vld [vmem:[%s2313_s17 + $0x318] sm:$0xff]  ;;  %v884_v14 = vld [vmem:[%s2313_s17 + $0x2f0] sm:$0xff] }
 0x1f9   : > { %1003 = vmatpush.msra.mxu3 %v855_v43  ;;  %944 = vmatmul.f32.vlgmr.msra.gmra.mxu0 %v2392_v39  ;;  %v817_v15 = vld [vmem:[%s2313_s17 + $0xd8] sm:$0xff]  ;;  %v812_v17 = vld [vmem:[%s2313_s17 + $0xb0] sm:$0xff] }
 0x1fa   : > { %1004 = vmatmul.f32.vlgmr.msra.gmra.mxu3 %v2399_v44  ;;  %1009 = vmatpush.msrb.mxu0 %v848_v45  ;;  %v885_v16 = vld [vmem:[%s2313_s17 + $0x2f8] sm:$0xff]  ;;  %v880_v18 = vld [vmem:[%s2313_s17 + $0x2d0] sm:$0xff] }
 0x1fb   : > { %1028 = vmatpush.msrb.mxu1 %v916_v46  ;;  %1049 = vmatpush.msrb.mxu2 %v849_v47  ;;  %v813_v19 = vld [vmem:[%s2313_s17 + $0xb8] sm:$0xff]  ;;  %v808_v21 = vld [vmem:[%s2313_s17 + $0x90] sm:$0xff]  ;;  %v1154_v47 = vld [vmem:[%s2311_s18 + $0xe0] sm:$0xff] }
 0x1fc   : > { %1068 = vmatpush.msrb.mxu3 %v917_v48  ;;  %964 = vmatmul.f32.vlgmr.msra.gmra.mxu1 %v2399_v44  ;;  %v881_v20 = vld [vmem:[%s2313_s17 + $0x2d8] sm:$0xff]  ;;  %v876_v22 = vld [vmem:[%s2313_s17 + $0x2b0] sm:$0xff]  ;;  %v1186_v48 = vld [vmem:[%s2311_s18 + $0x1e0] sm:$0xff] }
 0x1fd   : > { %1010 = vmatpush.msrb.mxu0 %v844_v49  ;;  %1029 = vmatpush.msrb.mxu1 %v912_v50  ;;  %v809_v23 = vld [vmem:[%s2313_s17 + $0x98] sm:$0xff]  ;;  %v804_v25 = vld [vmem:[%s2313_s17 + $0x70] sm:$0xff]  ;;  %v1150_v50 = vld [vmem:[%s2311_s18 + $0xc0] sm:$0xff] }
 0x1fe   : > { %1050 = vmatpush.msrb.mxu2 %v845_v51  ;;  %1069 = vmatpush.msrb.mxu3 %v913_v52  ;;  %v877_v24 = vld [vmem:[%s2313_s17 + $0x2b8] sm:$0xff]  ;;  %v872_v26 = vld [vmem:[%s2313_s17 + $0x290] sm:$0xff]  ;;  %v1182_v51 = vld [vmem:[%s2311_s18 + $0x1c0] sm:$0xff] }
 0x1ff   : > { %1011 = vmatpush.msrb.mxu0 %v840_v53  ;;  %1030 = vmatpush.msrb.mxu1 %v908_v54  ;;  %v805_v27 = vld [vmem:[%s2313_s17 + $0x78] sm:$0xff]  ;;  %v800_v29 = vld [vmem:[%s2313_s17 + $0x50] sm:$0xff]  ;;  %v1146_v53 = vld [vmem:[%s2311_s18 + $0xa0] sm:$0xff] }
 0x200   : > { %1051 = vmatpush.msrb.mxu2 %v841_v55  ;;  %1070 = vmatpush.msrb.mxu3 %v909_v56  ;;  %v873_v28 = vld [vmem:[%s2313_s17 + $0x298] sm:$0xff]  ;;  %v868_v30 = vld [vmem:[%s2313_s17 + $0x270] sm:$0xff]  ;;  %v1178_v54 = vld [vmem:[%s2311_s18 + $0x1a0] sm:$0xff] }
 0x201   : > { %1012 = vmatpush.msrb.mxu0 %v836_v57  ;;  %1031 = vmatpush.msrb.mxu1 %v904_v58  ;;  %v801_v31 = vld [vmem:[%s2313_s17 + $0x58] sm:$0xff]  ;;  %v796_v33 = vld [vmem:[%s2313_s17 + $0x30] sm:$0xff]  ;;  %v1142_v57 = vld [vmem:[%s2311_s18 + $0x80] sm:$0xff] }
 0x202   : > { %1052 = vmatpush.msrb.mxu2 %v837_v59  ;;  %1071 = vmatpush.msrb.mxu3 %v905_v60  ;;  %v869_v32 = vld [vmem:[%s2313_s17 + $0x278] sm:$0xff]  ;;  %v864_v34 = vld [vmem:[%s2313_s17 + $0x250] sm:$0xff]  ;;  %v1174_v58 = vld [vmem:[%s2311_s18 + $0x180] sm:$0xff] }
 0x203   : > { %1013 = vmatpush.msrb.mxu0 %v832_v61  ;;  %1032 = vmatpush.msrb.mxu1 %v900_v62  ;;  %v797_v35 = vld [vmem:[%s2313_s17 + $0x38] sm:$0xff]  ;;  %v792_v37 = vld [vmem:[%s2313_s17 + $0x10] sm:$0xff]  ;;  %v1138_v61 = vld [vmem:[%s2311_s18 + $0x60] sm:$0xff] }
 0x204   : > { %1053 = vmatpush.msrb.mxu2 %v833_v63  ;;  %1072 = vmatpush.msrb.mxu3 %v901_v0  ;;  %v865_v36 = vld [vmem:[%s2313_s17 + $0x258] sm:$0xff]  ;;  %v860_v38 = vld [vmem:[%s2313_s17 + $0x230] sm:$0xff]  ;;  %v1170_v62 = vld [vmem:[%s2311_s18 + $0x160] sm:$0xff] }
 0x205   : > { %1014 = vmatpush.msrb.mxu0 %v828_v1  ;;  %1033 = vmatpush.msrb.mxu1 %v896_v2  ;;  %v793_v40 = vld [vmem:[%s2313_s17 + $0x18] sm:$0xff]  ;;  %v856_v42 = vld [vmem:[%s2313_s17 + $0x210] sm:$0xff]  ;;  %v1134_v1 = vld [vmem:[%s2311_s18 + $0x40] sm:$0xff] }
 0x206   : > { %1054 = vmatpush.msrb.mxu2 %v829_v3  ;;  %1073 = vmatpush.msrb.mxu3 %v897_v4  ;;  %v861_v41 = vld [vmem:[%s2313_s17 + $0x238] sm:$0xff]  ;;  %v1156_v45 = vld [vmem:[%s2311_s18 + $0xf0] sm:$0xff]  ;;  %v1166_v2 = vld [vmem:[%s2311_s18 + $0x140] sm:$0xff] }
 0x207   : > { %1015 = vmatpush.msrb.mxu0 %v824_v5  ;;  %1034 = vmatpush.msrb.mxu1 %v892_v6  ;;  %v857_v43 = vld [vmem:[%s2313_s17 + $0x218] sm:$0xff]  ;;  %v1188_v46 = vld [vmem:[%s2311_s18 + $0x1f0] sm:$0xff]  ;;  %v1130_v4 = vld [vmem:[%s2311_s18 + $0x20] sm:$0xff] }
 0x208   : > { %1055 = vmatpush.msrb.mxu2 %v825_v7  ;;  %1074 = vmatpush.msrb.mxu3 %v893_v8  ;;  %v1152_v49 = vld [vmem:[%s2311_s18 + $0xd0] sm:$0xff]  ;;  %v1126_v8 = vld [vmem:[%s2311_s18] sm:$0xff] }
 0x209   : > { %1016 = vmatpush.msrb.mxu0 %v820_v9  ;;  %1035 = vmatpush.msrb.mxu1 %v888_v10  ;;  %v1148_v52 = vld [vmem:[%s2311_s18 + $0xb0] sm:$0xff]  ;;  %v1162_v9 = vld [vmem:[%s2311_s18 + $0x120] sm:$0xff] }
 0x20a   : > { %1056 = vmatpush.msrb.mxu2 %v821_v11  ;;  %1075 = vmatpush.msrb.mxu3 %v889_v12  ;;  %v1144_v55 = vld [vmem:[%s2311_s18 + $0x90] sm:$0xff]  ;;  %v1218_v10 = vld [vmem:[%s2311_s18 + $0x2e0] sm:$0xff]  ;;  %v1157_v11 = vld [vmem:[%s2311_s18 + $0xf8] sm:$0xff] }
 0x20b   : > { %1017 = vmatpush.msrb.mxu0 %v816_v13  ;;  %1036 = vmatpush.msrb.mxu1 %v884_v14  ;;  %v1176_v56 = vld [vmem:[%s2311_s18 + $0x190] sm:$0xff]  ;;  %v1155_v14 = vld [vmem:[%s2311_s18 + $0xe8] sm:$0xff] }
 0x20c   : > { %1057 = vmatpush.msrb.mxu2 %v817_v15  ;;  %1076 = vmatpush.msrb.mxu3 %v885_v16  ;;  %v1140_v59 = vld [vmem:[%s2311_s18 + $0x70] sm:$0xff]  ;;  %v1158_v15 = vld [vmem:[%s2311_s18 + $0x100] sm:$0xff] }
 0x20d   : > { %1018 = vmatpush.msrb.mxu0 %v812_v17  ;;  %1037 = vmatpush.msrb.mxu1 %v880_v18  ;;  %v1172_v60 = vld [vmem:[%s2311_s18 + $0x170] sm:$0xff]  ;;  %v1214_v16 = vld [vmem:[%s2311_s18 + $0x2c0] sm:$0xff]  ;;  %v1153_v18 = vld [vmem:[%s2311_s18 + $0xd8] sm:$0xff] }
 0x20e   : > { %1058 = vmatpush.msrb.mxu2 %v813_v19  ;;  %1077 = vmatpush.msrb.mxu3 %v881_v20  ;;  %v1136_v63 = vld [vmem:[%s2311_s18 + $0x50] sm:$0xff]  ;;  %v1189_v19 = vld [vmem:[%s2311_s18 + $0x1f8] sm:$0xff] }
 0x20f   : > { %1019 = vmatpush.msrb.mxu0 %v808_v21  ;;  %1038 = vmatpush.msrb.mxu1 %v876_v22  ;;  %v1168_v0 = vld [vmem:[%s2311_s18 + $0x150] sm:$0xff]  ;;  %v1250_v21 = vld [vmem:[%s2311_s18 + $0x3e0] sm:$0xff]  ;;  %v1151_v22 = vld [vmem:[%s2311_s18 + $0xc8] sm:$0xff] }
 0x210   : > { %1059 = vmatpush.msrb.mxu2 %v809_v23  ;;  %1078 = vmatpush.msrb.mxu3 %v877_v24  ;;  %v1132_v3 = vld [vmem:[%s2311_s18 + $0x30] sm:$0xff]  ;;  %v1187_v23 = vld [vmem:[%s2311_s18 + $0x1e8] sm:$0xff]  ;;  %v1210_v24 = vld [vmem:[%s2311_s18 + $0x2a0] sm:$0xff] }
 0x211   : > { %1020 = vmatpush.msrb.mxu0 %v804_v25  ;;  %1039 = vmatpush.msrb.mxu1 %v872_v26  ;;  %v1128_v5 = vld [vmem:[%s2311_s18 + $0x10] sm:$0xff]  ;;  %v1149_v26 = vld [vmem:[%s2311_s18 + $0xb8] sm:$0xff] }
 0x212   : > { %1060 = vmatpush.msrb.mxu2 %v805_v27  ;;  %1079 = vmatpush.msrb.mxu3 %v873_v28  ;;  %v1164_v6 = vld [vmem:[%s2311_s18 + $0x130] sm:$0xff]  ;;  %v1185_v27 = vld [vmem:[%s2311_s18 + $0x1d8] sm:$0xff] }
 0x213   : > { %1021 = vmatpush.msrb.mxu0 %v800_v29  ;;  %1040 = vmatpush.msrb.mxu1 %v868_v30  ;;  %v1220_v7 = vld [vmem:[%s2311_s18 + $0x2f0] sm:$0xff]  ;;  %v1246_v29 = vld [vmem:[%s2311_s18 + $0x3c0] sm:$0xff]  ;;  %v1147_v30 = vld [vmem:[%s2311_s18 + $0xa8] sm:$0xff] }
 0x214   : > { %1061 = vmatpush.msrb.mxu2 %v801_v31  ;;  %1080 = vmatpush.msrb.mxu3 %v869_v32  ;;  %v1160_v12 = vld [vmem:[%s2311_s18 + $0x110] sm:$0xff]  ;;  %v1183_v31 = vld [vmem:[%s2311_s18 + $0x1c8] sm:$0xff]  ;;  %v1206_v32 = vld [vmem:[%s2311_s18 + $0x280] sm:$0xff] }
 0x215   : > { %1022 = vmatpush.msrb.mxu0 %v796_v33  ;;  %1041 = vmatpush.msrb.mxu1 %v864_v34  ;;  %v1216_v13 = vld [vmem:[%s2311_s18 + $0x2d0] sm:$0xff]  ;;  %v1145_v34 = vld [vmem:[%s2311_s18 + $0x98] sm:$0xff] }
 0x216   : > { %1062 = vmatpush.msrb.mxu2 %v797_v35  ;;  %1081 = vmatpush.msrb.mxu3 %v865_v36  ;;  %v1252_v17 = vld [vmem:[%s2311_s18 + $0x3f0] sm:$0xff]  ;;  %v1181_v35 = vld [vmem:[%s2311_s18 + $0x1b8] sm:$0xff] }
 0x217   : > { %1023 = vmatpush.msrb.mxu0 %v792_v37  ;;  %1042 = vmatpush.msrb.mxu1 %v860_v38  ;;  %v1212_v20 = vld [vmem:[%s2311_s18 + $0x2b0] sm:$0xff]  ;;  %v1242_v37 = vld [vmem:[%s2311_s18 + $0x3a0] sm:$0xff]  ;;  %v1143_v38 = vld [vmem:[%s2311_s18 + $0x88] sm:$0xff] }
 0x218   : > { %1063 = vmatpush.msrb.mxu2 %v793_v40  ;;  %1082 = vmatpush.msrb.mxu3 %v861_v41  ;;  %v1248_v25 = vld [vmem:[%s2311_s18 + $0x3d0] sm:$0xff]  ;;  %v1179_v40 = vld [vmem:[%s2311_s18 + $0x1a8] sm:$0xff]  ;;  %v1202_v41 = vld [vmem:[%s2311_s18 + $0x260] sm:$0xff] }
 0x219   : > { %1024 = vmatmul.f32.vlgmr.msrb.gmra.mxu0 %v2392_v39  ;;  %1064 = vmatmul.f32.vlgmr.msrb.gmra.mxu2 %v2392_v39  ;;  %v1184_v39 = vld [vmem:[%s2311_s18 + $0x1d0] sm:$0xff] }
 0x21a   : > { %1043 = vmatpush.msrb.mxu1 %v856_v42  ;;  %1083 = vmatpush.msrb.mxu3 %v857_v43  ;;  %v1208_v28 = vld [vmem:[%s2311_s18 + $0x290] sm:$0xff]  ;;  %v1141_v43 = vld [vmem:[%s2311_s18 + $0x78] sm:$0xff] }
 0x21b   : > { %1044 = vmatmul.f32.vlgmr.msrb.gmra.mxu1 %v2399_v44  ;;  %1084 = vmatmul.f32.vlgmr.msrb.gmra.mxu3 %v2399_v44  ;;  %v1180_v44 = vld [vmem:[%s2311_s18 + $0x1b0] sm:$0xff] }
 0x21c   : > { %1254 = vmatpush.msra.mxu0 %v1156_v45  ;;  %1274 = vmatpush.msra.mxu1 %v1188_v46  ;;  %v1244_v33 = vld [vmem:[%s2311_s18 + $0x3b0] sm:$0xff]  ;;  %v1177_v45 = vld [vmem:[%s2311_s18 + $0x198] sm:$0xff] }
 0x21d   : > { %1294 = vmatpush.msra.mxu2 %v1220_v7  ;;  %1314 = vmatpush.msra.mxu3 %v1252_v17  ;;  %v1204_v36 = vld [vmem:[%s2311_s18 + $0x270] sm:$0xff]  ;;  %v1129_v7 = vld [vmem:[%s2311_s18 + $0x18] sm:$0xff] }
 0x21e   : > { %1255 = vmatpush.msra.mxu0 %v1154_v47  ;;  %1275 = vmatpush.msra.mxu1 %v1186_v48  ;;  %v1240_v42 = vld [vmem:[%s2311_s18 + $0x390] sm:$0xff]  ;;  %v1238_v47 = vld [vmem:[%s2311_s18 + $0x380] sm:$0xff]  ;;  %v1139_v48 = vld [vmem:[%s2311_s18 + $0x68] sm:$0xff] }
 0x21f   : > { %1295 = vmatpush.msra.mxu2 %v1218_v10  ;;  %1315 = vmatpush.msra.mxu3 %v1250_v21  ;;  %v1200_v46 = vld [vmem:[%s2311_s18 + $0x250] sm:$0xff]  ;;  %v1217_v21 = vld [vmem:[%s2311_s18 + $0x2d8] sm:$0xff] }
 0x220   : > { %1256 = vmatpush.msra.mxu0 %v1152_v49  ;;  %1276 = vmatpush.msra.mxu1 %v1184_v39  ;;  %v1175_v49 = vld [vmem:[%s2311_s18 + $0x188] sm:$0xff]  ;;  %v1198_v39 = vld [vmem:[%s2311_s18 + $0x240] sm:$0xff] }
 0x221   : > { %1296 = vmatpush.msra.mxu2 %v1216_v13  ;;  %1316 = vmatpush.msra.mxu3 %v1248_v25  ;;  %v1163_v13 = vld [vmem:[%s2311_s18 + $0x128] sm:$0xff] }
 0x222   : > { %1257 = vmatpush.msra.mxu0 %v1150_v50  ;;  %1277 = vmatpush.msra.mxu1 %v1182_v51  ;;  %v1236_v50 = vld [vmem:[%s2311_s18 + $0x370] sm:$0xff]  ;;  %v1137_v51 = vld [vmem:[%s2311_s18 + $0x58] sm:$0xff] }
 0x223   : > { %1297 = vmatpush.msra.mxu2 %v1214_v16  ;;  %1317 = vmatpush.msra.mxu3 %v1246_v29  ;;  %v1219_v16 = vld [vmem:[%s2311_s18 + $0x2e8] sm:$0xff] }
 0x224   : > { %1258 = vmatpush.msra.mxu0 %v1148_v52  ;;  %1278 = vmatpush.msra.mxu1 %v1180_v44  ;;  %v1173_v52 = vld [vmem:[%s2311_s18 + $0x178] sm:$0xff]  ;;  %v1196_v44 = vld [vmem:[%s2311_s18 + $0x230] sm:$0xff] }
 0x225   : > { %1298 = vmatpush.msra.mxu2 %v1212_v20  ;;  %1318 = vmatpush.msra.mxu3 %v1244_v33 }
 0x226   : > { %1259 = vmatpush.msra.mxu0 %v1146_v53  ;;  %1279 = vmatpush.msra.mxu1 %v1178_v54  ;;  %v1234_v53 = vld [vmem:[%s2311_s18 + $0x360] sm:$0xff] }
 0x227   : > { %1299 = vmatpush.msra.mxu2 %v1210_v24  ;;  %1319 = vmatpush.msra.mxu3 %v1242_v37  ;;  %v2550_v54 = vld [vmem:[%s720_s12] sm:$0xf]  ;;  %v1159_v24 = vld [vmem:[%s2311_s18 + $0x108] sm:$0xff] }
 0x228   : > { %1260 = vmatpush.msra.mxu0 %v1144_v55  ;;  %1280 = vmatpush.msra.mxu1 %v1176_v56  ;;  %v1135_v55 = vld [vmem:[%s2311_s18 + $0x48] sm:$0xff] }
 0x229   : > { %1300 = vmatpush.msra.mxu2 %v1208_v28  ;;  %1320 = vmatpush.msra.mxu3 %v1240_v42  ;;  %v1171_v56 = vld [vmem:[%s2311_s18 + $0x168] sm:$0xff]  ;;  %v1253_v28 = vld [vmem:[%s2311_s18 + $0x3f8] sm:$0xff] }
 0x22a   : > { %1261 = vmatpush.msra.mxu0 %v1142_v57  ;;  %1281 = vmatpush.msra.mxu1 %v1174_v58  ;;  %v1194_v57 = vld [vmem:[%s2311_s18 + $0x220] sm:$0xff]  ;;  %v1232_v58 = vld [vmem:[%s2311_s18 + $0x350] sm:$0xff]  ;;  %v1207_v42 = vld [vmem:[%s2311_s18 + $0x288] sm:$0xff] }
 0x22b   : > { %1301 = vmatpush.msra.mxu2 %v1206_v32  ;;  %1321 = vmatpush.msra.mxu3 %v1238_v47  ;;  %v1251_v32 = vld [vmem:[%s2311_s18 + $0x3e8] sm:$0xff]  ;;  %v1205_v47 = vld [vmem:[%s2311_s18 + $0x278] sm:$0xff] }
 0x22c   : > { %1262 = vmatpush.msra.mxu0 %v1140_v59  ;;  %1282 = vmatpush.msra.mxu1 %v1172_v60  ;;  %v1133_v59 = vld [vmem:[%s2311_s18 + $0x38] sm:$0xff] }
 0x22d   : > { %1302 = vmatpush.msra.mxu2 %v1204_v36  ;;  %1322 = vmatpush.msra.mxu3 %v1236_v50  ;;  %v1169_v60 = vld [vmem:[%s2311_s18 + $0x158] sm:$0xff]  ;;  %v1239_v50 = vld [vmem:[%s2311_s18 + $0x388] sm:$0xff] }
 0x22e   : > { %1263 = vmatpush.msra.mxu0 %v1138_v61  ;;  %1283 = vmatpush.msra.mxu1 %v1170_v62  ;;  %v920_v61 = vperm.slane %v2550_v54, 0  ;;  %v1192_v62 = vld [vmem:[%s2311_s18 + $0x210] sm:$0xff]  ;;  %v1249_v36 = vld [vmem:[%s2311_s18 + $0x3d8] sm:$0xff] }
 0x22f   : > { %1303 = vmatpush.msra.mxu2 %v1202_v41  ;;  %1323 = vmatpush.msra.mxu3 %v1234_v53  ;;  %v1247_v41 = vld [vmem:[%s2311_s18 + $0x3c8] sm:$0xff]  ;;  %v1237_v53 = vld [vmem:[%s2311_s18 + $0x378] sm:$0xff] }
 0x230   : > { %1264 = vmatpush.msra.mxu0 %v1136_v63  ;;  %1284 = vmatpush.msra.mxu1 %v1168_v0  ;;  %v1230_v63 = vld [vmem:[%s2311_s18 + $0x340] sm:$0xff]  ;;  %v1131_v0 = vld [vmem:[%s2311_s18 + $0x28] sm:$0xff] }
 0x231   : > { %1304 = vmatpush.msra.mxu2 %v1200_v46  ;;  %1324 = vmatpush.msra.mxu3 %v1232_v58  ;;  %v1243_v46 = vld [vmem:[%s2311_s18 + $0x3a8] sm:$0xff] }
 0x232   : > { %1265 = vmatpush.msra.mxu0 %v1134_v1  ;;  %1285 = vmatpush.msra.mxu1 %v1166_v2  ;;  %v1167_v2 = vld [vmem:[%s2311_s18 + $0x148] sm:$0xff] }
 0x233   : > { %1305 = vmatpush.msra.mxu2 %v1198_v39  ;;  %1325 = vmatpush.msra.mxu3 %v1230_v63  ;;  %v1203_v39 = vld [vmem:[%s2311_s18 + $0x268] sm:$0xff] }
 0x234   : > { %1266 = vmatpush.msra.mxu0 %v1132_v3  ;;  %1286 = vmatpush.msra.mxu1 %v1164_v6  ;;  %v1228_v6 = vld [vmem:[%s2311_s18 + $0x330] sm:$0xff]  ;;  %v1195_v63 = vld [vmem:[%s2311_s18 + $0x228] sm:$0xff] }
 0x235   : > { %1306 = vmatpush.msra.mxu2 %v1196_v44  ;;  %1326 = vmatpush.msra.mxu3 %v1228_v6  ;;  %v1191_v6 = vld [vmem:[%s2311_s18 + $0x208] sm:$0xff] }
 0x236   : > { %1267 = vmatpush.msra.mxu0 %v1130_v4  ;;  %1287 = vmatpush.msra.mxu1 %v1162_v9  ;;  %v921_v4 = vperm.slane %v2550_v54, 1  ;;  %v1221_v9 = vld [vmem:[%s2311_s18 + $0x2f8] sm:$0xff] }
 0x237   : > { %1307 = vmatpush.msra.mxu2 %v1194_v57 }
 0x238   : > { %1268 = vmatpush.msra.mxu0 %v1128_v5  ;;  %1288 = vmatpush.msra.mxu1 %v1160_v12  ;;  %v1190_v5 = vld [vmem:[%s2311_s18 + $0x200] sm:$0xff]  ;;  %v1127_v12 = vld [vmem:[%s2311_s18 + $0x8] sm:$0xff] }
 0x239   : > { %1308 = vmatpush.msra.mxu2 %v1192_v62 }
 0x23a   : > { %1269 = vmatpush.msra.mxu0 %v1126_v8  ;;  %1289 = vmatpush.msra.mxu1 %v1158_v15  ;;  %v1165_v8 = vld [vmem:[%s2311_s18 + $0x138] sm:$0xff] }
 0x23b   : > { %1309 = vmatpush.msra.mxu2 %v1190_v5 }
 0x23c   : > { %1334 = vmatpush.msrb.mxu0 %v1157_v11  ;;  %1354 = vmatpush.msrb.mxu1 %v1189_v19  ;;  %v1226_v11 = vld [vmem:[%s2311_s18 + $0x320] sm:$0xff]  ;;  %v1161_v19 = vld [vmem:[%s2311_s18 + $0x118] sm:$0xff] }
 0x23d   : > { %1374 = vmatpush.msrb.mxu2 %v1221_v9  ;;  %1327 = vmatpush.msra.mxu3 %v1226_v11  ;;  %v1225_v11 = vld [vmem:[%s2311_s18 + $0x318] sm:$0xff] }
 0x23e   : > { %1335 = vmatpush.msrb.mxu0 %v1155_v14  ;;  %1355 = vmatpush.msrb.mxu1 %v1187_v23  ;;  %v1222_v23 = vld [vmem:[%s2311_s18 + $0x300] sm:$0xff] }
 0x23f   : > { %1375 = vmatpush.msrb.mxu2 %v1219_v16 }
 0x240   : > { %1336 = vmatpush.msrb.mxu0 %v1153_v18  ;;  %1356 = vmatpush.msrb.mxu1 %v1185_v27  ;;  %v1224_v18 = vld [vmem:[%s2311_s18 + $0x310] sm:$0xff]  ;;  %v1215_v27 = vld [vmem:[%s2311_s18 + $0x2c8] sm:$0xff] }
 0x241   : > { %1328 = vmatpush.msra.mxu3 %v1224_v18  ;;  %1376 = vmatpush.msrb.mxu2 %v1217_v21 }
 0x242   : > { %1337 = vmatpush.msrb.mxu0 %v1151_v22  ;;  %1357 = vmatpush.msrb.mxu1 %v1183_v31  ;;  %v1213_v31 = vld [vmem:[%s2311_s18 + $0x2b8] sm:$0xff] }
 0x243   : > { %1329 = vmatpush.msra.mxu3 %v1222_v23  ;;  %1377 = vmatpush.msrb.mxu2 %v1215_v27 }
 0x244   : > { %1338 = vmatpush.msrb.mxu0 %v1149_v26  ;;  %1358 = vmatpush.msrb.mxu1 %v1181_v35  ;;  %v1211_v35 = vld [vmem:[%s2311_s18 + $0x2a8] sm:$0xff] }
 0x245   : > { %1394 = vmatpush.msrb.mxu3 %v1253_v28  ;;  %1378 = vmatpush.msrb.mxu2 %v1213_v31 }
 0x246   : > { %1339 = vmatpush.msrb.mxu0 %v1147_v30  ;;  %1359 = vmatpush.msrb.mxu1 %v1179_v40  ;;  %v1209_v40 = vld [vmem:[%s2311_s18 + $0x298] sm:$0xff] }
 0x247   : > { %1395 = vmatpush.msrb.mxu3 %v1251_v32  ;;  %1379 = vmatpush.msrb.mxu2 %v1211_v35 }
 0x248   : > { %1340 = vmatpush.msrb.mxu0 %v1145_v34  ;;  %1360 = vmatpush.msrb.mxu1 %v1177_v45 }
 0x249   : > { %1396 = vmatpush.msrb.mxu3 %v1249_v36  ;;  %1380 = vmatpush.msrb.mxu2 %v1209_v40 }
 0x24a   : > { %1341 = vmatpush.msrb.mxu0 %v1143_v38  ;;  %1361 = vmatpush.msrb.mxu1 %v1175_v49  ;;  %v1241_v49 = vld [vmem:[%s2311_s18 + $0x398] sm:$0xff] }
 0x24b   : > { %1397 = vmatpush.msrb.mxu3 %v1247_v41  ;;  %1381 = vmatpush.msrb.mxu2 %v1207_v42  ;;  %v1124_v42 = vld [vmem:[#allocation3 + $0x8] sm:$0xff] }
 0x24c   : > { %1342 = vmatpush.msrb.mxu0 %v1141_v43  ;;  %1362 = vmatpush.msrb.mxu1 %v1173_v52  ;;  %v1245_v43 = vld [vmem:[%s2311_s18 + $0x3b8] sm:$0xff] }
 0x24d   : > { %1398 = vmatpush.msrb.mxu3 %v1245_v43  ;;  %1382 = vmatpush.msrb.mxu2 %v1205_v47  ;;  %v1201_v52 = vld [vmem:[%s2311_s18 + $0x258] sm:$0xff] }
 0x24e   : > { %1343 = vmatpush.msrb.mxu0 %v1139_v48  ;;  %1363 = vmatpush.msrb.mxu1 %v1171_v56  ;;  %v1199_v56 = vld [vmem:[%s2311_s18 + $0x248] sm:$0xff] }
 0x24f   : > { %1399 = vmatpush.msrb.mxu3 %v1243_v46  ;;  %1383 = vmatpush.msrb.mxu2 %v1203_v39 }
 0x250   : > { %1344 = vmatpush.msrb.mxu0 %v1137_v51  ;;  %1364 = vmatpush.msrb.mxu1 %v1169_v60  ;;  %v1197_v60 = vld [vmem:[%s2311_s18 + $0x238] sm:$0xff] }
 0x251   : > { %1400 = vmatpush.msrb.mxu3 %v1241_v49  ;;  %1384 = vmatpush.msrb.mxu2 %v1201_v52 }
 0x252   : > { %1345 = vmatpush.msrb.mxu0 %v1135_v55  ;;  %1365 = vmatpush.msrb.mxu1 %v1167_v2  ;;  %v922_v2 = vperm.slane %v2550_v54, 2 }
 0x253   : > { %1401 = vmatpush.msrb.mxu3 %v1239_v50  ;;  %1385 = vmatpush.msrb.mxu2 %v1199_v56 }
 0x254   : > { %1346 = vmatpush.msrb.mxu0 %v1133_v59  ;;  %1366 = vmatpush.msrb.mxu1 %v1165_v8 }
 0x255   : > { %1402 = vmatpush.msrb.mxu3 %v1237_v53  ;;  %1386 = vmatpush.msrb.mxu2 %v1197_v60 }
 0x256   : > { %1347 = vmatpush.msrb.mxu0 %v1131_v0  ;;  %1367 = vmatpush.msrb.mxu1 %v1163_v13  ;;  %v1233_v0 = vld [vmem:[%s2311_s18 + $0x358] sm:$0xff]  ;;  %v923_v13 = vperm.slane %v2550_v54, 3 }
 0x257   : > { %1387 = vmatpush.msrb.mxu2 %v1195_v63 }
 0x258   : > { %1348 = vmatpush.msrb.mxu0 %v1129_v7  ;;  %1368 = vmatpush.msrb.mxu1 %v1161_v19  ;;  %v1229_v7 = vld [vmem:[%s2311_s18 + $0x338] sm:$0xff] }
 0x25a   : > { %1349 = vmatpush.msrb.mxu0 %v1127_v12  ;;  %1369 = vmatpush.msrb.mxu1 %v1159_v24 }
 0x276   : > { %v945_v1 = vpop.f32.mrf.mxu0 }
 0x277   : > { %v946_v3 = vadd.f32 %v945_v1, %v920_v61  ;;  %v1235_v61 = vld [vmem:[%s2311_s18 + $0x368] sm:$0xff] }
 0x278   : > { %1403 = vmatpush.msrb.mxu3 %v1235_v61  ;;  %v1231_v1 = vld [vmem:[%s2311_s18 + $0x348] sm:$0xff] }
 0x279   : > { %v965_v10 = vpop.f32.mrf.mxu1 }
 0x27a   : > { %v966_v14 = vadd.f32 %v965_v10, %v946_v3  ;;  %v985_v15 = vpop.f32.mrf.mxu2  ;;  %1404 = vmatpush.msrb.mxu3 %v1233_v0  ;;  %v1227_v10 = vld [vmem:[%s2311_s18 + $0x328] sm:$0xff] }
 0x27b   : > { %v986_v17 = vadd.f32 %v985_v15, %v921_v4  ;;  %v1193_v4 = vld [vmem:[%s2311_s18 + $0x218] sm:$0xff] }
 0x27c   : > { %v1092_v20 = vmul.f32 0.044715, %v966_v14  ;;  %v1088_v51 = vmul.f32 0.5, %v966_v14  ;;  %1405 = vmatpush.msrb.mxu3 %v1231_v1  ;;  %1388 = vmatpush.msrb.mxu2 %v1193_v4 }
 0x27d   : > { %v1005_v22 = vpop.f32.mrf.mxu3 }
 0x27e   : > { %v1096_v25 = vmul.f32 %v1092_v20, %v966_v14  ;;  %v1006_v26 = vadd.f32 %v1005_v22, %v986_v17  ;;  %1406 = vmatpush.msrb.mxu3 %v1229_v7  ;;  %1389 = vmatpush.msrb.mxu2 %v1191_v6 }
 0x280   : > { %v1100_v29 = vmul.f32 %v1096_v25, %v966_v14  ;;  %v1093_v30 = vmul.f32 0.044715, %v1006_v26  ;;  %v1089_v58 = vmul.f32 0.5, %v1006_v26  ;;  %1407 = vmatpush.msrb.mxu3 %v1227_v10 }
 0x282   : > { %v1097_v33 = vmul.f32 %v1093_v30, %v1006_v26  ;;  %v1104_v34 = vadd.f32 %v1100_v29, %v966_v14  ;;  %v1223_v14 = vld [vmem:[%s2311_s18 + $0x308] sm:$0xff]  ;;  %1408 = vmatpush.msrb.mxu3 %v1225_v11 }
 0x284   : > { %v1101_v37 = vmul.f32 %v1097_v33, %v1006_v26  ;;  %v1108_v38 = vmul.f32 0.7978846, %v1104_v34  ;;  %1409 = vmatpush.msrb.mxu3 %v1223_v14 }
 0x286   : > { %1748 = vtanh.f32 %v1108_v38  ;;  %v1105_v45 = vadd.f32 %v1101_v37, %v1006_v26 }
 0x288   : > { %v1109_v48 = vmul.f32 0.7978846, %v1105_v45 }
 0x28a   : > { %1750 = vtanh.f32 %v1109_v48 }
 0x28c   : > { %v1749_v44 = vpop.eup %1748 }
 0x28d   : > { %v1116_v55 = vadd.f32 1.0, %v1749_v44 }
 0x28f   : > { %v1120_v57 = vmul.f32 %v1116_v55, %v1088_v51  ;;  %v1125_v51 = vld [vmem:[#allocation3] sm:$0xff] }
 0x290   : > { %v1751_v59 = vpop.eup %1750 }
 0x291   : > { %1270 = vmatmul.f32.vlgmr.msra.gmra.mxu0 %v1120_v57  ;;  %v1117_v62 = vadd.f32 1.0, %v1751_v59 }
 0x293   : > { %v1121_v3 = vmul.f32 %v1117_v62, %v1089_v58 }
 0x295   : > { %1290 = vmatmul.f32.vlgmr.msra.gmra.mxu1 %v1121_v3 }
 0x296   : > { %v1025_v5 = vpop.f32.mrf.mxu0 }
 0x297   : > { %v1026_v8 = vadd.f32 %v1025_v5, %v922_v2 }
 0x298   : > { %v1045_v9 = vpop.f32.mrf.mxu1 }
 0x299   : > { %v1046_v12 = vadd.f32 %v1045_v9, %v1026_v8  ;;  %1350 = vmatmul.f32.vlgmr.msrb.gmra.mxu0 %v1120_v57 }
 0x29b   : > { %v1094_v15 = vmul.f32 0.044715, %v1046_v12  ;;  %v1090_v29 = vmul.f32 0.5, %v1046_v12 }
 0x29c   : > { %v1065_v16 = vpop.f32.mrf.mxu2 }
 0x29d   : > { %v1098_v17 = vmul.f32 %v1094_v15, %v1046_v12  ;;  %v1066_v18 = vadd.f32 %v1065_v16, %v923_v13  ;;  %1370 = vmatmul.f32.vlgmr.msrb.gmra.mxu1 %v1121_v3 }
 0x29e   : > { %v1085_v19 = vpop.f32.mrf.mxu3 }
 0x29f   : > { %v1102_v20 = vmul.f32 %v1098_v17, %v1046_v12  ;;  %v1086_v21 = vadd.f32 %v1085_v19, %v1066_v18 }
 0x2a1   : > { %v1095_v22 = vmul.f32 0.044715, %v1086_v21  ;;  %v1106_v23 = vadd.f32 %v1102_v20, %v1046_v12  ;;  %v1091_v33 = vmul.f32 0.5, %v1086_v21 }
 0x2a3   : > { %v1099_v24 = vmul.f32 %v1095_v22, %v1086_v21  ;;  %v1110_v25 = vmul.f32 0.7978846, %v1106_v23 }
 0x2a5   : > { %v1103_v26 = vmul.f32 %v1099_v24, %v1086_v21  ;;  %1752 = vtanh.f32 %v1110_v25 }
 0x2a7   : > { %v1107_v27 = vadd.f32 %v1103_v26, %v1086_v21 }
 0x2a9   : > { %v1111_v54 = vmul.f32 0.7978846, %v1107_v27 }
 0x2ab   : > { %v1753_v28 = vpop.eup %1752  ;;  %1754 = vtanh.f32 %v1111_v54 }
 0x2ac   : > { %v1118_v30 = vadd.f32 1.0, %v1753_v28 }
 0x2ae   : > { %v1122_v31 = vmul.f32 %v1118_v30, %v1090_v29 }
 0x2b0   : > { %1310 = vmatmul.f32.vlgmr.msra.gmra.mxu2 %v1122_v31 }
 0x2b1   : > { %v1755_v32 = vpop.eup %1754 }
 0x2b2   : > { %v1119_v34 = vadd.f32 1.0, %v1755_v32 }
 0x2b4   : > { %v1123_v35 = vmul.f32 %v1119_v34, %v1091_v33 }
 0x2b6   : > { %1330 = vmatmul.f32.vlgmr.msra.gmra.mxu3 %v1123_v35 }
 0x2b8   : > { %1390 = vmatmul.f32.vlgmr.msrb.gmra.mxu2 %v1122_v31 }
 0x2be   : > { %1410 = vmatmul.f32.vlgmr.msrb.gmra.mxu3 %v1123_v35 }
 0x30e   : > { %v1271_v37 = vpop.f32.mrf.mxu0 }
 0x312   : > { %v1291_v36 = vpop.f32.mrf.mxu1 }
 0x313   : > { %v1292_v40 = vadd.f32 %v1291_v36, %v1271_v37 }
 0x316   : > { %v1351_v48 = vpop.f32.mrf.mxu0 }
 0x31a   : > { %v1371_v46 = vpop.f32.mrf.mxu1 }
 0x31b   : > { %v1372_v39 = vadd.f32 %v1371_v46, %v1351_v48 }
 0x333   : > { %v1311_v38 = vpop.f32.mrf.mxu2 }
 0x334   : > { %v1312_v41 = vadd.f32 %v1311_v38, %v1292_v40 }
 0x339   : > { %v1331_v43 = vpop.f32.mrf.mxu3 }
 0x33a   : > { %v1332_v45 = vadd.f32 %v1331_v43, %v1312_v41 }
 0x33b   : > { %v1391_v49 = vpop.f32.mrf.mxu2 }
 0x33c   : > { %v1414_v47 = vadd.f32 %v1332_v45, %v1124_v42  ;;  %v1392_v50 = vadd.f32 %v1391_v49, %v1372_v39 }
 0x33e   : > { %1416 = vst [vmem:[#allocation3 + $0x8] sm:$0xff] %v1414_v47 }
 0x341   : > { %v1411_v52 = vpop.f32.mrf.mxu3 }
 0x342   : > { %v1412_v44 = vadd.f32 %v1411_v52, %v1392_v50  ;;  %1421 = sbr.rel (%p1645_p7) target bundleno = 853 (0x355), region = 83 }
 0x344   : > { %v1415_v53 = vadd.f32 %v1412_v44, %v1125_v51 }
 0x346   : > { %1417 = vst [vmem:[#allocation3] sm:$0xff] %v1415_v53 }
 0x347   : > { %v1422_v55 = vld [vmem:[#allocation3 + $0x8] sm:$0xff]  ;;  %v1424_v56 = vld [vmem:[%s2680_s7] sm:$0x3]  ;;  %v1433_v2 = vld [vmem:[%s2290_s30 + $0x8] sm:$0xff] }
 0x348   : > { %v1426_v57 = vperm.slane %v1424_v56, 0  ;;  %v1434_v58 = vld [vmem:[%s715_s16] sm:$0x3]  ;;  %v1427_v60 = vperm.slane %v1424_v56, 1 }
 0x349   : > { %v1436_v61 = vperm.slane %v1434_v58, 0  ;;  %v1437_v62 = vperm.slane %v1434_v58, 1  ;;  %v1432_v1 = vld [vmem:[%s2290_s30] sm:$0xff] }
 0x34a   : > { %v1430_v63 = vadd.f32 %v1426_v57, %v1422_v55 }
 0x34c   : > { %v1440_v3 = vmul.f32 %v1436_v61, %v1430_v63 }
 0x34d   : > { %v1423_v59 = vld [vmem:[#allocation3] sm:$0xff] }
 0x34e   : > { %v1431_v0 = vadd.f32 %v1427_v60, %v1423_v59  ;;  %v1442_v5 = vadd.f32 %v1440_v3, %v1432_v1 }
 0x350   : > { %v1441_v4 = vmul.f32 %v1437_v62, %v1431_v0  ;;  %1444 = vst [vmem:[%s2315_s9] sm:$0xff] %v1442_v5 }
 0x352   : > { %v1443_v6 = vadd.f32 %v1441_v4, %v1433_v2 }
 0x354   : > { %1445 = vst [vmem:[%s2315_s9 + $0x8] sm:$0xff] %v1443_v6 }
 0x355 PF: > { %s1654_s4 = sshll.u32 %s1854_s11, 4  ;;  %s2713_s24 = sld [smem:[#allocation21_spill]] }
 0x356   : > { %s1462_s12 = sshll.u32 %s2315_s9, 4  ;;  %s2714_s30 = sand.u32 1, %s1834_s28   ;;  %s1463_s12 = int_to_ptr.vmem [resolvable:$true] %s1462_s12 }
 0x357   : > { %s1447_s21 = scalar_lea.sflag [#allocation6], %s2714_s30 }
 0x35b   : > { %s1460_s16 = scalar_lea.hbm %s2713_s24, %s1654_s4  ;;  %s1776_s11 = scalar_lea.hbm %s2713_s24, 32 }
 0x35c   : > { %s1464_s13 = sshll.u32 %s1460_s16, 4  ;;  %s1465_s13 = int_to_ptr.hbm [resolvable:$true] %s1464_s13 }
 0x35d   : > { %s1770_s18 = sshra.s32 %s1465_s13, 4  ;;  %s1771_s18 = int_to_ptr.hbm [resolvable:$true] %s1770_s18 }
 0x35e   : > { %s1772_s17 = scalar_lea.hbm %s1771_s18, 16  ;;  %p1777_p13 = scmp.lt.s32.totalorder %s1771_s18, %s2713_s24 }
 0x35f   : > { %p1773_p8 = scmp.ne.s32.totalorder %s1771_s18, %s1772_s17  ;;  %p1778_p0 = scmp.lt.s32.totalorder %s1776_s11, %s1772_s17 }
 0x361   : > { %p1774_p9 = pnand %p1773_p8, %p1994_p10  ;;  %p1779_p1 = por %p1778_p0, %p1777_p13 }
 0x363   : > { %p1775_p11 = pneg %p1774_p9 }
 0x365   : > { %p1780_p2 = pnand %p1779_p1, %p1775_p11 }
 0x367   : > { %1783 = shalt.err (!%p1780_p2)
}
 0x368   : > { %1655 = dma.vmem_to_hbm [thread:$0]  (%p1994_p10), %s1463_s12, 256, %s1465_s13, %s1447_s21  }
 0x369 PF: > { %s2715_s9 = sld [smem:[#allocation13_spill]] }
 0x36a   : > { %s2716_s29 = sld [smem:[#allocation8_spill]] }
 0x36f   : > { %p1661_p3 = scmp.ge.s32.totalorder %s2715_s9, 2 }
 0x370   : > { %s1476_s26 = sand.u32 1, %s2716_s29  }
 0x371   : > { %p1658_p4 = pnand %p1661_p3, %p2001_p12  ;;  %s1477_s20 = scalar_lea.sflag [#allocation6], %s1476_s26 }
 0x373   : > { %p1659_p5 = pneg %p1658_p4 }
 0x375   : > { %1825 = dma.done.wait (%p1659_p5), %s1477_s20, 256  }
 0x376   : > { %1827 = vsyncadd (%p1659_p5), %s1477_s20, 4294967040  ;;  %s21_s14 = sadd.s32 1, %s2715_s9   ;;  %s2718_s22 = sld [smem:[#allocation9_spill]] }
 0x377   : > { %p18_p6 = scmp.ge.s32.totalorder %s21_s14, 6   ;;  %s2719_s29 = sld [smem:[#allocation17_spill]] }
 0x378   : > { %s2720_s30 = sld [smem:[#allocation10_spill]]  ;;  %s2726_s27 = smov %s1834_s28 }
 0x379   : > { %s2721_s9 = sld [smem:[#allocation16_spill]]  ;;  %20 = sbr.rel (!%p18_p6) target bundleno = 10 (0xa), region = 141 }
 0x37a   : > { %s2722_s10 = sld [smem:[#allocation11_spill]] }
 0x37b   : > { %s2723_s11 = sld [smem:[#allocation12_spill]] }
 0x37c   : > { %s2724_s12 = sld [smem:[#allocation14_spill]]  ;;  %s2727_s28 = smov %s2718_s22 }
 0x37d   : > { %s2725_s13 = sld [smem:[#allocation15_spill]] }
 0x37e   :  { %1483 = vsyncpa [#allocation6], 1 }
 0x37f   :  { %1485 = vsyncpa [#allocation6 + $0x1], 1 }

</bundles_post_ra>
